<compile_context>
chip_gen: v7x
topology: tpu7x:2x2x1
jax: 0.10.0
libtpu: 0.0.40
codegen_flags: <defaults>
</compile_context>

<pallas_src>
import functools
import numpy as np
import jax
import jax.numpy as jnp
from jax.experimental import pallas as pl
from jax.experimental.pallas import tpu as pltpu

N_FFT = 400
HOP = 160
N_FREQ = N_FFT // 2 + 1          # 201 (onesided)
NFP = 256                        # freq bins padded to a lane multiple
C = 16                           # lcnn channels
TT = 32                          # time frames per conv tile
TM = 256                         # frame rows per spectrogram tile


# --------------------------------------------------------------------------- #
# Kernel 1: power spectrogram  (frames @ [cos|sin] basis, bf16 -> f32)
# --------------------------------------------------------------------------- #
def _spectrogram_kernel(frames_ref, basis_ref, out_ref):
    d = jnp.dot(frames_ref[...], basis_ref[...],
                preferred_element_type=jnp.float32)          # (TM, 2*NFP)
    re = d[:, :NFP]
    im = d[:, NFP:]
    out_ref[...] = re * re + im * im                         # power = |X|^2


def spectrogram_pallas(frames2d, basis):
    mp = frames2d.shape[0]                                   # multiple of TM
    return pl.pallas_call(
        _spectrogram_kernel,
        out_shape=jax.ShapeDtypeStruct((mp, NFP), jnp.float32),
        grid_spec=pltpu.PrefetchScalarGridSpec(
            num_scalar_prefetch=0,
            grid=(mp // TM,),
            in_specs=[pl.BlockSpec((TM, N_FFT), lambda i: (i, 0)),
                      pl.BlockSpec((N_FFT, 2 * NFP), lambda i: (0, 0))],
            out_specs=pl.BlockSpec((TM, NFP), lambda i: (i, 0)),
        ),
        compiler_params=pltpu.CompilerParams(
            dimension_semantics=("parallel",)),
    )(frames2d, basis)


# --------------------------------------------------------------------------- #
# Kernel 2: fused conv1 + conv2 + global avg pool + fc1/fc2
#   layouts: channel-major, flattened (time*freq) on the lane axis (lane dense)
# --------------------------------------------------------------------------- #
def _conv_pool_fc_kernel(p1_ref, w1_ref, b1_ref, w2_ref, b2_ref,
                         fw1_ref, fb1_ref, fw2_ref, fb2_ref,
                         o1_ref, o2_ref,
                         h1buf, csum, *, F, inv_hw):
    t = pl.program_id(1)
    NT1 = TT + 2
    M1 = NT1 * NFP                    # conv1 output positions in this tile (+halo)
    M2 = TT * NFP                     # conv2 output positions in this tile
    PAD = 128                         # zero guard lanes around h1 (for tap shifts)

    @pl.when(t == 0)
    def _init():
        csum[...] = jnp.zeros_like(csum)
        h1buf[...] = jnp.zeros_like(h1buf)

    # ---- conv1 (C_in = 1): single MXU matmul over the 9 taps ----------------
    p1 = p1_ref[0, 0]                                        # (9, M1) bf16
    h1 = jnp.dot(w1_ref[...], p1,
                 preferred_element_type=jnp.float32)         # (C, M1) f32
    h1 = jnp.maximum(h1 + b1_ref[...], 0.0)
    # zero conv1 rows outside the real image (time in [0,F), freq < 201); this
    # both matches conv2's zero padding and makes the flat-shift trick exact.
    r1 = jax.lax.broadcasted_iota(jnp.int32, (1, M1), 1)
    g1 = t * TT - 1 + (r1 >> 8)                              # global time frame
    m1 = ((g1 >= 0) & (g1 < F) & ((r1 & (NFP - 1)) < N_FREQ)).astype(jnp.float32)
    h1buf[:, PAD:PAD + M1] = (h1 * m1).astype(jnp.bfloat16)

    # ---- conv2: 9 shifted (C,C) @ (C,M2) matmuls on VMEM-resident h1 --------
    acc = None
    for dy in range(3):
        for dx in range(3):
            k = dy * 3 + dx
            s = PAD + dy * NFP + dx - 1                      # static lane offset
            h1s = h1buf[:, s:s + M2]                         # (C, M2) bf16
            part = jnp.dot(w2_ref[k], h1s,
                           preferred_element_type=jnp.float32)
            acc = part if acc is None else acc + part
    h2 = jnp.maximum(acc + b2_ref[...], 0.0)                 # (C, M2) f32

    # ---- global average pool: masked partial sums accumulated over t --------
    r2 = jax.lax.broadcasted_iota(jnp.int32, (1, M2), 1)
    m2 = (((t * TT + (r2 >> 8)) < F) &
          ((r2 & (NFP - 1)) < N_FREQ)).astype(jnp.float32)
    csum[...] += jnp.sum(h2 * m2, axis=1, keepdims=True)     # (C, 1)

    # ---- FC heads on the last time tile (lane-dense 128-wide outputs) -------
    @pl.when(t == pl.num_programs(1) - 1)
    def _finalize():
        pooled = csum[...] * inv_hw                          # (C, 1)
        o1_ref[0] = jnp.sum(pooled * fw1_ref[...], axis=0,
                            keepdims=True) + fb1_ref[...]    # (1, 128)
        o2_ref[0] = jnp.sum(pooled * fw2_ref[...], axis=0,
                            keepdims=True) + fb2_ref[...]    # (1, 128)


def conv_pool_fc_pallas(P1, w1, b1, w2, b2, fw1, fb1, fw2, fb2, *, F, T_tiles):
    B = P1.shape[0]
    M1 = (TT + 2) * NFP
    kernel = functools.partial(_conv_pool_fc_kernel, F=F,
                               inv_hw=1.0 / float(N_FREQ * F))
    return pl.pallas_call(
        kernel,
        out_shape=(jax.ShapeDtypeStruct((B, 1, 128), jnp.float32),
                   jax.ShapeDtypeStruct((B, 1, 128), jnp.float32)),
        grid_spec=pltpu.PrefetchScalarGridSpec(
            num_scalar_prefetch=0,
            grid=(B, T_tiles),
            in_specs=[
                pl.BlockSpec((1, 1, 9, M1), lambda b, t: (b, t, 0, 0)),
                pl.BlockSpec((C, 9),        lambda b, t: (0, 0)),
                pl.BlockSpec((C, 1),        lambda b, t: (0, 0)),
                pl.BlockSpec((9, C, C),     lambda b, t: (0, 0, 0)),
                pl.BlockSpec((C, 1),        lambda b, t: (0, 0)),
                pl.BlockSpec((C, 128),      lambda b, t: (0, 0)),
                pl.BlockSpec((1, 128),      lambda b, t: (0, 0)),
                pl.BlockSpec((C, 128),      lambda b, t: (0, 0)),
                pl.BlockSpec((1, 128),      lambda b, t: (0, 0)),
            ],
            out_specs=(pl.BlockSpec((1, 1, 128), lambda b, t: (b, 0, 0)),
                       pl.BlockSpec((1, 1, 128), lambda b, t: (b, 0, 0))),
            scratch_shapes=[pltpu.VMEM((C, 128 + M1 + 128), jnp.bfloat16),
                            pltpu.VMEM((C, 1), jnp.float32)],
        ),
        compiler_params=pltpu.CompilerParams(
            dimension_semantics=("parallel", "arbitrary")),
    )(P1, w1, b1, w2, b2, fw1, fb1, fw2, fb2)


# --------------------------------------------------------------------------- #
# JAX glue: STFT basis / framing / conv1 patch windows / parameters
# --------------------------------------------------------------------------- #
def _stft_basis():
    n = np.arange(N_FFT, dtype=np.float64)
    f = np.arange(N_FREQ, dtype=np.float64)
    win = 0.5 * (1.0 - np.cos(2.0 * np.pi * n / N_FFT))      # periodic Hann
    ang = 2.0 * np.pi * np.outer(n, f) / N_FFT
    basis = np.zeros((N_FFT, 2 * NFP), np.float32)
    basis[:, :N_FREQ] = win[:, None] * np.cos(ang)
    basis[:, NFP:NFP + N_FREQ] = win[:, None] * np.sin(ang)
    return jnp.asarray(basis).astype(jnp.bfloat16)


def _frame_signal(x):
    B, L = x.shape
    pad = N_FFT // 2
    xp = jnp.pad(x, ((0, 0), (pad, pad)), mode="reflect")    # center=True
    n_frames = 1 + L // HOP
    idx = jnp.arange(n_frames)[:, None] * HOP + jnp.arange(N_FFT)[None, :]
    return xp[:, idx], n_frames                              # (B, F, n_fft)


def init_params(key, lcnn_channels=16, linear1_out=2, linear2_out=10):
    ks = jax.random.split(key, 8)
    p = {}
    # conv taps ordered k = 3*d_time + d_freq (spatially transposed w.r.t.
    # PyTorch's (cout,cin,kh_freq,kw_time); equivalent for random weights —
    # permute when porting real torch weights).  Linear weights are (in, out).
    p["conv1_w"] = 0.2 * jax.random.normal(ks[0], (lcnn_channels, 9), jnp.float32)
    p["conv1_b"] = 0.1 * jax.random.normal(ks[1], (lcnn_channels, 1), jnp.float32)
    p["conv2_w"] = 0.2 * jax.random.normal(ks[2], (9, lcnn_channels, lcnn_channels), jnp.float32)
    p["conv2_b"] = 0.1 * jax.random.normal(ks[3], (lcnn_channels, 1), jnp.float32)
    p["fc1_w"] = 0.2 * jax.random.normal(ks[4], (lcnn_channels, linear1_out), jnp.float32)
    p["fc1_b"] = 0.1 * jax.random.normal(ks[5], (linear1_out,), jnp.float32)
    p["fc2_w"] = 0.2 * jax.random.normal(ks[6], (lcnn_channels, linear2_out), jnp.float32)
    p["fc2_b"] = 0.1 * jax.random.normal(ks[7], (linear2_out,), jnp.float32)
    return p


@jax.jit
def model_forward(params, x):
    B, L = x.shape

    # --- DSP front end: tiled power-spectrogram kernel (time-major output) ---
    frames, F = _frame_signal(x)                             # (B, F, 400)
    M = B * F
    Mp = pl.cdiv(M, TM) * TM
    frames2d = frames.reshape(M, N_FFT).astype(jnp.bfloat16)
    frames2d = jnp.pad(frames2d, ((0, Mp - M), (0, 0)))
    power = spectrogram_pallas(frames2d, _stft_basis())      # (Mp, 256) f32
    spec = power[:M].reshape(B, F, NFP)                      # freq 201..255 == 0

    # --- conv1 patch windows (9 shifted copies of the 1-channel spectrogram) -
    T_tiles = pl.cdiv(F, TT)
    F_pad = T_tiles * TT
    NT1 = TT + 2
    sp = jnp.pad(spec, ((0, 0), (2, F_pad + 2 - F), (1, 1))).astype(jnp.bfloat16)
    shifted = [sp[:, dy:dy + F_pad + 2, dx:dx + NFP]
               for dy in range(3) for dx in range(3)]
    full = jnp.stack(shifted, axis=1)                        # (B, 9, F_pad+2, 256)
    widx = jnp.arange(T_tiles)[:, None] * TT + jnp.arange(NT1)[None, :]
    win = full[:, :, widx, :]                                # (B, 9, T, NT1, 256)
    P1 = win.transpose(0, 2, 1, 3, 4).reshape(B, T_tiles, 9, NT1 * NFP)

    # --- fused conv1 + conv2 + pool + FC heads --------------------------------
    n1 = params["fc1_w"].shape[1]
    n2 = params["fc2_w"].shape[1]
    fw1 = jnp.zeros((C, 128), jnp.float32).at[:, :n1].set(params["fc1_w"])
    fb1 = jnp.zeros((1, 128), jnp.float32).at[0, :n1].set(params["fc1_b"])
    fw2 = jnp.zeros((C, 128), jnp.float32).at[:, :n2].set(params["fc2_w"])
    fb2 = jnp.zeros((1, 128), jnp.float32).at[0, :n2].set(params["fc2_b"])

    o1, o2 = conv_pool_fc_pallas(
        P1,
        params["conv1_w"].astype(jnp.bfloat16), params["conv1_b"],
        params["conv2_w"].astype(jnp.bfloat16), params["conv2_b"],
        fw1, fb1, fw2, fb2, F=F, T_tiles=T_tiles)

    return o1[:, 0, :n1], o2[:, 0, :n2]


if __name__ == "__main__":
    key = jax.random.PRNGKey(0)
    pkey, xkey = jax.random.split(key)
    params = init_params(pkey)

    # small waveform: batch=2, 1600 samples -> 11 time frames, 201 freq bins
    x = jax.random.normal(xkey, (2, 1600), jnp.float32)

    x1, x2 = model_forward(params, x)
    jax.block_until_ready((x1, x2))
    assert x1.shape == (2, 2) and x2.shape == (2, 10)
    print("KERNEL_OK")
</pallas_src>

<mosaic_0001>
module attributes {stable_mosaic.version = 11 : i64} {
  func.func @_spectrogram_kernel(%arg0: i32, %arg1: memref<256x400xbf16, #tpu.memory_space<vmem>>, %arg2: memref<400x512xbf16, #tpu.memory_space<vmem>>, %arg3: memref<256x256xf32, #tpu.memory_space<vmem>>) attributes {dimension_semantics = [#tpu.dimension_semantics<parallel>], iteration_bounds = array<i64: 1>, scalar_prefetch = 0 : i64, scratch_operands = 0 : i64, tpu.core_type = #tpu.core_type<tc>, window_params = [{transform_indices = @transform_0, window_bounds = array<i64: 256, 400>}, {pipeline_mode = #tpu.pipeline_mode<synchronous>, transform_indices = @transform_1, window_bounds = array<i64: 400, 512>}, {transform_indices = @transform_2, window_bounds = array<i64: 256, 256>}]} {
    %c0 = arith.constant 0 : index
    %c0_0 = arith.constant 0 : index
    %0 = vector.load %arg1[%c0, %c0_0] : memref<256x400xbf16, #tpu.memory_space<vmem>>, vector<256x400xbf16>
    %c0_1 = arith.constant 0 : index
    %c0_2 = arith.constant 0 : index
    %1 = vector.load %arg2[%c0_1, %c0_2] : memref<400x512xbf16, #tpu.memory_space<vmem>>, vector<400x512xbf16>
    %cst = arith.constant dense<0.000000e+00> : vector<256x512xf32>
    %2 = tpu.matmul %0, %1, %cst {dimension_numbers = #tpu.dot_dimension_numbers<[1], [0], [0], [1], [0, 0, 1, 1], [], []>} : vector<256x400xbf16>, vector<400x512xbf16>, vector<256x512xf32> -> vector<256x512xf32>
    %3 = vector.extract_strided_slice %2 {offsets = [0, 0], sizes = [256, 256], strides = [1, 1]} : vector<256x512xf32> to vector<256x256xf32>
    %4 = vector.extract_strided_slice %2 {offsets = [0, 256], sizes = [256, 256], strides = [1, 1]} : vector<256x512xf32> to vector<256x256xf32>
    %5 = arith.mulf %3, %3 : vector<256x256xf32>
    %6 = arith.mulf %4, %4 : vector<256x256xf32>
    %7 = arith.addf %5, %6 : vector<256x256xf32>
    %c0_3 = arith.constant 0 : index
    %c0_4 = arith.constant 0 : index
    %8 = vector.load %arg3[%c0_3, %c0_4] : memref<256x256xf32, #tpu.memory_space<vmem>>, vector<256x256xf32>
    tpu.vector_store %arg3[%c0_3, %c0_4], %7 {strides = array<i32>} : memref<256x256xf32, #tpu.memory_space<vmem>>, vector<256x256xf32>,
    return
  }
  func.func @transform_0(%arg0: i32) -> (i32, i32) {
    %c0_i32 = arith.constant 0 : i32
    %c0_i32_0 = arith.constant 0 : i32
    return %arg0, %c0_i32 : i32, i32
  }
  func.func @transform_1(%arg0: i32) -> (i32, i32) {
    %c0_i32 = arith.constant 0 : i32
    %c0_i32_0 = arith.constant 0 : i32
    %c0_i32_1 = arith.constant 0 : i32
    return %c0_i32, %c0_i32_0 : i32, i32
  }
  func.func @transform_2(%arg0: i32) -> (i32, i32) {
    %c0_i32 = arith.constant 0 : i32
    %c0_i32_0 = arith.constant 0 : i32
    return %arg0, %c0_i32 : i32, i32
  }
}

module attributes {stable_mosaic.version = 11 : i64} {
  func.func @_conv_pool_fc_kernel(%arg0: i32, %arg1: i32, %arg2: memref<1x1x9x8704xbf16, #tpu.memory_space<vmem>>, %arg3: memref<16x9xbf16, #tpu.memory_space<vmem>>, %arg4: memref<16x1xf32, #tpu.memory_space<vmem>>, %arg5: memref<9x16x16xbf16, #tpu.memory_space<vmem>>, %arg6: memref<16x1xf32, #tpu.memory_space<vmem>>, %arg7: memref<16x128xf32, #tpu.memory_space<vmem>>, %arg8: memref<1x128xf32, #tpu.memory_space<vmem>>, %arg9: memref<16x128xf32, #tpu.memory_space<vmem>>, %arg10: memref<1x128xf32, #tpu.memory_space<vmem>>, %arg11: memref<1x1x128xf32, #tpu.memory_space<vmem>>, %arg12: memref<1x1x128xf32, #tpu.memory_space<vmem>>, %arg13: memref<16x8960xbf16, #tpu.memory_space<vmem>>, %arg14: memref<16x1xf32, #tpu.memory_space<vmem>>) attributes {dimension_semantics = [#tpu.dimension_semantics<parallel>, #tpu.dimension_semantics<arbitrary>], iteration_bounds = array<i64: 2, 1>, scalar_prefetch = 0 : i64, scratch_operands = 2 : i64, tpu.core_type = #tpu.core_type<tc>, window_params = [{transform_indices = @transform_0, window_bounds = array<i64: 1, 1, 9, 8704>}, {pipeline_mode = #tpu.pipeline_mode<synchronous>, transform_indices = @transform_1, window_bounds = array<i64: 16, 9>}, {pipeline_mode = #tpu.pipeline_mode<synchronous>, transform_indices = @transform_2, window_bounds = array<i64: 16, 1>}, {pipeline_mode = #tpu.pipeline_mode<synchronous>, transform_indices = @transform_3, window_bounds = array<i64: 9, 16, 16>}, {pipeline_mode = #tpu.pipeline_mode<synchronous>, transform_indices = @transform_4, window_bounds = array<i64: 16, 1>}, {pipeline_mode = #tpu.pipeline_mode<synchronous>, transform_indices = @transform_5, window_bounds = array<i64: 16, 128>}, {pipeline_mode = #tpu.pipeline_mode<synchronous>, transform_indices = @transform_6, window_bounds = array<i64: 1, 128>}, {pipeline_mode = #tpu.pipeline_mode<synchronous>, transform_indices = @transform_7, window_bounds = array<i64: 16, 128>}, {pipeline_mode = #tpu.pipeline_mode<synchronous>, transform_indices = @transform_8, window_bounds = array<i64: 1, 128>}, {transform_indices = @transform_9, window_bounds = array<i64: 1, 1, 128>}, {transform_indices = @transform_10, window_bounds = array<i64: 1, 1, 128>}]} {
    %c0_i32 = arith.constant 0 : i32
    %0 = arith.cmpi eq, %arg1, %c0_i32 : i32
    %1 = arith.extui %0 : i1 to i32
    %c0_i32_0 = arith.constant 0 : i32
    %2 = arith.cmpi ne, %1, %c0_i32_0 : i32
    scf.if %2 {
      %cst_64 = arith.constant 0.000000e+00 : f32
      %109 = vector.broadcast %cst_64 : f32 to vector<16x1xf32>
      %c0_65 = arith.constant 0 : index
      %c0_66 = arith.constant 0 : index
      %110 = vector.load %arg14[%c0_65, %c0_66] : memref<16x1xf32, #tpu.memory_space<vmem>>, vector<16x1xf32>
      tpu.vector_store %arg14[%c0_65, %c0_66], %109 {strides = array<i32>} : memref<16x1xf32, #tpu.memory_space<vmem>>, vector<16x1xf32>,
      %cst_67 = arith.constant 0.000000e+00 : bf16
      %111 = vector.broadcast %cst_67 : bf16 to vector<16x8960xbf16>
      %c0_68 = arith.constant 0 : index
      %c0_69 = arith.constant 0 : index
      %112 = vector.load %arg13[%c0_68, %c0_69] : memref<16x8960xbf16, #tpu.memory_space<vmem>>, vector<16x8960xbf16>
      tpu.vector_store %arg13[%c0_68, %c0_69], %111 {strides = array<i32>} : memref<16x8960xbf16, #tpu.memory_space<vmem>>, vector<16x8960xbf16>,
    } else {
    }
    %c0 = arith.constant 0 : index
    %c0_1 = arith.constant 0 : index
    %c0_2 = arith.constant 0 : index
    %c0_3 = arith.constant 0 : index
    %3 = vector.load %arg2[%c0, %c0_1, %c0_2, %c0_3] : memref<1x1x9x8704xbf16, #tpu.memory_space<vmem>>, vector<1x1x9x8704xbf16>
    %4 = vector.shape_cast %3 : vector<1x1x9x8704xbf16> to vector<9x8704xbf16>
    %c0_4 = arith.constant 0 : index
    %c0_5 = arith.constant 0 : index
    %5 = vector.load %arg3[%c0_4, %c0_5] : memref<16x9xbf16, #tpu.memory_space<vmem>>, vector<16x9xbf16>
    %cst = arith.constant dense<0.000000e+00> : vector<16x8704xf32>
    %6 = tpu.matmul %5, %4, %cst {dimension_numbers = #tpu.dot_dimension_numbers<[1], [0], [0], [1], [0, 0, 1, 1], [], []>} : vector<16x9xbf16>, vector<9x8704xbf16>, vector<16x8704xf32> -> vector<16x8704xf32>
    %c0_6 = arith.constant 0 : index
    %c0_7 = arith.constant 0 : index
    %7 = vector.load %arg4[%c0_6, %c0_7] : memref<16x1xf32, #tpu.memory_space<vmem>>, vector<16x1xf32>
    %8 = vector.broadcast %7 : vector<16x1xf32> to vector<16x8704xf32>
    %9 = arith.addf %6, %8 : vector<16x8704xf32>
    %cst_8 = arith.constant 0.000000e+00 : f32
    %10 = vector.broadcast %cst_8 : f32 to vector<16x8704xf32>
    %11 = arith.maximumf %9, %10 : vector<16x8704xf32>
    %12 = tpu.iota {dimensions = array<i32: 1>} : vector<1x8704xi32>
    %c32_i32 = arith.constant 32 : i32
    %13 = arith.muli %arg1, %c32_i32 : i32
    %c1_i32 = arith.constant 1 : i32
    %14 = arith.subi %13, %c1_i32 : i32
    %c8_i32 = arith.constant 8 : i32
    %15 = vector.broadcast %c8_i32 : i32 to vector<1x8704xi32>
    %16 = arith.shrsi %12, %15 : vector<1x8704xi32>
    %17 = vector.broadcast %14 : i32 to vector<1x8704xi32>
    %18 = arith.addi %17, %16 : vector<1x8704xi32>
    %c0_i32_9 = arith.constant 0 : i32
    %19 = vector.broadcast %c0_i32_9 : i32 to vector<1x8704xi32>
    %20 = arith.cmpi sge, %18, %19 : vector<1x8704xi32>
    %c11_i32 = arith.constant 11 : i32
    %21 = vector.broadcast %c11_i32 : i32 to vector<1x8704xi32>
    %22 = arith.cmpi slt, %18, %21 : vector<1x8704xi32>
    %23 = arith.andi %20, %22 : vector<1x8704xi1>
    %c255_i32 = arith.constant 255 : i32
    %24 = vector.broadcast %c255_i32 : i32 to vector<1x8704xi32>
    %25 = arith.andi %12, %24 : vector<1x8704xi32>
    %c201_i32 = arith.constant 201 : i32
    %26 = vector.broadcast %c201_i32 : i32 to vector<1x8704xi32>
    %27 = arith.cmpi slt, %25, %26 : vector<1x8704xi32>
    %28 = arith.andi %23, %27 : vector<1x8704xi1>
    %29 = arith.extui %28 : vector<1x8704xi1> to vector<1x8704xi32>
    %30 = arith.sitofp %29 : vector<1x8704xi32> to vector<1x8704xf32>
    %31 = vector.broadcast %30 : vector<1x8704xf32> to vector<16x8704xf32>
    %32 = arith.mulf %11, %31 : vector<16x8704xf32>
    %33 = arith.truncf %32 : vector<16x8704xf32> to vector<16x8704xbf16>
    %c0_10 = arith.constant 0 : index
    %c128 = arith.constant 128 : index
    %34 = vector.load %arg13[%c0_10, %c128] : memref<16x8960xbf16, #tpu.memory_space<vmem>>, vector<16x8704xbf16>
    tpu.vector_store %arg13[%c0_10, %c128], %33 {strides = array<i32>} : memref<16x8960xbf16, #tpu.memory_space<vmem>>, vector<16x8704xbf16>,
    %c0_11 = arith.constant 0 : index
    %c127 = arith.constant 127 : index
    %35 = vector.load %arg13[%c0_11, %c127] : memref<16x8960xbf16, #tpu.memory_space<vmem>>, vector<16x8192xbf16>
    %c0_12 = arith.constant 0 : index
    %c0_13 = arith.constant 0 : index
    %c0_14 = arith.constant 0 : index
    %36 = vector.load %arg5[%c0_12, %c0_13, %c0_14] : memref<9x16x16xbf16, #tpu.memory_space<vmem>>, vector<1x16x16xbf16>
    %37 = vector.shape_cast %36 : vector<1x16x16xbf16> to vector<16x16xbf16>
    %cst_15 = arith.constant dense<0.000000e+00> : vector<16x8192xf32>
    %38 = tpu.matmul %37, %35, %cst_15 {dimension_numbers = #tpu.dot_dimension_numbers<[1], [0], [0], [1], [0, 0, 1, 1], [], []>} : vector<16x16xbf16>, vector<16x8192xbf16>, vector<16x8192xf32> -> vector<16x8192xf32>
    %c0_16 = arith.constant 0 : index
    %c128_17 = arith.constant 128 : index
    %39 = vector.load %arg13[%c0_16, %c128_17] : memref<16x8960xbf16, #tpu.memory_space<vmem>>, vector<16x8192xbf16>
    %c1 = arith.constant 1 : index
    %c0_18 = arith.constant 0 : index
    %c0_19 = arith.constant 0 : index
    %40 = vector.load %arg5[%c1, %c0_18, %c0_19] : memref<9x16x16xbf16, #tpu.memory_space<vmem>>, vector<1x16x16xbf16>
    %41 = vector.shape_cast %40 : vector<1x16x16xbf16> to vector<16x16xbf16>
    %cst_20 = arith.constant dense<0.000000e+00> : vector<16x8192xf32>
    %42 = tpu.matmul %41, %39, %cst_20 {dimension_numbers = #tpu.dot_dimension_numbers<[1], [0], [0], [1], [0, 0, 1, 1], [], []>} : vector<16x16xbf16>, vector<16x8192xbf16>, vector<16x8192xf32> -> vector<16x8192xf32>
    %43 = arith.addf %38, %42 : vector<16x8192xf32>
    %c0_21 = arith.constant 0 : index
    %c129 = arith.constant 129 : index
    %44 = vector.load %arg13[%c0_21, %c129] : memref<16x8960xbf16, #tpu.memory_space<vmem>>, vector<16x8192xbf16>
    %c2 = arith.constant 2 : index
    %c0_22 = arith.constant 0 : index
    %c0_23 = arith.constant 0 : index
    %45 = vector.load %arg5[%c2, %c0_22, %c0_23] : memref<9x16x16xbf16, #tpu.memory_space<vmem>>, vector<1x16x16xbf16>
    %46 = vector.shape_cast %45 : vector<1x16x16xbf16> to vector<16x16xbf16>
    %cst_24 = arith.constant dense<0.000000e+00> : vector<16x8192xf32>
    %47 = tpu.matmul %46, %44, %cst_24 {dimension_numbers = #tpu.dot_dimension_numbers<[1], [0], [0], [1], [0, 0, 1, 1], [], []>} : vector<16x16xbf16>, vector<16x8192xbf16>, vector<16x8192xf32> -> vector<16x8192xf32>
    %48 = arith.addf %43, %47 : vector<16x8192xf32>
    %c0_25 = arith.constant 0 : index
    %c383 = arith.constant 383 : index
    %49 = vector.load %arg13[%c0_25, %c383] : memref<16x8960xbf16, #tpu.memory_space<vmem>>, vector<16x8192xbf16>
    %c3 = arith.constant 3 : index
    %c0_26 = arith.constant 0 : index
    %c0_27 = arith.constant 0 : index
    %50 = vector.load %arg5[%c3, %c0_26, %c0_27] : memref<9x16x16xbf16, #tpu.memory_space<vmem>>, vector<1x16x16xbf16>
    %51 = vector.shape_cast %50 : vector<1x16x16xbf16> to vector<16x16xbf16>
    %cst_28 = arith.constant dense<0.000000e+00> : vector<16x8192xf32>
    %52 = tpu.matmul %51, %49, %cst_28 {dimension_numbers = #tpu.dot_dimension_numbers<[1], [0], [0], [1], [0, 0, 1, 1], [], []>} : vector<16x16xbf16>, vector<16x8192xbf16>, vector<16x8192xf32> -> vector<16x8192xf32>
    %53 = arith.addf %48, %52 : vector<16x8192xf32>
    %c0_29 = arith.constant 0 : index
    %c384 = arith.constant 384 : index
    %54 = vector.load %arg13[%c0_29, %c384] : memref<16x8960xbf16, #tpu.memory_space<vmem>>, vector<16x8192xbf16>
    %c4 = arith.constant 4 : index
    %c0_30 = arith.constant 0 : index
    %c0_31 = arith.constant 0 : index
    %55 = vector.load %arg5[%c4, %c0_30, %c0_31] : memref<9x16x16xbf16, #tpu.memory_space<vmem>>, vector<1x16x16xbf16>
    %56 = vector.shape_cast %55 : vector<1x16x16xbf16> to vector<16x16xbf16>
    %cst_32 = arith.constant dense<0.000000e+00> : vector<16x8192xf32>
    %57 = tpu.matmul %56, %54, %cst_32 {dimension_numbers = #tpu.dot_dimension_numbers<[1], [0], [0], [1], [0, 0, 1, 1], [], []>} : vector<16x16xbf16>, vector<16x8192xbf16>, vector<16x8192xf32> -> vector<16x8192xf32>
    %58 = arith.addf %53, %57 : vector<16x8192xf32>
    %c0_33 = arith.constant 0 : index
    %c385 = arith.constant 385 : index
    %59 = vector.load %arg13[%c0_33, %c385] : memref<16x8960xbf16, #tpu.memory_space<vmem>>, vector<16x8192xbf16>
    %c5 = arith.constant 5 : index
    %c0_34 = arith.constant 0 : index
    %c0_35 = arith.constant 0 : index
    %60 = vector.load %arg5[%c5, %c0_34, %c0_35] : memref<9x16x16xbf16, #tpu.memory_space<vmem>>, vector<1x16x16xbf16>
    %61 = vector.shape_cast %60 : vector<1x16x16xbf16> to vector<16x16xbf16>
    %cst_36 = arith.constant dense<0.000000e+00> : vector<16x8192xf32>
    %62 = tpu.matmul %61, %59, %cst_36 {dimension_numbers = #tpu.dot_dimension_numbers<[1], [0], [0], [1], [0, 0, 1, 1], [], []>} : vector<16x16xbf16>, vector<16x8192xbf16>, vector<16x8192xf32> -> vector<16x8192xf32>
    %63 = arith.addf %58, %62 : vector<16x8192xf32>
    %c0_37 = arith.constant 0 : index
    %c639 = arith.constant 639 : index
    %64 = vector.load %arg13[%c0_37, %c639] : memref<16x8960xbf16, #tpu.memory_space<vmem>>, vector<16x8192xbf16>
    %c6 = arith.constant 6 : index
    %c0_38 = arith.constant 0 : index
    %c0_39 = arith.constant 0 : index
    %65 = vector.load %arg5[%c6, %c0_38, %c0_39] : memref<9x16x16xbf16, #tpu.memory_space<vmem>>, vector<1x16x16xbf16>
    %66 = vector.shape_cast %65 : vector<1x16x16xbf16> to vector<16x16xbf16>
    %cst_40 = arith.constant dense<0.000000e+00> : vector<16x8192xf32>
    %67 = tpu.matmul %66, %64, %cst_40 {dimension_numbers = #tpu.dot_dimension_numbers<[1], [0], [0], [1], [0, 0, 1, 1], [], []>} : vector<16x16xbf16>, vector<16x8192xbf16>, vector<16x8192xf32> -> vector<16x8192xf32>
    %68 = arith.addf %63, %67 : vector<16x8192xf32>
    %c0_41 = arith.constant 0 : index
    %c640 = arith.constant 640 : index
    %69 = vector.load %arg13[%c0_41, %c640] : memref<16x8960xbf16, #tpu.memory_space<vmem>>, vector<16x8192xbf16>
    %c7 = arith.constant 7 : index
    %c0_42 = arith.constant 0 : index
    %c0_43 = arith.constant 0 : index
    %70 = vector.load %arg5[%c7, %c0_42, %c0_43] : memref<9x16x16xbf16, #tpu.memory_space<vmem>>, vector<1x16x16xbf16>
    %71 = vector.shape_cast %70 : vector<1x16x16xbf16> to vector<16x16xbf16>
    %cst_44 = arith.constant dense<0.000000e+00> : vector<16x8192xf32>
    %72 = tpu.matmul %71, %69, %cst_44 {dimension_numbers = #tpu.dot_dimension_numbers<[1], [0], [0], [1], [0, 0, 1, 1], [], []>} : vector<16x16xbf16>, vector<16x8192xbf16>, vector<16x8192xf32> -> vector<16x8192xf32>
    %73 = arith.addf %68, %72 : vector<16x8192xf32>
    %c0_45 = arith.constant 0 : index
    %c641 = arith.constant 641 : index
    %74 = vector.load %arg13[%c0_45, %c641] : memref<16x8960xbf16, #tpu.memory_space<vmem>>, vector<16x8192xbf16>
    %c8 = arith.constant 8 : index
    %c0_46 = arith.constant 0 : index
    %c0_47 = arith.constant 0 : index
    %75 = vector.load %arg5[%c8, %c0_46, %c0_47] : memref<9x16x16xbf16, #tpu.memory_space<vmem>>, vector<1x16x16xbf16>
    %76 = vector.shape_cast %75 : vector<1x16x16xbf16> to vector<16x16xbf16>
    %cst_48 = arith.constant dense<0.000000e+00> : vector<16x8192xf32>
    %77 = tpu.matmul %76, %74, %cst_48 {dimension_numbers = #tpu.dot_dimension_numbers<[1], [0], [0], [1], [0, 0, 1, 1], [], []>} : vector<16x16xbf16>, vector<16x8192xbf16>, vector<16x8192xf32> -> vector<16x8192xf32>
    %78 = arith.addf %73, %77 : vector<16x8192xf32>
    %c0_49 = arith.constant 0 : index
    %c0_50 = arith.constant 0 : index
    %79 = vector.load %arg6[%c0_49, %c0_50] : memref<16x1xf32, #tpu.memory_space<vmem>>, vector<16x1xf32>
    %80 = vector.broadcast %79 : vector<16x1xf32> to vector<16x8192xf32>
    %81 = arith.addf %78, %80 : vector<16x8192xf32>
    %cst_51 = arith.constant 0.000000e+00 : f32
    %82 = vector.broadcast %cst_51 : f32 to vector<16x8192xf32>
    %83 = arith.maximumf %81, %82 : vector<16x8192xf32>
    %84 = tpu.iota {dimensions = array<i32: 1>} : vector<1x8192xi32>
    %c32_i32_52 = arith.constant 32 : i32
    %85 = arith.muli %arg1, %c32_i32_52 : i32
    %c8_i32_53 = arith.constant 8 : i32
    %86 = vector.broadcast %c8_i32_53 : i32 to vector<1x8192xi32>
    %87 = arith.shrsi %84, %86 : vector<1x8192xi32>
    %88 = vector.broadcast %85 : i32 to vector<1x8192xi32>
    %89 = arith.addi %88, %87 : vector<1x8192xi32>
    %c11_i32_54 = arith.constant 11 : i32
    %90 = vector.broadcast %c11_i32_54 : i32 to vector<1x8192xi32>
    %91 = arith.cmpi slt, %89, %90 : vector<1x8192xi32>
    %c255_i32_55 = arith.constant 255 : i32
    %92 = vector.broadcast %c255_i32_55 : i32 to vector<1x8192xi32>
    %93 = arith.andi %84, %92 : vector<1x8192xi32>
    %c201_i32_56 = arith.constant 201 : i32
    %94 = vector.broadcast %c201_i32_56 : i32 to vector<1x8192xi32>
    %95 = arith.cmpi slt, %93, %94 : vector<1x8192xi32>
    %96 = arith.andi %91, %95 : vector<1x8192xi1>
    %97 = arith.extui %96 : vector<1x8192xi1> to vector<1x8192xi32>
    %98 = arith.sitofp %97 : vector<1x8192xi32> to vector<1x8192xf32>
    %c0_57 = arith.constant 0 : index
    %c0_58 = arith.constant 0 : index
    %99 = vector.load %arg14[%c0_57, %c0_58] : memref<16x1xf32, #tpu.memory_space<vmem>>, vector<16x1xf32>
    %100 = vector.broadcast %98 : vector<1x8192xf32> to vector<16x8192xf32>
    %101 = arith.mulf %83, %100 : vector<16x8192xf32>
    %cst_59 = arith.constant dense<0.000000e+00> : vector<16xf32>
    %102 = vector.multi_reduction <add>, %101, %cst_59 [1] : vector<16x8192xf32> to vector<16xf32>
    %103 = vector.shape_cast %102 : vector<16xf32> to vector<16x1xf32>
    %104 = arith.addf %99, %103 : vector<16x1xf32>
    %c0_60 = arith.constant 0 : index
    %c0_61 = arith.constant 0 : index
    %105 = vector.load %arg14[%c0_60, %c0_61] : memref<16x1xf32, #tpu.memory_space<vmem>>, vector<16x1xf32>
    tpu.vector_store %arg14[%c0_60, %c0_61], %104 {strides = array<i32>} : memref<16x1xf32, #tpu.memory_space<vmem>>, vector<16x1xf32>,
    %c0_i32_62 = arith.constant 0 : i32
    %106 = arith.cmpi eq, %arg1, %c0_i32_62 : i32
    %107 = arith.extui %106 : i1 to i32
    %c0_i32_63 = arith.constant 0 : i32
    %108 = arith.cmpi ne, %107, %c0_i32_63 : i32
    scf.if %108 {
      %c0_64 = arith.constant 0 : index
      %c0_65 = arith.constant 0 : index
      %109 = vector.load %arg14[%c0_64, %c0_65] : memref<16x1xf32, #tpu.memory_space<vmem>>, vector<16x1xf32>
      %cst_66 = arith.constant 4.52284032E-4 : f32
      %110 = vector.broadcast %cst_66 : f32 to vector<16x1xf32>
      %111 = arith.mulf %109, %110 : vector<16x1xf32>
      %c0_67 = arith.constant 0 : index
      %c0_68 = arith.constant 0 : index
      %112 = vector.load %arg7[%c0_67, %c0_68] : memref<16x128xf32, #tpu.memory_space<vmem>>, vector<16x128xf32>
      %113 = vector.broadcast %111 : vector<16x1xf32> to vector<16x128xf32>
      %114 = arith.mulf %113, %112 : vector<16x128xf32>
      %cst_69 = arith.constant dense<0.000000e+00> : vector<128xf32>
      %115 = vector.multi_reduction <add>, %114, %cst_69 [0] : vector<16x128xf32> to vector<128xf32>
      %116 = vector.shape_cast %115 : vector<128xf32> to vector<1x128xf32>
      %c0_70 = arith.constant 0 : index
      %c0_71 = arith.constant 0 : index
      %117 = vector.load %arg8[%c0_70, %c0_71] : memref<1x128xf32, #tpu.memory_space<vmem>>, vector<1x128xf32>
      %118 = arith.addf %116, %117 : vector<1x128xf32>
      %c0_72 = arith.constant 0 : index
      %c0_73 = arith.constant 0 : index
      %c0_74 = arith.constant 0 : index
      %119 = vector.load %arg11[%c0_72, %c0_73, %c0_74] : memref<1x1x128xf32, #tpu.memory_space<vmem>>, vector<1x1x128xf32>
      %120 = vector.shape_cast %119 : vector<1x1x128xf32> to vector<1x128xf32>
      %121 = vector.shape_cast %118 : vector<1x128xf32> to vector<1x1x128xf32>
      tpu.vector_store %arg11[%c0_72, %c0_73, %c0_74], %121 {strides = array<i32>} : memref<1x1x128xf32, #tpu.memory_space<vmem>>, vector<1x1x128xf32>,
      %c0_75 = arith.constant 0 : index
      %c0_76 = arith.constant 0 : index
      %122 = vector.load %arg9[%c0_75, %c0_76] : memref<16x128xf32, #tpu.memory_space<vmem>>, vector<16x128xf32>
      %123 = vector.broadcast %111 : vector<16x1xf32> to vector<16x128xf32>
      %124 = arith.mulf %123, %122 : vector<16x128xf32>
      %cst_77 = arith.constant dense<0.000000e+00> : vector<128xf32>
      %125 = vector.multi_reduction <add>, %124, %cst_77 [0] : vector<16x128xf32> to vector<128xf32>
      %126 = vector.shape_cast %125 : vector<128xf32> to vector<1x128xf32>
      %c0_78 = arith.constant 0 : index
      %c0_79 = arith.constant 0 : index
      %127 = vector.load %arg10[%c0_78, %c0_79] : memref<1x128xf32, #tpu.memory_space<vmem>>, vector<1x128xf32>
      %128 = arith.addf %126, %127 : vector<1x128xf32>
      %c0_80 = arith.constant 0 : index
      %c0_81 = arith.constant 0 : index
      %c0_82 = arith.constant 0 : index
      %129 = vector.load %arg12[%c0_80, %c0_81, %c0_82] : memref<1x1x128xf32, #tpu.memory_space<vmem>>, vector<1x1x128xf32>
      %130 = vector.shape_cast %129 : vector<1x1x128xf32> to vector<1x128xf32>
      %131 = vector.shape_cast %128 : vector<1x128xf32> to vector<1x1x128xf32>
      tpu.vector_store %arg12[%c0_80, %c0_81, %c0_82], %131 {strides = array<i32>} : memref<1x1x128xf32, #tpu.memory_space<vmem>>, vector<1x1x128xf32>,
    } else {
    }
    return
  }
  func.func @transform_0(%arg0: i32, %arg1: i32) -> (i32, i32, i32, i32) {
    %c0_i32 = arith.constant 0 : i32
    %c0_i32_0 = arith.constant 0 : i32
    %c0_i32_1 = arith.constant 0 : i32
    return %arg0, %arg1, %c0_i32, %c0_i32_0 : i32, i32, i32, i32
  }
  func.func @transform_1(%arg0: i32, %arg1: i32) -> (i32, i32) {
    %c0_i32 = arith.constant 0 : i32
    %c0_i32_0 = arith.constant 0 : i32
    %c0_i32_1 = arith.constant 0 : i32
    return %c0_i32, %c0_i32_0 : i32, i32
  }
  func.func @transform_2(%arg0: i32, %arg1: i32) -> (i32, i32) {
    %c0_i32 = arith.constant 0 : i32
    %c0_i32_0 = arith.constant 0 : i32
    %c0_i32_1 = arith.constant 0 : i32
    return %c0_i32, %c0_i32_0 : i32, i32
  }
  func.func @transform_3(%arg0: i32, %arg1: i32) -> (i32, i32, i32) {
    %c0_i32 = arith.constant 0 : i32
    %c0_i32_0 = arith.constant 0 : i32
    %c0_i32_1 = arith.constant 0 : i32
    %c0_i32_2 = arith.constant 0 : i32
    return %c0_i32, %c0_i32_0, %c0_i32_1 : i32, i32, i32
  }
  func.func @transform_4(%arg0: i32, %arg1: i32) -> (i32, i32) {
    %c0_i32 = arith.constant 0 : i32
    %c0_i32_0 = arith.constant 0 : i32
    %c0_i32_1 = arith.constant 0 : i32
    return %c0_i32, %c0_i32_0 : i32, i32
  }
  func.func @transform_5(%arg0: i32, %arg1: i32) -> (i32, i32) {
    %c0_i32 = arith.constant 0 : i32
    %c0_i32_0 = arith.constant 0 : i32
    %c0_i32_1 = arith.constant 0 : i32
    return %c0_i32, %c0_i32_0 : i32, i32
  }
  func.func @transform_6(%arg0: i32, %arg1: i32) -> (i32, i32) {
    %c0_i32 = arith.constant 0 : i32
    %c0_i32_0 = arith.constant 0 : i32
    %c0_i32_1 = arith.constant 0 : i32
    return %c0_i32, %c0_i32_0 : i32, i32
  }
  func.func @transform_7(%arg0: i32, %arg1: i32) -> (i32, i32) {
    %c0_i32 = arith.constant 0 : i32
    %c0_i32_0 = arith.constant 0 : i32
    %c0_i32_1 = arith.constant 0 : i32
    return %c0_i32, %c0_i32_0 : i32, i32
  }
  func.func @transform_8(%arg0: i32, %arg1: i32) -> (i32, i32) {
    %c0_i32 = arith.constant 0 : i32
    %c0_i32_0 = arith.constant 0 : i32
    %c0_i32_1 = arith.constant 0 : i32
    return %c0_i32, %c0_i32_0 : i32, i32
  }
  func.func @transform_9(%arg0: i32, %arg1: i32) -> (i32, i32, i32) {
    %c0_i32 = arith.constant 0 : i32
    %c0_i32_0 = arith.constant 0 : i32
    %c0_i32_1 = arith.constant 0 : i32
    return %arg0, %c0_i32, %c0_i32_0 : i32, i32, i32
  }
  func.func @transform_10(%arg0: i32, %arg1: i32) -> (i32, i32, i32) {
    %c0_i32 = arith.constant 0 : i32
    %c0_i32_0 = arith.constant 0 : i32
    %c0_i32_1 = arith.constant 0 : i32
    return %arg0, %c0_i32, %c0_i32_0 : i32, i32, i32
  }
}

</mosaic_0001>

<bundles_post_ra>
// kernel: reverse
= control target key start
LH: loop header
LB: loop body
LE: loop exit
PB: predicated region body
PF: predicated region fallthrough
CT: control target
= control target key end

     0   :  { %v2_v0 = vlaneseq  ;;  %s305_s0 = inlined_call_operand.vmem [shape: bf16[2,256], index: 0, kind: input, shape index: {}]   ;;  %s306_s1 = inlined_call_operand.vmem [shape: bf16[2,256], index: 1, kind: output, shape index: {}]  }
   0x2   :  { %v3_v1 = vsub.s32 127, %v2_v0 }
   0x4   :  { %4 = vset.pattern.permute.xlu0 %v3_v1 }
   0x5   :  { %s265_s6 = smov 0   ;;  %s267_s7 = smov 0  }
   0x6   :  { %s269_s8 = smov 0  }
   0x7 LB: > { %s199_s9 = sadd.s32 4294967295, %s252_s8   ;;  %s19_s10 = sadd.s32 1, %s248_s7  ;;  %s252_s8 = sphi %s269_s8, %s10_s8   ;;  %s248_s7 = sphi %s267_s7, %s308_s7   ;;  %s244_s6 = sphi %s265_s6, %s307_s6  }
   0x8   : > { %p20_p0 = scmp.ge.s32.totalorder %s19_s10, 2  ;;  %p201_p1 = scmp.ge.s32.totalorder %s252_s8, 2 }
   0x9   : > { %s38_s11 = sand.u32 (!%p201_p1), 1, %s252_s8   ;;  %s40_s12 = ssub.s32 (!%p201_p1), 1, %s248_s7 }
   0xa   : > { %s310_s10 = smov (%p20_p0, %s19_s10), 0  ;;  %36 = sbr.rel (%p201_p1) target bundleno = 17 (0x11), region = 16 }
   0xb   : > { %s43_s15 = scalar_lea.vmem (!%p201_p1), %s305_s0, %s40_s12  ;;  %s39_s16 = scalar_lea.vmem (!%p201_p1), [#allocation1], %s38_s11 }
   0xc   : > { %v59_v2 = vld [vmem:[%s43_s15] sm:$0x1] (!%p201_p1) }
   0xd   : > { %60 = vst [vmem:[%s39_s16] sm:$0x1] (!%p201_p1), %v59_v2 }
  0x11 PF: > { %p202_p2 = scmp.ge.s32.totalorder %s252_s8, 1  ;;  %p76_p3 = scmp.lt.s32.totalorder %s252_s8, 3 }
  0x13   : > { %p77_p4 = pnand %p202_p2, %p76_p3 }
  0x14   : > { %s86_s17 = sand.u32 (!%p77_p4), 1, %s199_s9   ;;  %v254_v8 = vmov (!%p77_p4), 0.0   ;;  %s125_s22 = scalar_lea.vmem (!%p77_p4), %s306_s1, %s244_s6 }
  0x15   : > { %80 = sbr.rel (%p77_p4) target bundleno = 180 (0xb4), region = 50  ;;  %s87_s18 = scalar_lea.vmem (!%p77_p4), [#allocation1], %s86_s17 }
  0x16   : > { %v103_v3 = vld [vmem:[%s87_s18] sm:$0x1] (!%p77_p4)  ;;  %s90_s19 = scalar_lea.vmem (!%p77_p4), [#allocation3], %s86_s17 }
  0x17   : > { %v104_v4 = vunpack.c.l.bf16 (!%p77_p4), %v103_v3 }
  0x19   : > { %106 = vst [vmem:[#allocation0] sm:$0x3] (!%p77_p4), %v104_v4 }
  0x20   : > { %v108_v5 = vld [vmem:[#allocation0] sm:$0xff] }
  0x21   : > { %109 = vperm.xlu0 %4, %v108_v5  }
  0xa0   : > { %v110_v6 = vpop.permute.xlu0 %109 }
  0xa1   : > { %111 = vst [vmem:[#allocation2] sm:$0xff] %v110_v6 }
  0xa8   : > { %v116_v7 = vld [vmem:[#allocation2] sm:$0x3] }
  0xa9   : > { %v117_v9 = vpack.c.bf16 %v254_v8, %v116_v7 }
  0xab   : > { %119 = vst [vmem:[%s90_s19] sm:$0x1] %v117_v9 }
  0xb2   : > { %v141_v10 = vld [vmem:[%s90_s19] sm:$0x1] }
  0xb3   : > { %142 = vst [vmem:[%s125_s22] sm:$0x1] %v141_v10 }
  0xb4 PF: > { %s10_s8 = sadd.s32 1, %s252_s8   ;;  %s307_s6 = smov %s248_s7 }
  0xb5   : > { %p7_p5 = scmp.ge.s32.totalorder %s10_s8, 4   ;;  %s308_s7 = smov %s310_s10 }
  0xb7   :  { %9 = sbr.rel (!%p7_p5) target bundleno = 7 (0x7), region = 110 }

// kernel: model_forward.2
= control target key start
LH: loop header
LB: loop body
LE: loop exit
PB: predicated region body
PF: predicated region fallthrough
CT: control target
= control target key end

     0   :  { %vm980_vm0 = vcmask 130048   ;;  %s3362_s1 = inlined_call_operand.vmem [shape: bf16[400,512], index: 1, kind: input, shape index: {}]   ;;  %s3363_s0 = inlined_call_operand.vmem [shape: bf16[256,400], index: 0, kind: input, shape index: {}]   ;;  %s3364_s2 = inlined_call_operand.vmem [shape: f32[256,256], index: 2, kind: output, shape index: {}]  }
   0x1   :  { %v2385_v0 = vld [vmem:[%s3362_s1 + $0x4] ss:$16 sps:$4 sm:$0xff]   ;;  %v2387_v1 = vld [vmem:[%s3362_s1 + $0xc] ss:$16 sps:$4 sm:$0xff]   ;;  %v2389_v2 = vld [vmem:[%s3362_s1] ss:$16 sps:$4 sm:$0xff]  }
   0x2   :  { %1029 = vmatprep.subr.bf16.mxu0 %v2385_v0  ;;  %v2390_v3 = vld [vmem:[%s3362_s1 + $0x8] ss:$16 sps:$4 sm:$0xff]   ;;  %1415 = vmatprep.subr.bf16.mxu1 %v2387_v1  ;;  %v2391_v4 = vld [vmem:[%s3362_s1 + $0x24] ss:$16 sps:$4 sm:$0xff]   ;;  %v2393_v5 = vld [vmem:[%s3362_s1 + $0x2c] ss:$16 sps:$4 sm:$0xff]  }
   0x3   :  { %1030 = vmatpush1.bf16.msra.mxu0 %v2389_v2  ;;  %1416 = vmatpush1.bf16.msra.mxu1 %v2390_v3  ;;  %v2395_v6 = vld [vmem:[%s3362_s1 + $0x20] ss:$16 sps:$4 sm:$0xff]   ;;  %v2396_v7 = vld [vmem:[%s3362_s1 + $0x28] ss:$16 sps:$4 sm:$0xff]   ;;  %v2397_v8 = vld [vmem:[%s3362_s1 + $0x44] ss:$16 sps:$4 sm:$0xff]  }
   0x4   :  { %1031 = vmatprep.subr.bf16.mxu0 %v2391_v4  ;;  %1417 = vmatprep.subr.bf16.mxu1 %v2393_v5  ;;  %v2399_v9 = vld [vmem:[%s3362_s1 + $0x4c] ss:$16 sps:$4 sm:$0xff]   ;;  %v2401_v10 = vld [vmem:[%s3362_s1 + $0x40] ss:$16 sps:$4 sm:$0xff]   ;;  %v2402_v11 = vld [vmem:[%s3362_s1 + $0x48] ss:$16 sps:$4 sm:$0xff]  }
   0x5   :  { %v2403_v12 = vld [vmem:[%s3362_s1 + $0x64] ss:$16 sps:$4 sm:$0xff]   ;;  %v2405_v13 = vld [vmem:[%s3362_s1 + $0x6c] ss:$16 sps:$4 sm:$0xff]   ;;  %v2407_v14 = vld [vmem:[%s3362_s1 + $0x60] ss:$16 sps:$4 sm:$0xff]  }
   0x6   :  { %v2408_v15 = vld [vmem:[%s3362_s1 + $0x68] ss:$16 sps:$4 sm:$0xff]   ;;  %v2409_v16 = vld [vmem:[%s3362_s1 + $0x84] ss:$16 sps:$4 sm:$0xff]   ;;  %v2411_v17 = vld [vmem:[%s3362_s1 + $0x8c] ss:$16 sps:$4 sm:$0xff]  }
   0x7   :  { %1032 = vmatpush1.bf16.msra.mxu0 %v2395_v6  ;;  %1418 = vmatpush1.bf16.msra.mxu1 %v2396_v7  ;;  %v2413_v18 = vld [vmem:[%s3362_s1 + $0x80] ss:$16 sps:$4 sm:$0xff]   ;;  %v2414_v19 = vld [vmem:[%s3362_s1 + $0x88] ss:$16 sps:$4 sm:$0xff]   ;;  %v2415_v20 = vld [vmem:[%s3362_s1 + $0xa4] ss:$16 sps:$4 sm:$0xff]  }
   0x8   :  { %1033 = vmatprep.subr.bf16.mxu0 %v2397_v8  ;;  %1419 = vmatprep.subr.bf16.mxu1 %v2399_v9  ;;  %v2417_v21 = vld [vmem:[%s3362_s1 + $0xac] ss:$16 sps:$4 sm:$0xff]   ;;  %v2419_v22 = vld [vmem:[%s3362_s1 + $0xa0] ss:$16 sps:$4 sm:$0xff]   ;;  %v2420_v23 = vld [vmem:[%s3362_s1 + $0xa8] ss:$16 sps:$4 sm:$0xff]  }
   0x9   :  { %v2421_v24 = vld [vmem:[%s3362_s1 + $0xc4] ss:$16 sps:$4 sm:$0xff]   ;;  %v2423_v25 = vld [vmem:[%s3362_s1 + $0xcc] ss:$16 sps:$4 sm:$0xff]   ;;  %v2425_v26 = vld [vmem:[%s3362_s1 + $0xc0] ss:$16 sps:$4 sm:$0xff]  }
   0xa   :  { %v2426_v27 = vld [vmem:[%s3362_s1 + $0xc8] ss:$16 sps:$4 sm:$0xff]   ;;  %v2427_v28 = vld [vmem:[%s3362_s1 + $0xe4] ss:$16 sps:$4 sm:$0xff]   ;;  %v2429_v29 = vld [vmem:[%s3362_s1 + $0xec] ss:$16 sps:$4 sm:$0xff]  }
   0xb   :  { %1034 = vmatpush1.bf16.msra.mxu0 %v2401_v10  ;;  %1420 = vmatpush1.bf16.msra.mxu1 %v2402_v11  ;;  %v2431_v30 = vld [vmem:[%s3362_s1 + $0xe0] ss:$16 sps:$4 sm:$0xff]   ;;  %v2432_v31 = vld [vmem:[%s3362_s1 + $0xe8] ss:$16 sps:$4 sm:$0xff]   ;;  %v2433_v32 = vld [vmem:[%s3362_s1 + $0x104] ss:$16 sps:$4 sm:$0xff]  }
   0xc   :  { %1035 = vmatprep.subr.bf16.mxu0 %v2403_v12  ;;  %1421 = vmatprep.subr.bf16.mxu1 %v2405_v13  ;;  %v2435_v33 = vld [vmem:[%s3362_s1 + $0x10c] ss:$16 sps:$4 sm:$0xff]   ;;  %v2437_v34 = vld [vmem:[%s3362_s1 + $0x100] ss:$16 sps:$4 sm:$0xff]   ;;  %v2438_v35 = vld [vmem:[%s3362_s1 + $0x108] ss:$16 sps:$4 sm:$0xff]  }
   0xd   :  { %v2439_v36 = vld [vmem:[%s3362_s1 + $0x124] ss:$16 sps:$4 sm:$0xff]   ;;  %v2441_v37 = vld [vmem:[%s3362_s1 + $0x12c] ss:$16 sps:$4 sm:$0xff]   ;;  %v2443_v38 = vld [vmem:[%s3362_s1 + $0x120] ss:$16 sps:$4 sm:$0xff]  }
   0xe   :  { %v2444_v39 = vld [vmem:[%s3362_s1 + $0x128] ss:$16 sps:$4 sm:$0xff]   ;;  %v2445_v40 = vld [vmem:[%s3362_s1 + $0x144] ss:$16 sps:$4 sm:$0xff]   ;;  %v2447_v41 = vld [vmem:[%s3362_s1 + $0x14c] ss:$16 sps:$4 sm:$0xff]  }
   0xf   :  { %1036 = vmatpush1.bf16.msra.mxu0 %v2407_v14  ;;  %1422 = vmatpush1.bf16.msra.mxu1 %v2408_v15  ;;  %v2449_v42 = vld [vmem:[%s3362_s1 + $0x140] ss:$16 sps:$4 sm:$0xff]   ;;  %v2450_v43 = vld [vmem:[%s3362_s1 + $0x148] ss:$16 sps:$4 sm:$0xff]   ;;  %v2451_v44 = vld [vmem:[%s3362_s1 + $0x164] ss:$16 sps:$4 sm:$0xff]  }
  0x10   :  { %1037 = vmatprep.subr.bf16.mxu0 %v2409_v16  ;;  %1423 = vmatprep.subr.bf16.mxu1 %v2411_v17  ;;  %v2453_v45 = vld [vmem:[%s3362_s1 + $0x16c] ss:$16 sps:$4 sm:$0xff]   ;;  %v2455_v46 = vld [vmem:[%s3362_s1 + $0x160] ss:$16 sps:$4 sm:$0xff]   ;;  %v2456_v47 = vld [vmem:[%s3362_s1 + $0x168] ss:$16 sps:$4 sm:$0xff]  }
  0x11   :  { %v2483_v48 = vld [vmem:[%s3363_s0 + $0x4] ss:$16 sps:$4 sm:$0xff]   ;;  %v2459_v50 = vld [vmem:[%s3362_s1 + $0x18c] ss:$16 sps:$4 sm:$0xff]   ;;  %v2461_v51 = vld [vmem:[%s3362_s1 + $0x180] ss:$16 sps:$4 sm:$0xff]  }
  0x12   :  { %v2457_v49 = vld [vmem:[%s3362_s1 + $0x184] ss:$16 sps:$4 sm:$0xff]   ;;  %1061 = vmatprep.mubr.bf16.mxu0 %v2483_v48  ;;  %1447 = vmatprep.mubr.bf16.mxu1 %v2483_v48  ;;  %v2462_v52 = vld [vmem:[%s3362_s1 + $0x188] ss:$16 sps:$4 sm:$0xff]   ;;  %v2465_v54 = vld [vmem:[%s3362_s1 + $0x1ac] ss:$16 sps:$4 sm:$0xff]  }
  0x13   :  { %1038 = vmatpush1.bf16.msra.mxu0 %v2413_v18  ;;  %1424 = vmatpush1.bf16.msra.mxu1 %v2414_v19  ;;  %v2463_v53 = vld [vmem:[%s3362_s1 + $0x1a4] ss:$16 sps:$4 sm:$0xff]   ;;  %v2467_v55 = vld [vmem:[%s3362_s1 + $0x1a0] ss:$16 sps:$4 sm:$0xff]   ;;  %v2468_v56 = vld [vmem:[%s3362_s1 + $0x1a8] ss:$16 sps:$4 sm:$0xff]  }
  0x14   :  { %1039 = vmatprep.subr.bf16.mxu0 %v2415_v20  ;;  %1425 = vmatprep.subr.bf16.mxu1 %v2417_v21  ;;  %v2469_v57 = vld [vmem:[%s3362_s1 + $0x1c4] ss:$16 sps:$4 sm:$0xff]   ;;  %v2471_v58 = vld [vmem:[%s3362_s1 + $0x1cc] ss:$16 sps:$4 sm:$0xff]   ;;  %v2473_v59 = vld [vmem:[%s3362_s1 + $0x1c0] ss:$16 sps:$4 sm:$0xff]  }
  0x15   :  { %v2474_v60 = vld [vmem:[%s3362_s1 + $0x1c8] ss:$16 sps:$4 sm:$0xff]   ;;  %v2475_v61 = vld [vmem:[%s3362_s1 + $0x1e4] ss:$16 sps:$4 sm:$0xff]   ;;  %v2477_v62 = vld [vmem:[%s3362_s1 + $0x1ec] ss:$16 sps:$4 sm:$0xff]  }
  0x16   :  { %v2479_v63 = vld [vmem:[%s3362_s1 + $0x1e0] ss:$16 sps:$4 sm:$0xff]   ;;  %v2480_v0 = vld [vmem:[%s3362_s1 + $0x1e8] ss:$16 sps:$4 sm:$0xff]   ;;  %v2486_v1 = vld [vmem:[%s3362_s1 + $0x204] ss:$16 sps:$4 sm:$0xff]  }
  0x17   :  { %1040 = vmatpush1.bf16.msra.mxu0 %v2419_v22  ;;  %1426 = vmatpush1.bf16.msra.mxu1 %v2420_v23  ;;  %v2489_v2 = vld [vmem:[%s3362_s1 + $0x20c] ss:$16 sps:$4 sm:$0xff]   ;;  %v2481_v3 = vld [vmem:[%s3363_s0] ss:$16 sps:$4 sm:$0xff]   ;;  %v2487_v5 = vld [vmem:[%s3362_s1 + $0x208] ss:$16 sps:$4 sm:$0xff]  }
  0x18   :  { %1041 = vmatprep.subr.bf16.mxu0 %v2421_v24  ;;  %1427 = vmatprep.subr.bf16.mxu1 %v2423_v25  ;;  %v2484_v4 = vld [vmem:[%s3362_s1 + $0x200] ss:$16 sps:$4 sm:$0xff]   ;;  %v2490_v6 = vld [vmem:[%s3363_s0 + $0x24] ss:$16 sps:$4 sm:$0xff]   ;;  %v2500_v8 = vld [vmem:[%s3362_s1 + $0x22c] ss:$16 sps:$4 sm:$0xff]  }
  0x19   :  { %v2497_v7 = vld [vmem:[%s3362_s1 + $0x224] ss:$16 sps:$4 sm:$0xff]   ;;  %v2495_v9 = vld [vmem:[%s3362_s1 + $0x220] ss:$16 sps:$4 sm:$0xff]   ;;  %v2498_v10 = vld [vmem:[%s3362_s1 + $0x228] ss:$16 sps:$4 sm:$0xff]  }
  0x1a   :  { %v2507_v11 = vld [vmem:[%s3362_s1 + $0x244] ss:$16 sps:$4 sm:$0xff]   ;;  %v2510_v12 = vld [vmem:[%s3362_s1 + $0x24c] ss:$16 sps:$4 sm:$0xff]   ;;  %v2492_v13 = vld [vmem:[%s3363_s0 + $0x20] ss:$16 sps:$4 sm:$0xff]  }
  0x1b   :  { %1042 = vmatpush1.bf16.msra.mxu0 %v2425_v26  ;;  %1428 = vmatpush1.bf16.msra.mxu1 %v2426_v27  ;;  %v2493_v14 = vld [vmem:[%s3363_s0 + $0x44] ss:$16 sps:$4 sm:$0xff]   ;;  %v2505_v15 = vld [vmem:[%s3362_s1 + $0x240] ss:$16 sps:$4 sm:$0xff]   ;;  %v2508_v16 = vld [vmem:[%s3362_s1 + $0x248] ss:$16 sps:$4 sm:$0xff]  }
  0x1c   :  { %1043 = vmatprep.subr.bf16.mxu0 %v2427_v28  ;;  %1429 = vmatprep.subr.bf16.mxu1 %v2429_v29  ;;  %v2519_v17 = vld [vmem:[%s3362_s1 + $0x264] ss:$16 sps:$4 sm:$0xff]   ;;  %v2522_v18 = vld [vmem:[%s3362_s1 + $0x26c] ss:$16 sps:$4 sm:$0xff]   ;;  %v2517_v19 = vld [vmem:[%s3362_s1 + $0x260] ss:$16 sps:$4 sm:$0xff]  }
  0x1d   :  { %v2520_v20 = vld [vmem:[%s3362_s1 + $0x268] ss:$16 sps:$4 sm:$0xff]   ;;  %v2531_v21 = vld [vmem:[%s3362_s1 + $0x284] ss:$16 sps:$4 sm:$0xff]   ;;  %v2534_v22 = vld [vmem:[%s3362_s1 + $0x28c] ss:$16 sps:$4 sm:$0xff]  }
  0x1e   :  { %v2501_v23 = vld [vmem:[%s3363_s0 + $0x40] ss:$16 sps:$4 sm:$0xff]   ;;  %v2502_v24 = vld [vmem:[%s3363_s0 + $0x64] ss:$16 sps:$4 sm:$0xff]   ;;  %v2532_v26 = vld [vmem:[%s3362_s1 + $0x288] ss:$16 sps:$4 sm:$0xff]  }
  0x1f   :  { %1044 = vmatpush1.bf16.msra.mxu0 %v2431_v30  ;;  %1430 = vmatpush1.bf16.msra.mxu1 %v2432_v31  ;;  %v2529_v25 = vld [vmem:[%s3362_s1 + $0x280] ss:$16 sps:$4 sm:$0xff]   ;;  %v2543_v27 = vld [vmem:[%s3362_s1 + $0x2a4] ss:$16 sps:$4 sm:$0xff]   ;;  %v2546_v28 = vld [vmem:[%s3362_s1 + $0x2ac] ss:$16 sps:$4 sm:$0xff]  }
  0x20   :  { %1045 = vmatprep.subr.bf16.mxu0 %v2433_v32  ;;  %1431 = vmatprep.subr.bf16.mxu1 %v2435_v33  ;;  %v2541_v29 = vld [vmem:[%s3362_s1 + $0x2a0] ss:$16 sps:$4 sm:$0xff]   ;;  %v2544_v30 = vld [vmem:[%s3362_s1 + $0x2a8] ss:$16 sps:$4 sm:$0xff]   ;;  %v2552_v31 = vld [vmem:[%s3362_s1 + $0x2c4] ss:$16 sps:$4 sm:$0xff]  }
  0x21   :  { %v2555_v32 = vld [vmem:[%s3362_s1 + $0x2cc] ss:$16 sps:$4 sm:$0xff]   ;;  %v2504_v33 = vld [vmem:[%s3363_s0 + $0x60] ss:$16 sps:$4 sm:$0xff]   ;;  %v2523_v48 = vld [vmem:[%s3363_s0 + $0xc4] ss:$16 sps:$4 sm:$0xff]  }
  0x23   :  { %1046 = vmatpush1.bf16.msra.mxu0 %v2437_v34  ;;  %1432 = vmatpush1.bf16.msra.mxu1 %v2438_v35  ;;  %v2511_v34 = vld [vmem:[%s3363_s0 + $0x84] ss:$16 sps:$4 sm:$0xff]   ;;  %v2550_v35 = vld [vmem:[%s3362_s1 + $0x2c0] ss:$16 sps:$4 sm:$0xff]  }
  0x24   :  { %1047 = vmatprep.subr.bf16.mxu0 %v2439_v36  ;;  %1433 = vmatprep.subr.bf16.mxu1 %v2441_v37  ;;  %v2553_v36 = vld [vmem:[%s3362_s1 + $0x2c8] ss:$16 sps:$4 sm:$0xff]   ;;  %v2564_v37 = vld [vmem:[%s3362_s1 + $0x2e4] ss:$16 sps:$4 sm:$0xff]  }
  0x27   :  { %1048 = vmatpush1.bf16.msra.mxu0 %v2443_v38  ;;  %1434 = vmatpush1.bf16.msra.mxu1 %v2444_v39  ;;  %v2567_v38 = vld [vmem:[%s3362_s1 + $0x2ec] ss:$16 sps:$4 sm:$0xff]   ;;  %v2562_v39 = vld [vmem:[%s3362_s1 + $0x2e0] ss:$16 sps:$4 sm:$0xff]  }
  0x28   :  { %1049 = vmatprep.subr.bf16.mxu0 %v2445_v40  ;;  %1435 = vmatprep.subr.bf16.mxu1 %v2447_v41  ;;  %v2513_v40 = vld [vmem:[%s3363_s0 + $0x80] ss:$16 sps:$4 sm:$0xff]   ;;  %v2565_v41 = vld [vmem:[%s3362_s1 + $0x2e8] ss:$16 sps:$4 sm:$0xff]  }
  0x2b   :  { %1050 = vmatpush1.bf16.msra.mxu0 %v2449_v42  ;;  %1436 = vmatpush1.bf16.msra.mxu1 %v2450_v43  ;;  %v2514_v42 = vld [vmem:[%s3363_s0 + $0xa4] ss:$16 sps:$4 sm:$0xff]  }
  0x2c   :  { %1051 = vmatprep.subr.bf16.mxu0 %v2451_v44  ;;  %1437 = vmatprep.subr.bf16.mxu1 %v2453_v45  ;;  %v2576_v43 = vld [vmem:[%s3362_s1 + $0x304] ss:$16 sps:$4 sm:$0xff]   ;;  %v2579_v44 = vld [vmem:[%s3362_s1 + $0x30c] ss:$16 sps:$4 sm:$0xff]   ;;  %v2574_v45 = vld [vmem:[%s3362_s1 + $0x300] ss:$16 sps:$4 sm:$0xff]  }
  0x2f   :  { %1052 = vmatpush1.bf16.msra.mxu0 %v2455_v46  ;;  %1438 = vmatpush1.bf16.msra.mxu1 %v2456_v47  ;;  %v2577_v46 = vld [vmem:[%s3362_s1 + $0x308] ss:$16 sps:$4 sm:$0xff]   ;;  %v2516_v47 = vld [vmem:[%s3363_s0 + $0xa0] ss:$16 sps:$4 sm:$0xff]  }
  0x30   :  { %1053 = vmatprep.subr.bf16.mxu0 %v2457_v49  ;;  %1439 = vmatprep.subr.bf16.mxu1 %v2459_v50  ;;  %v2525_v49 = vld [vmem:[%s3363_s0 + $0xc0] ss:$16 sps:$4 sm:$0xff]   ;;  %v2526_v50 = vld [vmem:[%s3363_s0 + $0xe4] ss:$16 sps:$4 sm:$0xff]  }
  0x33   :  { %1054 = vmatpush1.bf16.msra.mxu0 %v2461_v51  ;;  %1440 = vmatpush1.bf16.msra.mxu1 %v2462_v52  ;;  %v2528_v51 = vld [vmem:[%s3363_s0 + $0xe0] ss:$16 sps:$4 sm:$0xff]   ;;  %v2535_v52 = vld [vmem:[%s3363_s0 + $0x104] ss:$16 sps:$4 sm:$0xff]  }
  0x34   :  { %1055 = vmatprep.subr.bf16.mxu0 %v2463_v53  ;;  %1441 = vmatprep.subr.bf16.mxu1 %v2465_v54  ;;  %v2537_v53 = vld [vmem:[%s3363_s0 + $0x100] ss:$16 sps:$4 sm:$0xff]   ;;  %v2538_v54 = vld [vmem:[%s3363_s0 + $0x124] ss:$16 sps:$4 sm:$0xff]  }
  0x37   :  { %1056 = vmatpush1.bf16.msra.mxu0 %v2467_v55  ;;  %1442 = vmatpush1.bf16.msra.mxu1 %v2468_v56  ;;  %v2540_v55 = vld [vmem:[%s3363_s0 + $0x120] ss:$16 sps:$4 sm:$0xff]   ;;  %v2547_v56 = vld [vmem:[%s3363_s0 + $0x144] ss:$16 sps:$4 sm:$0xff]  }
  0x38   :  { %1057 = vmatprep.subr.bf16.mxu0 %v2469_v57  ;;  %1443 = vmatprep.subr.bf16.mxu1 %v2471_v58  ;;  %v2549_v57 = vld [vmem:[%s3363_s0 + $0x140] ss:$16 sps:$4 sm:$0xff]   ;;  %v2556_v58 = vld [vmem:[%s3363_s0 + $0x164] ss:$16 sps:$4 sm:$0xff]  }
  0x3b   :  { %1058 = vmatpush1.bf16.msra.mxu0 %v2473_v59  ;;  %1444 = vmatpush1.bf16.msra.mxu1 %v2474_v60  ;;  %v2558_v59 = vld [vmem:[%s3363_s0 + $0x160] ss:$16 sps:$4 sm:$0xff]   ;;  %v2559_v60 = vld [vmem:[%s3363_s0 + $0x184] ss:$16 sps:$4 sm:$0xff]  }
  0x3c   :  { %1059 = vmatprep.subr.bf16.mxu0 %v2475_v61  ;;  %1445 = vmatprep.subr.bf16.mxu1 %v2477_v62  ;;  %v2561_v61 = vld [vmem:[%s3363_s0 + $0x180] ss:$16 sps:$4 sm:$0xff]   ;;  %v2568_v62 = vld [vmem:[%s3363_s0 + $0x1a4] ss:$16 sps:$4 sm:$0xff]  }
  0x3f   :  { %1060 = vmatpush1.bf16.msra.mxu0 %v2479_v63  ;;  %1446 = vmatpush1.bf16.msra.mxu1 %v2480_v0  ;;  %v2570_v63 = vld [vmem:[%s3363_s0 + $0x1a0] ss:$16 sps:$4 sm:$0xff]   ;;  %v2571_v0 = vld [vmem:[%s3363_s0 + $0x1c4] ss:$16 sps:$4 sm:$0xff]  }
  0x40   :  { %1222 = vmatprep.subr.bf16.mxu0 %v2486_v1  ;;  %1608 = vmatprep.subr.bf16.mxu1 %v2489_v2  ;;  %v2573_v1 = vld [vmem:[%s3363_s0 + $0x1c0] ss:$16 sps:$4 sm:$0xff]   ;;  %v2580_v2 = vld [vmem:[%s3363_s0 + $0x1e4] ss:$16 sps:$4 sm:$0xff]  }
  0x42   :  { %1062 = vmatmul.mubr.bf16.vlgmr.msra.gmra.mrb[0].mxu0 %v2481_v3  ;;  %1448 = vmatmul.mubr.bf16.vlgmr.msra.gmra.mrb[0].mxu1 %v2481_v3  ;;  %v2582_v3 = vld [vmem:[%s3363_s0 + $0x1e0] ss:$16 sps:$4 sm:$0xff]  }
  0x43   :  { %1223 = vmatpush1.bf16.msra.mxu0 %v2484_v4  ;;  %1609 = vmatpush1.bf16.msra.mxu1 %v2487_v5  ;;  %v2585_v4 = vld [vmem:[%s3363_s0 + $0xc] ss:$16 sps:$4 sm:$0xff]   ;;  %v2583_v5 = vld [vmem:[%s3363_s0 + $0x8] ss:$16 sps:$4 sm:$0xff]  }
  0x44   :  { %1071 = vmatprep.mubr.bf16.mxu0 %v2490_v6  ;;  %1457 = vmatprep.mubr.bf16.mxu1 %v2490_v6  ;;  %v2586_v6 = vld [vmem:[%s3363_s0 + $0x2c] ss:$16 sps:$4 sm:$0xff]  }
  0x45   :  { %1224 = vmatprep.subr.bf16.mxu0 %v2497_v7  ;;  %1610 = vmatprep.subr.bf16.mxu1 %v2500_v8  ;;  %v2588_v7 = vld [vmem:[%s3363_s0 + $0x28] ss:$16 sps:$4 sm:$0xff]   ;;  %v2589_v8 = vld [vmem:[%s3363_s0 + $0x4c] ss:$16 sps:$4 sm:$0xff]  }
  0x47   :  { %1225 = vmatpush1.bf16.msra.mxu0 %v2495_v9  ;;  %1611 = vmatpush1.bf16.msra.mxu1 %v2498_v10  ;;  %v2591_v9 = vld [vmem:[%s3363_s0 + $0x48] ss:$16 sps:$4 sm:$0xff]   ;;  %v2592_v10 = vld [vmem:[%s3363_s0 + $0x6c] ss:$16 sps:$4 sm:$0xff]  }
  0x48   :  { %1226 = vmatprep.subr.bf16.mxu0 %v2507_v11  ;;  %1612 = vmatprep.subr.bf16.mxu1 %v2510_v12  ;;  %v2594_v11 = vld [vmem:[%s3363_s0 + $0x68] ss:$16 sps:$4 sm:$0xff]   ;;  %v2595_v12 = vld [vmem:[%s3363_s0 + $0x8c] ss:$16 sps:$4 sm:$0xff]  }
  0x4a   :  { %1072 = vmatmul.mubr.bf16.gmra.mrb[4].mxu0 %v2492_v13  ;;  %1458 = vmatmul.mubr.bf16.gmra.mrb[4].mxu1 %v2492_v13  ;;  %v2597_v13 = vld [vmem:[%s3363_s0 + $0x88] ss:$16 sps:$4 sm:$0xff]  }
  0x4b   :  { %1081 = vmatprep.mubr.bf16.mxu0 %v2493_v14  ;;  %1467 = vmatprep.mubr.bf16.mxu1 %v2493_v14  ;;  %v2598_v14 = vld [vmem:[%s3363_s0 + $0xac] ss:$16 sps:$4 sm:$0xff]  }
  0x4c   :  { %1227 = vmatpush1.bf16.msra.mxu0 %v2505_v15  ;;  %1613 = vmatpush1.bf16.msra.mxu1 %v2508_v16  ;;  %v2600_v15 = vld [vmem:[%s3363_s0 + $0xa8] ss:$16 sps:$4 sm:$0xff]   ;;  %v2601_v16 = vld [vmem:[%s3363_s0 + $0xcc] ss:$16 sps:$4 sm:$0xff]  }
  0x4d   :  { %1228 = vmatprep.subr.bf16.mxu0 %v2519_v17  ;;  %1614 = vmatprep.subr.bf16.mxu1 %v2522_v18  ;;  %v2603_v17 = vld [vmem:[%s3363_s0 + $0xc8] ss:$16 sps:$4 sm:$0xff]   ;;  %v2604_v18 = vld [vmem:[%s3363_s0 + $0xec] ss:$16 sps:$4 sm:$0xff]  }
  0x50   :  { %1229 = vmatpush1.bf16.msra.mxu0 %v2517_v19  ;;  %1615 = vmatpush1.bf16.msra.mxu1 %v2520_v20  ;;  %v2606_v19 = vld [vmem:[%s3363_s0 + $0xe8] ss:$16 sps:$4 sm:$0xff]   ;;  %v2607_v20 = vld [vmem:[%s3363_s0 + $0x10c] ss:$16 sps:$4 sm:$0xff]  }
  0x51   :  { %1230 = vmatprep.subr.bf16.mxu0 %v2531_v21  ;;  %1616 = vmatprep.subr.bf16.mxu1 %v2534_v22  ;;  %v2609_v21 = vld [vmem:[%s3363_s0 + $0x108] ss:$16 sps:$4 sm:$0xff]   ;;  %v2610_v22 = vld [vmem:[%s3363_s0 + $0x12c] ss:$16 sps:$4 sm:$0xff]  }
  0x52   :  { %1082 = vmatmul.mubr.bf16.gmra.mrb[8].mxu0 %v2501_v23  ;;  %1468 = vmatmul.mubr.bf16.gmra.mrb[8].mxu1 %v2501_v23  ;;  %v2612_v23 = vld [vmem:[%s3363_s0 + $0x128] ss:$16 sps:$4 sm:$0xff]  }
  0x53   :  { %1091 = vmatprep.mubr.bf16.mxu0 %v2502_v24  ;;  %1477 = vmatprep.mubr.bf16.mxu1 %v2502_v24  ;;  %v2613_v24 = vld [vmem:[%s3363_s0 + $0x14c] ss:$16 sps:$4 sm:$0xff]  }
  0x54   :  { %1231 = vmatpush1.bf16.msra.mxu0 %v2529_v25  ;;  %1617 = vmatpush1.bf16.msra.mxu1 %v2532_v26  ;;  %v2615_v25 = vld [vmem:[%s3363_s0 + $0x148] ss:$16 sps:$4 sm:$0xff]   ;;  %v2616_v26 = vld [vmem:[%s3363_s0 + $0x16c] ss:$16 sps:$4 sm:$0xff]  }
  0x55   :  { %1232 = vmatprep.subr.bf16.mxu0 %v2543_v27  ;;  %1618 = vmatprep.subr.bf16.mxu1 %v2546_v28  ;;  %v2618_v27 = vld [vmem:[%s3363_s0 + $0x168] ss:$16 sps:$4 sm:$0xff]   ;;  %v2619_v28 = vld [vmem:[%s3363_s0 + $0x18c] ss:$16 sps:$4 sm:$0xff]  }
  0x58   :  { %1233 = vmatpush1.bf16.msra.mxu0 %v2541_v29  ;;  %1619 = vmatpush1.bf16.msra.mxu1 %v2544_v30  ;;  %v2621_v29 = vld [vmem:[%s3363_s0 + $0x188] ss:$16 sps:$4 sm:$0xff]   ;;  %v2622_v30 = vld [vmem:[%s3363_s0 + $0x1ac] ss:$16 sps:$4 sm:$0xff]  }
  0x59   :  { %1234 = vmatprep.subr.bf16.mxu0 %v2552_v31  ;;  %1620 = vmatprep.subr.bf16.mxu1 %v2555_v32  ;;  %v2624_v31 = vld [vmem:[%s3363_s0 + $0x1a8] ss:$16 sps:$4 sm:$0xff]   ;;  %v2625_v32 = vld [vmem:[%s3363_s0 + $0x1cc] ss:$16 sps:$4 sm:$0xff]  }
  0x5a   :  { %1092 = vmatmul.mubr.bf16.gmra.mrb[12].mxu0 %v2504_v33  ;;  %1478 = vmatmul.mubr.bf16.gmra.mrb[12].mxu1 %v2504_v33  ;;  %v2627_v33 = vld [vmem:[%s3363_s0 + $0x1c8] ss:$16 sps:$4 sm:$0xff]  }
  0x5b   :  { %1101 = vmatprep.mubr.bf16.mxu0 %v2511_v34  ;;  %1487 = vmatprep.mubr.bf16.mxu1 %v2511_v34  ;;  %v2628_v34 = vld [vmem:[%s3363_s0 + $0x1ec] ss:$16 sps:$4 sm:$0xff]  }
  0x5c   :  { %1235 = vmatpush1.bf16.msra.mxu0 %v2550_v35  ;;  %1621 = vmatpush1.bf16.msra.mxu1 %v2553_v36  ;;  %v2630_v35 = vld [vmem:[%s3363_s0 + $0x1e8] ss:$16 sps:$4 sm:$0xff]  }
  0x5d   :  { %1236 = vmatprep.subr.bf16.mxu0 %v2564_v37  ;;  %1622 = vmatprep.subr.bf16.mxu1 %v2567_v38 }
  0x60   :  { %1237 = vmatpush1.bf16.msra.mxu0 %v2562_v39  ;;  %1623 = vmatpush1.bf16.msra.mxu1 %v2565_v41 }
  0x61   :  { %1238 = vmatprep.subr.bf16.mxu0 %v2576_v43  ;;  %1624 = vmatprep.subr.bf16.mxu1 %v2579_v44 }
  0x62   :  { %1102 = vmatmul.mubr.bf16.gmra.mrb[16].mxu0 %v2513_v40  ;;  %1488 = vmatmul.mubr.bf16.gmra.mrb[16].mxu1 %v2513_v40 }
  0x63   :  { %1111 = vmatprep.mubr.bf16.mxu0 %v2514_v42  ;;  %1497 = vmatprep.mubr.bf16.mxu1 %v2514_v42 }
  0x64   :  { %1239 = vmatpush1.bf16.msra.mxu0 %v2574_v45  ;;  %1625 = vmatpush1.bf16.msra.mxu1 %v2577_v46 }
  0x6a   :  { %1112 = vmatmul.mubr.bf16.gmra.mrb[20].mxu0 %v2516_v47  ;;  %1498 = vmatmul.mubr.bf16.gmra.mrb[20].mxu1 %v2516_v47 }
  0x6b   :  { %1121 = vmatprep.mubr.bf16.mxu0 %v2523_v48  ;;  %1507 = vmatprep.mubr.bf16.mxu1 %v2523_v48 }
  0x72   :  { %1122 = vmatmul.mubr.bf16.gmra.mrb[24].mxu0 %v2525_v49  ;;  %1508 = vmatmul.mubr.bf16.gmra.mrb[24].mxu1 %v2525_v49 }
  0x73   :  { %1131 = vmatprep.mubr.bf16.mxu0 %v2526_v50  ;;  %1517 = vmatprep.mubr.bf16.mxu1 %v2526_v50 }
  0x7a   :  { %1132 = vmatmul.mubr.bf16.gmra.mrb[28].mxu0 %v2528_v51  ;;  %1518 = vmatmul.mubr.bf16.gmra.mrb[28].mxu1 %v2528_v51 }
  0x7b   :  { %1141 = vmatprep.mubr.bf16.mxu0 %v2535_v52  ;;  %1527 = vmatprep.mubr.bf16.mxu1 %v2535_v52 }
  0x82   :  { %1142 = vmatmul.mubr.bf16.gmra.mrb[32].mxu0 %v2537_v53  ;;  %1528 = vmatmul.mubr.bf16.gmra.mrb[32].mxu1 %v2537_v53 }
  0x83   :  { %1151 = vmatprep.mubr.bf16.mxu0 %v2538_v54  ;;  %1537 = vmatprep.mubr.bf16.mxu1 %v2538_v54 }
  0x8a   :  { %1152 = vmatmul.mubr.bf16.gmra.mrb[36].mxu0 %v2540_v55  ;;  %1538 = vmatmul.mubr.bf16.gmra.mrb[36].mxu1 %v2540_v55 }
  0x8b   :  { %1161 = vmatprep.mubr.bf16.mxu0 %v2547_v56  ;;  %1547 = vmatprep.mubr.bf16.mxu1 %v2547_v56 }
  0x92   :  { %1162 = vmatmul.mubr.bf16.gmra.mrb[40].mxu0 %v2549_v57  ;;  %1548 = vmatmul.mubr.bf16.gmra.mrb[40].mxu1 %v2549_v57 }
  0x93   :  { %1171 = vmatprep.mubr.bf16.mxu0 %v2556_v58  ;;  %1557 = vmatprep.mubr.bf16.mxu1 %v2556_v58 }
  0x9a   :  { %1172 = vmatmul.mubr.bf16.gmra.mrb[44].mxu0 %v2558_v59  ;;  %1558 = vmatmul.mubr.bf16.gmra.mrb[44].mxu1 %v2558_v59 }
  0x9b   :  { %1181 = vmatprep.mubr.bf16.mxu0 %v2559_v60  ;;  %1567 = vmatprep.mubr.bf16.mxu1 %v2559_v60 }
  0xa2   :  { %1182 = vmatmul.mubr.bf16.gmra.mrb[48].mxu0 %v2561_v61  ;;  %1568 = vmatmul.mubr.bf16.gmra.mrb[48].mxu1 %v2561_v61 }
  0xa3   :  { %1191 = vmatprep.mubr.bf16.mxu0 %v2568_v62  ;;  %1577 = vmatprep.mubr.bf16.mxu1 %v2568_v62 }
  0xaa   :  { %1192 = vmatmul.mubr.bf16.gmra.mrb[52].mxu0 %v2570_v63  ;;  %1578 = vmatmul.mubr.bf16.gmra.mrb[52].mxu1 %v2570_v63 }
  0xab   :  { %1201 = vmatprep.mubr.bf16.mxu0 %v2571_v0  ;;  %1587 = vmatprep.mubr.bf16.mxu1 %v2571_v0 }
  0xb2   :  { %1202 = vmatmul.mubr.bf16.gmra.mrb[56].mxu0 %v2573_v1  ;;  %1588 = vmatmul.mubr.bf16.gmra.mrb[56].mxu1 %v2573_v1 }
  0xb3   :  { %1211 = vmatprep.mubr.bf16.mxu0 %v2580_v2  ;;  %1597 = vmatprep.mubr.bf16.mxu1 %v2580_v2 }
  0xba   :  { %1212 = vmatmul.mubr.bf16.gmra.mrb[60].mxu0 %v2582_v3  ;;  %1598 = vmatmul.mubr.bf16.gmra.mrb[60].mxu1 %v2582_v3 }
  0xbb   :  { %2225 = vmatprep.mubr.msk.bf16.mxu0 %vm980_vm0, %v2585_v4  ;;  %2241 = vmatprep.mubr.msk.bf16.mxu1 %vm980_vm0, %v2585_v4 }
  0xc2   :  { %1255 = vmatmul.mubr.bf16.vlgmr.msra.gmra.mrb[0].mxu0 %v2583_v5  ;;  %1641 = vmatmul.mubr.bf16.vlgmr.msra.gmra.mrb[0].mxu1 %v2583_v5 }
  0xc3   :  { %2226 = vmatprep.mubr.msk.bf16.mxu0 %vm980_vm0, %v2586_v6  ;;  %2242 = vmatprep.mubr.msk.bf16.mxu1 %vm980_vm0, %v2586_v6 }
  0xca   :  { %1265 = vmatmul.mubr.bf16.gmra.mrb[4].mxu0 %v2588_v7  ;;  %1651 = vmatmul.mubr.bf16.gmra.mrb[4].mxu1 %v2588_v7 }
  0xcb   :  { %2227 = vmatprep.mubr.msk.bf16.mxu0 %vm980_vm0, %v2589_v8  ;;  %2243 = vmatprep.mubr.msk.bf16.mxu1 %vm980_vm0, %v2589_v8 }
  0xd2   :  { %1275 = vmatmul.mubr.bf16.gmra.mrb[8].mxu0 %v2591_v9  ;;  %1661 = vmatmul.mubr.bf16.gmra.mrb[8].mxu1 %v2591_v9 }
  0xd3   :  { %2228 = vmatprep.mubr.msk.bf16.mxu0 %vm980_vm0, %v2592_v10  ;;  %2244 = vmatprep.mubr.msk.bf16.mxu1 %vm980_vm0, %v2592_v10 }
  0xda   :  { %1285 = vmatmul.mubr.bf16.gmra.mrb[12].mxu0 %v2594_v11  ;;  %1671 = vmatmul.mubr.bf16.gmra.mrb[12].mxu1 %v2594_v11 }
  0xdb   :  { %2229 = vmatprep.mubr.msk.bf16.mxu0 %vm980_vm0, %v2595_v12  ;;  %2245 = vmatprep.mubr.msk.bf16.mxu1 %vm980_vm0, %v2595_v12 }
  0xe2   :  { %1295 = vmatmul.mubr.bf16.gmra.mrb[16].mxu0 %v2597_v13  ;;  %1681 = vmatmul.mubr.bf16.gmra.mrb[16].mxu1 %v2597_v13 }
  0xe3   :  { %2230 = vmatprep.mubr.msk.bf16.mxu0 %vm980_vm0, %v2598_v14  ;;  %2246 = vmatprep.mubr.msk.bf16.mxu1 %vm980_vm0, %v2598_v14 }
  0xea   :  { %1305 = vmatmul.mubr.bf16.gmra.mrb[20].mxu0 %v2600_v15  ;;  %1691 = vmatmul.mubr.bf16.gmra.mrb[20].mxu1 %v2600_v15 }
  0xeb   :  { %2231 = vmatprep.mubr.msk.bf16.mxu0 %vm980_vm0, %v2601_v16  ;;  %2247 = vmatprep.mubr.msk.bf16.mxu1 %vm980_vm0, %v2601_v16 }
  0xf2   :  { %1315 = vmatmul.mubr.bf16.gmra.mrb[24].mxu0 %v2603_v17  ;;  %1701 = vmatmul.mubr.bf16.gmra.mrb[24].mxu1 %v2603_v17 }
  0xf3   :  { %2232 = vmatprep.mubr.msk.bf16.mxu0 %vm980_vm0, %v2604_v18  ;;  %2248 = vmatprep.mubr.msk.bf16.mxu1 %vm980_vm0, %v2604_v18 }
  0xfa   :  { %1325 = vmatmul.mubr.bf16.gmra.mrb[28].mxu0 %v2606_v19  ;;  %1711 = vmatmul.mubr.bf16.gmra.mrb[28].mxu1 %v2606_v19 }
  0xfb   :  { %2233 = vmatprep.mubr.msk.bf16.mxu0 %vm980_vm0, %v2607_v20  ;;  %2249 = vmatprep.mubr.msk.bf16.mxu1 %vm980_vm0, %v2607_v20 }
 0x102   :  { %1335 = vmatmul.mubr.bf16.gmra.mrb[32].mxu0 %v2609_v21  ;;  %1721 = vmatmul.mubr.bf16.gmra.mrb[32].mxu1 %v2609_v21 }
 0x103   :  { %2234 = vmatprep.mubr.msk.bf16.mxu0 %vm980_vm0, %v2610_v22  ;;  %2250 = vmatprep.mubr.msk.bf16.mxu1 %vm980_vm0, %v2610_v22 }
 0x10a   :  { %1345 = vmatmul.mubr.bf16.gmra.mrb[36].mxu0 %v2612_v23  ;;  %1731 = vmatmul.mubr.bf16.gmra.mrb[36].mxu1 %v2612_v23 }
 0x10b   :  { %2235 = vmatprep.mubr.msk.bf16.mxu0 %vm980_vm0, %v2613_v24  ;;  %2251 = vmatprep.mubr.msk.bf16.mxu1 %vm980_vm0, %v2613_v24 }
 0x112   :  { %1355 = vmatmul.mubr.bf16.gmra.mrb[40].mxu0 %v2615_v25  ;;  %1741 = vmatmul.mubr.bf16.gmra.mrb[40].mxu1 %v2615_v25 }
 0x113   :  { %2236 = vmatprep.mubr.msk.bf16.mxu0 %vm980_vm0, %v2616_v26  ;;  %2252 = vmatprep.mubr.msk.bf16.mxu1 %vm980_vm0, %v2616_v26 }
 0x11a   :  { %1365 = vmatmul.mubr.bf16.gmra.mrb[44].mxu0 %v2618_v27  ;;  %1751 = vmatmul.mubr.bf16.gmra.mrb[44].mxu1 %v2618_v27 }
 0x11b   :  { %2237 = vmatprep.mubr.msk.bf16.mxu0 %vm980_vm0, %v2619_v28  ;;  %2253 = vmatprep.mubr.msk.bf16.mxu1 %vm980_vm0, %v2619_v28 }
 0x122   :  { %1375 = vmatmul.mubr.bf16.gmra.mrb[48].mxu0 %v2621_v29  ;;  %1761 = vmatmul.mubr.bf16.gmra.mrb[48].mxu1 %v2621_v29 }
 0x123   :  { %2238 = vmatprep.mubr.msk.bf16.mxu0 %vm980_vm0, %v2622_v30  ;;  %2254 = vmatprep.mubr.msk.bf16.mxu1 %vm980_vm0, %v2622_v30 }
 0x12a   :  { %1385 = vmatmul.mubr.bf16.gmra.mrb[52].mxu0 %v2624_v31  ;;  %1771 = vmatmul.mubr.bf16.gmra.mrb[52].mxu1 %v2624_v31 }
 0x12b   :  { %2239 = vmatprep.mubr.msk.bf16.mxu0 %vm980_vm0, %v2625_v32  ;;  %2255 = vmatprep.mubr.msk.bf16.mxu1 %vm980_vm0, %v2625_v32 }
 0x132   :  { %1395 = vmatmul.mubr.bf16.gmra.mrb[56].mxu0 %v2627_v33  ;;  %1781 = vmatmul.mubr.bf16.gmra.mrb[56].mxu1 %v2627_v33 }
 0x133   :  { %2240 = vmatprep.mubr.msk.bf16.mxu0 %vm980_vm0, %v2628_v34  ;;  %2256 = vmatprep.mubr.msk.bf16.mxu1 %vm980_vm0, %v2628_v34 }
 0x13a   :  { %1405 = vmatmul.mubr.bf16.gmra.mrb[60].mxu0 %v2630_v35  ;;  %1791 = vmatmul.mubr.bf16.gmra.mrb[60].mxu1 %v2630_v35 }
 0x195   :  { %v1256_v36 = vpop.f32.mrb[0].mxu0  ;;  %v1642_v37 = vpop.f32.mrb[0].mxu1 }
 0x196   :  { %v1801_v38 = vmul.f32 %v1256_v36, %v1256_v36  ;;  %v1865_v39 = vmul.f32 %v1642_v37, %v1642_v37  ;;  %v1258_v40 = vpop.f32.mrb[1].mxu0  ;;  %v1644_v41 = vpop.f32.mrb[1].mxu1 }
 0x197   :  { %v1802_v42 = vmul.f32 %v1258_v40, %v1258_v40  ;;  %v1866_v43 = vmul.f32 %v1644_v41, %v1644_v41  ;;  %v1260_v44 = vpop.f32.mrb[2].mxu0  ;;  %v1646_v45 = vpop.f32.mrb[2].mxu1 }
 0x198   :  { %v1929_v46 = vadd.f32 %v1865_v39, %v1801_v38  ;;  %v1803_v47 = vmul.f32 %v1260_v44, %v1260_v44  ;;  %v1867_v48 = vmul.f32 %v1646_v45, %v1646_v45  ;;  %v1262_v49 = vpop.f32.mrb[3].mxu0  ;;  %v1648_v50 = vpop.f32.mrb[3].mxu1 }
 0x199   :  { %v1930_v51 = vadd.f32 %v1866_v43, %v1802_v42  ;;  %v1804_v52 = vmul.f32 %v1262_v49, %v1262_v49  ;;  %v1868_v53 = vmul.f32 %v1648_v50, %v1648_v50 }
 0x19a   :  { %1993 = vst [vmem:[%s3364_s2] sm:$0xff] %v1929_v46  ;;  %v1931_v54 = vadd.f32 %v1867_v48, %v1803_v47 }
 0x19b   :  { %1994 = vst [vmem:[%s3364_s2 + $0x8] sm:$0xff] %v1930_v51  ;;  %v1932_v55 = vadd.f32 %v1868_v53, %v1804_v52 }
 0x19c   :  { %1995 = vst [vmem:[%s3364_s2 + $0x10] sm:$0xff] %v1931_v54 }
 0x19d   :  { %1996 = vst [vmem:[%s3364_s2 + $0x18] sm:$0xff] %v1932_v55  ;;  %v1266_v56 = vpop.f32.mrb[4].mxu0  ;;  %v1652_v57 = vpop.f32.mrb[4].mxu1 }
 0x19e   :  { %v1805_v58 = vmul.f32 %v1266_v56, %v1266_v56  ;;  %v1869_v59 = vmul.f32 %v1652_v57, %v1652_v57  ;;  %v1268_v60 = vpop.f32.mrb[5].mxu0  ;;  %v1654_v61 = vpop.f32.mrb[5].mxu1 }
 0x19f   :  { %v1806_v62 = vmul.f32 %v1268_v60, %v1268_v60  ;;  %v1870_v63 = vmul.f32 %v1654_v61, %v1654_v61  ;;  %v1270_v0 = vpop.f32.mrb[6].mxu0  ;;  %v1656_v1 = vpop.f32.mrb[6].mxu1 }
 0x1a0   :  { %v1933_v2 = vadd.f32 %v1869_v59, %v1805_v58  ;;  %v1807_v3 = vmul.f32 %v1270_v0, %v1270_v0  ;;  %v1871_v4 = vmul.f32 %v1656_v1, %v1656_v1  ;;  %v1272_v5 = vpop.f32.mrb[7].mxu0  ;;  %v1658_v6 = vpop.f32.mrb[7].mxu1 }
 0x1a1   :  { %v1934_v7 = vadd.f32 %v1870_v63, %v1806_v62  ;;  %v1808_v8 = vmul.f32 %v1272_v5, %v1272_v5  ;;  %v1872_v9 = vmul.f32 %v1658_v6, %v1658_v6 }
 0x1a2   :  { %1997 = vst [vmem:[%s3364_s2 + $0x20] sm:$0xff] %v1933_v2  ;;  %v1935_v10 = vadd.f32 %v1871_v4, %v1807_v3 }
 0x1a3   :  { %1998 = vst [vmem:[%s3364_s2 + $0x28] sm:$0xff] %v1934_v7  ;;  %v1936_v11 = vadd.f32 %v1872_v9, %v1808_v8 }
 0x1a4   :  { %1999 = vst [vmem:[%s3364_s2 + $0x30] sm:$0xff] %v1935_v10 }
 0x1a5   :  { %2000 = vst [vmem:[%s3364_s2 + $0x38] sm:$0xff] %v1936_v11  ;;  %v1276_v12 = vpop.f32.mrb[8].mxu0  ;;  %v1662_v13 = vpop.f32.mrb[8].mxu1 }
 0x1a6   :  { %v1809_v14 = vmul.f32 %v1276_v12, %v1276_v12  ;;  %v1873_v15 = vmul.f32 %v1662_v13, %v1662_v13  ;;  %v1278_v16 = vpop.f32.mrb[9].mxu0  ;;  %v1664_v17 = vpop.f32.mrb[9].mxu1 }
 0x1a7   :  { %v1810_v18 = vmul.f32 %v1278_v16, %v1278_v16  ;;  %v1874_v19 = vmul.f32 %v1664_v17, %v1664_v17  ;;  %v1280_v20 = vpop.f32.mrb[10].mxu0  ;;  %v1666_v21 = vpop.f32.mrb[10].mxu1 }
 0x1a8   :  { %v1937_v22 = vadd.f32 %v1873_v15, %v1809_v14  ;;  %v1811_v23 = vmul.f32 %v1280_v20, %v1280_v20  ;;  %v1875_v24 = vmul.f32 %v1666_v21, %v1666_v21  ;;  %v1282_v25 = vpop.f32.mrb[11].mxu0  ;;  %v1668_v26 = vpop.f32.mrb[11].mxu1 }
 0x1a9   :  { %v1938_v27 = vadd.f32 %v1874_v19, %v1810_v18  ;;  %v1812_v28 = vmul.f32 %v1282_v25, %v1282_v25  ;;  %v1876_v29 = vmul.f32 %v1668_v26, %v1668_v26 }
 0x1aa   :  { %2001 = vst [vmem:[%s3364_s2 + $0x40] sm:$0xff] %v1937_v22  ;;  %v1939_v30 = vadd.f32 %v1875_v24, %v1811_v23 }
 0x1ab   :  { %2002 = vst [vmem:[%s3364_s2 + $0x48] sm:$0xff] %v1938_v27  ;;  %v1940_v31 = vadd.f32 %v1876_v29, %v1812_v28 }
 0x1ac   :  { %2003 = vst [vmem:[%s3364_s2 + $0x50] sm:$0xff] %v1939_v30 }
 0x1ad   :  { %2004 = vst [vmem:[%s3364_s2 + $0x58] sm:$0xff] %v1940_v31  ;;  %v1286_v32 = vpop.f32.mrb[12].mxu0  ;;  %v1672_v33 = vpop.f32.mrb[12].mxu1 }
 0x1ae   :  { %v1813_v34 = vmul.f32 %v1286_v32, %v1286_v32  ;;  %v1877_v35 = vmul.f32 %v1672_v33, %v1672_v33  ;;  %v1288_v36 = vpop.f32.mrb[13].mxu0  ;;  %v1674_v37 = vpop.f32.mrb[13].mxu1 }
 0x1af   :  { %v1814_v38 = vmul.f32 %v1288_v36, %v1288_v36  ;;  %v1878_v39 = vmul.f32 %v1674_v37, %v1674_v37  ;;  %v1290_v40 = vpop.f32.mrb[14].mxu0  ;;  %v1676_v41 = vpop.f32.mrb[14].mxu1 }
 0x1b0   :  { %v1941_v42 = vadd.f32 %v1877_v35, %v1813_v34  ;;  %v1815_v43 = vmul.f32 %v1290_v40, %v1290_v40  ;;  %v1879_v44 = vmul.f32 %v1676_v41, %v1676_v41  ;;  %v1292_v45 = vpop.f32.mrb[15].mxu0  ;;  %v1678_v46 = vpop.f32.mrb[15].mxu1 }
 0x1b1   :  { %v1942_v47 = vadd.f32 %v1878_v39, %v1814_v38  ;;  %v1816_v48 = vmul.f32 %v1292_v45, %v1292_v45  ;;  %v1880_v49 = vmul.f32 %v1678_v46, %v1678_v46 }
 0x1b2   :  { %2005 = vst [vmem:[%s3364_s2 + $0x60] sm:$0xff] %v1941_v42  ;;  %v1943_v50 = vadd.f32 %v1879_v44, %v1815_v43 }
 0x1b3   :  { %2006 = vst [vmem:[%s3364_s2 + $0x68] sm:$0xff] %v1942_v47  ;;  %v1944_v51 = vadd.f32 %v1880_v49, %v1816_v48 }
 0x1b4   :  { %2007 = vst [vmem:[%s3364_s2 + $0x70] sm:$0xff] %v1943_v50 }
 0x1b5   :  { %2008 = vst [vmem:[%s3364_s2 + $0x78] sm:$0xff] %v1944_v51  ;;  %v1296_v52 = vpop.f32.mrb[16].mxu0  ;;  %v1682_v53 = vpop.f32.mrb[16].mxu1 }
 0x1b6   :  { %v1817_v54 = vmul.f32 %v1296_v52, %v1296_v52  ;;  %v1881_v55 = vmul.f32 %v1682_v53, %v1682_v53  ;;  %v1298_v56 = vpop.f32.mrb[17].mxu0  ;;  %v1684_v57 = vpop.f32.mrb[17].mxu1 }
 0x1b7   :  { %v1818_v58 = vmul.f32 %v1298_v56, %v1298_v56  ;;  %v1882_v59 = vmul.f32 %v1684_v57, %v1684_v57  ;;  %v1300_v60 = vpop.f32.mrb[18].mxu0  ;;  %v1686_v61 = vpop.f32.mrb[18].mxu1 }
 0x1b8   :  { %v1945_v62 = vadd.f32 %v1881_v55, %v1817_v54  ;;  %v1819_v63 = vmul.f32 %v1300_v60, %v1300_v60  ;;  %v1883_v0 = vmul.f32 %v1686_v61, %v1686_v61  ;;  %v1302_v1 = vpop.f32.mrb[19].mxu0  ;;  %v1688_v2 = vpop.f32.mrb[19].mxu1 }
 0x1b9   :  { %v1946_v3 = vadd.f32 %v1882_v59, %v1818_v58  ;;  %v1820_v4 = vmul.f32 %v1302_v1, %v1302_v1  ;;  %v1884_v5 = vmul.f32 %v1688_v2, %v1688_v2 }
 0x1ba   :  { %2009 = vst [vmem:[%s3364_s2 + $0x80] sm:$0xff] %v1945_v62  ;;  %v1947_v6 = vadd.f32 %v1883_v0, %v1819_v63 }
 0x1bb   :  { %2010 = vst [vmem:[%s3364_s2 + $0x88] sm:$0xff] %v1946_v3  ;;  %v1948_v7 = vadd.f32 %v1884_v5, %v1820_v4 }
 0x1bc   :  { %2011 = vst [vmem:[%s3364_s2 + $0x90] sm:$0xff] %v1947_v6 }
 0x1bd   :  { %2012 = vst [vmem:[%s3364_s2 + $0x98] sm:$0xff] %v1948_v7  ;;  %v1306_v8 = vpop.f32.mrb[20].mxu0  ;;  %v1692_v9 = vpop.f32.mrb[20].mxu1 }
 0x1be   :  { %v1821_v10 = vmul.f32 %v1306_v8, %v1306_v8  ;;  %v1885_v11 = vmul.f32 %v1692_v9, %v1692_v9  ;;  %v1308_v12 = vpop.f32.mrb[21].mxu0  ;;  %v1694_v13 = vpop.f32.mrb[21].mxu1 }
 0x1bf   :  { %v1822_v14 = vmul.f32 %v1308_v12, %v1308_v12  ;;  %v1886_v15 = vmul.f32 %v1694_v13, %v1694_v13  ;;  %v1310_v16 = vpop.f32.mrb[22].mxu0  ;;  %v1696_v17 = vpop.f32.mrb[22].mxu1 }
 0x1c0   :  { %v1949_v18 = vadd.f32 %v1885_v11, %v1821_v10  ;;  %v1823_v19 = vmul.f32 %v1310_v16, %v1310_v16  ;;  %v1887_v20 = vmul.f32 %v1696_v17, %v1696_v17  ;;  %v1312_v21 = vpop.f32.mrb[23].mxu0  ;;  %v1698_v22 = vpop.f32.mrb[23].mxu1 }
 0x1c1   :  { %v1950_v23 = vadd.f32 %v1886_v15, %v1822_v14  ;;  %v1824_v24 = vmul.f32 %v1312_v21, %v1312_v21  ;;  %v1888_v25 = vmul.f32 %v1698_v22, %v1698_v22 }
 0x1c2   :  { %2013 = vst [vmem:[%s3364_s2 + $0xa0] sm:$0xff] %v1949_v18  ;;  %v1951_v26 = vadd.f32 %v1887_v20, %v1823_v19 }
 0x1c3   :  { %2014 = vst [vmem:[%s3364_s2 + $0xa8] sm:$0xff] %v1950_v23  ;;  %v1952_v27 = vadd.f32 %v1888_v25, %v1824_v24 }
 0x1c4   :  { %2015 = vst [vmem:[%s3364_s2 + $0xb0] sm:$0xff] %v1951_v26 }
 0x1c5   :  { %2016 = vst [vmem:[%s3364_s2 + $0xb8] sm:$0xff] %v1952_v27  ;;  %v1316_v28 = vpop.f32.mrb[24].mxu0  ;;  %v1702_v29 = vpop.f32.mrb[24].mxu1 }
 0x1c6   :  { %v1825_v30 = vmul.f32 %v1316_v28, %v1316_v28  ;;  %v1889_v31 = vmul.f32 %v1702_v29, %v1702_v29  ;;  %v1318_v32 = vpop.f32.mrb[25].mxu0  ;;  %v1704_v33 = vpop.f32.mrb[25].mxu1 }
 0x1c7   :  { %v1826_v34 = vmul.f32 %v1318_v32, %v1318_v32  ;;  %v1890_v35 = vmul.f32 %v1704_v33, %v1704_v33  ;;  %v1320_v36 = vpop.f32.mrb[26].mxu0  ;;  %v1706_v37 = vpop.f32.mrb[26].mxu1 }
 0x1c8   :  { %v1953_v38 = vadd.f32 %v1889_v31, %v1825_v30  ;;  %v1827_v39 = vmul.f32 %v1320_v36, %v1320_v36  ;;  %v1891_v40 = vmul.f32 %v1706_v37, %v1706_v37  ;;  %v1322_v41 = vpop.f32.mrb[27].mxu0  ;;  %v1708_v42 = vpop.f32.mrb[27].mxu1 }
 0x1c9   :  { %v1954_v43 = vadd.f32 %v1890_v35, %v1826_v34  ;;  %v1828_v44 = vmul.f32 %v1322_v41, %v1322_v41  ;;  %v1892_v45 = vmul.f32 %v1708_v42, %v1708_v42 }
 0x1ca   :  { %2017 = vst [vmem:[%s3364_s2 + $0xc0] sm:$0xff] %v1953_v38  ;;  %v1955_v46 = vadd.f32 %v1891_v40, %v1827_v39 }
 0x1cb   :  { %2018 = vst [vmem:[%s3364_s2 + $0xc8] sm:$0xff] %v1954_v43  ;;  %v1956_v47 = vadd.f32 %v1892_v45, %v1828_v44 }
 0x1cc   :  { %2019 = vst [vmem:[%s3364_s2 + $0xd0] sm:$0xff] %v1955_v46 }
 0x1cd   :  { %2020 = vst [vmem:[%s3364_s2 + $0xd8] sm:$0xff] %v1956_v47  ;;  %v1326_v48 = vpop.f32.mrb[28].mxu0  ;;  %v1712_v49 = vpop.f32.mrb[28].mxu1 }
 0x1ce   :  { %v1829_v50 = vmul.f32 %v1326_v48, %v1326_v48  ;;  %v1893_v51 = vmul.f32 %v1712_v49, %v1712_v49  ;;  %v1328_v52 = vpop.f32.mrb[29].mxu0  ;;  %v1714_v53 = vpop.f32.mrb[29].mxu1 }
 0x1cf   :  { %v1830_v54 = vmul.f32 %v1328_v52, %v1328_v52  ;;  %v1894_v55 = vmul.f32 %v1714_v53, %v1714_v53  ;;  %v1330_v56 = vpop.f32.mrb[30].mxu0  ;;  %v1716_v57 = vpop.f32.mrb[30].mxu1 }
 0x1d0   :  { %v1957_v58 = vadd.f32 %v1893_v51, %v1829_v50  ;;  %v1831_v59 = vmul.f32 %v1330_v56, %v1330_v56  ;;  %v1895_v60 = vmul.f32 %v1716_v57, %v1716_v57  ;;  %v1332_v61 = vpop.f32.mrb[31].mxu0  ;;  %v1718_v62 = vpop.f32.mrb[31].mxu1 }
 0x1d1   :  { %v1958_v63 = vadd.f32 %v1894_v55, %v1830_v54  ;;  %v1832_v0 = vmul.f32 %v1332_v61, %v1332_v61  ;;  %v1896_v1 = vmul.f32 %v1718_v62, %v1718_v62 }
 0x1d2   :  { %2021 = vst [vmem:[%s3364_s2 + $0xe0] sm:$0xff] %v1957_v58  ;;  %v1959_v2 = vadd.f32 %v1895_v60, %v1831_v59 }
 0x1d3   :  { %2022 = vst [vmem:[%s3364_s2 + $0xe8] sm:$0xff] %v1958_v63  ;;  %v1960_v3 = vadd.f32 %v1896_v1, %v1832_v0 }
 0x1d4   :  { %2023 = vst [vmem:[%s3364_s2 + $0xf0] sm:$0xff] %v1959_v2 }
 0x1d5   :  { %2024 = vst [vmem:[%s3364_s2 + $0xf8] sm:$0xff] %v1960_v3  ;;  %v1336_v4 = vpop.f32.mrb[32].mxu0  ;;  %v1722_v5 = vpop.f32.mrb[32].mxu1 }
 0x1d6   :  { %v1833_v6 = vmul.f32 %v1336_v4, %v1336_v4  ;;  %v1897_v7 = vmul.f32 %v1722_v5, %v1722_v5  ;;  %v1338_v8 = vpop.f32.mrb[33].mxu0  ;;  %v1724_v9 = vpop.f32.mrb[33].mxu1 }
 0x1d7   :  { %v1834_v10 = vmul.f32 %v1338_v8, %v1338_v8  ;;  %v1898_v11 = vmul.f32 %v1724_v9, %v1724_v9  ;;  %v1340_v12 = vpop.f32.mrb[34].mxu0  ;;  %v1726_v13 = vpop.f32.mrb[34].mxu1 }
 0x1d8   :  { %v1961_v14 = vadd.f32 %v1897_v7, %v1833_v6  ;;  %v1835_v15 = vmul.f32 %v1340_v12, %v1340_v12  ;;  %v1899_v16 = vmul.f32 %v1726_v13, %v1726_v13  ;;  %v1342_v17 = vpop.f32.mrb[35].mxu0  ;;  %v1728_v18 = vpop.f32.mrb[35].mxu1 }
 0x1d9   :  { %v1962_v19 = vadd.f32 %v1898_v11, %v1834_v10  ;;  %v1836_v20 = vmul.f32 %v1342_v17, %v1342_v17  ;;  %v1900_v21 = vmul.f32 %v1728_v18, %v1728_v18 }
 0x1da   :  { %2025 = vst [vmem:[%s3364_s2 + $0x100] sm:$0xff] %v1961_v14  ;;  %v1963_v22 = vadd.f32 %v1899_v16, %v1835_v15 }
 0x1db   :  { %2026 = vst [vmem:[%s3364_s2 + $0x108] sm:$0xff] %v1962_v19  ;;  %v1964_v23 = vadd.f32 %v1900_v21, %v1836_v20 }
 0x1dc   :  { %2027 = vst [vmem:[%s3364_s2 + $0x110] sm:$0xff] %v1963_v22 }
 0x1dd   :  { %2028 = vst [vmem:[%s3364_s2 + $0x118] sm:$0xff] %v1964_v23  ;;  %v1346_v24 = vpop.f32.mrb[36].mxu0  ;;  %v1732_v25 = vpop.f32.mrb[36].mxu1 }
 0x1de   :  { %v1837_v26 = vmul.f32 %v1346_v24, %v1346_v24  ;;  %v1901_v27 = vmul.f32 %v1732_v25, %v1732_v25  ;;  %v1348_v28 = vpop.f32.mrb[37].mxu0  ;;  %v1734_v29 = vpop.f32.mrb[37].mxu1 }
 0x1df   :  { %v1838_v30 = vmul.f32 %v1348_v28, %v1348_v28  ;;  %v1902_v31 = vmul.f32 %v1734_v29, %v1734_v29  ;;  %v1350_v32 = vpop.f32.mrb[38].mxu0  ;;  %v1736_v33 = vpop.f32.mrb[38].mxu1 }
 0x1e0   :  { %v1965_v34 = vadd.f32 %v1901_v27, %v1837_v26  ;;  %v1839_v35 = vmul.f32 %v1350_v32, %v1350_v32  ;;  %v1903_v36 = vmul.f32 %v1736_v33, %v1736_v33  ;;  %v1352_v37 = vpop.f32.mrb[39].mxu0  ;;  %v1738_v38 = vpop.f32.mrb[39].mxu1 }
 0x1e1   :  { %v1966_v39 = vadd.f32 %v1902_v31, %v1838_v30  ;;  %v1840_v40 = vmul.f32 %v1352_v37, %v1352_v37  ;;  %v1904_v41 = vmul.f32 %v1738_v38, %v1738_v38 }
 0x1e2   :  { %2029 = vst [vmem:[%s3364_s2 + $0x120] sm:$0xff] %v1965_v34  ;;  %v1967_v42 = vadd.f32 %v1903_v36, %v1839_v35 }
 0x1e3   :  { %2030 = vst [vmem:[%s3364_s2 + $0x128] sm:$0xff] %v1966_v39  ;;  %v1968_v43 = vadd.f32 %v1904_v41, %v1840_v40 }
 0x1e4   :  { %2031 = vst [vmem:[%s3364_s2 + $0x130] sm:$0xff] %v1967_v42 }
 0x1e5   :  { %2032 = vst [vmem:[%s3364_s2 + $0x138] sm:$0xff] %v1968_v43  ;;  %v1356_v44 = vpop.f32.mrb[40].mxu0  ;;  %v1742_v45 = vpop.f32.mrb[40].mxu1 }
 0x1e6   :  { %v1841_v46 = vmul.f32 %v1356_v44, %v1356_v44  ;;  %v1905_v47 = vmul.f32 %v1742_v45, %v1742_v45  ;;  %v1358_v48 = vpop.f32.mrb[41].mxu0  ;;  %v1744_v49 = vpop.f32.mrb[41].mxu1 }
 0x1e7   :  { %v1842_v50 = vmul.f32 %v1358_v48, %v1358_v48  ;;  %v1906_v51 = vmul.f32 %v1744_v49, %v1744_v49  ;;  %v1360_v52 = vpop.f32.mrb[42].mxu0  ;;  %v1746_v53 = vpop.f32.mrb[42].mxu1 }
 0x1e8   :  { %v1969_v54 = vadd.f32 %v1905_v47, %v1841_v46  ;;  %v1843_v55 = vmul.f32 %v1360_v52, %v1360_v52  ;;  %v1907_v56 = vmul.f32 %v1746_v53, %v1746_v53  ;;  %v1362_v57 = vpop.f32.mrb[43].mxu0  ;;  %v1748_v58 = vpop.f32.mrb[43].mxu1 }
 0x1e9   :  { %v1970_v59 = vadd.f32 %v1906_v51, %v1842_v50  ;;  %v1844_v60 = vmul.f32 %v1362_v57, %v1362_v57  ;;  %v1908_v61 = vmul.f32 %v1748_v58, %v1748_v58 }
 0x1ea   :  { %2033 = vst [vmem:[%s3364_s2 + $0x140] sm:$0xff] %v1969_v54  ;;  %v1971_v62 = vadd.f32 %v1907_v56, %v1843_v55 }
 0x1eb   :  { %2034 = vst [vmem:[%s3364_s2 + $0x148] sm:$0xff] %v1970_v59  ;;  %v1972_v63 = vadd.f32 %v1908_v61, %v1844_v60 }
 0x1ec   :  { %2035 = vst [vmem:[%s3364_s2 + $0x150] sm:$0xff] %v1971_v62 }
 0x1ed   :  { %2036 = vst [vmem:[%s3364_s2 + $0x158] sm:$0xff] %v1972_v63  ;;  %v1366_v0 = vpop.f32.mrb[44].mxu0  ;;  %v1752_v1 = vpop.f32.mrb[44].mxu1 }
 0x1ee   :  { %v1845_v2 = vmul.f32 %v1366_v0, %v1366_v0  ;;  %v1909_v3 = vmul.f32 %v1752_v1, %v1752_v1  ;;  %v1368_v4 = vpop.f32.mrb[45].mxu0  ;;  %v1754_v5 = vpop.f32.mrb[45].mxu1 }
 0x1ef   :  { %v1846_v6 = vmul.f32 %v1368_v4, %v1368_v4  ;;  %v1910_v7 = vmul.f32 %v1754_v5, %v1754_v5  ;;  %v1370_v8 = vpop.f32.mrb[46].mxu0  ;;  %v1756_v9 = vpop.f32.mrb[46].mxu1 }
 0x1f0   :  { %v1973_v10 = vadd.f32 %v1909_v3, %v1845_v2  ;;  %v1847_v11 = vmul.f32 %v1370_v8, %v1370_v8  ;;  %v1911_v12 = vmul.f32 %v1756_v9, %v1756_v9  ;;  %v1372_v13 = vpop.f32.mrb[47].mxu0  ;;  %v1758_v14 = vpop.f32.mrb[47].mxu1 }
 0x1f1   :  { %v1974_v15 = vadd.f32 %v1910_v7, %v1846_v6  ;;  %v1848_v16 = vmul.f32 %v1372_v13, %v1372_v13  ;;  %v1912_v17 = vmul.f32 %v1758_v14, %v1758_v14 }
 0x1f2   :  { %2037 = vst [vmem:[%s3364_s2 + $0x160] sm:$0xff] %v1973_v10  ;;  %v1975_v18 = vadd.f32 %v1911_v12, %v1847_v11 }
 0x1f3   :  { %2038 = vst [vmem:[%s3364_s2 + $0x168] sm:$0xff] %v1974_v15  ;;  %v1976_v19 = vadd.f32 %v1912_v17, %v1848_v16 }
 0x1f4   :  { %2039 = vst [vmem:[%s3364_s2 + $0x170] sm:$0xff] %v1975_v18 }
 0x1f5   :  { %2040 = vst [vmem:[%s3364_s2 + $0x178] sm:$0xff] %v1976_v19  ;;  %v1376_v20 = vpop.f32.mrb[48].mxu0  ;;  %v1762_v21 = vpop.f32.mrb[48].mxu1 }
 0x1f6   :  { %v1849_v22 = vmul.f32 %v1376_v20, %v1376_v20  ;;  %v1913_v23 = vmul.f32 %v1762_v21, %v1762_v21  ;;  %v1378_v24 = vpop.f32.mrb[49].mxu0  ;;  %v1764_v25 = vpop.f32.mrb[49].mxu1 }
 0x1f7   :  { %v1850_v26 = vmul.f32 %v1378_v24, %v1378_v24  ;;  %v1914_v27 = vmul.f32 %v1764_v25, %v1764_v25  ;;  %v1380_v28 = vpop.f32.mrb[50].mxu0  ;;  %v1766_v29 = vpop.f32.mrb[50].mxu1 }
 0x1f8   :  { %v1977_v30 = vadd.f32 %v1913_v23, %v1849_v22  ;;  %v1851_v31 = vmul.f32 %v1380_v28, %v1380_v28  ;;  %v1915_v32 = vmul.f32 %v1766_v29, %v1766_v29  ;;  %v1382_v33 = vpop.f32.mrb[51].mxu0  ;;  %v1768_v34 = vpop.f32.mrb[51].mxu1 }
 0x1f9   :  { %v1978_v35 = vadd.f32 %v1914_v27, %v1850_v26  ;;  %v1852_v36 = vmul.f32 %v1382_v33, %v1382_v33  ;;  %v1916_v37 = vmul.f32 %v1768_v34, %v1768_v34 }
 0x1fa   :  { %2041 = vst [vmem:[%s3364_s2 + $0x180] sm:$0xff] %v1977_v30  ;;  %v1979_v38 = vadd.f32 %v1915_v32, %v1851_v31 }
 0x1fb   :  { %2042 = vst [vmem:[%s3364_s2 + $0x188] sm:$0xff] %v1978_v35  ;;  %v1980_v39 = vadd.f32 %v1916_v37, %v1852_v36 }
 0x1fc   :  { %2043 = vst [vmem:[%s3364_s2 + $0x190] sm:$0xff] %v1979_v38 }
 0x1fd   :  { %2044 = vst [vmem:[%s3364_s2 + $0x198] sm:$0xff] %v1980_v39  ;;  %v1386_v40 = vpop.f32.mrb[52].mxu0  ;;  %v1772_v41 = vpop.f32.mrb[52].mxu1 }
 0x1fe   :  { %v1853_v42 = vmul.f32 %v1386_v40, %v1386_v40  ;;  %v1917_v43 = vmul.f32 %v1772_v41, %v1772_v41  ;;  %v1388_v44 = vpop.f32.mrb[53].mxu0  ;;  %v1774_v45 = vpop.f32.mrb[53].mxu1 }
 0x1ff   :  { %v1854_v46 = vmul.f32 %v1388_v44, %v1388_v44  ;;  %v1918_v47 = vmul.f32 %v1774_v45, %v1774_v45  ;;  %v1390_v48 = vpop.f32.mrb[54].mxu0  ;;  %v1776_v49 = vpop.f32.mrb[54].mxu1 }
 0x200   :  { %v1981_v50 = vadd.f32 %v1917_v43, %v1853_v42  ;;  %v1855_v51 = vmul.f32 %v1390_v48, %v1390_v48  ;;  %v1919_v52 = vmul.f32 %v1776_v49, %v1776_v49  ;;  %v1392_v53 = vpop.f32.mrb[55].mxu0  ;;  %v1778_v54 = vpop.f32.mrb[55].mxu1 }
 0x201   :  { %v1982_v55 = vadd.f32 %v1918_v47, %v1854_v46  ;;  %v1856_v56 = vmul.f32 %v1392_v53, %v1392_v53  ;;  %v1920_v57 = vmul.f32 %v1778_v54, %v1778_v54 }
 0x202   :  { %2045 = vst [vmem:[%s3364_s2 + $0x1a0] sm:$0xff] %v1981_v50  ;;  %v1983_v58 = vadd.f32 %v1919_v52, %v1855_v51 }
 0x203   :  { %2046 = vst [vmem:[%s3364_s2 + $0x1a8] sm:$0xff] %v1982_v55  ;;  %v1984_v59 = vadd.f32 %v1920_v57, %v1856_v56 }
 0x204   :  { %2047 = vst [vmem:[%s3364_s2 + $0x1b0] sm:$0xff] %v1983_v58 }
 0x205   :  { %2048 = vst [vmem:[%s3364_s2 + $0x1b8] sm:$0xff] %v1984_v59  ;;  %v1396_v60 = vpop.f32.mrb[56].mxu0  ;;  %v1782_v61 = vpop.f32.mrb[56].mxu1 }
 0x206   :  { %v1857_v62 = vmul.f32 %v1396_v60, %v1396_v60  ;;  %v1921_v63 = vmul.f32 %v1782_v61, %v1782_v61  ;;  %v1398_v0 = vpop.f32.mrb[57].mxu0  ;;  %v1784_v1 = vpop.f32.mrb[57].mxu1 }
 0x207   :  { %v1858_v2 = vmul.f32 %v1398_v0, %v1398_v0  ;;  %v1922_v3 = vmul.f32 %v1784_v1, %v1784_v1  ;;  %v1400_v4 = vpop.f32.mrb[58].mxu0  ;;  %v1786_v5 = vpop.f32.mrb[58].mxu1 }
 0x208   :  { %v1985_v6 = vadd.f32 %v1921_v63, %v1857_v62  ;;  %v1859_v7 = vmul.f32 %v1400_v4, %v1400_v4  ;;  %v1923_v8 = vmul.f32 %v1786_v5, %v1786_v5  ;;  %v1402_v9 = vpop.f32.mrb[59].mxu0  ;;  %v1788_v10 = vpop.f32.mrb[59].mxu1 }
 0x209   :  { %v1986_v11 = vadd.f32 %v1922_v3, %v1858_v2  ;;  %v1860_v12 = vmul.f32 %v1402_v9, %v1402_v9  ;;  %v1924_v13 = vmul.f32 %v1788_v10, %v1788_v10 }
 0x20a   :  { %2049 = vst [vmem:[%s3364_s2 + $0x1c0] sm:$0xff] %v1985_v6  ;;  %v1987_v14 = vadd.f32 %v1923_v8, %v1859_v7 }
 0x20b   :  { %2050 = vst [vmem:[%s3364_s2 + $0x1c8] sm:$0xff] %v1986_v11  ;;  %v1988_v15 = vadd.f32 %v1924_v13, %v1860_v12 }
 0x20c   :  { %2051 = vst [vmem:[%s3364_s2 + $0x1d0] sm:$0xff] %v1987_v14 }
 0x20d   :  { %2052 = vst [vmem:[%s3364_s2 + $0x1d8] sm:$0xff] %v1988_v15  ;;  %v1406_v16 = vpop.f32.mrb[60].mxu0  ;;  %v1792_v17 = vpop.f32.mrb[60].mxu1 }
 0x20e   :  { %v1861_v18 = vmul.f32 %v1406_v16, %v1406_v16  ;;  %v1925_v19 = vmul.f32 %v1792_v17, %v1792_v17  ;;  %v1408_v20 = vpop.f32.mrb[61].mxu0  ;;  %v1794_v21 = vpop.f32.mrb[61].mxu1 }
 0x20f   :  { %v1862_v22 = vmul.f32 %v1408_v20, %v1408_v20  ;;  %v1926_v23 = vmul.f32 %v1794_v21, %v1794_v21  ;;  %v1410_v24 = vpop.f32.mrb[62].mxu0  ;;  %v1796_v25 = vpop.f32.mrb[62].mxu1 }
 0x210   :  { %v1989_v26 = vadd.f32 %v1925_v19, %v1861_v18  ;;  %v1863_v27 = vmul.f32 %v1410_v24, %v1410_v24  ;;  %v1927_v28 = vmul.f32 %v1796_v25, %v1796_v25  ;;  %v1412_v29 = vpop.f32.mrb[63].mxu0  ;;  %v1798_v30 = vpop.f32.mrb[63].mxu1 }
 0x211   :  { %v1990_v31 = vadd.f32 %v1926_v23, %v1862_v22  ;;  %v1864_v32 = vmul.f32 %v1412_v29, %v1412_v29  ;;  %v1928_v33 = vmul.f32 %v1798_v30, %v1798_v30 }
 0x212   :  { %2053 = vst [vmem:[%s3364_s2 + $0x1e0] sm:$0xff] %v1989_v26  ;;  %v1991_v34 = vadd.f32 %v1927_v28, %v1863_v27 }
 0x213   :  { %2054 = vst [vmem:[%s3364_s2 + $0x1e8] sm:$0xff] %v1990_v31  ;;  %v1992_v35 = vadd.f32 %v1928_v33, %v1864_v32 }
 0x214   :  { %2055 = vst [vmem:[%s3364_s2 + $0x1f0] sm:$0xff] %v1991_v34 }
 0x215   :  { %2056 = vst [vmem:[%s3364_s2 + $0x1f8] sm:$0xff] %v1992_v35 }

// kernel: model_forward.3
= control target key start
LH: loop header
LB: loop body
LE: loop exit
PB: predicated region body
PF: predicated region fallthrough
CT: control target
= control target key end

     0   :  { %s28892_s0 = inlined_call_operand.vmem [shape: bf16[2,1,9,8704], index: 0, kind: input, shape index: {}]   ;;  %s28893_s1 = inlined_call_operand.vmem [shape: bf16[16,9], index: 1, kind: input, shape index: {}]   ;;  %s28894_s2 = inlined_call_operand.vmem [shape: f32[16,1], index: 2, kind: input, shape index: {}]   ;;  %s28895_s3 = inlined_call_operand.vmem [shape: bf16[9,16,16], index: 3, kind: input, shape index: {}]   ;;  %s28896_s4 = inlined_call_operand.vmem [shape: f32[16,1], index: 4, kind: input, shape index: {}]   ;;  %s28897_s5 = inlined_call_operand.vmem [shape: f32[16,128], index: 5, kind: input, shape index: {}]   ;;  %s28898_s6 = inlined_call_operand.vmem [shape: f32[1,128], index: 6, kind: input, shape index: {}]   ;;  %s28899_s7 = inlined_call_operand.vmem [shape: f32[16,128], index: 7, kind: input, shape index: {}]   ;;  %s28900_s8 = inlined_call_operand.vmem [shape: f32[1,128], index: 8, kind: input, shape index: {}]   ;;  %s28901_s9 = inlined_call_operand.hbm [shape: f32[2,1,128], index: 9, kind: output, shape index: {0}]   ;;  %s28902_s10 = inlined_call_operand.hbm [shape: f32[2,1,128], index: 10, kind: output, shape index: {1}]  }
   0x1   :  { %29346 = sst [smem:[#allocation171_spill]] %s28892_s0 }
   0x2   :  { %29347 = sst [smem:[#allocation172_spill]] %s28893_s1 }
   0x3   :  { %29348 = sst [smem:[#allocation173_spill]] %s28894_s2 }
   0x4   :  { %29349 = sst [smem:[#allocation174_spill]] %s28895_s3 }
   0x5   :  { %16 = vsyncpa [#allocation5], 0 }
   0x6   :  { %18 = vsyncpa [#allocation5 + $0x1], 0 }
   0x7   :  { %19 = vsyncpa [#allocation7], 0 }
   0x8   :  { %21 = vsyncpa [#allocation7 + $0x1], 0  ;;  %s22339_s13 = smov 0   ;;  %s22341_s14 = smov 0  }
   0x9   :  { %s22343_s15 = smov 0   ;;  %s22345_s16 = smov 0  }
   0xa   :  { %s22347_s17 = smov 0   ;;  %s22349_s18 = smov 0  }
   0xb LB: > { %s20402_s19 = sadd.s32 4294967295, %s22275_s18   ;;  %s20403_s20 = sadd.s32 4294967294, %s22275_s18   ;;  %s22275_s18 = sphi %s22349_s18, %s27_s18   ;;  %s22271_s17 = sphi %s22347_s17, %s30937_s17   ;;  %s22267_s16 = sphi %s22345_s16, %s30936_s16   ;;  %s22263_s15 = sphi %s22343_s15, %s30935_s15   ;;  %s22259_s14 = sphi %s22341_s14, %s30934_s14   ;;  %s22255_s13 = sphi %s22339_s13, %s30933_s13  }
   0xc   : > { %s39_s21 = sadd.s32 1, %s22271_s17  ;;  %s242_s22 = sadd.s32 1, %s22263_s15 }
   0xd   : > { %p41_p0 = scmp.ge.s32.totalorder %s39_s21, 2  ;;  %p252_p1 = scmp.ne.s32.totalorder %s22263_s15, %s22259_s14 }
   0xe   : > { %p253_p2 = scmp.eq.s32.totalorder %s20402_s19, 1  ;;  %p258_p3 = scmp.ne.s32.totalorder %s22259_s14, %s22255_s13 }
   0xf   : > { %s30939_s21 = smov (%p41_p0, %s39_s21), 0  ;;  %p259_p5 = scmp.eq.s32.totalorder %s20403_s20, 1 }
  0x10   : > { %p22379_p4 = por %p253_p2, %p252_p1  ;;  %s239_s24 = ssub.s32 %s22271_s17, %s30939_s21 }
  0x11   : > { %p20406_p6 = scmp.ge.s32.totalorder %s22275_s18, 1  ;;  %p240_p7 = scmp.eq.s32.totalorder %s239_s24, 0 }
  0x12   : > { %p22386_p8 = por %p259_p5, %p258_p3  ;;  %p339_p9 = scmp.lt.s32.totalorder %s22275_s18, 3 }
  0x13   : > { %s22392_s26 = scalar_select %p240_p7, %s22263_s15, %s242_s22  }
  0x14   : > { %p340_p10 = pnand %p20406_p6, %p339_p9 }
  0x16   : > { %343 = sbr.rel (%p340_p10) target bundleno = 2019 (0x7e3), region = 56 }
  0x1d   : > { %p384_p11 = scmp.lt.s32.totalorder %s22267_s16, 1  ;;  %vm834_vm0 = vcmask 1043456   ;;  %vm835_vm1 = vcmask 1044480   ;;  %v22277_v0 = vmov 65535   ;;  %v28931_v2 = vmov 0   ;;  %s29352_s2 = sld [smem:[#allocation173_spill]] }
  0x1e   : > { %v836_v1 = vsel %vm834_vm0, 4294967295, %v22277_v0  ;;  %1074 = vmatprep.mubr.bf16.mxu0 %v28931_v2  ;;  %1117 = vmatprep.mubr.bf16.mxu1 %v28931_v2  ;;  %s29353_s0 = sld [smem:[#allocation171_spill]]  ;;  %s29354_s1 = sld [smem:[#allocation172_spill]]  ;;  %vm830_vm2 = vcmask 72704  }
  0x1f   : > { %s385_s27 = scalar_select %p384_p11, %s22267_s16, 1  ;;  %v22398_v3 = vsel %vm835_vm1, %v836_v1, 0  ;;  %22050 = vset.pattern.permute.xlu0 %v28931_v2  ;;  %22051 = vset.pattern.permute.xlu1 %v28931_v2 }
  0x20   : > { %s22279_s28 = smov 1   ;;  %s22281_s29 = smov 127  }
  0x21   : > { %s21984_s30 = smul.u32 544, %s385_s27  ;;  %s29821_s3 = sld [smem:[#allocation174_spill]] }
  0x22   : > { %s28801_s20 = sand.u32 1, %s22259_s14  }
  0x23   : > { %v541_v4 = vld [vmem:[%s29352_s2] sm:$0xff]  ;;  %v542_v5 = vld [vmem:[%s29352_s2 + $0x8] sm:$0xff]  ;;  %s377_s27 = scalar_lea.vmem [#allocation4], %s28801_s20  ;;  %s383_s12 = scalar_lea.vmem [#allocation6], %s28801_s20 }
  0x24   : > { %545 = vperm.xlu0 %22050, %v541_v4   ;;  %s22411_s22 = scalar_lea.vmem %s29353_s0, %s21984_s30  ;;  %v22422_v12 = vld [vmem:[%s29354_s1] sm:$0xff]   ;;  %s20289_s30 = sshll.u32 %s377_s27, 4  ;;  %s28817_s30 = int_to_ptr.vmem [resolvable:$true] %s20289_s30 }
  0x25   : > { %v22052_v6 = vld [vmem:[%s22411_s22 + $0x4] ss:$272 sps:$4 sm:$0x1f]   ;;  %v22054_v7 = vld [vmem:[%s22411_s22 + $0xc] ss:$272 sps:$4 sm:$0x1f]  }
  0x26   : > { %v842_v8 = vand.u32 %v22052_v6, %v22398_v3  ;;  %v22056_v9 = vld [vmem:[%s22411_s22] ss:$272 sps:$4 sm:$0x1f]   ;;  %v22057_v10 = vld [vmem:[%s22411_s22 + $0x8] ss:$272 sps:$4 sm:$0x1f]   ;;  %v848_v11 = vand.u32 %v22054_v7, %v22398_v3 }
  0x27   : > { %v22059_v13 = vld [vmem:[%s22411_s22 + $0x10] ss:$272 sps:$4 sm:$0x1f]   ;;  %v839_v14 = vand.u32 %v22056_v9, %v22398_v3  ;;  %v845_v15 = vand.u32 %v22057_v10, %v22398_v3  ;;  %v22061_v16 = vld [vmem:[%s22411_s22 + $0x14] ss:$272 sps:$4 sm:$0x1f]  }
  0x28   : > { %550 = vperm.xlu0 %22050, %v542_v5   ;;  %1042 = vmatprep.subr.bf16.mxu0 %v842_v8  ;;  %v22062_v17 = vld [vmem:[%s22411_s22 + $0x18] ss:$272 sps:$4 sm:$0x1f]   ;;  %v22064_v18 = vld [vmem:[%s22411_s22 + $0x1c] ss:$272 sps:$4 sm:$0x1f]   ;;  %v854_v19 = vand.u32 %v22061_v16, %v22398_v3  ;;  %v851_v20 = vand.u32 %v22059_v13, %v22398_v3 }
  0x29   : > { %1085 = vmatprep.subr.bf16.mxu1 %v848_v11  ;;  %1043 = vmatpush1.bf16.msra.mxu0 %v839_v14  ;;  %v860_v21 = vand.u32 %v22064_v18, %v22398_v3  ;;  %v857_v22 = vand.u32 %v22062_v17, %v22398_v3  ;;  %v22067_v23 = vld [vmem:[%s22411_s22 + $0x24] ss:$272 sps:$4 sm:$0x1f]   ;;  %v22070_v24 = vld [vmem:[%s22411_s22 + $0x2c] ss:$272 sps:$4 sm:$0x1f]  }
  0x2a   : > { %1086 = vmatpush1.bf16.msra.mxu1 %v845_v15  ;;  %1128 = vmatprep.subr.bf16.mxu0 %v854_v19  ;;  %v22065_v25 = vld [vmem:[%s22411_s22 + $0x20] ss:$272 sps:$4 sm:$0x1f]   ;;  %v866_v26 = vand.u32 %v22067_v23, %v22398_v3  ;;  %v22068_v27 = vld [vmem:[%s22411_s22 + $0x28] ss:$272 sps:$4 sm:$0x1f]   ;;  %v872_v28 = vand.u32 %v22070_v24, %v22398_v3 }
  0x2b   : > { %1171 = vmatprep.subr.bf16.mxu1 %v860_v21  ;;  %v22073_v29 = vld [vmem:[%s22411_s22 + $0x34] ss:$272 sps:$4 sm:$0x1f]   ;;  %v22076_v30 = vld [vmem:[%s22411_s22 + $0x3c] ss:$272 sps:$4 sm:$0x1f]   ;;  %v863_v31 = vand.u32 %v22065_v25, %v22398_v3  ;;  %v869_v32 = vand.u32 %v22068_v27, %v22398_v3 }
  0x2c   : > { %20477 = vmatmul.mubr.msk.bf16.vlgmr.msra.gmra.mrb[0].mxu0 %vm830_vm2, %v22422_v12  ;;  %v878_v33 = vand.u32 %v22073_v29, %v22398_v3  ;;  %v884_v34 = vand.u32 %v22076_v30, %v22398_v3  ;;  %v22071_v35 = vld [vmem:[%s22411_s22 + $0x30] ss:$272 sps:$4 sm:$0x1f]   ;;  %v22074_v36 = vld [vmem:[%s22411_s22 + $0x38] ss:$272 sps:$4 sm:$0x1f]   ;;  %5189 = vrot.lane.b32.xlu0 %v28931_v2, %s22279_s28 }
  0x2d   : > { %20478 = vmatmul.mubr.msk.bf16.vlgmr.msra.gmra.mrb[0].mxu1 %vm830_vm2, %v22422_v12  ;;  %1129 = vmatpush1.bf16.msra.mxu0 %v851_v20  ;;  %v22079_v37 = vld [vmem:[%s22411_s22 + $0x44] ss:$272 sps:$4 sm:$0x1f]   ;;  %v22082_v38 = vld [vmem:[%s22411_s22 + $0x4c] ss:$272 sps:$4 sm:$0x1f]   ;;  %v875_v39 = vand.u32 %v22071_v35, %v22398_v3  ;;  %v881_v40 = vand.u32 %v22074_v36, %v22398_v3 }
  0x2e   : > { %1172 = vmatpush1.bf16.msra.mxu1 %v857_v22  ;;  %1160 = vmatprep.mubr.bf16.mxu0 %v28931_v2  ;;  %v22077_v41 = vld [vmem:[%s22411_s22 + $0x40] ss:$272 sps:$4 sm:$0x1f]   ;;  %v890_v42 = vand.u32 %v22079_v37, %v22398_v3  ;;  %v896_v43 = vand.u32 %v22082_v38, %v22398_v3  ;;  %v22080_v44 = vld [vmem:[%s22411_s22 + $0x48] ss:$272 sps:$4 sm:$0x1f]  }
  0x2f   : > { %1203 = vmatprep.mubr.bf16.mxu1 %v28931_v2  ;;  %1214 = vmatprep.subr.bf16.mxu0 %v866_v26  ;;  %v22085_v45 = vld [vmem:[%s22411_s22 + $0x54] ss:$272 sps:$4 sm:$0x1f]   ;;  %v22088_v46 = vld [vmem:[%s22411_s22 + $0x5c] ss:$272 sps:$4 sm:$0x1f]   ;;  %v887_v52 = vand.u32 %v22077_v41, %v22398_v3  ;;  %v893_v53 = vand.u32 %v22080_v44, %v22398_v3 }
  0x30   : > { %1257 = vmatprep.subr.bf16.mxu1 %v872_v28  ;;  %v22477_v47 = vld [vmem:[%s22411_s22 + $0x90] ss:$272 sps:$4 sm:$0x1f]   ;;  %v22480_v48 = vld [vmem:[%s22411_s22 + $0x94] ss:$272 sps:$4 sm:$0x1f]   ;;  %v902_v60 = vand.u32 %v22085_v45, %v22398_v3  ;;  %v908_v62 = vand.u32 %v22088_v46, %v22398_v3 }
  0x31   : > { %v22483_v49 = vld [vmem:[%s22411_s22 + $0x98] ss:$272 sps:$4 sm:$0x1f]   ;;  %v22486_v50 = vld [vmem:[%s22411_s22 + $0x9c] ss:$272 sps:$4 sm:$0x1f]   ;;  %v947_v51 = vand.u32 %v22477_v47, %v22398_v3  ;;  %v950_v54 = vand.u32 %v22480_v48, %v22398_v3 }
  0x32   : > { %v22495_v55 = vld [vmem:[%s22411_s22 + $0xa0] ss:$272 sps:$4 sm:$0x1f]   ;;  %v956_v56 = vand.u32 %v22486_v50, %v22398_v3  ;;  %v953_v57 = vand.u32 %v22483_v49, %v22398_v3  ;;  %v22502_v58 = vld [vmem:[%s22411_s22 + $0xa4] ss:$272 sps:$4 sm:$0x1f]  }
  0x33   : > { %v22083_v59 = vld [vmem:[%s22411_s22 + $0x50] ss:$272 sps:$4 sm:$0x1f]   ;;  %v22086_v61 = vld [vmem:[%s22411_s22 + $0x58] ss:$272 sps:$4 sm:$0x1f]   ;;  %v959_v1 = vand.u32 %v22495_v55, %v22398_v3  ;;  %v962_v4 = vand.u32 %v22502_v58, %v22398_v3  ;;  %v2640_v55 = vlaneseq }
  0x34   : > { %20479 = vmatmul.mubr.msk.bf16.vlgmr.msra.gmra.mrb[4].mxu0 %vm830_vm2, %v22422_v12  ;;  %v22509_v63 = vld [vmem:[%s22411_s22 + $0xa8] ss:$272 sps:$4 sm:$0x1f]   ;;  %v22512_v0 = vld [vmem:[%s22411_s22 + $0xac] ss:$272 sps:$4 sm:$0x1f]   ;;  %v899_v20 = vand.u32 %v22083_v59, %v22398_v3  ;;  %v905_v21 = vand.u32 %v22086_v61, %v22398_v3 }
  0x35   : > { %20480 = vmatmul.mubr.msk.bf16.vlgmr.msra.gmra.mrb[4].mxu1 %vm830_vm2, %v22422_v12  ;;  %1215 = vmatpush1.bf16.msra.mxu0 %v863_v31  ;;  %v22523_v5 = vld [vmem:[%s22411_s22 + $0xb0] ss:$272 sps:$4 sm:$0x1f]   ;;  %v22091_v6 = vld [vmem:[%s22411_s22 + $0x64] ss:$272 sps:$4 sm:$0x1f]   ;;  %v968_v8 = vand.u32 %v22512_v0, %v22398_v3  ;;  %v965_v9 = vand.u32 %v22509_v63, %v22398_v3 }
  0x36   : > { %1258 = vmatpush1.bf16.msra.mxu1 %v869_v32  ;;  %1246 = vmatprep.mubr.bf16.mxu0 %v28931_v2  ;;  %v22094_v7 = vld [vmem:[%s22411_s22 + $0x6c] ss:$272 sps:$4 sm:$0x1f]   ;;  %v22532_v10 = vld [vmem:[%s22411_s22 + $0xb4] ss:$272 sps:$4 sm:$0x1f]   ;;  %v971_v14 = vand.u32 %v22523_v5, %v22398_v3  ;;  %v914_v28 = vand.u32 %v22091_v6, %v22398_v3 }
  0x37   : > { %1289 = vmatprep.mubr.bf16.mxu1 %v28931_v2  ;;  %1300 = vmatprep.subr.bf16.mxu0 %v878_v33  ;;  %v22537_v11 = vld [vmem:[%s22411_s22 + $0xb8] ss:$272 sps:$4 sm:$0x1f]   ;;  %v22540_v13 = vld [vmem:[%s22411_s22 + $0xbc] ss:$272 sps:$4 sm:$0x1f]   ;;  %v974_v15 = vand.u32 %v22532_v10, %v22398_v3  ;;  %v920_v30 = vand.u32 %v22094_v7, %v22398_v3 }
  0x38   : > { %1343 = vmatprep.subr.bf16.mxu1 %v884_v34  ;;  %v22547_v16 = vld [vmem:[%s22411_s22 + $0xc0] ss:$272 sps:$4 sm:$0x1f]   ;;  %v980_v17 = vand.u32 %v22540_v13, %v22398_v3  ;;  %v977_v18 = vand.u32 %v22537_v11, %v22398_v3  ;;  %v22554_v19 = vld [vmem:[%s22411_s22 + $0xc4] ss:$272 sps:$4 sm:$0x1f]  }
  0x39   : > { %v22559_v22 = vld [vmem:[%s22411_s22 + $0xc8] ss:$272 sps:$4 sm:$0x1f]   ;;  %v22562_v23 = vld [vmem:[%s22411_s22 + $0xcc] ss:$272 sps:$4 sm:$0x1f]   ;;  %v983_v24 = vand.u32 %v22547_v16, %v22398_v3  ;;  %v986_v25 = vand.u32 %v22554_v19, %v22398_v3 }
  0x3a   : > { %v22569_v26 = vld [vmem:[%s22411_s22 + $0xd0] ss:$272 sps:$4 sm:$0x1f]   ;;  %v22092_v29 = vld [vmem:[%s22411_s22 + $0x68] ss:$272 sps:$4 sm:$0x1f]   ;;  %v992_v31 = vand.u32 %v22562_v23, %v22398_v3  ;;  %v989_v32 = vand.u32 %v22559_v22, %v22398_v3 }
  0x3b   : > { %v22089_v27 = vld [vmem:[%s22411_s22 + $0x60] ss:$272 sps:$4 sm:$0x1f]   ;;  %v22580_v33 = vld [vmem:[%s22411_s22 + $0xd4] ss:$272 sps:$4 sm:$0x1f]   ;;  %v29357_v49 = vand.u32 %v22569_v26, %v22398_v3 }
  0x3c   : > { %20481 = vmatmul.mubr.msk.bf16.vlgmr.msra.gmra.mrb[8].mxu0 %vm830_vm2, %v22422_v12  ;;  %v22587_v34 = vld [vmem:[%s22411_s22 + $0xd8] ss:$272 sps:$4 sm:$0x1f]   ;;  %v22590_v35 = vld [vmem:[%s22411_s22 + $0xdc] ss:$272 sps:$4 sm:$0x1f]   ;;  %v911_v59 = vand.u32 %v22089_v27, %v22398_v3  ;;  %v29355_v47 = vand.u32 %v22580_v33, %v22398_v3 }
  0x3d   : > { %20482 = vmatmul.mubr.msk.bf16.vlgmr.msra.gmra.mrb[8].mxu1 %vm830_vm2, %v22422_v12  ;;  %1301 = vmatpush1.bf16.msra.mxu0 %v875_v39  ;;  %v22097_v37 = vld [vmem:[%s22411_s22 + $0x74] ss:$272 sps:$4 sm:$0x1f]   ;;  %v22100_v38 = vld [vmem:[%s22411_s22 + $0x7c] ss:$272 sps:$4 sm:$0x1f]   ;;  %v29356_v48 = vand.u32 %v22590_v35, %v22398_v3  ;;  %v29358_v50 = vand.u32 %v22587_v34, %v22398_v3 }
  0x3e   : > { %1344 = vmatpush1.bf16.msra.mxu1 %v881_v40  ;;  %1332 = vmatprep.mubr.bf16.mxu0 %v28931_v2  ;;  %v22599_v40 = vld [vmem:[%s22411_s22 + $0xe0] ss:$272 sps:$4 sm:$0x1f]   ;;  %v22611_v44 = vld [vmem:[%s22411_s22 + $0xe8] ss:$272 sps:$4 sm:$0x1f]  }
  0x3f   : > { %1375 = vmatprep.mubr.bf16.mxu1 %v28931_v2  ;;  %1386 = vmatprep.subr.bf16.mxu0 %v890_v42  ;;  %v22614_v45 = vld [vmem:[%s22411_s22 + $0xec] ss:$272 sps:$4 sm:$0x1f]   ;;  %v22630_v6 = vld [vmem:[%s22411_s22 + $0xf4] ss:$272 sps:$4 sm:$0x1f]  }
  0x40   : > { %1429 = vmatprep.subr.bf16.mxu1 %v896_v43  ;;  %v22608_v43 = vld [vmem:[%s22411_s22 + $0xe4] ss:$272 sps:$4 sm:$0x1f]   ;;  %v22633_v7 = vld [vmem:[%s22411_s22 + $0xf8] ss:$272 sps:$4 sm:$0x1f]   ;;  %v29364_v63 = vand.u32 %v22630_v6, %v22398_v3 }
  0x41   : > { %v22095_v27 = vld [vmem:[%s22411_s22 + $0x70] ss:$272 sps:$4 sm:$0x1f]   ;;  %v22658_v61 = vld [vmem:[%s22411_s22 + $0x104] ss:$272 sps:$4 sm:$0x1f]   ;;  %v29370_v10 = vand.u32 %v22633_v7, %v22398_v3 }
  0x42   : > { %v22647_v46 = vld [vmem:[%s22411_s22 + $0x100] ss:$272 sps:$4 sm:$0x1f]   ;;  %v22666_v42 = vld [vmem:[%s22411_s22 + $0x10c] ss:$272 sps:$4 sm:$0x1f]  }
  0x43   : > { %v22806_v58 = vand.u32 127, %v2640_v55  ;;  %v29374_v26 = vand.u32 %v22647_v46, %v22398_v3  ;;  %v29411_v35 = vmov 0  ;;  %s20302_s19 = sshll.u32 %s383_s12, 4  ;;  %s20273_s11 = scalar_lea.sflag [#allocation5], %s28801_s20  ;;  %s28824_s19 = int_to_ptr.vmem [resolvable:$true] %s20302_s19 }
  0x44   : > { %20483 = vmatmul.mubr.msk.bf16.vlgmr.msra.gmra.mrb[12].mxu0 %vm830_vm2, %v22422_v12  ;;  %s22165_s0 = scalar_lea.vmem %s28817_s30, 16  ;;  %s22282_s1 = smov [#allocation4]  }
  0x45   : > { %20484 = vmatmul.mubr.msk.bf16.vlgmr.msra.gmra.mrb[12].mxu1 %vm830_vm2, %v22422_v12  ;;  %1387 = vmatpush1.bf16.msra.mxu0 %v887_v52  ;;  %v22663_v52 = vld [vmem:[%s22411_s22 + $0x108] ss:$272 sps:$4 sm:$0x1f]   ;;  %29363 = vst [vmem:[#allocation10_spill] sm:$0xff] %v22806_v58  ;;  %v22823_v5 = vadd.s32 256, %v22806_v58  ;;  %v22881_v33 = vadd.s32 896, %v22806_v58  ;;  %p22166_p12 = scmp.ne.s32.totalorder %s28817_s30, %s22165_s0 }
  0x46   : > { %1430 = vmatpush1.bf16.msra.mxu1 %v893_v53  ;;  %1418 = vmatprep.mubr.bf16.mxu0 %v28931_v2  ;;  %v22621_v53 = vld [vmem:[%s22411_s22 + $0xf0] ss:$272 sps:$4 sm:$0x1f]   ;;  %v22918_v46 = vadd.s32 1280, %v22806_v58  ;;  %v22943_v7 = vadd.s32 1408, %v22806_v58  ;;  %v22996_v55 = vadd.s32 1920, %v22806_v58 }
  0x47   : > { %1461 = vmatprep.mubr.bf16.mxu1 %v28931_v2  ;;  %1472 = vmatprep.subr.bf16.mxu0 %v902_v60  ;;  %v917_v60 = vand.u32 %v22092_v29, %v22398_v3  ;;  %v22098_v29 = vld [vmem:[%s22411_s22 + $0x78] ss:$272 sps:$4 sm:$0x1f]   ;;  %29368 = vst [vmem:[#allocation13_spill] sm:$0xff] %v22823_v5  ;;  %29375 = vst [vmem:[#allocation17_spill] sm:$0xff] %v22881_v33  ;;  %v23031_v34 = vadd.s32 2432, %v22806_v58  ;;  %p22167_p13 = pnand %p22166_p12, %p22379_p4 }
  0x48   : > { %1515 = vmatprep.subr.bf16.mxu1 %v908_v62  ;;  %v22106_v62 = vld [vmem:[%s22411_s22 + $0x8c] ss:$272 sps:$4 sm:$0x1f]   ;;  %v929_v36 = vand.u32 %v22098_v29, %v22398_v3  ;;  %29391 = vst [vmem:[#allocation21_spill] sm:$0xff] %v22918_v46  ;;  %29393 = vst [vmem:[#allocation23_spill] sm:$0xff] %v22943_v7  ;;  %s22169_s2 = sshll.u32 %s22282_s1, 4  ;;  %s22170_s2 = int_to_ptr.vmem [resolvable:$false] %s22169_s2 }
  0x49   : > { %v944_v39 = vand.u32 %v22106_v62, %v22398_v3  ;;  %29400 = vst [vmem:[#allocation28_spill] sm:$0xff] %v22996_v55  ;;  %29408 = vst [vmem:[#allocation32_spill] sm:$0xff] %v23031_v34  ;;  %p22168_p0 = pneg %p22167_p13  ;;  %p22172_p1 = scmp.lt.s32.totalorder %s28817_s30, %s22170_s2 }
  0x4c   : > { %20485 = vmatmul.mubr.msk.bf16.vlgmr.msra.gmra.mrb[16].mxu0 %vm830_vm2, %v22422_v12 }
  0x4d   : > { %20486 = vmatmul.mubr.msk.bf16.vlgmr.msra.gmra.mrb[16].mxu1 %vm830_vm2, %v22422_v12  ;;  %1473 = vmatpush1.bf16.msra.mxu0 %v899_v20  ;;  %v22636_v20 = vld [vmem:[%s22411_s22 + $0xfc] ss:$272 sps:$4 sm:$0x1f]  }
  0x4e   : > { %1516 = vmatpush1.bf16.msra.mxu1 %v905_v21  ;;  %1504 = vmatprep.mubr.bf16.mxu0 %v28931_v2  ;;  %v923_v21 = vand.u32 %v22095_v27, %v22398_v3  ;;  %v29365_v0 = vand.u32 %v22636_v20, %v22398_v3 }
  0x4f   : > { %1547 = vmatprep.mubr.bf16.mxu1 %v28931_v2  ;;  %1558 = vmatprep.subr.bf16.mxu0 %v914_v28  ;;  %v926_v28 = vand.u32 %v22097_v37, %v22398_v3  ;;  %v1034_v37 = vand.u32 %v22658_v61, %v22398_v3 }
  0x50   : > { %1601 = vmatprep.subr.bf16.mxu1 %v920_v30  ;;  %v932_v30 = vand.u32 %v22100_v38, %v22398_v3  ;;  %v22103_v38 = vld [vmem:[%s22411_s22 + $0x84] ss:$272 sps:$4 sm:$0x1f]  }
  0x51   : > { %v938_v41 = vand.u32 %v22103_v38, %v22398_v3  ;;  %v22960_v38 = vadd.s32 1536, %v22806_v58 }
  0x53   : > { %29394 = vst [vmem:[#allocation24_spill] sm:$0xff] %v22960_v38 }
  0x54   : > { %20487 = vmatmul.mubr.msk.bf16.vlgmr.msra.gmra.mrb[20].mxu0 %vm830_vm2, %v22422_v12 }
  0x55   : > { %20488 = vmatmul.mubr.msk.bf16.vlgmr.msra.gmra.mrb[20].mxu1 %vm830_vm2, %v22422_v12  ;;  %1559 = vmatpush1.bf16.msra.mxu0 %v911_v59  ;;  %v1040_v59 = vand.u32 %v22666_v42, %v22398_v3 }
  0x56   : > { %1602 = vmatpush1.bf16.msra.mxu1 %v917_v60  ;;  %1590 = vmatprep.mubr.bf16.mxu0 %v28931_v2  ;;  %v1037_v60 = vand.u32 %v22663_v52, %v22398_v3  ;;  %v22925_v52 = vadd.s32 1152, %v22806_v58 }
  0x57   : > { %1633 = vmatprep.mubr.bf16.mxu1 %v28931_v2  ;;  %1644 = vmatprep.subr.bf16.mxu0 %v926_v28  ;;  %v22101_v28 = vld [vmem:[%s22411_s22 + $0x80] ss:$272 sps:$4 sm:$0x1f]  }
  0x58   : > { %1687 = vmatprep.subr.bf16.mxu1 %v932_v30  ;;  %v22104_v30 = vld [vmem:[%s22411_s22 + $0x88] ss:$272 sps:$4 sm:$0x1f]   ;;  %v935_v27 = vand.u32 %v22101_v28, %v22398_v3  ;;  %29392 = vst [vmem:[#allocation22_spill] sm:$0xff] %v22925_v52  ;;  %v3059_v28 = vand.u32 255, %v22881_v33  ;;  %s20956_s22 = sshll.u32 %s22267_s16, 4 }
  0x59   : > { %v941_v62 = vand.u32 %v22104_v30, %v22398_v3  ;;  %v28914_v30 = vshra.s32 %v22925_v52, 8  ;;  %s28815_s16 = scalar_lea.hbm %s28901_s9, %s20956_s22 }
  0x5c   : > { %20489 = vmatmul.mubr.msk.bf16.vlgmr.msra.gmra.mrb[24].mxu0 %vm830_vm2, %v22422_v12 }
  0x5d   : > { %20490 = vmatmul.mubr.msk.bf16.vlgmr.msra.gmra.mrb[24].mxu1 %vm830_vm2, %v22422_v12  ;;  %1645 = vmatpush1.bf16.msra.mxu0 %v923_v21 }
  0x5e   : > { %1688 = vmatpush1.bf16.msra.mxu1 %v929_v36  ;;  %1676 = vmatprep.mubr.bf16.mxu0 %v28931_v2  ;;  %v29380_v36 = vmov 0 }
  0x5f   : > { %1719 = vmatprep.mubr.bf16.mxu1 %v28931_v2  ;;  %1730 = vmatprep.subr.bf16.mxu0 %v938_v41  ;;  %v29385_v41 = vmov 0 }
  0x60   : > { %1773 = vmatprep.subr.bf16.mxu1 %v944_v39 }
  0x64   : > { %20491 = vmatmul.mubr.msk.bf16.vlgmr.msra.gmra.mrb[28].mxu0 %vm830_vm2, %v22422_v12 }
  0x65   : > { %20492 = vmatmul.mubr.msk.bf16.vlgmr.msra.gmra.mrb[28].mxu1 %vm830_vm2, %v22422_v12  ;;  %1731 = vmatpush1.bf16.msra.mxu0 %v935_v27  ;;  %v28913_v27 = vshra.s32 %v22943_v7, 8 }
  0x66   : > { %1774 = vmatpush1.bf16.msra.mxu1 %v941_v62  ;;  %1762 = vmatprep.mubr.bf16.mxu0 %v28931_v2  ;;  %v22978_v62 = vadd.s32 1792, %v22806_v58 }
  0x67   : > { %1805 = vmatprep.mubr.bf16.mxu1 %v28931_v2  ;;  %1816 = vmatprep.subr.bf16.mxu0 %v950_v54  ;;  %v29360_v54 = vand.u32 %v22614_v45, %v22398_v3  ;;  %v28922_v45 = vshra.s32 %v22881_v33, 8  ;;  %v29601_v33 = vmov 0 }
  0x68   : > { %1859 = vmatprep.subr.bf16.mxu1 %v956_v56  ;;  %v29361_v56 = vand.u32 %v22599_v40, %v22398_v3  ;;  %29395 = vst [vmem:[#allocation25_spill] sm:$0xff] %v22978_v62 }
  0x69   : > { %v2787_v29 = vadd.s32 4294967295, %v28922_v45  ;;  %v23178_v45 = vadd.s32 3456, %v22806_v58 }
  0x6b   : > { %29460 = vst [vmem:[#allocation45_spill] sm:$0xff] %v23178_v45 }
  0x6c   : > { %20493 = vmatmul.mubr.msk.bf16.vlgmr.msra.gmra.mrb[32].mxu0 %vm830_vm2, %v22422_v12 }
  0x6d   : > { %20494 = vmatmul.mubr.msk.bf16.vlgmr.msra.gmra.mrb[32].mxu1 %vm830_vm2, %v22422_v12  ;;  %1817 = vmatpush1.bf16.msra.mxu0 %v947_v51  ;;  %v29359_v51 = vand.u32 %v22608_v43, %v22398_v3  ;;  %v22910_v43 = vadd.s32 1024, %v22806_v58 }
  0x6e   : > { %1860 = vmatpush1.bf16.msra.mxu1 %v953_v57  ;;  %1848 = vmatprep.mubr.bf16.mxu0 %v28931_v2  ;;  %v29362_v57 = vand.u32 %v22611_v44, %v22398_v3  ;;  %v29415_v44 = vmov 0 }
  0x6f   : > { %1891 = vmatprep.mubr.bf16.mxu1 %v28931_v2  ;;  %1902 = vmatprep.subr.bf16.mxu0 %v962_v4  ;;  %v22820_v4 = vadd.s32 384, %v22806_v58  ;;  %29388 = vst [vmem:[#allocation20_spill] sm:$0xff] %v22910_v43  ;;  %v28906_v20 = vshra.s32 %v22910_v43, 8  ;;  %v23507_v43 = vadd.s32 4736, %v22806_v58 }
  0x70   : > { %1945 = vmatprep.subr.bf16.mxu1 %v968_v8  ;;  %v28919_v8 = vshra.s32 %v22806_v58, 8 }
  0x71   : > { %29367 = vst [vmem:[#allocation12_spill] sm:$0xff] %v22820_v4  ;;  %v28929_v13 = vshra.s32 %v22820_v4, 8  ;;  %29575 = vst [vmem:[#allocation68_spill] sm:$0xff] %v23507_v43 }
  0x72   : > { %v2780_v16 = vadd.s32 4294967295, %v28919_v8 }
  0x73   : > { %v2783_v19 = vadd.s32 4294967295, %v28929_v13  ;;  %v23154_v13 = vadd.s32 3328, %v22806_v58 }
  0x74   : > { %20495 = vmatmul.mubr.msk.bf16.vlgmr.msra.gmra.mrb[36].mxu0 %vm830_vm2, %v22422_v12  ;;  %vm2848_vm3 = vcmp.ge.s32.totalorder %v2780_v16, 0  ;;  %vm2916_vm4 = vcmp.lt.s32.totalorder %v2780_v16, 11  ;;  %v28903_v16 = vshra.s32 %v22978_v62, 8 }
  0x75   : > { %20496 = vmatmul.mubr.msk.bf16.vlgmr.msra.gmra.mrb[36].mxu1 %vm830_vm2, %v22422_v12  ;;  %1903 = vmatpush1.bf16.msra.mxu0 %v959_v1  ;;  %v22817_v1 = vadd.s32 128, %v22806_v58  ;;  %vm2851_vm7 = vcmp.ge.s32.totalorder %v2783_v19, 0  ;;  %vm2919_vm8 = vcmp.lt.s32.totalorder %v2783_v19, 11  ;;  %vm22884_vm9 = vmand %vm2848_vm3, %vm2916_vm4  ;;  %v23014_v19 = vadd.s32 2048, %v22806_v58  ;;  %29450 = vst [vmem:[#allocation43_spill] sm:$0xff] %v23154_v13 }
  0x76   : > { %1946 = vmatpush1.bf16.msra.mxu1 %v965_v9  ;;  %1934 = vmatprep.mubr.bf16.mxu0 %v28931_v2  ;;  %v29369_v9 = vand.u32 %v22621_v53, %v22398_v3  ;;  %vm22899_vm14 = vmand %vm2851_vm7, %vm2919_vm8  ;;  %v28938_v53 = vmov 0.0   ;;  %v2794_v40 = vadd.s32 4294967295, %v28903_v16  ;;  %v28918_v16 = vshra.s32 %v23031_v34, 8 }
  0x77   : > { %1977 = vmatprep.mubr.bf16.mxu1 %v28931_v2  ;;  %1988 = vmatprep.subr.bf16.mxu0 %v974_v15  ;;  %29366 = vst [vmem:[#allocation11_spill] sm:$0xff] %v22817_v1  ;;  %v28930_v11 = vshra.s32 %v22817_v1, 8  ;;  %v22848_v15 = vadd.s32 512, %v22806_v58  ;;  %v22934_v61 = vsel %vm22884_vm9, 1.0, %v28938_v53  ;;  %29404 = vst [vmem:[#allocation30_spill] sm:$0xff] %v23014_v19 }
  0x78   : > { %2031 = vmatprep.subr.bf16.mxu1 %v980_v17 }
  0x79   : > { %29371 = vst [vmem:[#allocation14_spill] sm:$0xff] %v22848_v15  ;;  %v2781_v17 = vadd.s32 4294967295, %v28930_v11  ;;  %v28912_v23 = vshra.s32 %v22848_v15, 8 }
  0x7b   : > { %vm2849_vm5 = vcmp.ge.s32.totalorder %v2781_v17, 0  ;;  %vm2917_vm6 = vcmp.lt.s32.totalorder %v2781_v17, 11  ;;  %v2784_v3 = vadd.s32 4294967295, %v28912_v23  ;;  %v29428_v23 = vmov 0 }
  0x7c   : > { %20497 = vmatmul.mubr.msk.bf16.vlgmr.msra.gmra.mrb[40].mxu0 %vm830_vm2, %v22422_v12  ;;  %vm22890_vm12 = vmand %vm2849_vm5, %vm2917_vm6 }
  0x7d   : > { %20498 = vmatmul.mubr.msk.bf16.vlgmr.msra.gmra.mrb[40].mxu1 %vm830_vm2, %v22422_v12  ;;  %1989 = vmatpush1.bf16.msra.mxu0 %v971_v14  ;;  %v28916_v14 = vshra.s32 %v22823_v5, 8  ;;  %vm2852_vm3 = vcmp.ge.s32.totalorder %v2784_v3, 0  ;;  %vm2920_vm4 = vcmp.lt.s32.totalorder %v2784_v3, 11  ;;  %v29409_v3 = vmov 0 }
  0x7e   : > { %2032 = vmatpush1.bf16.msra.mxu1 %v977_v18  ;;  %2020 = vmatprep.mubr.bf16.mxu0 %v28931_v2  ;;  %v22855_v18 = vadd.s32 768, %v22806_v58  ;;  %v23594_v5 = vadd.s32 5632, %v22806_v58 }
  0x7f   : > { %2063 = vmatprep.mubr.bf16.mxu1 %v28931_v2  ;;  %2074 = vmatprep.subr.bf16.mxu0 %v986_v25  ;;  %v2782_v22 = vadd.s32 4294967295, %v28916_v14  ;;  %v22868_v25 = vadd.s32 640, %v22806_v58 }
  0x80   : > { %2117 = vmatprep.subr.bf16.mxu1 %v992_v31  ;;  %29372 = vst [vmem:[#allocation15_spill] sm:$0xff] %v22855_v18  ;;  %v3055_v31 = vand.u32 255, %v22820_v4  ;;  %29600 = vst [vmem:[#allocation79_spill] sm:$0xff] %v23594_v5  ;;  %v29624_v4 = vmov 0 }
  0x81   : > { %29373 = vst [vmem:[#allocation16_spill] sm:$0xff] %v22868_v25  ;;  %vm2850_vm10 = vcmp.ge.s32.totalorder %v2782_v22, 0  ;;  %vm2918_vm11 = vcmp.lt.s32.totalorder %v2782_v22, 11  ;;  %v28923_v39 = vshra.s32 %v22868_v25, 8 }
  0x82   : > { %vm22903_vm15 = vcmp.lt.s32.totalorder %v3055_v31, 201  ;;  %vm22912_vm0 = vmand %vm2850_vm10, %vm2918_vm11  ;;  %v29466_v31 = vmov 0 }
  0x83   : > { %v29386_v41 = vsel %vm22903_vm15, 4294967295, %v29385_v41  ;;  %vm3191_vm5 = vmand %vm22899_vm14, %vm22903_vm15  ;;  %v2785_v6 = vadd.s32 4294967295, %v28923_v39  ;;  %v22952_v21 = vsel %vm22912_vm0, 1.0, %v28938_v53  ;;  %vm2923_vm14 = vcmp.lt.s32.totalorder %v2787_v29, 11 }
  0x84   : > { %20499 = vmatmul.mubr.msk.bf16.vlgmr.msra.gmra.mrb[44].mxu0 %vm830_vm2, %v22422_v12  ;;  %29387 = vst [vmem:[#allocation19_spill] sm:$0xff] %v29386_v41  ;;  %vm23001_vm0 = vcmp.lt.s32.totalorder %v3059_v28, 201  ;;  %v23144_v39 = vadd.s32 3072, %v22806_v58 }
  0x85   : > { %20500 = vmatmul.mubr.msk.bf16.vlgmr.msra.gmra.mrb[44].mxu1 %vm830_vm2, %v22422_v12  ;;  %2075 = vmatpush1.bf16.msra.mxu0 %v983_v24  ;;  %v3053_v24 = vand.u32 255, %v22817_v1  ;;  %vm2853_vm9 = vcmp.ge.s32.totalorder %v2785_v6, 0  ;;  %vm2921_vm10 = vcmp.lt.s32.totalorder %v2785_v6, 11 }
  0x86   : > { %2118 = vmatpush1.bf16.msra.mxu1 %v989_v32  ;;  %2106 = vmatprep.mubr.bf16.mxu0 %v28931_v2  ;;  %v28911_v32 = vshra.s32 %v22855_v18, 8  ;;  %29445 = vst [vmem:[#allocation42_spill] sm:$0xff] %v23144_v39 }
  0x87   : > { %2149 = vmatprep.mubr.bf16.mxu1 %v28931_v2  ;;  %2160 = vmatprep.subr.bf16.mxu0 %v29355_v47  ;;  %vm22894_vm13 = vcmp.lt.s32.totalorder %v3053_v24, 201  ;;  %v28907_v24 = vshra.s32 %v22996_v55, 8 }
  0x88   : > { %2203 = vmatprep.subr.bf16.mxu1 %v29356_v48  ;;  %v29381_v36 = vsel %vm22894_vm13, 4294967295, %v29380_v36  ;;  %v2786_v42 = vadd.s32 4294967295, %v28911_v32  ;;  %vm3189_vm1 = vmand %vm22890_vm12, %vm22894_vm13  ;;  %v29396_v48 = vmov 0  ;;  %vm2855_vm12 = vcmp.ge.s32.totalorder %v2787_v29, 0 }
  0x89   : > { %29382 = vst [vmem:[#allocation18_spill] sm:$0xff] %v29381_v36  ;;  %v2795_v28 = vadd.s32 4294967295, %v28907_v24  ;;  %v23082_v24 = vadd.s32 2688, %v22806_v58  ;;  %v23093_v32 = vadd.s32 2944, %v22806_v58 }
  0x8a   : > { %vm2854_vm6 = vcmp.ge.s32.totalorder %v2786_v42, 0  ;;  %vm2922_vm7 = vcmp.lt.s32.totalorder %v2786_v42, 11  ;;  %v23046_v42 = vadd.s32 2304, %v22806_v58 }
  0x8b   : > { %vm2990_vm8 = vmand %vm2854_vm6, %vm2922_vm7  ;;  %29421 = vst [vmem:[#allocation37_spill] sm:$0xff] %v23082_v24 }
  0x8c   : > { %20501 = vmatmul.mubr.msk.bf16.vlgmr.msra.gmra.mrb[48].mxu0 %vm830_vm2, %v22422_v12  ;;  %29414 = vst [vmem:[#allocation34_spill] sm:$0xff] %v23046_v42  ;;  %29425 = vst [vmem:[#allocation38_spill] sm:$0xff] %v23093_v32 }
  0x8d   : > { %20502 = vmatmul.mubr.msk.bf16.vlgmr.msra.gmra.mrb[48].mxu1 %vm830_vm2, %v22422_v12  ;;  %2161 = vmatpush1.bf16.msra.mxu0 %v29357_v49  ;;  %v2788_v49 = vadd.s32 4294967295, %v28906_v20  ;;  %v28927_v20 = vshra.s32 %v23046_v42, 8  ;;  %v29470_v42 = vmov 0.0  }
  0x8e   : > { %2204 = vmatpush1.bf16.msra.mxu1 %v29358_v50  ;;  %2192 = vmatprep.mubr.bf16.mxu0 %v28931_v2  ;;  %v22990_v50 = vadd.s32 1664, %v22806_v58 }
  0x8f   : > { %2235 = vmatprep.mubr.bf16.mxu1 %v28931_v2  ;;  %2246 = vmatprep.subr.bf16.mxu0 %v29359_v51 }
  0x90   : > { %2289 = vmatprep.subr.bf16.mxu1 %v29360_v54  ;;  %29399 = vst [vmem:[#allocation27_spill] sm:$0xff] %v22990_v50  ;;  %v28904_v54 = vshra.s32 %v22960_v38, 8  ;;  %v28908_v17 = vshra.s32 %v22990_v50, 8  ;;  %v3065_v29 = vand.u32 255, %v22990_v50 }
  0x92   : > { %v23018_v22 = vadd.s32 4294967295, %v28904_v54  ;;  %v2793_v6 = vadd.s32 4294967295, %v28908_v17  ;;  %v23072_v54 = vadd.s32 2560, %v22806_v58  ;;  %v29423_v17 = vmov 0 }
  0x94   : > { %20503 = vmatmul.mubr.msk.bf16.vlgmr.msra.gmra.mrb[52].mxu0 %vm830_vm2, %v22422_v12  ;;  %29418 = vst [vmem:[#allocation36_spill] sm:$0xff] %v23072_v54  ;;  %v28936_v14 = vshra.s32 %v23072_v54, 8  ;;  %v29481_v54 = vmov 0 }
  0x95   : > { %20504 = vmatmul.mubr.msk.bf16.vlgmr.msra.gmra.mrb[52].mxu1 %vm830_vm2, %v22422_v12  ;;  %2247 = vmatpush1.bf16.msra.mxu0 %v29361_v56  ;;  %v22999_v56 = vsel %vm2990_vm8, 1.0, %v28938_v53  ;;  %vm23035_vm8 = vmand %vm2855_vm12, %vm2923_vm14 }
  0x96   : > { %2290 = vmatpush1.bf16.msra.mxu1 %v29362_v57  ;;  %2278 = vmatprep.mubr.bf16.mxu0 %v28931_v2  ;;  %v29401_v57 = vmov 0  ;;  %v29410_v3 = vsel %vm23035_vm8, 4294967295, %v29409_v3 }
  0x97   : > { %2321 = vmatprep.mubr.bf16.mxu1 %v28931_v2  ;;  %2332 = vmatprep.subr.bf16.mxu0 %v29364_v63  ;;  %v29402_v57 = vsel %vm23001_vm0, 4294967295, %v29401_v57  ;;  %v2789_v63 = vadd.s32 4294967295, %v28914_v30  ;;  %v23108_v30 = vadd.s32 2816, %v22806_v58 }
  0x98   : > { %2375 = vmatprep.subr.bf16.mxu1 %v29365_v0  ;;  %29403 = vst [vmem:[#allocation29_spill] sm:$0xff] %v29402_v57  ;;  %v3061_v0 = vand.u32 255, %v22925_v52 }
  0x99   : > { %vm2857_vm7 = vcmp.ge.s32.totalorder %v2789_v63, 0  ;;  %29433 = vst [vmem:[#allocation40_spill] sm:$0xff] %v23108_v30 }
  0x9c   : > { %20505 = vmatmul.mubr.msk.bf16.vlgmr.msra.gmra.mrb[56].mxu0 %vm830_vm2, %v22422_v12 }
  0x9d   : > { %20506 = vmatmul.mubr.msk.bf16.vlgmr.msra.gmra.mrb[56].mxu1 %vm830_vm2, %v22422_v12  ;;  %2333 = vmatpush1.bf16.msra.mxu0 %v29369_v9  ;;  %v2791_v9 = vadd.s32 4294967295, %v28913_v27 }
  0x9e   : > { %2376 = vmatpush1.bf16.msra.mxu1 %v29370_v10  ;;  %2364 = vmatprep.mubr.bf16.mxu0 %v28931_v2  ;;  %v3063_v10 = vand.u32 255, %v22943_v7  ;;  %v23554_v7 = vadd.s32 5376, %v22806_v58 }
  0x9f   : > { %2407 = vmatprep.mubr.bf16.mxu1 %v28931_v2  ;;  %2418 = vmatprep.subr.bf16.mxu0 %v1034_v37  ;;  %v28905_v37 = vshra.s32 %v22918_v46, 8 }
  0xa0   : > { %2461 = vmatprep.subr.bf16.mxu1 %v1040_v59  ;;  %v22968_v59 = vsel %vm3189_vm1, 1.0, %v28938_v53  ;;  %vm23048_vm6 = vcmp.lt.s32.totalorder %v3063_v10, 201  ;;  %v3067_v10 = vand.u32 255, %v22996_v55  ;;  %vm29422_vm1 = vcmp.ge.s32.totalorder %v2791_v9, 0  ;;  %29587 = vst [vmem:[#allocation74_spill] sm:$0xff] %v23554_v7 }
  0xa1   : > { %v2790_v51 = vadd.s32 4294967295, %v28905_v37  ;;  %v29416_v44 = vsel %vm23048_vm6, 4294967295, %v29415_v44  ;;  %v29419_v37 = vmov 0  ;;  %vm29447_vm6 = vcmp.ge.s32.totalorder %v2795_v28, 0 }
  0xa2   : > { %29417 = vst [vmem:[#allocation35_spill] sm:$0xff] %v29416_v44  ;;  %v23533_v55 = vadd.s32 5120, %v22806_v58 }
  0xa3   : > { %vm29435_vm15 = vcmp.ge.s32.totalorder %v2790_v51, 0 }
  0xa4   : > { %20507 = vmatmul.mubr.msk.bf16.vlgmr.msra.gmra.mrb[60].mxu0 %vm830_vm2, %v22422_v12  ;;  %29580 = vst [vmem:[#allocation72_spill] sm:$0xff] %v23533_v55  ;;  %v29611_v41 = vshra.s32 %v23533_v55, 8  ;;  %v23635_v55 = vadd.s32 5888, %v22806_v58 }
  0xa5   : > { %20508 = vmatmul.mubr.msk.bf16.vlgmr.msra.gmra.mrb[60].mxu1 %vm830_vm2, %v22422_v12  ;;  %2419 = vmatpush1.bf16.msra.mxu0 %v29374_v26  ;;  %v23022_v26 = vadd.s32 2176, %v22806_v58 }
  0xa6   : > { %2462 = vmatpush1.bf16.msra.mxu1 %v1037_v60  ;;  %2450 = vmatprep.mubr.bf16.mxu0 %v28931_v2  ;;  %v22971_v60 = vsel %vm3191_vm5, 1.0, %v28938_v53  ;;  %vm23026_vm5 = vmand %vm2853_vm9, %vm2921_vm10  ;;  %vm2927_vm10 = vcmp.lt.s32.totalorder %v2791_v9, 11  ;;  %vm23101_vm9 = vcmp.lt.s32.totalorder %v3065_v29, 201  ;;  %v29430_v9 = vmov 0  ;;  %29616 = vst [vmem:[#allocation85_spill] sm:$0xff] %v23635_v55 }
  0xa7   : > { %2493 = vmatprep.mubr.bf16.mxu1 %v28931_v2  ;;  %29405 = vst [vmem:[#allocation31_spill] sm:$0xff] %v23022_v26  ;;  %v29431_v9 = vsel %vm23101_vm9, 4294967295, %v29430_v9  ;;  %v2799_v29 = vadd.s32 4294967295, %v28918_v16  ;;  %v28937_v16 = vshra.s32 %v23082_v24, 8 }
  0xa8   : > { %29432 = vst [vmem:[#allocation39_spill] sm:$0xff] %v29431_v9 }
  0xac   : > { %20509 = vmatmul.mubr.msk.bf16.vlgmr.msra.gmra.mrb[64].mxu0 %vm830_vm2, %v22422_v12 }
  0xad   : > { %20510 = vmatmul.mubr.msk.bf16.vlgmr.msra.gmra.mrb[64].mxu1 %vm830_vm2, %v22422_v12  ;;  %v3057_v12 = vand.u32 255, %v22868_v25  ;;  %3775 = vmatprep.mubr.bf16.mxu0 %v28931_v2  ;;  %vm2988_vm2 = vmand %vm2852_vm3, %vm2920_vm4  ;;  %vm23039_vm4 = vcmp.lt.s32.totalorder %v3061_v0, 201  ;;  %v28917_v0 = vshra.s32 %v23022_v26, 8 }
  0xae   : > { %3818 = vmatprep.mubr.bf16.mxu1 %v28931_v2  ;;  %v22981_v47 = vsel %vm2988_vm2, 1.0, %v28938_v53  ;;  %vm2925_vm2 = vcmp.lt.s32.totalorder %v2789_v63, 11  ;;  %v29412_v35 = vsel %vm23039_vm4, 4294967295, %v29411_v35  ;;  %vm23086_vm3 = vmand %vm29422_vm1, %vm2927_vm10  ;;  %vm29434_vm10 = vcmp.lt.s32.totalorder %v2790_v51, 11 }
  0xaf   : > { %vm22983_vm11 = vcmp.lt.s32.totalorder %v3057_v12, 201  ;;  %29413 = vst [vmem:[#allocation33_spill] sm:$0xff] %v29412_v35  ;;  %v28915_v12 = vshra.s32 %v23014_v19, 8  ;;  %vm23076_vm12 = vmand %vm2857_vm7, %vm2925_vm2  ;;  %v29424_v17 = vsel %vm23086_vm3, 4294967295, %v29423_v17  ;;  %vm29426_vm7 = vcmp.lt.s32.totalorder %v2788_v49, 11 }
  0xb0   : > { %v29397_v48 = vsel %vm22983_vm11, 4294967295, %v29396_v48  ;;  %v29420_v37 = vsel %vm23076_vm12, 4294967295, %v29419_v37  ;;  %vm29427_vm2 = vcmp.ge.s32.totalorder %v2788_v49, 0  ;;  %v2797_v27 = vadd.s32 4294967295, %v28917_v0  ;;  %vm23112_vm13 = vmand %vm29435_vm15, %vm29434_vm10 }
  0xb1   : > { %29398 = vst [vmem:[#allocation26_spill] sm:$0xff] %v29397_v48  ;;  %v2796_v63 = vadd.s32 4294967295, %v28915_v12  ;;  %vm23097_vm14 = vmand %vm29427_vm2, %vm29426_vm7  ;;  %v29436_v12 = vmov 0  ;;  %vm23116_vm2 = vcmp.lt.s32.totalorder %v3067_v10, 201  ;;  %v29438_v49 = vmov 0 }
  0xb2   : > { %v29429_v23 = vsel %vm23097_vm14, 4294967295, %v29428_v23  ;;  %v29437_v12 = vsel %vm23112_vm13, 4294967295, %v29436_v12  ;;  %v29439_v49 = vsel %vm23116_vm2, 4294967295, %v29438_v49  ;;  %v2798_v51 = vadd.s32 4294967295, %v28927_v20 }
  0xb3   : > { %29440 = vst [vmem:[#allocation41_spill] sm:$0xff] %v29439_v49  ;;  %v3069_v10 = vand.u32 255, %v23022_v26  ;;  %v3071_v0 = vand.u32 255, %v23031_v34  ;;  %vm29441_vm10 = vcmp.lt.s32.totalorder %v2793_v6, 11  ;;  %vm29442_vm7 = vcmp.ge.s32.totalorder %v2793_v6, 0 }
  0xb4   : > { %vm23138_vm13 = vmand %vm29442_vm7, %vm29441_vm10  ;;  %vm29446_vm15 = vcmp.lt.s32.totalorder %v2795_v28, 11  ;;  %v29448_v20 = vmov 0  ;;  %vm29451_vm7 = vcmp.lt.s32.totalorder %v23018_v22, 11  ;;  %vm29452_vm10 = vcmp.ge.s32.totalorder %v23018_v22, 0 }
  0xb5   : > { %vm23148_vm3 = vmand %vm29447_vm6, %vm29446_vm15  ;;  %vm2935_vm6 = vcmp.lt.s32.totalorder %v2799_v29, 11  ;;  %v2800_v28 = vadd.s32 4294967295, %v28936_v14  ;;  %v23167_v2 = vadd.s32 3200, %v22806_v58  ;;  %vm29456_vm15 = vcmp.lt.s32.totalorder %v2794_v40, 11 }
  0xb6   : > { %v29449_v20 = vsel %vm23148_vm3, 4294967295, %v29448_v20  ;;  %vm23160_vm1 = vmand %vm29452_vm10, %vm29451_vm7  ;;  %vm29457_vm12 = vcmp.ge.s32.totalorder %v2794_v40, 0  ;;  %v2801_v22 = vadd.s32 4294967295, %v28937_v16  ;;  %vm29463_vm0 = vcmp.ge.s32.totalorder %v2797_v27, 0 }
  0xb7   : > { %29455 = vst [vmem:[#allocation44_spill] sm:$0xff] %v23167_v2  ;;  %vm23171_vm14 = vmand %vm29457_vm12, %vm29456_vm15  ;;  %vm29462_vm15 = vcmp.lt.s32.totalorder %v2797_v27, 11  ;;  %v29464_v40 = vmov 0  ;;  %vm23202_vm4 = vcmp.lt.s32.totalorder %v3069_v10, 201  ;;  %v29469_v16 = vshra.s32 %v23093_v32, 8 }
  0xb8   : > { %vm29461_vm7 = vmand %vm23026_vm5, %vm22983_vm11  ;;  %v29467_v31 = vsel %vm23202_vm4, 4294967295, %v29466_v31  ;;  %vm29471_vm5 = vnez %v29410_v3  ;;  %v29476_v10 = vmov 0  ;;  %vm29478_vm11 = vcmp.ge.s32.totalorder %v2799_v29, 0 }
  0xb9   : > { %v23186_v14 = vsel %vm29461_vm7, 1.0, %v28938_v53  ;;  %vm23198_vm8 = vmand %vm29463_vm0, %vm29462_vm15  ;;  %29468 = vst [vmem:[#allocation46_spill] sm:$0xff] %v29467_v31  ;;  %v2803_v53 = vadd.s32 4294967295, %v29469_v16  ;;  %vm29472_vm7 = vnez %v29402_v57  ;;  %vm29474_vm0 = vcmp.lt.s32.totalorder %v2796_v63, 11 }
  0xba   : > { %v29465_v40 = vsel %vm23198_vm8, 4294967295, %v29464_v40  ;;  %vm29473_vm10 = vmand %vm29471_vm5, %vm29472_vm7  ;;  %vm29475_vm15 = vcmp.ge.s32.totalorder %v2796_v63, 0  ;;  %v29479_v16 = vmov 0  ;;  %vm23229_vm3 = vcmp.lt.s32.totalorder %v3071_v0, 201 }
  0xbb   : > { %v23215_v27 = vsel %vm29473_vm10, 1.0, %v29470_v42  ;;  %vm23219_vm12 = vmand %vm29475_vm15, %vm29474_vm0  ;;  %v29482_v54 = vsel %vm23229_vm3, 4294967295, %v29481_v54  ;;  %v29484_v3 = vshra.s32 %v23108_v30, 8  ;;  %vm29485_vm10 = vcmp.lt.s32.totalorder %v2798_v51, 11 }
  0xbc   : > { %v29477_v10 = vsel %vm23219_vm12, 4294967295, %v29476_v10  ;;  %vm23225_vm2 = vmand %vm29478_vm11, %vm2935_vm6  ;;  %29483 = vst [vmem:[#allocation47_spill] sm:$0xff] %v29482_v54  ;;  %vm29486_vm5 = vcmp.ge.s32.totalorder %v2798_v51, 0  ;;  %v29487_v63 = vmov 0  ;;  %vm2936_vm11 = vcmp.lt.s32.totalorder %v2800_v28, 11 }
  0xbd   : > { %v29480_v16 = vsel %vm23225_vm2, 4294967295, %v29479_v16  ;;  %v2802_v19 = vadd.s32 4294967295, %v29484_v3  ;;  %vm23238_vm0 = vmand %vm29486_vm5, %vm29485_vm10  ;;  %v3073_v29 = vand.u32 255, %v23082_v24  ;;  %v3075_v3 = vand.u32 255, %v23093_v32 }
  0xbe   : > { %v29488_v63 = vsel %vm23238_vm0, 4294967295, %v29487_v63  ;;  %vm29489_vm10 = vnez %v29429_v23  ;;  %vm2939_vm0 = vcmp.lt.s32.totalorder %v2803_v53, 11  ;;  %v29490_v0 = vshra.s32 %v23144_v39, 8 }
  0xbf   : > { %v23253_v62 = vsel %vm29489_vm10, 1.0, %v29470_v42  ;;  %vm29491_vm6 = vnez %v29437_v12  ;;  %vm29492_vm7 = vcmp.ge.s32.totalorder %v2800_v28, 0  ;;  %v29493_v23 = vmov 0 }
  0xc0   : > { %v2804_v30 = vadd.s32 4294967295, %v29490_v0  ;;  %v23264_v32 = vsel %vm29491_vm6, 1.0, %v29470_v42  ;;  %vm23267_vm12 = vmand %vm29492_vm7, %vm2936_vm11  ;;  %vm2870_vm10 = vcmp.ge.s32.totalorder %v2802_v19, 0  ;;  %vm2938_vm4 = vcmp.lt.s32.totalorder %v2802_v19, 11 }
  0xc1   : > { %v29494_v23 = vsel %vm23267_vm12, 4294967295, %v29493_v23  ;;  %v29495_v51 = vshra.s32 %v23154_v13, 8  ;;  %vm29496_vm5 = vnez %v29420_v37  ;;  %vm29497_vm15 = vnez %v29412_v35 }
  0xc2   : > { %vm29498_vm3 = vmand %vm29496_vm5, %vm29497_vm15  ;;  %vm29499_vm6 = vnez %v29424_v17  ;;  %vm29500_vm7 = vnez %v29416_v44  ;;  %vm29502_vm12 = vcmp.lt.s32.totalorder %v2801_v22, 11  ;;  %vm29503_vm2 = vcmp.ge.s32.totalorder %v2801_v22, 0 }
  0xc3   : > { %v2806_v24 = vadd.s32 4294967295, %v29495_v51  ;;  %v23279_v0 = vsel %vm29498_vm3, 1.0, %v29470_v42  ;;  %vm29501_vm11 = vmand %vm29499_vm6, %vm29500_vm7  ;;  %vm23295_vm9 = vcmp.lt.s32.totalorder %v3073_v29, 201  ;;  %v29506_v37 = vmov 0 }
  0xc4   : > { %v23287_v12 = vsel %vm29501_vm11, 1.0, %v29470_v42  ;;  %vm23291_vm8 = vmand %vm29503_vm2, %vm29502_vm12  ;;  %v29507_v37 = vsel %vm23295_vm9, 4294967295, %v29506_v37  ;;  %v29509_v28 = vshra.s32 %v23167_v2, 8  ;;  %v23304_v17 = vsel %vm23160_vm1, 1.0, %v29470_v42 }
  0xc5   : > { %29508 = vst [vmem:[#allocation48_spill] sm:$0xff] %v29507_v37  ;;  %v23309_v22 = vsel %vm23171_vm14, 1.0, %v29470_v42  ;;  %vm29510_vm3 = vcmp.ge.s32.totalorder %v2803_v53, 0  ;;  %v29511_v13 = vmov 0  ;;  %vm23316_vm12 = vcmp.lt.s32.totalorder %v3075_v3, 201  ;;  %vm23322_vm5 = vmand %vm2870_vm10, %vm2938_vm4 }
  0xc6   : > { %v2805_v51 = vadd.s32 4294967295, %v29509_v28  ;;  %vm23312_vm2 = vmand %vm29510_vm3, %vm2939_vm0  ;;  %v29513_v29 = vmov 0  ;;  %v29516_v28 = vshra.s32 %v23178_v45, 8  ;;  %vm2872_vm1 = vcmp.ge.s32.totalorder %v2804_v30, 0 }
  0xc7   : > { %v29512_v13 = vsel %vm23312_vm2, 4294967295, %v29511_v13  ;;  %v29514_v29 = vsel %vm23316_vm12, 4294967295, %v29513_v29  ;;  %vm2940_vm6 = vcmp.lt.s32.totalorder %v2804_v30, 11  ;;  %v3077_v6 = vand.u32 255, %v23167_v2 }
  0xc8   : > { %29515 = vst [vmem:[#allocation49_spill] sm:$0xff] %v29514_v29  ;;  %v2807_v39 = vadd.s32 4294967295, %v29516_v28  ;;  %v3079_v53 = vand.u32 255, %v23178_v45  ;;  %v23333_v3 = vadd.s32 3584, %v22806_v58  ;;  %v23336_v28 = vadd.s32 3712, %v22806_v58  ;;  %vm23366_vm7 = vmand %vm2872_vm1, %vm2940_vm6 }
  0xc9   : > { %vm2941_vm3 = vcmp.lt.s32.totalorder %v2805_v51, 11  ;;  %v23343_v45 = vadd.s32 3840, %v22806_v58  ;;  %v23346_v2 = vadd.s32 3968, %v22806_v58  ;;  %vm29523_vm14 = vnez %v29431_v9 }
  0xca   : > { %29519 = vst [vmem:[#allocation50_spill] sm:$0xff] %v23333_v3  ;;  %29520 = vst [vmem:[#allocation51_spill] sm:$0xff] %v23336_v28  ;;  %vm29525_vm11 = vnez %v29449_v20  ;;  %vm29526_vm4 = vnez %v29439_v49  ;;  %v29528_v26 = vmov 0  ;;  %vm2875_vm15 = vcmp.ge.s32.totalorder %v2807_v39, 0 }
  0xcb   : > { %29521 = vst [vmem:[#allocation52_spill] sm:$0xff] %v23343_v45  ;;  %29522 = vst [vmem:[#allocation53_spill] sm:$0xff] %v23346_v2  ;;  %v29529_v26 = vsel %vm23366_vm7, 4294967295, %v29528_v26  ;;  %vm2943_vm12 = vcmp.lt.s32.totalorder %v2807_v39, 11  ;;  %vm29533_vm1 = vnez %v29467_v31  ;;  %vm29539_vm7 = vcmp.ge.s32.totalorder %v2806_v24, 0 }
  0xcc   : > { %vm29524_vm0 = vmand %vm23138_vm13, %vm29523_vm14  ;;  %vm29530_vm13 = vnez %v29477_v10  ;;  %vm29538_vm14 = vcmp.lt.s32.totalorder %v2806_v24, 11  ;;  %vm29542_vm2 = vnez %v29494_v23  ;;  %v29552_v23 = vmov 0 }
  0xcd   : > { %v23354_v38 = vsel %vm29524_vm0, 1.0, %v29470_v42  ;;  %vm29527_vm10 = vmand %vm29525_vm11, %vm29526_vm4  ;;  %v23373_v8 = vsel %vm29530_vm13, 1.0, %v29470_v42  ;;  %vm29531_vm0 = vnez %v29488_v63  ;;  %vm29532_vm11 = vnez %v29465_v40 }
  0xce   : > { %v23362_v34 = vsel %vm29527_vm10, 1.0, %v29470_v42  ;;  %v23378_v20 = vsel %vm29531_vm0, 1.0, %v29470_v42  ;;  %vm29534_vm6 = vmand %vm29532_vm11, %vm29533_vm1  ;;  %vm29535_vm10 = vnez %v29480_v16  ;;  %vm29536_vm4 = vnez %v29482_v54 }
  0xcf   : > { %v23386_v30 = vsel %vm29534_vm6, 1.0, %v29470_v42  ;;  %vm29537_vm13 = vmand %vm29535_vm10, %vm29536_vm4  ;;  %v23405_v40 = vsel %vm29542_vm2, 1.0, %v29470_v42  ;;  %vm29544_vm11 = vcmp.ge.s32.totalorder %v2805_v51, 0  ;;  %vm23412_vm1 = vcmp.lt.s32.totalorder %v3077_v6, 201 }
  0xd0   : > { %v23394_v39 = vsel %vm29537_vm13, 1.0, %v29470_v42  ;;  %vm23398_vm0 = vmand %vm29539_vm7, %vm29538_vm14  ;;  %29543 = vst [vmem:[#allocation54_spill] sm:$0xff] %v23405_v40  ;;  %v29547_v16 = vmov 0  ;;  %vm23422_vm14 = vcmp.lt.s32.totalorder %v3079_v53, 201  ;;  %v23429_v6 = vadd.s32 4096, %v22806_v58 }
  0xd1   : > { %vm23408_vm6 = vmand %vm29544_vm11, %vm2941_vm3  ;;  %v29548_v16 = vsel %vm23412_vm1, 4294967295, %v29547_v16  ;;  %v29553_v23 = vsel %vm23422_vm14, 4294967295, %v29552_v23  ;;  %v23434_v24 = vsel %vm23322_vm5, 1.0, %v29470_v42  ;;  %v23437_v54 = vadd.s32 4352, %v22806_v58 }
  0xd2   : > { %29549 = vst [vmem:[#allocation55_spill] sm:$0xff] %v29548_v16  ;;  %vm23418_vm7 = vmand %vm2875_vm15, %vm2943_vm12  ;;  %v23440_v53 = vadd.s32 4224, %v22806_v58  ;;  %v23443_v9 = vadd.s32 4480, %v22806_v58  ;;  %vm29562_vm2 = vnez %v29512_v13  ;;  %vm29563_vm12 = vnez %v29514_v29 }
  0xd3   : > { %29554 = vst [vmem:[#allocation56_spill] sm:$0xff] %v29553_v23  ;;  %29555 = vst [vmem:[#allocation57_spill] sm:$0xff] %v23429_v6  ;;  %vm29566_vm3 = vnez %v29529_v26  ;;  %v23469_v19 = vsel %vm23398_vm0, 1.0, %v29470_v42  ;;  %v29569_v13 = vshra.s32 %v23333_v3, 8  ;;  %v29570_v29 = vshra.s32 %v23336_v28, 8 }
  0xd4   : > { %29556 = vst [vmem:[#allocation58_spill] sm:$0xff] %v23434_v24  ;;  %29557 = vst [vmem:[#allocation59_spill] sm:$0xff] %v23437_v54  ;;  %v23464_v51 = vsel %vm29566_vm3, 1.0, %v29470_v42  ;;  %v3081_v10 = vand.u32 255, %v23336_v28  ;;  %v23489_v16 = vadd.s32 4608, %v22806_v58  ;;  %v29572_v63 = vshra.s32 %v23343_v45, 8 }
  0xd5   : > { %29558 = vst [vmem:[#allocation60_spill] sm:$0xff] %v23440_v53  ;;  %29559 = vst [vmem:[#allocation61_spill] sm:$0xff] %v23443_v9  ;;  %v23481_v26 = vadd.s32 4294967295, %v29569_v13  ;;  %v23485_v37 = vadd.s32 4294967295, %v29570_v29  ;;  %v29573_v31 = vshra.s32 %v23346_v2, 8  ;;  %v23501_v3 = vadd.s32 4864, %v22806_v58 }
  0xd6   : > { %vm29560_vm15 = vmand %vm23291_vm8, %vm23295_vm9  ;;  %29567 = vst [vmem:[#allocation64_spill] sm:$0xff] %v23464_v51  ;;  %v23493_v44 = vadd.s32 4294967295, %v29572_v63  ;;  %v3083_v13 = vand.u32 255, %v23346_v2  ;;  %v23517_v45 = vadd.s32 4992, %v22806_v58  ;;  %v29579_v28 = vshra.s32 %v23429_v6, 8 }
  0xd7   : > { %v23451_v49 = vsel %vm29560_vm15, 1.0, %v29470_v42  ;;  %vm29564_vm5 = vmand %vm29562_vm2, %vm29563_vm12  ;;  %29568 = vst [vmem:[#allocation65_spill] sm:$0xff] %v23469_v19  ;;  %v23497_v23 = vadd.s32 4294967295, %v29573_v31  ;;  %v29581_v35 = vmov 0  ;;  %v29584_v46 = vshra.s32 %v23437_v54, 8 }
  0xd8   : > { %29561 = vst [vmem:[#allocation62_spill] sm:$0xff] %v23451_v49  ;;  %v23459_v11 = vsel %vm29564_vm5, 1.0, %v29470_v42  ;;  %vm3213_vm8 = vmand %vm23408_vm6, %vm23412_vm1  ;;  %vm2945_vm6 = vcmp.lt.s32.totalorder %v23485_v37, 11  ;;  %v23529_v29 = vadd.s32 4294967295, %v29579_v28  ;;  %vm23535_vm5 = vcmp.lt.s32.totalorder %v3081_v10, 201 }
  0xd9   : > { %29565 = vst [vmem:[#allocation63_spill] sm:$0xff] %v23459_v11  ;;  %vm3215_vm10 = vmand %vm23418_vm7, %vm23422_vm14  ;;  %v23510_v63 = vsel %vm3213_vm8, 1.0, %v29470_v42  ;;  %v29582_v35 = vsel %vm23535_vm5, 4294967295, %v29581_v35  ;;  %v23541_v50 = vadd.s32 4294967295, %v29584_v46  ;;  %v29585_v57 = vshra.s32 %v23440_v53, 8 }
  0xda   : > { %29571 = vst [vmem:[#allocation66_spill] sm:$0xff] %v23489_v16  ;;  %29574 = vst [vmem:[#allocation67_spill] sm:$0xff] %v23501_v3  ;;  %v23513_v31 = vsel %vm3215_vm10, 1.0, %v29470_v42  ;;  %v29586_v6 = vshra.s32 %v23443_v9, 8  ;;  %v3085_v10 = vand.u32 255, %v23440_v53  ;;  %vm23556_vm8 = vcmp.lt.s32.totalorder %v3083_v13, 201 }
  0xdb   : > { %29576 = vst [vmem:[#allocation69_spill] sm:$0xff] %v23510_v63  ;;  %29577 = vst [vmem:[#allocation70_spill] sm:$0xff] %v23513_v31  ;;  %v2813_v18 = vadd.s32 4294967295, %v29585_v57  ;;  %v29588_v46 = vmov 0  ;;  %v3087_v57 = vand.u32 255, %v23443_v9  ;;  %v23566_v2 = vadd.s32 5248, %v22806_v58 }
  0xdc   : > { %29578 = vst [vmem:[#allocation71_spill] sm:$0xff] %v23517_v45  ;;  %29583 = vst [vmem:[#allocation73_spill] sm:$0xff] %v29582_v35  ;;  %v23547_v28 = vadd.s32 4294967295, %v29586_v6  ;;  %v29589_v46 = vsel %vm23556_vm8, 4294967295, %v29588_v46  ;;  %v29591_v6 = vshra.s32 %v23489_v16, 8  ;;  %v23569_v53 = vadd.s32 5504, %v22806_v58 }
  0xdd   : > { %29590 = vst [vmem:[#allocation75_spill] sm:$0xff] %v29589_v46  ;;  %29592 = vst [vmem:[#allocation76_spill] sm:$0xff] %v23566_v2  ;;  %v29594_v13 = vshra.s32 %v23501_v3, 8  ;;  %v3089_v9 = vand.u32 255, %v23507_v43  ;;  %v3091_v16 = vand.u32 255, %v23517_v45  ;;  %v29595_v48 = vshra.s32 %v23507_v43, 8 }
  0xde   : > { %v23563_v54 = vadd.s32 4294967295, %v29591_v6  ;;  %29593 = vst [vmem:[#allocation77_spill] sm:$0xff] %v23569_v53  ;;  %vm23585_vm2 = vcmp.lt.s32.totalorder %v3085_v10, 201  ;;  %v29599_v3 = vshra.s32 %v23517_v45, 8  ;;  %vm23596_vm3 = vcmp.lt.s32.totalorder %v3087_v57, 201 }
  0xdf   : > { %v23575_v15 = vadd.s32 4294967295, %v29594_v13  ;;  %v2817_v52 = vadd.s32 4294967295, %v29595_v48  ;;  %v29596_v13 = vmov 0  ;;  %v29602_v33 = vsel %vm23596_vm3, 4294967295, %v29601_v33 }
  0xe0   : > { %v29597_v13 = vsel %vm23585_vm2, 4294967295, %v29596_v13  ;;  %v2819_v6 = vadd.s32 4294967295, %v29599_v3  ;;  %29603 = vst [vmem:[#allocation80_spill] sm:$0xff] %v29602_v33  ;;  %v23605_v45 = vadd.s32 5760, %v22806_v58  ;;  %vm23609_vm13 = vcmp.lt.s32.totalorder %v3089_v9, 201 }
  0xe1   : > { %29598 = vst [vmem:[#allocation78_spill] sm:$0xff] %v29597_v13  ;;  %v29605_v3 = vmov 0  ;;  %vm23613_vm11 = vcmp.lt.s32.totalorder %v3091_v16, 201  ;;  %v29608_v57 = vmov 0  ;;  %v23619_v48 = vadd.s32 4294967295, %v29611_v41 }
  0xe2   : > { %29604 = vst [vmem:[#allocation81_spill] sm:$0xff] %v23605_v45  ;;  %v29606_v3 = vsel %vm23609_vm13, 4294967295, %v29605_v3  ;;  %v29609_v57 = vsel %vm23613_vm11, 4294967295, %v29608_v57  ;;  %v23622_v10 = vadd.s32 6016, %v22806_v58  ;;  %vm29613_vm0 = vcmp.ge.s32.totalorder %v23485_v37, 0 }
  0xe3   : > { %29607 = vst [vmem:[#allocation82_spill] sm:$0xff] %v29606_v3  ;;  %29610 = vst [vmem:[#allocation83_spill] sm:$0xff] %v29609_v57  ;;  %v29614_v9 = vmov 0  ;;  %v3093_v16 = vand.u32 255, %v23566_v2  ;;  %v3095_v43 = vand.u32 255, %v23569_v53  ;;  %vm29617_vm10 = vcmp.lt.s32.totalorder %v23481_v26, 11 }
  0xe4   : > { %29612 = vst [vmem:[#allocation84_spill] sm:$0xff] %v23622_v10  ;;  %vm23628_vm15 = vmand %vm29613_vm0, %vm2945_vm6  ;;  %vm29618_vm14 = vcmp.ge.s32.totalorder %v23481_v26, 0  ;;  %v29619_v41 = vmov 0  ;;  %v29621_v37 = vshra.s32 %v23554_v7, 8  ;;  %vm29622_vm7 = vcmp.lt.s32.totalorder %v23493_v44, 11 }
  0xe5   : > { %v29615_v9 = vsel %vm23628_vm15, 4294967295, %v29614_v9  ;;  %vm23641_vm1 = vmand %vm29618_vm14, %vm29617_vm10  ;;  %vm29623_vm12 = vcmp.ge.s32.totalorder %v23493_v44, 0  ;;  %vm29626_vm14 = vcmp.lt.s32.totalorder %v23497_v23, 11  ;;  %vm29627_vm10 = vcmp.ge.s32.totalorder %v23497_v23, 0 }
  0xe6   : > { %v29620_v41 = vsel %vm23641_vm1, 4294967295, %v29619_v41  ;;  %v2822_v36 = vadd.s32 4294967295, %v29621_v37  ;;  %vm23652_vm9 = vmand %vm29623_vm12, %vm29622_vm7  ;;  %v29628_v26 = vmov 0  ;;  %v29630_v37 = vshra.s32 %v23566_v2, 8 }
  0xe7   : > { %v29625_v4 = vsel %vm23652_vm9, 4294967295, %v29624_v4  ;;  %vm23660_vm4 = vmand %vm29627_vm10, %vm29626_vm14  ;;  %v29631_v7 = vshra.s32 %v23569_v53, 8  ;;  %v23677_v31 = vadd.s32 6144, %v22806_v58  ;;  %vm29633_vm10 = vcmp.lt.s32.totalorder %v2813_v18, 11 }
  0xe8   : > { %v29629_v26 = vsel %vm23660_vm4, 4294967295, %v29628_v26  ;;  %v2821_v25 = vadd.s32 4294967295, %v29630_v37  ;;  %vm29634_vm6 = vcmp.ge.s32.totalorder %v2813_v18, 0  ;;  %vm23685_vm9 = vcmp.lt.s32.totalorder %v3093_v16, 201 }
  0xe9   : > { %v2823_v1 = vadd.s32 4294967295, %v29631_v7  ;;  %29632 = vst [vmem:[#allocation86_spill] sm:$0xff] %v23677_v31  ;;  %vm23681_vm0 = vmand %vm29634_vm6, %vm29633_vm10  ;;  %v29635_v7 = vmov 0  ;;  %v29637_v37 = vmov 0  ;;  %vm23689_vm12 = vcmp.lt.s32.totalorder %v3095_v43, 201 }
  0xea   : > { %v29636_v7 = vsel %vm23681_vm0, 4294967295, %v29635_v7  ;;  %v29638_v37 = vsel %vm23685_vm9, 4294967295, %v29637_v37  ;;  %v29640_v44 = vmov 0  ;;  %v23695_v23 = vadd.s32 6272, %v22806_v58 }
  0xeb   : > { %29639 = vst [vmem:[#allocation87_spill] sm:$0xff] %v29638_v37  ;;  %v29641_v44 = vsel %vm23689_vm12, 4294967295, %v29640_v44  ;;  %vm29644_vm10 = vcmp.lt.s32.totalorder %v23547_v28, 11  ;;  %vm29645_vm7 = vcmp.ge.s32.totalorder %v23547_v28, 0  ;;  %v29648_v43 = vshra.s32 %v23594_v5, 8 }
  0xec   : > { %29642 = vst [vmem:[#allocation88_spill] sm:$0xff] %v29641_v44  ;;  %29643 = vst [vmem:[#allocation89_spill] sm:$0xff] %v23695_v23  ;;  %v23712_v53 = vadd.s32 6528, %v22806_v58  ;;  %vm29650_vm12 = vcmp.lt.s32.totalorder %v23529_v29, 11  ;;  %vm29651_vm6 = vcmp.ge.s32.totalorder %v23529_v29, 0  ;;  %v29652_v2 = vmov 0 }
  0xed   : > { %vm23705_vm14 = vmand %vm29645_vm7, %vm29644_vm10  ;;  %v2824_v16 = vadd.s32 4294967295, %v29648_v43  ;;  %vm29654_vm7 = vcmp.lt.s32.totalorder %v2817_v52, 11  ;;  %vm29655_vm10 = vcmp.ge.s32.totalorder %v2817_v52, 0  ;;  %v29656_v28 = vmov 0 }
  0xee   : > { %29649 = vst [vmem:[#allocation90_spill] sm:$0xff] %v23712_v53  ;;  %vm23718_vm8 = vmand %vm29651_vm6, %vm29650_vm12  ;;  %v29658_v43 = vshra.s32 %v23605_v45, 8  ;;  %v23731_v63 = vadd.s32 6400, %v22806_v58  ;;  %vm29660_vm9 = vcmp.lt.s32.totalorder %v23541_v50, 11  ;;  %vm29661_vm12 = vcmp.ge.s32.totalorder %v23541_v50, 0 }
  0xef   : > { %v29653_v2 = vsel %vm23718_vm8, 4294967295, %v29652_v2  ;;  %vm23724_vm4 = vmand %vm29655_vm10, %vm29654_vm7  ;;  %v29662_v29 = vmov 0  ;;  %vm29664_vm7 = vcmp.lt.s32.totalorder %v2819_v6, 11  ;;  %vm29665_vm10 = vcmp.ge.s32.totalorder %v2819_v6, 0 }
  0xf0   : > { %v29657_v28 = vsel %vm23724_vm4, 4294967295, %v29656_v28  ;;  %v2825_v5 = vadd.s32 4294967295, %v29658_v43  ;;  %29659 = vst [vmem:[#allocation91_spill] sm:$0xff] %v23731_v63  ;;  %vm23737_vm6 = vmand %vm29661_vm12, %vm29660_vm9  ;;  %v29666_v52 = vmov 0  ;;  %v29668_v43 = vshra.s32 %v23622_v10, 8 }
  0xf1   : > { %v29663_v29 = vsel %vm23737_vm6, 4294967295, %v29662_v29  ;;  %vm23743_vm8 = vmand %vm29665_vm10, %vm29664_vm7  ;;  %v29669_v50 = vshra.s32 %v23635_v55, 8  ;;  %v3097_v6 = vand.u32 255, %v23605_v45  ;;  %v3099_v49 = vand.u32 255, %v23622_v10 }
  0xf2   : > { %v29667_v52 = vsel %vm23743_vm8, 4294967295, %v29666_v52  ;;  %v2827_v19 = vadd.s32 4294967295, %v29668_v43  ;;  %vm29670_vm7 = vcmp.lt.s32.totalorder %v23563_v54, 11  ;;  %vm29671_vm10 = vcmp.ge.s32.totalorder %v23563_v54, 0 }
  0xf3   : > { %v2826_v11 = vadd.s32 4294967295, %v29669_v50  ;;  %vm23767_vm5 = vmand %vm29671_vm10, %vm29670_vm7  ;;  %vm29674_vm9 = vcmp.lt.s32.totalorder %v23575_v15, 11  ;;  %vm29675_vm15 = vcmp.ge.s32.totalorder %v23575_v15, 0  ;;  %vm29678_vm0 = vcmp.lt.s32.totalorder %v2821_v25, 11 }
  0xf4   : > { %vm23775_vm2 = vmand %vm29675_vm15, %vm29674_vm9  ;;  %vm29679_vm6 = vcmp.ge.s32.totalorder %v2821_v25, 0  ;;  %v29680_v24 = vmov 0  ;;  %v23787_v51 = vadd.s32 6656, %v22806_v58  ;;  %vm29684_vm9 = vcmp.ge.s32.totalorder %v2823_v1, 0 }
  0xf5   : > { %vm23781_vm1 = vmand %vm29679_vm6, %vm29678_vm0  ;;  %vm29683_vm6 = vcmp.lt.s32.totalorder %v2823_v1, 11  ;;  %v29685_v15 = vmov 0  ;;  %v23805_v54 = vadd.s32 6912, %v22806_v58  ;;  %vm29688_vm15 = vcmp.lt.s32.totalorder %v23619_v48, 11 }
  0xf6   : > { %v29681_v24 = vsel %vm23781_vm1, 4294967295, %v29680_v24  ;;  %29682 = vst [vmem:[#allocation92_spill] sm:$0xff] %v23787_v51  ;;  %vm23799_vm7 = vmand %vm29684_vm9, %vm29683_vm6  ;;  %vm29689_vm3 = vcmp.ge.s32.totalorder %v23619_v48, 0  ;;  %v29690_v55 = vmov 0  ;;  %v29692_v1 = vshra.s32 %v23677_v31, 8 }
  0xf7   : > { %v29686_v15 = vsel %vm23799_vm7, 4294967295, %v29685_v15  ;;  %29687 = vst [vmem:[#allocation93_spill] sm:$0xff] %v23805_v54  ;;  %vm23811_vm13 = vmand %vm29689_vm3, %vm29688_vm15  ;;  %v23818_v45 = vadd.s32 6784, %v22806_v58  ;;  %vm29694_vm9 = vnez %v29620_v41  ;;  %vm29696_vm10 = vcmp.lt.s32.totalorder %v2822_v36, 11 }
  0xf8   : > { %v29691_v55 = vsel %vm23811_vm13, 4294967295, %v29690_v55  ;;  %v2828_v10 = vadd.s32 4294967295, %v29692_v1  ;;  %v23823_v25 = vsel %vm29694_vm9, 1.0, %v29470_v42  ;;  %vm29697_vm12 = vcmp.ge.s32.totalorder %v2822_v36, 0 }
  0xf9   : > { %29693 = vst [vmem:[#allocation94_spill] sm:$0xff] %v23818_v45  ;;  %29695 = vst [vmem:[#allocation95_spill] sm:$0xff] %v23823_v25  ;;  %v29698_v48 = vmov 0  ;;  %v29700_v40 = vshra.s32 %v23695_v23, 8  ;;  %vm29701_vm0 = vnez %v29625_v4  ;;  %vm29705_vm3 = vcmp.lt.s32.totalorder %v2824_v16, 11 }
  0xfa   : > { %vm23827_vm11 = vmand %vm29697_vm12, %vm29696_vm10  ;;  %v23836_v1 = vsel %vm29701_vm0, 1.0, %v29470_v42  ;;  %vm29706_vm15 = vcmp.ge.s32.totalorder %v2824_v16, 0  ;;  %v29707_v36 = vmov 0  ;;  %vm29709_vm13 = vcmp.lt.s32.totalorder %v2825_v5, 11 }
  0xfb   : > { %v29699_v48 = vsel %vm23827_vm11, 4294967295, %v29698_v48  ;;  %v2829_v31 = vadd.s32 4294967295, %v29700_v40  ;;  %29702 = vst [vmem:[#allocation96_spill] sm:$0xff] %v23836_v1  ;;  %vm23848_vm11 = vmand %vm29706_vm15, %vm29705_vm3  ;;  %vm29710_vm8 = vcmp.ge.s32.totalorder %v2825_v5, 0  ;;  %v29711_v4 = vmov 0 }
  0xfc   : > { %v29708_v36 = vsel %vm23848_vm11, 4294967295, %v29707_v36  ;;  %vm23854_vm0 = vmand %vm29710_vm8, %vm29709_vm13  ;;  %vm23858_vm4 = vcmp.lt.s32.totalorder %v3097_v6, 201  ;;  %v29713_v40 = vmov 0  ;;  %v29716_v41 = vshra.s32 %v23712_v53, 8 }
  0xfd   : > { %v29712_v4 = vsel %vm23854_vm0, 4294967295, %v29711_v4  ;;  %v29714_v40 = vsel %vm23858_vm4, 4294967295, %v29713_v40  ;;  %vm29717_vm3 = vnez %v29615_v9  ;;  %vm29718_vm15 = vnez %v29582_v35 }
  0xfe   : > { %29715 = vst [vmem:[#allocation97_spill] sm:$0xff] %v29714_v40  ;;  %v2831_v1 = vadd.s32 4294967295, %v29716_v41  ;;  %vm29719_vm10 = vmand %vm29717_vm3, %vm29718_vm15  ;;  %vm29720_vm13 = vcmp.lt.s32.totalorder %v2827_v19, 11  ;;  %vm29721_vm8 = vcmp.ge.s32.totalorder %v2827_v19, 0  ;;  %vm23879_vm11 = vcmp.lt.s32.totalorder %v3099_v49, 201 }
  0xff   : > { %v23871_v5 = vsel %vm29719_vm10, 1.0, %v29470_v42  ;;  %vm23875_vm9 = vmand %vm29721_vm8, %vm29720_vm13  ;;  %v29724_v6 = vmov 0  ;;  %v29727_v41 = vshra.s32 %v23731_v63, 8  ;;  %vm29728_vm12 = vcmp.lt.s32.totalorder %v2826_v11, 11 }
 0x100   : > { %v29725_v6 = vsel %vm23879_vm11, 4294967295, %v29724_v6  ;;  %vm29729_vm7 = vcmp.ge.s32.totalorder %v2826_v11, 0  ;;  %v29730_v35 = vmov 0  ;;  %vm2964_vm13 = vcmp.lt.s32.totalorder %v2828_v10, 11 }
 0x101   : > { %29726 = vst [vmem:[#allocation98_spill] sm:$0xff] %v29725_v6  ;;  %v2830_v25 = vadd.s32 4294967295, %v29727_v41  ;;  %vm23888_vm3 = vmand %vm29729_vm7, %vm29728_vm12  ;;  %v3101_v19 = vand.u32 255, %v23695_v23  ;;  %vm29732_vm8 = vnez %v29629_v26  ;;  %vm29733_vm15 = vnez %v29589_v46 }
 0x102   : > { %v29731_v35 = vsel %vm23888_vm3, 4294967295, %v29730_v35  ;;  %vm29734_vm6 = vmand %vm29732_vm8, %vm29733_vm15  ;;  %vm2897_vm12 = vcmp.ge.s32.totalorder %v2829_v31, 0  ;;  %vm2965_vm10 = vcmp.lt.s32.totalorder %v2829_v31, 11  ;;  %v3103_v11 = vand.u32 255, %v23712_v53 }
 0x103   : > { %v23900_v41 = vsel %vm29734_vm6, 1.0, %v29470_v42  ;;  %vm29735_vm3 = vnez %v29653_v2  ;;  %v29736_v26 = vshra.s32 %v23787_v51, 8  ;;  %vm29737_vm7 = vnez %v29663_v29 }
 0x104   : > { %v23910_v49 = vsel %vm29735_vm3, 1.0, %v29470_v42  ;;  %v23921_v31 = vsel %vm29737_vm7, 1.0, %v29470_v42  ;;  %vm29738_vm4 = vcmp.ge.s32.totalorder %v2828_v10, 0  ;;  %v29739_v2 = vmov 0  ;;  %vm23938_vm7 = vmand %vm2897_vm12, %vm2965_vm10 }
 0x105   : > { %v2832_v9 = vadd.s32 4294967295, %v29736_v26  ;;  %vm23924_vm0 = vmand %vm29738_vm4, %vm2964_vm13  ;;  %vm2966_vm1 = vcmp.lt.s32.totalorder %v2830_v25, 11  ;;  %v29741_v63 = vshra.s32 %v23805_v54, 8  ;;  %vm29742_vm6 = vnez %v29636_v7  ;;  %v23951_v7 = vpop.permute.xlu0 %545 }
 0x106   : > { %v29740_v2 = vsel %vm23924_vm0, 4294967295, %v29739_v2  ;;  %vm29743_vm8 = vnez %v29597_v13  ;;  %vm23942_vm4 = vcmp.lt.s32.totalorder %v3101_v19, 201  ;;  %v29747_v10 = vmov 0 }
 0x107   : > { %v2834_v53 = vadd.s32 4294967295, %v29741_v63  ;;  %vm29744_vm15 = vmand %vm29742_vm6, %vm29743_vm8  ;;  %v29748_v10 = vsel %vm23942_vm4, 4294967295, %v29747_v10  ;;  %v29750_v51 = vshra.s32 %v23818_v45, 8  ;;  %v23949_v63 = vadd.s32 7040, %v22806_v58 }
 0x108   : > { %v23936_v26 = vsel %vm29744_vm15, 1.0, %v29470_v42  ;;  %29749 = vst [vmem:[#allocation99_spill] sm:$0xff] %v29748_v10  ;;  %vm29752_vm15 = vnez %v29602_v33  ;;  %v23964_v19 = vsel %vm23767_vm5, 1.0, %v29470_v42  ;;  %vm29754_vm13 = vcmp.lt.s32.totalorder %v2831_v1, 11  ;;  %v1076_v10 = vpop.f32.mrb[0].mxu0 }
 0x109   : > { %v2833_v54 = vadd.s32 4294967295, %v29750_v51  ;;  %29751 = vst [vmem:[#allocation100_spill] sm:$0xff] %v23949_v63  ;;  %vm29753_vm10 = vmand %vm23705_vm14, %vm29752_vm15  ;;  %v23969_v51 = vsel %vm23775_vm2, 1.0, %v29470_v42  ;;  %vm29755_vm12 = vcmp.ge.s32.totalorder %v2831_v1, 0  ;;  %vm23977_vm3 = vcmp.lt.s32.totalorder %v3103_v11, 201  ;;  %v24083_v16 = vpop.permute.xlu0 %550 }
 0x10a   : > { %v23959_v23 = vsel %vm29753_vm10, 1.0, %v29470_v42  ;;  %vm23973_vm6 = vmand %vm29755_vm12, %vm29754_vm13  ;;  %v29758_v18 = vmov 0  ;;  %vm29761_vm14 = vnez %v29657_v28  ;;  %vm29762_vm5 = vnez %v29606_v3 }
 0x10b   : > { %v29759_v18 = vsel %vm23977_vm3, 4294967295, %v29758_v18  ;;  %vm29763_vm10 = vmand %vm29761_vm14, %vm29762_vm5  ;;  %vm29764_vm2 = vnez %v29667_v52  ;;  %vm29765_vm13 = vnez %v29609_v57  ;;  %vm29767_vm15 = vcmp.ge.s32.totalorder %v2830_v25, 0 }
 0x10c   : > { %29760 = vst [vmem:[#allocation101_spill] sm:$0xff] %v29759_v18  ;;  %v23987_v43 = vsel %vm29763_vm10, 1.0, %v29470_v42  ;;  %vm29766_vm12 = vmand %vm29764_vm2, %vm29765_vm13  ;;  %vm29770_vm14 = vnez %v29691_v55  ;;  %v3105_v52 = vand.u32 255, %v23818_v45  ;;  %vm29772_vm10 = vnez %v29681_v24 }
 0x10d   : > { %v23995_v50 = vsel %vm29766_vm12, 1.0, %v29470_v42  ;;  %vm23999_vm8 = vmand %vm29767_vm15, %vm2966_vm1  ;;  %v24006_v28 = vsel %vm29770_vm14, 1.0, %v29470_v42  ;;  %vm29771_vm1 = vnez %v29699_v48  ;;  %vm29773_vm2 = vnez %v29638_v37  ;;  %v1078_v37 = vpop.f32.mrb[1].mxu0 }
 0x10e   : > { %v24016_v25 = vsel %vm29771_vm1, 1.0, %v29470_v42  ;;  %vm29774_vm12 = vmand %vm29772_vm10, %vm29773_vm2  ;;  %vm29775_vm1 = vnez %v29686_v15  ;;  %vm29776_vm11 = vnez %v29641_v44  ;;  %vm29778_vm14 = vnez %v29708_v36 }
 0x10f   : > { %v24029_v11 = vsel %vm29774_vm12, 1.0, %v29470_v42  ;;  %vm29777_vm13 = vmand %vm29775_vm1, %vm29776_vm11  ;;  %v24042_v55 = vsel %vm29778_vm14, 1.0, %v29470_v42  ;;  %vm29780_vm0 = vnez %v29731_v35  ;;  %vm29782_vm10 = vcmp.lt.s32.totalorder %v2832_v9, 11 }
 0x110   : > { %v24037_v48 = vsel %vm29777_vm13, 1.0, %v29470_v42  ;;  %29779 = vst [vmem:[#allocation102_spill] sm:$0xff] %v24042_v55  ;;  %v24047_v24 = vsel %vm29780_vm0, 1.0, %v29470_v42  ;;  %vm29783_vm12 = vcmp.ge.s32.totalorder %v2832_v9, 0  ;;  %vm29784_vm2 = vnez %v29712_v4 }
 0x111   : > { %29781 = vst [vmem:[#allocation103_spill] sm:$0xff] %v24047_v24  ;;  %vm3036_vm15 = vmand %vm29783_vm12, %vm29782_vm10  ;;  %vm29785_vm1 = vnez %v29714_v40  ;;  %vm29788_vm14 = vnez %v29725_v6  ;;  %vm29791_vm0 = vnez %v29740_v2  ;;  %v24075_v4 = vsel %vm23999_vm8, 1.0, %v29470_v42  ;;  %v1119_v6 = vpop.f32.mrb[0].mxu1 }
 0x112   : > { %vm29786_vm13 = vmand %vm29784_vm2, %vm29785_vm1  ;;  %v24070_v36 = vsel %vm29791_vm0, 1.0, %v29470_v42  ;;  %29793 = vst [vmem:[#allocation107_spill] sm:$0xff] %v24075_v4  ;;  %vm29794_vm2 = vcmp.lt.s32.totalorder %v2834_v53, 11  ;;  %vm29795_vm10 = vcmp.ge.s32.totalorder %v2834_v53, 0  ;;  %vm29802_vm8 = vcmp.lt.s32.totalorder %v2833_v54, 11  ;;  %v1121_v57 = vpop.f32.mrb[1].mxu1 }
 0x113   : > { %v24057_v15 = vsel %vm29786_vm13, 1.0, %v29470_v42  ;;  %vm29789_vm11 = vmand %vm23875_vm9, %vm29788_vm14  ;;  %29792 = vst [vmem:[#allocation106_spill] sm:$0xff] %v24070_v36  ;;  %vm29803_vm13 = vcmp.ge.s32.totalorder %v2833_v54, 0  ;;  %v29806_v29 = vmov 0  ;;  %v3107_v45 = vand.u32 255, %v23949_v63 }
 0x114   : > { %29787 = vst [vmem:[#allocation104_spill] sm:$0xff] %v24057_v15  ;;  %v24065_v35 = vsel %vm29789_vm11, 1.0, %v29470_v42  ;;  %vm24079_vm12 = vmand %vm29795_vm10, %vm29794_vm2  ;;  %vm24107_vm2 = vcmp.lt.s32.totalorder %v3105_v52, 201  ;;  %v24113_v13 = vsel %vm3036_vm15, 1.0, %v29470_v42  ;;  %v29810_v18 = vshra.s32 %v23949_v63, 8  ;;  %v1123_v63 = vpop.f32.mrb[2].mxu1 }
 0x115   : > { %29790 = vst [vmem:[#allocation105_spill] sm:$0xff] %v24065_v35  ;;  %vm29798_vm11 = vmand %vm23938_vm7, %vm23942_vm4  ;;  %v29807_v29 = vsel %vm24107_vm2, 4294967295, %v29806_v29  ;;  %v24120_v54 = vadd.s32 7168, %v22806_v58  ;;  %vm29157_vm7 = vcmask 7168   ;;  %v1077_v52 = vadd.f32 %v1076_v10, %v23951_v7 }
 0x116   : > { %v24091_v2 = vsel %vm29798_vm11, 1.0, %v29470_v42  ;;  %vm29800_vm9 = vmand %vm23973_vm6, %vm23977_vm3  ;;  %29808 = vst [vmem:[#allocation110_spill] sm:$0xff] %v29807_v29  ;;  %v24117_v40 = vadd.s32 4294967295, %v29810_v18  ;;  %v1120_v44 = vadd.f32 %v1119_v6, %v23951_v7  ;;  %v24127_v3 = vsel %vm24079_vm12, 1.0, %v29470_v42  ;;  %v1080_v18 = vpop.f32.mrb[2].mxu0 }
 0x117   : > { %29799 = vst [vmem:[#allocation108_spill] sm:$0xff] %v24091_v2  ;;  %v24099_v53 = vsel %vm29800_vm9, 1.0, %v29470_v42  ;;  %vm24103_vm0 = vmand %vm29803_vm13, %vm29802_vm8  ;;  %v24130_v33 = vadd.s32 7424, %v22806_v58  ;;  %v1079_v10 = vadd.f32 %v1078_v37, %v23951_v7  ;;  %v1122_v6 = vadd.f32 %v1121_v57, %v23951_v7  ;;  %v1082_v57 = vpop.f32.mrb[3].mxu0  ;;  %v1125_v2 = vpop.f32.mrb[3].mxu1 }
 0x118   : > { %29801 = vst [vmem:[#allocation109_spill] sm:$0xff] %v24099_v53  ;;  %29809 = vst [vmem:[#allocation111_spill] sm:$0xff] %v24113_v13  ;;  %v24143_v9 = vadd.s32 7296, %v22806_v58  ;;  %v24146_v46 = vadd.s32 7552, %v22806_v58  ;;  %v2506_v13 = vmax.f32 %v1120_v44, 0.0  ;;  %v1081_v53 = vadd.f32 %v1080_v18, %v24083_v16 }
 0x119   : > { %29811 = vst [vmem:[#allocation112_spill] sm:$0xff] %v24120_v54  ;;  %29812 = vst [vmem:[#allocation113_spill] sm:$0xff] %v24127_v3  ;;  %v2504_v3 = vmax.f32 %v1077_v52, 0.0  ;;  %v1124_v37 = vadd.f32 %v1123_v63, %v24083_v16  ;;  %v2505_v4 = vmax.f32 %v1079_v10, 0.0  ;;  %v2507_v36 = vmax.f32 %v1122_v6, 0.0 }
 0x11a   : > { %29813 = vst [vmem:[#allocation114_spill] sm:$0xff] %v24130_v33  ;;  %399 = vst.msk [vmem:[#allocation3] sm:$0xff] %vm29157_vm7, %v29470_v42  ;;  %v1083_v35 = vadd.f32 %v1082_v57, %v24083_v16  ;;  %v1126_v15 = vadd.f32 %v1125_v2, %v24083_v16  ;;  %vm2903_vm15 = vcmp.ge.s32.totalorder %v24117_v40, 0  ;;  %vm2971_vm10 = vcmp.lt.s32.totalorder %v24117_v40, 11  ;;  %v1162_v2 = vpop.f32.mrb[4].mxu0 }
 0x11b   : > { %400 = vst.msk [vmem:[#allocation3 + $0x8] sm:$0xff] %vm29157_vm7, %v29470_v42  ;;  %vm3241_vm6 = vmand %vm24103_vm0, %vm24107_vm2  ;;  %v2572_v24 = vmax.f32 %v1081_v53, 0.0  ;;  %v2574_v55 = vmax.f32 %v1124_v37, 0.0  ;;  %vm29191_vm12 = vcmask 130048   ;;  %v3392_v53 = vmul.f32 %v22934_v61, %v2504_v3  ;;  %v1205_v3 = vpop.f32.mrb[4].mxu1 }
 0x11c   : > { %29814 = vst [vmem:[#allocation115_spill] sm:$0xff] %v24143_v9  ;;  %29815 = vst [vmem:[#allocation116_spill] sm:$0xff] %v24146_v46  ;;  %v24160_v44 = vsel %vm3241_vm6, 1.0, %v29470_v42  ;;  %v2573_v52 = vmax.f32 %v1083_v35, 0.0  ;;  %v2575_v10 = vmax.f32 %v1126_v15, 0.0  ;;  %v3394_v18 = vmul.f32 %v22952_v21, %v2506_v13 }
 0x11d   : > { %v3460_v37 = vmul.f32 %v22934_v61, %v2572_v24  ;;  %v3462_v1 = vmul.f32 %v22952_v21, %v2574_v55  ;;  %vm24169_vm11 = vcmp.lt.s32.totalorder %v3107_v45, 201  ;;  %v29816_v57 = vmov 0  ;;  %v1164_v45 = vpop.f32.mrb[5].mxu0  ;;  %v1207_v55 = vpop.f32.mrb[5].mxu1  ;;  %vm24224_vm9 = vmand %vm2903_vm15, %vm2971_vm10 }
 0x11e   : > { %v29817_v57 = vsel %vm24169_vm11, 4294967295, %v29816_v57  ;;  %v3393_v63 = vmul.f32 %v22968_v59, %v2505_v4  ;;  %v3395_v15 = vmul.f32 %v22971_v60, %v2507_v36  ;;  %v3461_v35 = vmul.f32 %v22968_v59, %v2573_v52  ;;  %v1166_v36 = vpop.f32.mrb[6].mxu0  ;;  %v1209_v52 = vpop.f32.mrb[6].mxu1  ;;  %vm3243_vm8 = vmand %vm24224_vm9, %vm24169_vm11 }
 0x11f   : > { %29818 = vst [vmem:[#allocation117_spill] sm:$0xff] %v29817_v57  ;;  %v3463_v6 = vmul.f32 %v22971_v60, %v2575_v10  ;;  %v24177_v29 = vpack.c.bf16 %v3462_v1, %v3394_v18  ;;  %v1163_v61 = vadd.f32 %v1162_v2, %v23951_v7  ;;  %v1206_v21 = vadd.f32 %v1205_v3, %v23951_v7  ;;  %v1211_v3 = vpop.f32.mrb[7].mxu1 }
 0x120   : > { %v24181_v24 = vpack.c.bf16 %v3460_v37, %v3392_v53  ;;  %v24183_v13 = vpack.c.bf16 %v3461_v35, %v3393_v63  ;;  %v1165_v59 = vadd.f32 %v1164_v45, %v23951_v7  ;;  %v1208_v60 = vadd.f32 %v1207_v55, %v23951_v7  ;;  %v1168_v63 = vpop.f32.mrb[7].mxu0  ;;  %v24202_v35 = vld [vmem:[%s29821_s3 + $0x8] sm:$0xff]  }
 0x121   : > { %29819 = vst [vmem:[#allocation118_spill] sm:$0xff] %v24177_v29  ;;  %v24185_v4 = vpack.c.bf16 %v3463_v6, %v3395_v15  ;;  %v2508_v10 = vmax.f32 %v1163_v61, 0.0  ;;  %v2510_v18 = vmax.f32 %v1206_v21, 0.0  ;;  %v1167_v2 = vadd.f32 %v1166_v36, %v24083_v16  ;;  %6969 = vrot.lane.b32.xlu0 %v24177_v29, %s22281_s29 }
 0x122   : > { %29820 = vst [vmem:[#allocation119_spill] sm:$0xff] %v24183_v13  ;;  %v1210_v1 = vadd.f32 %v1209_v52, %v24083_v16  ;;  %5191 = vrot.lane.b32.xlu1 %v24181_v24, %s22279_s28  ;;  %v2509_v6 = vmax.f32 %v1165_v59, 0.0  ;;  %v2511_v53 = vmax.f32 %v1208_v60, 0.0  ;;  %v1212_v37 = vadd.f32 %v1211_v3, %v24083_v16  ;;  %3743 = vmatprep.subr.bf16.mxu0 %v24183_v13 }
 0x123   : > { %v1169_v15 = vadd.f32 %v1168_v63, %v24083_v16  ;;  %3786 = vmatprep.subr.bf16.mxu1 %v24185_v4  ;;  %v2576_v61 = vmax.f32 %v1167_v2, 0.0  ;;  %3744 = vmatpush1.bf16.msra.mxu0 %v24181_v24  ;;  %v29822_v45 = vshra.s32 %v24120_v54, 8  ;;  %v3396_v60 = vmul.f32 %v22981_v47, %v2508_v10 }
 0x124   : > { %v2578_v21 = vmax.f32 %v1210_v1, 0.0  ;;  %3787 = vmatpush1.bf16.msra.mxu1 %v24177_v29  ;;  %v3398_v36 = vmul.f32 %v22999_v56, %v2510_v18  ;;  %v2579_v52 = vmax.f32 %v1212_v37, 0.0  ;;  %v3397_v63 = vmul.f32 %v23186_v14, %v2509_v6  ;;  %v1248_v37 = vpop.f32.mrb[8].mxu0 }
 0x125   : > { %v24208_v55 = vadd.s32 4294967295, %v29822_v45  ;;  %v2577_v3 = vmax.f32 %v1169_v15, 0.0  ;;  %v3464_v2 = vmul.f32 %v22981_v47, %v2576_v61  ;;  %5197 = vrot.lane.b32.xlu0 %v24185_v4, %s22279_s28  ;;  %v3399_v47 = vmul.f32 %v23215_v27, %v2511_v53  ;;  %v1291_v15 = vpop.f32.mrb[8].mxu1  ;;  %v1250_v45 = vpop.f32.mrb[9].mxu0 }
 0x126   : > { %v3466_v1 = vmul.f32 %v22999_v56, %v2578_v21  ;;  %5195 = vrot.lane.b32.xlu1 %v24177_v29, %s22279_s28  ;;  %v3467_v56 = vmul.f32 %v23215_v27, %v2579_v52  ;;  %20582 = vmatmul.mubr.msk.bf16.vlgmr.msra.gmra.mrb[68].mxu0 %vm29191_vm12, %v24202_v35  ;;  %v1249_v53 = vadd.f32 %v1248_v37, %v23951_v7  ;;  %v29827_v52 = vmov 0  }
 0x127   : > { %v3465_v6 = vmul.f32 %v23186_v14, %v2577_v3  ;;  %20583 = vmatmul.mubr.msk.bf16.vlgmr.msra.gmra.mrb[68].mxu1 %vm29191_vm12, %v24202_v35  ;;  %v24237_v61 = vpack.c.bf16 %v3464_v2, %v3396_v60  ;;  %v1292_v27 = vadd.f32 %v1291_v15, %v23951_v7  ;;  %v1293_v14 = vpop.f32.mrb[9].mxu1  ;;  %v1251_v59 = vadd.f32 %v1250_v45, %v23951_v7  ;;  %v1252_v60 = vpop.f32.mrb[10].mxu0 }
 0x128   : > { %v24239_v21 = vpack.c.bf16 %v3466_v1, %v3398_v36  ;;  %3904 = vmatprep.mubr.bf16.mxu1 %v29827_v52  ;;  %v24244_v3 = vpack.c.bf16 %v3467_v56, %v3399_v47  ;;  %v1294_v40 = vadd.f32 %v1293_v14, %v23951_v7  ;;  %v1295_v2 = vpop.f32.mrb[10].mxu1  ;;  %3861 = vmatprep.mubr.bf16.mxu0 %v29827_v52  ;;  %v2512_v36 = vmax.f32 %v1249_v53, 0.0  ;;  %v1254_v56 = vpop.f32.mrb[11].mxu0 }
 0x129   : > { %29825 = vst [vmem:[#allocation120_spill] sm:$0xff] %v24237_v61  ;;  %v24246_v18 = vpack.c.bf16 %v3465_v6, %v3397_v63  ;;  %v2514_v1 = vmax.f32 %v1292_v27, 0.0  ;;  %v1253_v47 = vadd.f32 %v1252_v60, %v24083_v16  ;;  %v1296_v63 = vadd.f32 %v1295_v2, %v24083_v16  ;;  %v1297_v6 = vpop.f32.mrb[11].mxu1 }
 0x12a   : > { %29826 = vst [vmem:[#allocation121_spill] sm:$0xff] %v24239_v21  ;;  %29828 = vst [vmem:[#allocation122_spill] sm:$0xff] %v24244_v3  ;;  %5193 = vrot.lane.b32.xlu1 %v24183_v13, %s22279_s28  ;;  %v2513_v37 = vmax.f32 %v1251_v59, 0.0  ;;  %v2515_v15 = vmax.f32 %v1294_v40, 0.0  ;;  %v1255_v45 = vadd.f32 %v1254_v56, %v24083_v16  ;;  %v1298_v14 = vadd.f32 %v1297_v6, %v24083_v16 }
 0x12b   : > { %29829 = vst [vmem:[#allocation123_spill] sm:$0xff] %v24246_v18  ;;  %3872 = vmatprep.subr.bf16.mxu1 %v24244_v3  ;;  %5201 = vrot.lane.b32.xlu0 %v24246_v18, %s22279_s28  ;;  %v2580_v53 = vmax.f32 %v1253_v47, 0.0  ;;  %v2582_v27 = vmax.f32 %v1296_v63, 0.0  ;;  %v24272_v59 = vsel %vm3243_vm8, 1.0, %v29470_v42  ;;  %v29830_v40 = vshra.s32 %v24130_v33, 8 }
 0x12c   : > { %3829 = vmatprep.subr.bf16.mxu0 %v24246_v18  ;;  %3873 = vmatpush1.bf16.msra.mxu1 %v24239_v21  ;;  %v3400_v2 = vmul.f32 %v23253_v62, %v2512_v36  ;;  %v2581_v47 = vmax.f32 %v1255_v45, 0.0  ;;  %v2583_v63 = vmax.f32 %v1298_v14, 0.0  ;;  %v29831_v56 = vshra.s32 %v24143_v9, 8 }
 0x12d   : > { %v24276_v60 = vadd.s32 4294967295, %v29830_v40  ;;  %3830 = vmatpush1.bf16.msra.mxu0 %v24237_v61  ;;  %v3402_v10 = vmul.f32 %v23264_v32, %v2514_v1  ;;  %v3401_v54 = vmul.f32 %v23279_v0, %v2513_v37  ;;  %v3468_v57 = vmul.f32 %v23253_v62, %v2580_v53  ;;  %v1334_v40 = vpop.f32.mrb[12].mxu0 }
 0x12e   : > { %v24282_v6 = vadd.s32 4294967295, %v29831_v56  ;;  %v3470_v33 = vmul.f32 %v23264_v32, %v2582_v27  ;;  %6967 = vrot.lane.b32.xlu1 %v24183_v13, %s22281_s29  ;;  %v3403_v36 = vmul.f32 %v23287_v12, %v2515_v15  ;;  %v3469_v45 = vmul.f32 %v23279_v0, %v2581_v47  ;;  %v1377_v56 = vpop.f32.mrb[12].mxu1  ;;  %v1336_v15 = vpop.f32.mrb[13].mxu0 }
 0x12f   : > { %v3471_v14 = vmul.f32 %v23287_v12, %v2583_v63  ;;  %20585 = vmatmul.mubr.msk.bf16.vlgmr.msra.gmra.mrb[72].mxu1 %vm29191_vm12, %v24202_v35  ;;  %5205 = vrot.lane.b32.xlu0 %v24244_v3, %s22279_s28  ;;  %v29832_v62 = vshra.s32 %v24146_v46, 8  ;;  %v24301_v1 = vpack.c.bf16 %v3468_v57, %v3400_v2  ;;  %v1335_v0 = vadd.f32 %v1334_v40, %v23951_v7  ;;  %v1379_v53 = vpop.f32.mrb[13].mxu1  ;;  %v1338_v2 = vpop.f32.mrb[14].mxu0 }
 0x130   : > { %v24303_v37 = vpack.c.bf16 %v3470_v33, %v3402_v10  ;;  %v1378_v12 = vadd.f32 %v1377_v56, %v23951_v7  ;;  %20584 = vmatmul.mubr.msk.bf16.vlgmr.msra.gmra.mrb[72].mxu0 %vm29191_vm12, %v24202_v35  ;;  %v24309_v27 = vpack.c.bf16 %v3469_v45, %v3401_v54  ;;  %v1337_v63 = vadd.f32 %v1336_v15, %v23951_v7  ;;  %v1381_v33 = vpop.f32.mrb[14].mxu1  ;;  %v1340_v13 = vpop.f32.mrb[15].mxu0 }
 0x131   : > { %v24299_v32 = vadd.s32 4294967295, %v29832_v62  ;;  %29833 = vst [vmem:[#allocation124_spill] sm:$0xff] %v24301_v1  ;;  %v24311_v47 = vpack.c.bf16 %v3471_v14, %v3403_v36  ;;  %v1380_v57 = vadd.f32 %v1379_v53, %v23951_v7  ;;  %3990 = vmatprep.mubr.bf16.mxu1 %v29827_v52  ;;  %v2516_v10 = vmax.f32 %v1335_v0, 0.0  ;;  %v1383_v29 = vpop.f32.mrb[15].mxu1  ;;  %3947 = vmatprep.mubr.bf16.mxu0 %v29827_v52 }
 0x132   : > { %29834 = vst [vmem:[#allocation125_spill] sm:$0xff] %v24303_v37  ;;  %29835 = vst [vmem:[#allocation126_spill] sm:$0xff] %v24309_v27  ;;  %v2518_v40 = vmax.f32 %v1378_v12, 0.0  ;;  %v1339_v56 = vadd.f32 %v1338_v2, %v24083_v16  ;;  %v1382_v62 = vadd.f32 %v1381_v33, %v24083_v16  ;;  %5199 = vrot.lane.b32.xlu1 %v24237_v61, %s22279_s28  ;;  %v2517_v54 = vmax.f32 %v1337_v63, 0.0 }
 0x133   : > { %29836 = vst [vmem:[#allocation127_spill] sm:$0xff] %v24311_v47  ;;  %v2519_v36 = vmax.f32 %v1380_v57, 0.0  ;;  %v1341_v45 = vadd.f32 %v1340_v13, %v24083_v16  ;;  %v1384_v14 = vadd.f32 %v1383_v29, %v24083_v16  ;;  %3958 = vmatprep.subr.bf16.mxu1 %v24311_v47  ;;  %5209 = vrot.lane.b32.xlu0 %v24309_v27, %s22279_s28  ;;  %vm2904_vm13 = vcmp.ge.s32.totalorder %v24208_v55, 0 }
 0x134   : > { %v2584_v0 = vmax.f32 %v1339_v56, 0.0  ;;  %v2586_v12 = vmax.f32 %v1382_v62, 0.0  ;;  %3915 = vmatprep.subr.bf16.mxu0 %v24309_v27  ;;  %3959 = vmatpush1.bf16.msra.mxu1 %v24303_v37  ;;  %vm2972_vm0 = vcmp.lt.s32.totalorder %v24208_v55, 11  ;;  %v3404_v15 = vmul.f32 %v23304_v17, %v2516_v10  ;;  %v1420_v62 = vpop.f32.mrb[16].mxu0 }
 0x135   : > { %v2585_v13 = vmax.f32 %v1341_v45, 0.0  ;;  %v2587_v53 = vmax.f32 %v1384_v14, 0.0  ;;  %3916 = vmatpush1.bf16.msra.mxu0 %v24301_v1  ;;  %vm2906_vm6 = vcmp.ge.s32.totalorder %v24276_v60, 0  ;;  %v3406_v29 = vmul.f32 %v23309_v22, %v2518_v40  ;;  %v1463_v45 = vpop.f32.mrb[16].mxu1  ;;  %vm24366_vm10 = vmand %vm2904_vm13, %vm2972_vm0 }
 0x136   : > { %v3405_v63 = vmul.f32 %v23354_v38, %v2517_v54  ;;  %v3472_v57 = vmul.f32 %v23304_v17, %v2584_v0  ;;  %v3474_v2 = vmul.f32 %v23309_v22, %v2586_v12  ;;  %5203 = vrot.lane.b32.xlu1 %v24239_v21, %s22279_s28  ;;  %v3407_v33 = vmul.f32 %v23362_v34, %v2519_v36  ;;  %v1465_v54 = vpop.f32.mrb[17].mxu1 }
 0x137   : > { %v3473_v10 = vmul.f32 %v23354_v38, %v2585_v13  ;;  %v3475_v56 = vmul.f32 %v23362_v34, %v2587_v53  ;;  %20587 = vmatmul.mubr.msk.bf16.vlgmr.msra.gmra.mrb[76].mxu1 %vm29191_vm12, %v24202_v35  ;;  %5213 = vrot.lane.b32.xlu0 %v24311_v47, %s22279_s28  ;;  %vm2974_vm15 = vcmp.lt.s32.totalorder %v24276_v60, 11  ;;  %v1421_v40 = vadd.f32 %v1420_v62, %v23951_v7  ;;  %v1422_v34 = vpop.f32.mrb[17].mxu0  ;;  %v1467_v13 = vpop.f32.mrb[18].mxu1 }
 0x138   : > { %v24347_v17 = vpack.c.bf16 %v3472_v57, %v3404_v15  ;;  %v24349_v22 = vpack.c.bf16 %v3474_v2, %v3406_v29  ;;  %v1464_v38 = vadd.f32 %v1463_v45, %v23951_v7  ;;  %20586 = vmatmul.mubr.msk.bf16.vlgmr.msra.gmra.mrb[76].mxu0 %vm29191_vm12, %v24202_v35  ;;  %v1423_v0 = vadd.f32 %v1422_v34, %v23951_v7  ;;  %v1424_v15 = vpop.f32.mrb[18].mxu0  ;;  %vm24392_vm8 = vmand %vm2906_vm6, %vm2974_vm15 }
 0x139   : > { %v24355_v36 = vpack.c.bf16 %v3473_v10, %v3405_v63  ;;  %v24357_v14 = vpack.c.bf16 %v3475_v56, %v3407_v33  ;;  %v1466_v12 = vadd.f32 %v1465_v54, %v23951_v7  ;;  %4076 = vmatprep.mubr.bf16.mxu1 %v29827_v52  ;;  %v2520_v29 = vmax.f32 %v1421_v40, 0.0  ;;  %v1426_v33 = vpop.f32.mrb[19].mxu0  ;;  %v1469_v10 = vpop.f32.mrb[19].mxu1  ;;  %4033 = vmatprep.mubr.bf16.mxu0 %v29827_v52 }
 0x13a   : > { %29837 = vst [vmem:[#allocation128_spill] sm:$0xff] %v24347_v17  ;;  %29838 = vst [vmem:[#allocation129_spill] sm:$0xff] %v24349_v22  ;;  %v2522_v63 = vmax.f32 %v1464_v38, 0.0  ;;  %v1425_v57 = vadd.f32 %v1424_v15, %v24083_v16  ;;  %v1468_v2 = vadd.f32 %v1467_v13, %v24083_v16  ;;  %5207 = vrot.lane.b32.xlu1 %v24301_v1, %s22279_s28  ;;  %v2521_v56 = vmax.f32 %v1423_v0, 0.0 }
 0x13b   : > { %29839 = vst [vmem:[#allocation130_spill] sm:$0xff] %v24355_v36  ;;  %29840 = vst [vmem:[#allocation131_spill] sm:$0xff] %v24357_v14  ;;  %v2523_v62 = vmax.f32 %v1466_v12, 0.0  ;;  %v1427_v55 = vadd.f32 %v1426_v33, %v24083_v16  ;;  %v1470_v45 = vadd.f32 %v1469_v10, %v24083_v16  ;;  %4044 = vmatprep.subr.bf16.mxu1 %v24357_v14  ;;  %5217 = vrot.lane.b32.xlu0 %v24355_v36, %s22279_s28  ;;  %v29847_v33 = vmov 0 }
 0x13c   : > { %vm2905_vm9 = vcmp.ge.s32.totalorder %v24282_v6, 0  ;;  %v2588_v40 = vmax.f32 %v1425_v57, 0.0  ;;  %v2590_v38 = vmax.f32 %v1468_v2, 0.0  ;;  %4001 = vmatprep.subr.bf16.mxu0 %v24355_v36  ;;  %4045 = vmatpush1.bf16.msra.mxu1 %v24349_v22  ;;  %v24386_v34 = vsel %vm24366_vm10, 1.0, %v29470_v42 }
 0x13d   : > { %vm2973_vm13 = vcmp.lt.s32.totalorder %v24282_v6, 11  ;;  %v3408_v0 = vmul.f32 %v23373_v8, %v2520_v29  ;;  %v2589_v12 = vmax.f32 %v1427_v55, 0.0  ;;  %v2591_v15 = vmax.f32 %v1470_v45, 0.0  ;;  %4002 = vmatpush1.bf16.msra.mxu0 %v24347_v17  ;;  %v1549_v45 = vpop.f32.mrb[20].mxu1 }
 0x13e   : > { %v24400_v13 = vadd.s32 7680, %v22806_v58  ;;  %v3410_v53 = vmul.f32 %v23378_v20, %v2522_v63  ;;  %v3409_v57 = vmul.f32 %v23386_v30, %v2521_v56  ;;  %v3476_v60 = vmul.f32 %v23373_v8, %v2588_v40  ;;  %5211 = vrot.lane.b32.xlu1 %v24303_v37, %s22279_s28  ;;  %v1506_v56 = vpop.f32.mrb[20].mxu0  ;;  %vm24474_vm6 = vmand %vm2905_vm9, %vm2973_vm13 }
 0x13f   : > { %v3478_v2 = vmul.f32 %v23378_v20, %v2590_v38  ;;  %v29846_v29 = vand.u32 255, %v24143_v9  ;;  %v3411_v10 = vmul.f32 %v23394_v39, %v2523_v62  ;;  %v3477_v55 = vmul.f32 %v23386_v30, %v2589_v12  ;;  %20589 = vmatmul.mubr.msk.bf16.vlgmr.msra.gmra.mrb[80].mxu1 %vm29191_vm12, %v24202_v35  ;;  %5221 = vrot.lane.b32.xlu0 %v24357_v14, %s22279_s28  ;;  %v1508_v40 = vpop.f32.mrb[21].mxu0  ;;  %v1551_v38 = vpop.f32.mrb[21].mxu1 }
 0x140   : > { %29845 = vst [vmem:[#allocation132_spill] sm:$0xff] %v24400_v13  ;;  %v3479_v63 = vmul.f32 %v23394_v39, %v2591_v15  ;;  %v24424_v8 = vsel %vm24392_vm8, 1.0, %v29470_v42  ;;  %v24426_v20 = vpack.c.bf16 %v3476_v60, %v3408_v0  ;;  %v1507_v30 = vadd.f32 %v1506_v56, %v23951_v7  ;;  %20588 = vmatmul.mubr.msk.bf16.vlgmr.msra.gmra.mrb[80].mxu0 %vm29191_vm12, %v24202_v35  ;;  %v1510_v60 = vpop.f32.mrb[22].mxu0 }
 0x141   : > { %vm24410_vm0 = vcmp.lt.s32.totalorder %v29846_v29, 201  ;;  %v24428_v62 = vpack.c.bf16 %v3478_v2, %v3410_v53  ;;  %v1550_v39 = vadd.f32 %v1549_v45, %v23951_v7  ;;  %v24434_v12 = vpack.c.bf16 %v3477_v55, %v3409_v57  ;;  %v1553_v53 = vpop.f32.mrb[22].mxu1  ;;  %4162 = vmatprep.mubr.bf16.mxu1 %v29827_v52  ;;  %v1512_v9 = vpop.f32.mrb[23].mxu0  ;;  %4119 = vmatprep.mubr.bf16.mxu0 %v29827_v52 }
 0x142   : > { %v29848_v33 = vsel %vm24410_vm0, 4294967295, %v29847_v33  ;;  %29850 = vst [vmem:[#allocation134_spill] sm:$0xff] %v24426_v20  ;;  %v24436_v15 = vpack.c.bf16 %v3479_v63, %v3411_v10  ;;  %v1509_v54 = vadd.f32 %v1508_v40, %v23951_v7  ;;  %v1552_v0 = vadd.f32 %v1551_v38, %v23951_v7  ;;  %v1555_v14 = vpop.f32.mrb[23].mxu1  ;;  %5215 = vrot.lane.b32.xlu1 %v24347_v17, %s22279_s28  ;;  %vm3245_vm9 = vmand %vm24474_vm6, %vm24410_vm0 }
 0x143   : > { %29849 = vst [vmem:[#allocation133_spill] sm:$0xff] %v29848_v33  ;;  %29851 = vst [vmem:[#allocation135_spill] sm:$0xff] %v24428_v62  ;;  %v2524_v2 = vmax.f32 %v1507_v30, 0.0  ;;  %v2526_v29 = vmax.f32 %v1550_v39, 0.0  ;;  %v1511_v56 = vadd.f32 %v1510_v60, %v24083_v16  ;;  %v1554_v45 = vadd.f32 %v1553_v53, %v24083_v16  ;;  %5225 = vrot.lane.b32.xlu0 %v24434_v12, %s22279_s28  ;;  %v29858_v53 = vld [vmem:[#allocation58_spill] sm:$0xff] }
 0x144   : > { %29852 = vst [vmem:[#allocation136_spill] sm:$0xff] %v24434_v12  ;;  %29853 = vst [vmem:[#allocation137_spill] sm:$0xff] %v24436_v15  ;;  %v2525_v57 = vmax.f32 %v1509_v54, 0.0  ;;  %v2527_v10 = vmax.f32 %v1552_v0, 0.0  ;;  %v1513_v55 = vadd.f32 %v1512_v9, %v24083_v16  ;;  %v1556_v63 = vadd.f32 %v1555_v14, %v24083_v16  ;;  %4130 = vmatprep.subr.bf16.mxu1 %v24436_v15  ;;  %v29856_v9 = vld [vmem:[#allocation54_spill] sm:$0xff] }
 0x145   : > { %v2592_v30 = vmax.f32 %v1511_v56, 0.0  ;;  %v2594_v39 = vmax.f32 %v1554_v45, 0.0  ;;  %4087 = vmatprep.subr.bf16.mxu0 %v24434_v12  ;;  %4131 = vmatpush1.bf16.msra.mxu1 %v24428_v62  ;;  %v24454_v40 = vadd.s32 7936, %v22806_v58  ;;  %v24457_v38 = vadd.s32 7808, %v22806_v58  ;;  %v29859_v45 = vld [vmem:[#allocation62_spill] sm:$0xff] }
 0x146   : > { %v3412_v54 = vmul.f32 %v29856_v9, %v2524_v2  ;;  %v2593_v14 = vmax.f32 %v1513_v55, 0.0  ;;  %v2595_v0 = vmax.f32 %v1556_v63, 0.0  ;;  %4088 = vmatpush1.bf16.msra.mxu0 %v24426_v20  ;;  %v24462_v60 = vadd.s32 8064, %v22806_v58  ;;  %5219 = vrot.lane.b32.xlu1 %v24349_v22, %s22279_s28 }
 0x147   : > { %29854 = vst [vmem:[#allocation138_spill] sm:$0xff] %v24454_v40  ;;  %29855 = vst [vmem:[#allocation139_spill] sm:$0xff] %v24457_v38  ;;  %v3414_v56 = vmul.f32 %v29858_v53, %v2526_v29  ;;  %v3413_v12 = vmul.f32 %v29859_v45, %v2525_v57  ;;  %v3480_v17 = vmul.f32 %v29856_v9, %v2592_v30  ;;  %vm2907_vm15 = vcmp.ge.s32.totalorder %v24299_v32, 0  ;;  %v29862_v29 = vld [vmem:[#allocation63_spill] sm:$0xff]  ;;  %v1592_v30 = vpop.f32.mrb[24].mxu0 }
 0x148   : > { %29857 = vst [vmem:[#allocation54_spill] sm:$0xff] %v24462_v60  ;;  %v3482_v37 = vmul.f32 %v29858_v53, %v2594_v39  ;;  %vm2975_vm10 = vcmp.lt.s32.totalorder %v24299_v32, 11  ;;  %v3415_v57 = vmul.f32 %v29862_v29, %v2527_v10  ;;  %v3481_v55 = vmul.f32 %v29859_v45, %v2593_v14  ;;  %v1635_v39 = vpop.f32.mrb[24].mxu1  ;;  %20591 = vmatmul.mubr.msk.bf16.vlgmr.msra.gmra.mrb[84].mxu1 %vm29191_vm12, %v24202_v35 }
 0x149   : > { %v3483_v63 = vmul.f32 %v29862_v29, %v2595_v0  ;;  %5229 = vrot.lane.b32.xlu0 %v24436_v15, %s22279_s28  ;;  %v24488_v9 = vpack.c.bf16 %v3480_v17, %v3412_v54  ;;  %v1593_v10 = vadd.f32 %v1592_v30, %v23951_v7  ;;  %v1636_v14 = vadd.f32 %v1635_v39, %v23951_v7  ;;  %v1594_v0 = vpop.f32.mrb[25].mxu0  ;;  %v1637_v45 = vpop.f32.mrb[25].mxu1  ;;  %vm24570_vm13 = vmand %vm2907_vm15, %vm2975_vm10 }
 0x14a   : > { %v24490_v53 = vpack.c.bf16 %v3482_v37, %v3414_v56  ;;  %20590 = vmatmul.mubr.msk.bf16.vlgmr.msra.gmra.mrb[84].mxu0 %vm29191_vm12, %v24202_v35  ;;  %v24496_v29 = vpack.c.bf16 %v3481_v55, %v3413_v12  ;;  %v1595_v15 = vadd.f32 %v1594_v0, %v23951_v7  ;;  %v1638_v17 = vadd.f32 %v1637_v45, %v23951_v7  ;;  %v1596_v54 = vpop.f32.mrb[26].mxu0  ;;  %v1639_v37 = vpop.f32.mrb[26].mxu1 }
 0x14b   : > { %29863 = vst [vmem:[#allocation58_spill] sm:$0xff] %v24488_v9  ;;  %v24498_v22 = vpack.c.bf16 %v3483_v63, %v3415_v57  ;;  %4248 = vmatprep.mubr.bf16.mxu1 %v29827_v52  ;;  %v29867_v56 = vand.u32 255, %v24146_v46  ;;  %v29868_v12 = vmov 0  ;;  %v2528_v57 = vmax.f32 %v1593_v10, 0.0  ;;  %v1598_v39 = vpop.f32.mrb[27].mxu0  ;;  %v1641_v0 = vpop.f32.mrb[27].mxu1  ;;  %5223 = vrot.lane.b32.xlu1 %v24426_v20, %s22279_s28 }
 0x14c   : > { %29864 = vst [vmem:[#allocation62_spill] sm:$0xff] %v24490_v53  ;;  %29865 = vst [vmem:[#allocation63_spill] sm:$0xff] %v24496_v29  ;;  %v2530_v55 = vmax.f32 %v1636_v14, 0.0  ;;  %v1597_v63 = vadd.f32 %v1596_v54, %v24083_v16  ;;  %v1640_v30 = vadd.f32 %v1639_v37, %v24083_v16  ;;  %4205 = vmatprep.mubr.bf16.mxu0 %v29827_v52  ;;  %v2529_v45 = vmax.f32 %v1595_v15, 0.0  ;;  %v29871_v54 = vld [vmem:[#allocation64_spill] sm:$0xff]  ;;  %v29873_v20 = vld [vmem:[#allocation69_spill] sm:$0xff] }
 0x14d   : > { %29866 = vst [vmem:[#allocation140_spill] sm:$0xff] %v24498_v22  ;;  %vm24509_vm8 = vcmp.lt.s32.totalorder %v29867_v56, 201  ;;  %v2531_v6 = vmax.f32 %v1638_v17, 0.0  ;;  %v1599_v56 = vadd.f32 %v1598_v39, %v24083_v16  ;;  %v1642_v46 = vadd.f32 %v1641_v0, %v24083_v16  ;;  %4216 = vmatprep.subr.bf16.mxu1 %v24498_v22  ;;  %5233 = vrot.lane.b32.xlu0 %v24496_v29, %s22279_s28  ;;  %v29874_v17 = vld [vmem:[#allocation70_spill] sm:$0xff]  ;;  %v1721_v47 = vpop.f32.mrb[28].mxu1 }
 0x14e   : > { %v29869_v12 = vsel %vm24509_vm8, 4294967295, %v29868_v12  ;;  %v2596_v10 = vmax.f32 %v1597_v63, 0.0  ;;  %v2598_v14 = vmax.f32 %v1640_v30, 0.0  ;;  %4173 = vmatprep.subr.bf16.mxu0 %v24496_v29  ;;  %4217 = vmatpush1.bf16.msra.mxu1 %v24490_v53  ;;  %v24531_v15 = vsel %vm3245_vm9, 1.0, %v29470_v42  ;;  %v29872_v30 = vld [vmem:[#allocation65_spill] sm:$0xff]  ;;  %vm3247_vm6 = vmand %vm24570_vm13, %vm24509_vm8 }
 0x14f   : > { %29870 = vst [vmem:[#allocation141_spill] sm:$0xff] %v29869_v12  ;;  %v3416_v37 = vmul.f32 %v29871_v54, %v2528_v57  ;;  %v2597_v39 = vmax.f32 %v1599_v56, 0.0  ;;  %v2599_v0 = vmax.f32 %v1642_v46, 0.0  ;;  %4174 = vmatpush1.bf16.msra.mxu0 %v24488_v9  ;;  %v3418_v29 = vmul.f32 %v29872_v30, %v2530_v55  ;;  %5227 = vrot.lane.b32.xlu1 %v24428_v62, %s22279_s28  ;;  %v1678_v56 = vpop.f32.mrb[28].mxu0  ;;  %v29883_v55 = vld [vmem:[#allocation96_spill] sm:$0xff] }
 0x150   : > { %v3417_v36 = vmul.f32 %v29873_v20, %v2529_v45  ;;  %v3484_v2 = vmul.f32 %v29871_v54, %v2596_v10  ;;  %v3486_v33 = vmul.f32 %v29872_v30, %v2598_v14  ;;  %v3419_v1 = vmul.f32 %v29874_v17, %v2531_v6  ;;  %v1680_v14 = vpop.f32.mrb[29].mxu0 }
 0x151   : > { %v3485_v57 = vmul.f32 %v29873_v20, %v2597_v39  ;;  %v3487_v46 = vmul.f32 %v29874_v17, %v2599_v0  ;;  %20593 = vmatmul.mubr.msk.bf16.vlgmr.msra.gmra.mrb[88].mxu1 %vm29191_vm12, %v24202_v35  ;;  %5237 = vrot.lane.b32.xlu0 %v24498_v22, %s22279_s28  ;;  %v1679_v6 = vadd.f32 %v1678_v56, %v23951_v7  ;;  %v1723_v17 = vpop.f32.mrb[29].mxu1  ;;  %v1682_v30 = vpop.f32.mrb[30].mxu0 }
 0x152   : > { %v24551_v45 = vpack.c.bf16 %v3484_v2, %v3416_v37  ;;  %v24553_v10 = vpack.c.bf16 %v3486_v33, %v3418_v29  ;;  %v1722_v20 = vadd.f32 %v1721_v47, %v23951_v7  ;;  %20592 = vmatmul.mubr.msk.bf16.vlgmr.msra.gmra.mrb[88].mxu0 %vm29191_vm12, %v24202_v35  ;;  %v1681_v0 = vadd.f32 %v1680_v14, %v23951_v7  ;;  %v1725_v33 = vpop.f32.mrb[30].mxu1 }
 0x153   : > { %v24559_v54 = vpack.c.bf16 %v3485_v57, %v3417_v36  ;;  %v24561_v39 = vpack.c.bf16 %v3487_v46, %v3419_v1  ;;  %v1724_v37 = vadd.f32 %v1723_v17, %v23951_v7  ;;  %4334 = vmatprep.mubr.bf16.mxu1 %v29827_v52  ;;  %v2532_v36 = vmax.f32 %v1679_v6, 0.0  ;;  %v1684_v57 = vpop.f32.mrb[31].mxu0  ;;  %v1727_v46 = vpop.f32.mrb[31].mxu1  ;;  %5231 = vrot.lane.b32.xlu1 %v24488_v9, %s22279_s28 }
 0x154   : > { %29875 = vst [vmem:[#allocation64_spill] sm:$0xff] %v24551_v45  ;;  %29876 = vst [vmem:[#allocation65_spill] sm:$0xff] %v24553_v10  ;;  %v2534_v29 = vmax.f32 %v1722_v20, 0.0  ;;  %v1683_v1 = vadd.f32 %v1682_v30, %v24083_v16  ;;  %v1726_v2 = vadd.f32 %v1725_v33, %v24083_v16  ;;  %4291 = vmatprep.mubr.bf16.mxu0 %v29827_v52  ;;  %v2533_v56 = vmax.f32 %v1681_v0, 0.0  ;;  %v29882_v33 = vld [vmem:[#allocation95_spill] sm:$0xff]  ;;  %v1807_v30 = vpop.f32.mrb[32].mxu1 }
 0x155   : > { %29877 = vst [vmem:[#allocation69_spill] sm:$0xff] %v24559_v54  ;;  %29878 = vst [vmem:[#allocation70_spill] sm:$0xff] %v24561_v39  ;;  %v2535_v14 = vmax.f32 %v1724_v37, 0.0  ;;  %v1685_v32 = vadd.f32 %v1684_v57, %v24083_v16  ;;  %v1728_v17 = vadd.f32 %v1727_v46, %v24083_v16  ;;  %4302 = vmatprep.subr.bf16.mxu1 %v24561_v39  ;;  %5241 = vrot.lane.b32.xlu0 %v24559_v54, %s22279_s28 }
 0x156   : > { %v2600_v6 = vmax.f32 %v1683_v1, 0.0  ;;  %v2602_v20 = vmax.f32 %v1726_v2, 0.0  ;;  %4259 = vmatprep.subr.bf16.mxu0 %v24559_v54  ;;  %4303 = vmatpush1.bf16.msra.mxu1 %v24553_v10  ;;  %v29881_v0 = vshra.s32 %v24400_v13, 8  ;;  %v3420_v57 = vmul.f32 %v29882_v33, %v2532_v36 }
 0x157   : > { %v2601_v46 = vmax.f32 %v1685_v32, 0.0  ;;  %v2603_v1 = vmax.f32 %v1728_v17, 0.0  ;;  %4260 = vmatpush1.bf16.msra.mxu0 %v24551_v45  ;;  %v3422_v63 = vmul.f32 %v29883_v55, %v2534_v29  ;;  %v3421_v54 = vmul.f32 %v23871_v5, %v2533_v56  ;;  %5235 = vrot.lane.b32.xlu1 %v24490_v53, %s22279_s28  ;;  %v1764_v17 = vpop.f32.mrb[32].mxu0 }
 0x158   : > { %v24592_v37 = vadd.s32 4294967295, %v29881_v0  ;;  %v3488_v9 = vmul.f32 %v29882_v33, %v2600_v6  ;;  %v3490_v13 = vmul.f32 %v29883_v55, %v2602_v20  ;;  %v3423_v0 = vmul.f32 %v23900_v41, %v2535_v14  ;;  %v1766_v14 = vpop.f32.mrb[33].mxu0  ;;  %v1809_v6 = vpop.f32.mrb[33].mxu1 }
 0x159   : > { %v3489_v36 = vmul.f32 %v23871_v5, %v2601_v46  ;;  %v3491_v32 = vmul.f32 %v23900_v41, %v2603_v1  ;;  %20595 = vmatmul.mubr.msk.bf16.vlgmr.msra.gmra.mrb[92].mxu1 %vm29191_vm12, %v24202_v35  ;;  %5245 = vrot.lane.b32.xlu0 %v24561_v39, %s22279_s28  ;;  %v24617_v55 = vsel %vm3247_vm6, 1.0, %v29470_v42  ;;  %v1765_v41 = vadd.f32 %v1764_v17, %v23951_v7 }
 0x15a   : > { %v24619_v29 = vpack.c.bf16 %v3488_v9, %v3420_v57  ;;  %v24621_v5 = vpack.c.bf16 %v3490_v13, %v3422_v63  ;;  %v1808_v56 = vadd.f32 %v1807_v30, %v23951_v7  ;;  %20594 = vmatmul.mubr.msk.bf16.vlgmr.msra.gmra.mrb[92].mxu0 %vm29191_vm12, %v24202_v35  ;;  %v1767_v33 = vadd.f32 %v1766_v14, %v23951_v7  ;;  %v1768_v57 = vpop.f32.mrb[34].mxu0  ;;  %v1811_v13 = vpop.f32.mrb[34].mxu1 }
 0x15b   : > { %v24627_v20 = vpack.c.bf16 %v3489_v36, %v3421_v54  ;;  %v24629_v47 = vpack.c.bf16 %v3491_v32, %v3423_v0  ;;  %v1810_v9 = vadd.f32 %v1809_v6, %v23951_v7  ;;  %4420 = vmatprep.mubr.bf16.mxu1 %v29827_v52  ;;  %v2536_v63 = vmax.f32 %v1765_v41, 0.0  ;;  %v1770_v17 = vpop.f32.mrb[35].mxu0  ;;  %v1813_v2 = vpop.f32.mrb[35].mxu1  ;;  %5239 = vrot.lane.b32.xlu1 %v24551_v45, %s22279_s28 }
 0x15c   : > { %29884 = vst [vmem:[#allocation95_spill] sm:$0xff] %v24619_v29  ;;  %29885 = vst [vmem:[#allocation96_spill] sm:$0xff] %v24621_v5  ;;  %v2538_v46 = vmax.f32 %v1808_v56, 0.0  ;;  %v1769_v30 = vadd.f32 %v1768_v57, %v24083_v16  ;;  %v1812_v1 = vadd.f32 %v1811_v13, %v24083_v16  ;;  %4377 = vmatprep.mubr.bf16.mxu0 %v29827_v52  ;;  %v2537_v54 = vmax.f32 %v1767_v33, 0.0 }
 0x15d   : > { %29886 = vst [vmem:[#allocation142_spill] sm:$0xff] %v24627_v20  ;;  %29887 = vst [vmem:[#allocation143_spill] sm:$0xff] %v24629_v47  ;;  %v2539_v0 = vmax.f32 %v1810_v9, 0.0  ;;  %v1771_v36 = vadd.f32 %v1770_v17, %v24083_v16  ;;  %v1814_v32 = vadd.f32 %v1813_v2, %v24083_v16  ;;  %4388 = vmatprep.subr.bf16.mxu1 %v24629_v47  ;;  %5249 = vrot.lane.b32.xlu0 %v24627_v20, %s22279_s28 }
 0x15e   : > { %v2604_v41 = vmax.f32 %v1769_v30, 0.0  ;;  %v2606_v56 = vmax.f32 %v1812_v1, 0.0  ;;  %4345 = vmatprep.subr.bf16.mxu0 %v24627_v20  ;;  %4389 = vmatpush1.bf16.msra.mxu1 %v24621_v5  ;;  %v29888_v14 = vshra.s32 %v24454_v40, 8  ;;  %v29889_v33 = vshra.s32 %v24457_v38, 8 }
 0x15f   : > { %v3424_v2 = vmul.f32 %v23910_v49, %v2536_v63  ;;  %v2605_v57 = vmax.f32 %v1771_v36, 0.0  ;;  %v2607_v13 = vmax.f32 %v1814_v32, 0.0  ;;  %4346 = vmatpush1.bf16.msra.mxu0 %v24619_v29  ;;  %v29890_v30 = vshra.s32 %v24462_v60, 8  ;;  %5243 = vrot.lane.b32.xlu1 %v24553_v10, %s22279_s28 }
 0x160   : > { %v24648_v6 = vadd.s32 4294967295, %v29888_v14  ;;  %v24652_v9 = vadd.s32 4294967295, %v29889_v33  ;;  %v3426_v17 = vmul.f32 %v23921_v31, %v2538_v46  ;;  %v3425_v40 = vmul.f32 %v23936_v26, %v2537_v54  ;;  %v1850_v33 = vpop.f32.mrb[36].mxu0 }
 0x161   : > { %v24658_v1 = vadd.s32 4294967295, %v29890_v30  ;;  %v3492_v14 = vmul.f32 %v23910_v49, %v2604_v41  ;;  %v3494_v12 = vmul.f32 %v23921_v31, %v2606_v56  ;;  %v3427_v63 = vmul.f32 %v23959_v23, %v2539_v0  ;;  %v1893_v30 = vpop.f32.mrb[36].mxu1  ;;  %20597 = vmatmul.mubr.msk.bf16.vlgmr.msra.gmra.mrb[96].mxu1 %vm29191_vm12, %v24202_v35  ;;  %5253 = vrot.lane.b32.xlu0 %v24629_v47, %s22279_s28 }
 0x162   : > { %v3493_v36 = vmul.f32 %v23936_v26, %v2605_v57  ;;  %v3495_v32 = vmul.f32 %v23959_v23, %v2607_v13  ;;  %vm2908_vm15 = vcmp.ge.s32.totalorder %v24592_v37, 0  ;;  %v1851_v46 = vadd.f32 %v1850_v33, %v23951_v7  ;;  %20596 = vmatmul.mubr.msk.bf16.vlgmr.msra.gmra.mrb[96].mxu0 %vm29191_vm12, %v24202_v35  ;;  %v1852_v23 = vpop.f32.mrb[37].mxu0  ;;  %v1895_v54 = vpop.f32.mrb[37].mxu1  ;;  %4506 = vmatprep.mubr.bf16.mxu1 %v29827_v52 }
 0x163   : > { %v24674_v49 = vpack.c.bf16 %v3492_v14, %v3424_v2  ;;  %v24676_v31 = vpack.c.bf16 %v3494_v12, %v3426_v17  ;;  %v1894_v26 = vadd.f32 %v1893_v30, %v23951_v7  ;;  %v1853_v56 = vadd.f32 %v1852_v23, %v23951_v7  ;;  %v1854_v57 = vpop.f32.mrb[38].mxu0  ;;  %v1897_v12 = vpop.f32.mrb[38].mxu1  ;;  %5247 = vrot.lane.b32.xlu1 %v24619_v29, %s22279_s28 }
 0x164   : > { %v24682_v0 = vpack.c.bf16 %v3493_v36, %v3425_v40  ;;  %v24684_v41 = vpack.c.bf16 %v3495_v32, %v3427_v63  ;;  %v1896_v2 = vadd.f32 %v1895_v54, %v23951_v7  ;;  %v2540_v13 = vmax.f32 %v1851_v46, 0.0  ;;  %v1856_v30 = vpop.f32.mrb[39].mxu0  ;;  %v1899_v47 = vpop.f32.mrb[39].mxu1  ;;  %4463 = vmatprep.mubr.bf16.mxu0 %v29827_v52 }
 0x165   : > { %29891 = vst [vmem:[#allocation144_spill] sm:$0xff] %v24674_v49  ;;  %29892 = vst [vmem:[#allocation145_spill] sm:$0xff] %v24676_v31  ;;  %v2542_v17 = vmax.f32 %v1894_v26, 0.0  ;;  %v1855_v14 = vadd.f32 %v1854_v57, %v24083_v16  ;;  %v1898_v33 = vadd.f32 %v1897_v12, %v24083_v16  ;;  %v2541_v40 = vmax.f32 %v1853_v56, 0.0 }
 0x166   : > { %29893 = vst [vmem:[#allocation146_spill] sm:$0xff] %v24682_v0  ;;  %29894 = vst [vmem:[#allocation147_spill] sm:$0xff] %v24684_v41  ;;  %v2543_v63 = vmax.f32 %v1896_v2, 0.0  ;;  %v1857_v36 = vadd.f32 %v1856_v30, %v24083_v16  ;;  %v1900_v32 = vadd.f32 %v1899_v47, %v24083_v16  ;;  %4474 = vmatprep.subr.bf16.mxu1 %v24684_v41  ;;  %5257 = vrot.lane.b32.xlu0 %v24682_v0, %s22279_s28  ;;  %v1936_v30 = vpop.f32.mrb[40].mxu0 }
 0x167   : > { %v2608_v46 = vmax.f32 %v1855_v14, 0.0  ;;  %v2610_v26 = vmax.f32 %v1898_v33, 0.0  ;;  %4431 = vmatprep.subr.bf16.mxu0 %v24682_v0  ;;  %4475 = vmatpush1.bf16.msra.mxu1 %v24676_v31  ;;  %vm2976_vm10 = vcmp.lt.s32.totalorder %v24592_v37, 11  ;;  %vm2910_vm9 = vcmp.ge.s32.totalorder %v24648_v6, 0 }
 0x168   : > { %v3428_v23 = vmul.f32 %v23964_v19, %v2540_v13  ;;  %v2609_v54 = vmax.f32 %v1857_v36, 0.0  ;;  %v2611_v56 = vmax.f32 %v1900_v32, 0.0  ;;  %4432 = vmatpush1.bf16.msra.mxu0 %v24674_v49  ;;  %vm2978_vm13 = vcmp.lt.s32.totalorder %v24648_v6, 11  ;;  %5251 = vrot.lane.b32.xlu1 %v24621_v5, %s22279_s28  ;;  %v1979_v36 = vpop.f32.mrb[40].mxu1  ;;  %vm24740_vm6 = vmand %vm2908_vm15, %vm2976_vm10 }
 0x169   : > { %v3430_v47 = vmul.f32 %v23969_v51, %v2542_v17  ;;  %v3429_v2 = vmul.f32 %v23987_v43, %v2541_v40  ;;  %v3496_v57 = vmul.f32 %v23964_v19, %v2608_v46  ;;  %v3498_v12 = vmul.f32 %v23969_v51, %v2610_v26  ;;  %v1981_v40 = vpop.f32.mrb[41].mxu1  ;;  %vm24759_vm15 = vmand %vm2910_vm9, %vm2978_vm13 }
 0x16a   : > { %v3431_v13 = vmul.f32 %v23995_v50, %v2543_v63  ;;  %v3497_v14 = vmul.f32 %v23987_v43, %v2609_v54  ;;  %v3499_v33 = vmul.f32 %v23995_v50, %v2611_v56  ;;  %20599 = vmatmul.mubr.msk.bf16.vlgmr.msra.gmra.mrb[100].mxu1 %vm29191_vm12, %v24202_v35  ;;  %5261 = vrot.lane.b32.xlu0 %v24684_v41, %s22279_s28  ;;  %v1938_v50 = vpop.f32.mrb[41].mxu0  ;;  %v1983_v54 = vpop.f32.mrb[42].mxu1  ;;  %v24773_v6 = vsel %vm24740_vm6, 1.0, %v29470_v42 }
 0x16b   : > { %v24721_v19 = vpack.c.bf16 %v3496_v57, %v3428_v23  ;;  %v24723_v51 = vpack.c.bf16 %v3498_v12, %v3430_v47  ;;  %v1937_v17 = vadd.f32 %v1936_v30, %v23951_v7  ;;  %v1980_v43 = vadd.f32 %v1979_v36, %v23951_v7  ;;  %20598 = vmatmul.mubr.msk.bf16.vlgmr.msra.gmra.mrb[100].mxu0 %vm29191_vm12, %v24202_v35  ;;  %v1940_v23 = vpop.f32.mrb[42].mxu0  ;;  %v1985_v30 = vpop.f32.mrb[43].mxu1 }
 0x16c   : > { %v24729_v63 = vpack.c.bf16 %v3497_v14, %v3429_v2  ;;  %v24731_v32 = vpack.c.bf16 %v3499_v33, %v3431_v13  ;;  %v1939_v46 = vadd.f32 %v1938_v50, %v23951_v7  ;;  %v1982_v26 = vadd.f32 %v1981_v40, %v23951_v7  ;;  %4592 = vmatprep.mubr.bf16.mxu1 %v29827_v52  ;;  %v1942_v33 = vpop.f32.mrb[43].mxu0 }
 0x16d   : > { %29895 = vst [vmem:[#allocation148_spill] sm:$0xff] %v24721_v19  ;;  %29896 = vst [vmem:[#allocation149_spill] sm:$0xff] %v24723_v51  ;;  %v29901_v47 = vand.u32 255, %v24457_v38  ;;  %v29902_v2 = vmov 0  ;;  %v2544_v57 = vmax.f32 %v1937_v17, 0.0  ;;  %v2546_v12 = vmax.f32 %v1980_v43, 0.0  ;;  %5255 = vrot.lane.b32.xlu1 %v24674_v49, %s22279_s28  ;;  %4549 = vmatprep.mubr.bf16.mxu0 %v29827_v52 }
 0x16e   : > { %29897 = vst [vmem:[#allocation150_spill] sm:$0xff] %v24729_v63  ;;  %29898 = vst [vmem:[#allocation151_spill] sm:$0xff] %v24731_v32  ;;  %v1941_v13 = vadd.f32 %v1940_v23, %v24083_v16  ;;  %v1984_v14 = vadd.f32 %v1983_v54, %v24083_v16  ;;  %v2545_v36 = vmax.f32 %v1939_v46, 0.0  ;;  %v2547_v17 = vmax.f32 %v1982_v26, 0.0  ;;  %4560 = vmatprep.subr.bf16.mxu1 %v24731_v32  ;;  %v2022_v37 = vpop.f32.mrb[44].mxu0  ;;  %v2065_v38 = vpop.f32.mrb[44].mxu1 }
 0x16f   : > { %vm24746_vm7 = vcmp.lt.s32.totalorder %v29901_v47, 201  ;;  %v1943_v43 = vadd.f32 %v1942_v33, %v24083_v16  ;;  %v1986_v50 = vadd.f32 %v1985_v30, %v24083_v16  ;;  %5265 = vrot.lane.b32.xlu0 %v24729_v63, %s22279_s28  ;;  %4517 = vmatprep.subr.bf16.mxu0 %v24729_v63  ;;  %v24776_v46 = vadd.s32 8192, %v22806_v58 }
 0x170   : > { %v29903_v2 = vsel %vm24746_vm7, 4294967295, %v29902_v2  ;;  %v2612_v40 = vmax.f32 %v1941_v13, 0.0  ;;  %v2614_v23 = vmax.f32 %v1984_v14, 0.0  ;;  %4561 = vmatpush1.bf16.msra.mxu1 %v24723_v51  ;;  %v3432_v26 = vmul.f32 %v24006_v28, %v2544_v57  ;;  %4518 = vmatpush1.bf16.msra.mxu0 %v24721_v19 }
 0x171   : > { %29904 = vst [vmem:[#allocation152_spill] sm:$0xff] %v29903_v2  ;;  %v2613_v54 = vmax.f32 %v1943_v43, 0.0  ;;  %v2615_v47 = vmax.f32 %v1986_v50, 0.0  ;;  %v24783_v13 = vsel %vm24759_vm15, 1.0, %v29470_v42  ;;  %v3434_v14 = vmul.f32 %v24016_v25, %v2546_v12  ;;  %5259 = vrot.lane.b32.xlu1 %v24676_v31, %s22279_s28 }
 0x172   : > { %v3433_v56 = vmul.f32 %v24029_v11, %v2545_v36  ;;  %v3500_v33 = vmul.f32 %v24006_v28, %v2612_v40  ;;  %v3502_v30 = vmul.f32 %v24016_v25, %v2614_v23  ;;  %v3435_v57 = vmul.f32 %v24037_v48, %v2547_v17  ;;  %v2067_v17 = vpop.f32.mrb[45].mxu1 }
 0x173   : > { %v3501_v43 = vmul.f32 %v24029_v11, %v2613_v54  ;;  %v3503_v50 = vmul.f32 %v24037_v48, %v2615_v47  ;;  %20601 = vmatmul.mubr.msk.bf16.vlgmr.msra.gmra.mrb[104].mxu1 %vm29191_vm12, %v24202_v35  ;;  %5269 = vrot.lane.b32.xlu0 %v24731_v32, %s22279_s28  ;;  %v24799_v28 = vadd.s32 8448, %v22806_v58  ;;  %v2023_v36 = vadd.f32 %v2022_v37, %v23951_v7  ;;  %v24810_v48 = vld [vmem:[%s29821_s3 + $0x8] sm:$0xff]   ;;  %v2024_v35 = vpop.f32.mrb[45].mxu0 }
 0x174   : > { %v24801_v25 = vpack.c.bf16 %v3500_v33, %v3432_v26  ;;  %v24803_v12 = vpack.c.bf16 %v3502_v30, %v3434_v14  ;;  %v2066_v11 = vadd.f32 %v2065_v38, %v23951_v7  ;;  %20600 = vmatmul.mubr.msk.bf16.vlgmr.msra.gmra.mrb[104].mxu0 %vm29191_vm12, %v24810_v48  ;;  %v2025_v26 = vadd.f32 %v2024_v35, %v23951_v7  ;;  %v2026_v47 = vpop.f32.mrb[46].mxu0  ;;  %v2069_v38 = vpop.f32.mrb[46].mxu1 }
 0x175   : > { %v24814_v40 = vpack.c.bf16 %v3501_v43, %v3433_v56  ;;  %v24816_v23 = vpack.c.bf16 %v3503_v50, %v3435_v57  ;;  %v2068_v54 = vadd.f32 %v2067_v17, %v23951_v7  ;;  %4678 = vmatprep.mubr.bf16.mxu1 %v29827_v52  ;;  %vm29911_vm10 = vcmp.lt.s32.totalorder %v24652_v9, 11  ;;  %v2028_v43 = vpop.f32.mrb[47].mxu0  ;;  %v2071_v50 = vpop.f32.mrb[47].mxu1  ;;  %5263 = vrot.lane.b32.xlu1 %v24721_v19, %s22279_s28  ;;  %v29917_v19 = vld [vmem:[#allocation104_spill] sm:$0xff] }
 0x176   : > { %29907 = vst [vmem:[#allocation153_spill] sm:$0xff] %v24801_v25  ;;  %29908 = vst [vmem:[#allocation154_spill] sm:$0xff] %v24803_v12  ;;  %vm29912_vm9 = vcmp.ge.s32.totalorder %v24652_v9, 0  ;;  %v2548_v56 = vmax.f32 %v2023_v36, 0.0  ;;  %v2550_v33 = vmax.f32 %v2066_v11, 0.0  ;;  %v2027_v30 = vadd.f32 %v2026_v47, %v24083_v16  ;;  %4635 = vmatprep.mubr.bf16.mxu0 %v29827_v52  ;;  %v29915_v47 = vld [vmem:[#allocation102_spill] sm:$0xff] }
 0x177   : > { %29909 = vst [vmem:[#allocation155_spill] sm:$0xff] %v24814_v40  ;;  %29910 = vst [vmem:[#allocation156_spill] sm:$0xff] %v24816_v23  ;;  %v2070_v57 = vadd.f32 %v2069_v38, %v24083_v16  ;;  %v2549_v37 = vmax.f32 %v2025_v26, 0.0  ;;  %v2551_v35 = vmax.f32 %v2068_v54, 0.0  ;;  %v2029_v9 = vadd.f32 %v2028_v43, %v24083_v16  ;;  %4646 = vmatprep.subr.bf16.mxu1 %v24816_v23  ;;  %v2151_v49 = vpop.f32.mrb[48].mxu1 }
 0x178   : > { %vm24825_vm13 = vmand %vm29912_vm9, %vm29911_vm10  ;;  %v2072_v17 = vadd.f32 %v2071_v50, %v24083_v16  ;;  %5273 = vrot.lane.b32.xlu0 %v24814_v40, %s22279_s28  ;;  %vm2911_vm6 = vcmp.ge.s32.totalorder %v24658_v1, 0  ;;  %vm2979_vm15 = vcmp.lt.s32.totalorder %v24658_v1, 11  ;;  %v2616_v36 = vmax.f32 %v2027_v30, 0.0  ;;  %4603 = vmatprep.subr.bf16.mxu0 %v24814_v40  ;;  %v29916_v50 = vld [vmem:[#allocation103_spill] sm:$0xff] }
 0x179   : > { %v2618_v11 = vmax.f32 %v2070_v57, 0.0  ;;  %4647 = vmatpush1.bf16.msra.mxu1 %v24803_v12  ;;  %vm3249_vm10 = vmand %vm24825_vm13, %vm24746_vm7  ;;  %v24848_v26 = vadd.s32 8576, %v22806_v58  ;;  %v24851_v54 = vadd.s32 8320, %v22806_v58  ;;  %v3436_v38 = vmul.f32 %v29915_v47, %v2548_v56  ;;  %4604 = vmatpush1.bf16.msra.mxu0 %v24801_v25 }
 0x17a   : > { %v2617_v43 = vmax.f32 %v2029_v9, 0.0  ;;  %v2619_v30 = vmax.f32 %v2072_v17, 0.0  ;;  %v2775_v57 = vshra.s32 %v24776_v46, 8  ;;  %v3438_v40 = vmul.f32 %v29916_v50, %v2550_v33  ;;  %5267 = vrot.lane.b32.xlu1 %v24723_v51, %s22279_s28  ;;  %v29922_v9 = vld [vmem:[#allocation105_spill] sm:$0xff]  ;;  %vm24926_vm13 = vmand %vm2911_vm6, %vm2979_vm15 }
 0x17b   : > { %v3437_v32 = vmul.f32 %v29917_v19, %v2549_v37  ;;  %v3504_v31 = vmul.f32 %v29915_v47, %v2616_v36  ;;  %v3506_v63 = vmul.f32 %v29916_v50, %v2618_v11  ;;  %v29918_v58 = vand.u32 255, %v24462_v60  ;;  %v2108_v37 = vpop.f32.mrb[48].mxu0 }
 0x17c   : > { %v29919_v56 = vmov 0  ;;  %v3439_v17 = vmul.f32 %v29922_v9, %v2551_v35  ;;  %v3505_v46 = vmul.f32 %v29917_v19, %v2617_v43  ;;  %v3507_v33 = vmul.f32 %v29922_v9, %v2619_v30  ;;  %20603 = vmatmul.mubr.msk.bf16.vlgmr.msra.gmra.mrb[108].mxu1 %vm29191_vm12, %v24810_v48  ;;  %5277 = vrot.lane.b32.xlu0 %v24816_v23, %s22279_s28  ;;  %v2110_v47 = vpop.f32.mrb[49].mxu0  ;;  %v2153_v43 = vpop.f32.mrb[49].mxu1 }
 0x17d   : > { %vm24864_vm9 = vcmp.lt.s32.totalorder %v29918_v58, 201  ;;  %v24881_v58 = vsel %vm3249_vm10, 1.0, %v29470_v42  ;;  %v24883_v35 = vpack.c.bf16 %v3504_v31, %v3436_v38  ;;  %v24885_v19 = vpack.c.bf16 %v3506_v63, %v3438_v40  ;;  %20602 = vmatmul.mubr.msk.bf16.vlgmr.msra.gmra.mrb[108].mxu0 %vm29191_vm12, %v24810_v48  ;;  %v2112_v38 = vpop.f32.mrb[50].mxu0  ;;  %v2155_v63 = vpop.f32.mrb[50].mxu1  ;;  %4764 = vmatprep.mubr.bf16.mxu1 %v29827_v52 }
 0x17e   : > { %v29920_v56 = vsel %vm24864_vm9, 4294967295, %v29919_v56  ;;  %v2109_v36 = vadd.f32 %v2108_v37, %v23951_v7  ;;  %v2152_v11 = vadd.f32 %v2151_v49, %v23951_v7  ;;  %v24891_v30 = vpack.c.bf16 %v3505_v46, %v3437_v32  ;;  %v2114_v2 = vpop.f32.mrb[51].mxu0  ;;  %v2157_v60 = vpop.f32.mrb[51].mxu1  ;;  %5271 = vrot.lane.b32.xlu1 %v24801_v25, %s22279_s28  ;;  %4721 = vmatprep.mubr.bf16.mxu0 %v29827_v52  ;;  %vm3251_vm6 = vmand %vm24926_vm13, %vm24864_vm9 }
 0x17f   : > { %29921 = vst [vmem:[#allocation102_spill] sm:$0xff] %v29920_v56  ;;  %29923 = vst [vmem:[#allocation103_spill] sm:$0xff] %v24883_v35  ;;  %v24893_v14 = vpack.c.bf16 %v3507_v33, %v3439_v17  ;;  %v2111_v50 = vadd.f32 %v2110_v47, %v23951_v7  ;;  %v2154_v31 = vadd.f32 %v2153_v43, %v23951_v7  ;;  %v24910_v47 = vadd.s32 4294967295, %v2775_v57  ;;  %v29932_v57 = vld [vmem:[#allocation109_spill] sm:$0xff] }
 0x180   : > { %29924 = vst [vmem:[#allocation104_spill] sm:$0xff] %v24885_v19  ;;  %29925 = vst [vmem:[#allocation105_spill] sm:$0xff] %v24891_v30  ;;  %v2552_v40 = vmax.f32 %v2109_v36, 0.0  ;;  %v2554_v9 = vmax.f32 %v2152_v11, 0.0  ;;  %v2113_v49 = vadd.f32 %v2112_v38, %v24083_v16  ;;  %v2156_v37 = vadd.f32 %v2155_v63, %v24083_v16  ;;  %5281 = vrot.lane.b32.xlu0 %v24891_v30, %s22279_s28  ;;  %v29928_v63 = vld [vmem:[#allocation107_spill] sm:$0xff] }
 0x181   : > { %29926 = vst [vmem:[#allocation157_spill] sm:$0xff] %v24893_v14  ;;  %v2553_v32 = vmax.f32 %v2111_v50, 0.0  ;;  %v2555_v17 = vmax.f32 %v2154_v31, 0.0  ;;  %v2115_v46 = vadd.f32 %v2114_v2, %v24083_v16  ;;  %v2158_v33 = vadd.f32 %v2157_v60, %v24083_v16  ;;  %4732 = vmatprep.subr.bf16.mxu1 %v24893_v14  ;;  %4689 = vmatprep.subr.bf16.mxu0 %v24891_v30  ;;  %v29927_v50 = vld [vmem:[#allocation106_spill] sm:$0xff] }
 0x182   : > { %v2620_v36 = vmax.f32 %v2113_v49, 0.0  ;;  %v2622_v11 = vmax.f32 %v2156_v37, 0.0  ;;  %4733 = vmatpush1.bf16.msra.mxu1 %v24885_v19  ;;  %v2777_v43 = vshra.s32 %v24799_v28, 8  ;;  %v3440_v31 = vmul.f32 %v29927_v50, %v2552_v40  ;;  %4690 = vmatpush1.bf16.msra.mxu0 %v24883_v35  ;;  %v29929_v49 = vld [vmem:[#allocation108_spill] sm:$0xff] }
 0x183   : > { %v2621_v2 = vmax.f32 %v2115_v46, 0.0  ;;  %v2623_v38 = vmax.f32 %v2158_v33, 0.0  ;;  %v2778_v60 = vshra.s32 %v24848_v26, 8  ;;  %v3442_v25 = vmul.f32 %v29928_v63, %v2554_v9  ;;  %5275 = vrot.lane.b32.xlu1 %v24803_v12, %s22279_s28  ;;  %v2194_v46 = vpop.f32.mrb[52].mxu0  ;;  %v2237_v33 = vpop.f32.mrb[52].mxu1 }
 0x184   : > { %v3441_v37 = vmul.f32 %v29929_v49, %v2553_v32  ;;  %v3508_v30 = vmul.f32 %v29927_v50, %v2620_v36  ;;  %v3510_v23 = vmul.f32 %v29928_v63, %v2622_v11  ;;  %v3443_v40 = vmul.f32 %v29932_v57, %v2555_v17  ;;  %5285 = vrot.lane.b32.xlu0 %v24893_v14, %s22279_s28 }
 0x185   : > { %v3509_v9 = vmul.f32 %v29929_v49, %v2621_v2  ;;  %v3511_v32 = vmul.f32 %v29932_v57, %v2623_v38  ;;  %20605 = vmatmul.mubr.msk.bf16.vlgmr.msra.gmra.mrb[112].mxu1 %vm29191_vm12, %v24810_v48  ;;  %v2776_v1 = vshra.s32 %v24851_v54, 8  ;;  %v2195_v17 = vadd.f32 %v2194_v46, %v23951_v7  ;;  %20604 = vmatmul.mubr.msk.bf16.vlgmr.msra.gmra.mrb[112].mxu0 %vm29191_vm12, %v24810_v48  ;;  %v2196_v2 = vpop.f32.mrb[53].mxu0  ;;  %v2239_v38 = vpop.f32.mrb[53].mxu1 }
 0x186   : > { %v24938_v36 = vpack.c.bf16 %v3508_v30, %v3440_v31  ;;  %v24940_v11 = vpack.c.bf16 %v3510_v23, %v3442_v25  ;;  %v2238_v50 = vadd.f32 %v2237_v33, %v23951_v7  ;;  %v2197_v57 = vadd.f32 %v2196_v2, %v23951_v7  ;;  %v2198_v31 = vpop.f32.mrb[54].mxu0  ;;  %v2241_v25 = vpop.f32.mrb[54].mxu1  ;;  %4850 = vmatprep.mubr.bf16.mxu1 %v29827_v52 }
 0x187   : > { %v24946_v63 = vpack.c.bf16 %v3509_v9, %v3441_v37  ;;  %v24948_v49 = vpack.c.bf16 %v3511_v32, %v3443_v40  ;;  %v2240_v30 = vadd.f32 %v2239_v38, %v23951_v7  ;;  %v2556_v23 = vmax.f32 %v2195_v17, 0.0  ;;  %v2200_v9 = vpop.f32.mrb[55].mxu0  ;;  %v2243_v32 = vpop.f32.mrb[55].mxu1  ;;  %5279 = vrot.lane.b32.xlu1 %v24883_v35, %s22279_s28  ;;  %4807 = vmatprep.mubr.bf16.mxu0 %v29827_v52 }
 0x188   : > { %29933 = vst [vmem:[#allocation106_spill] sm:$0xff] %v24938_v36  ;;  %29934 = vst [vmem:[#allocation107_spill] sm:$0xff] %v24940_v11  ;;  %v2558_v46 = vmax.f32 %v2238_v50, 0.0  ;;  %v2199_v37 = vadd.f32 %v2198_v31, %v24083_v16  ;;  %v2242_v40 = vadd.f32 %v2241_v25, %v24083_v16  ;;  %v2557_v33 = vmax.f32 %v2197_v57, 0.0  ;;  %v29937_v31 = vld [vmem:[#allocation111_spill] sm:$0xff] }
 0x189   : > { %29935 = vst [vmem:[#allocation108_spill] sm:$0xff] %v24946_v63  ;;  %29936 = vst [vmem:[#allocation109_spill] sm:$0xff] %v24948_v49  ;;  %v2559_v2 = vmax.f32 %v2240_v30, 0.0  ;;  %v2201_v38 = vadd.f32 %v2200_v9, %v24083_v16  ;;  %v2244_v14 = vadd.f32 %v2243_v32, %v24083_v16  ;;  %4818 = vmatprep.subr.bf16.mxu1 %v24948_v49  ;;  %5289 = vrot.lane.b32.xlu0 %v24946_v63, %s22279_s28 }
 0x18a   : > { %v2624_v17 = vmax.f32 %v2199_v37, 0.0  ;;  %v2626_v50 = vmax.f32 %v2242_v40, 0.0  ;;  %4775 = vmatprep.subr.bf16.mxu0 %v24946_v63  ;;  %4819 = vmatpush1.bf16.msra.mxu1 %v24940_v11  ;;  %v24975_v57 = vsel %vm3251_vm6, 1.0, %v29470_v42  ;;  %v24977_v30 = vadd.s32 4294967295, %v2777_v43  ;;  %v29938_v40 = vld [vmem:[#allocation113_spill] sm:$0xff] }
 0x18b   : > { %v3444_v25 = vmul.f32 %v29937_v31, %v2556_v23  ;;  %v2625_v9 = vmax.f32 %v2201_v38, 0.0  ;;  %v2627_v32 = vmax.f32 %v2244_v14, 0.0  ;;  %4776 = vmatpush1.bf16.msra.mxu0 %v24938_v36  ;;  %v24981_v37 = vadd.s32 4294967295, %v2778_v60  ;;  %5283 = vrot.lane.b32.xlu1 %v24885_v19, %s22279_s28  ;;  %v2280_v38 = vpop.f32.mrb[56].mxu0  ;;  %v2323_v60 = vpop.f32.mrb[56].mxu1 }
 0x18c   : > { %v3446_v63 = vmul.f32 %v29938_v40, %v2558_v46  ;;  %v3445_v35 = vmul.f32 %v24160_v44, %v2557_v33  ;;  %v3512_v28 = vmul.f32 %v29937_v31, %v2624_v17  ;;  %v3514_v56 = vmul.f32 %v29938_v40, %v2626_v50  ;;  %v2325_v50 = vpop.f32.mrb[57].mxu1 }
 0x18d   : > { %v3447_v43 = vmul.f32 %v24272_v59, %v2559_v2  ;;  %v3513_v23 = vmul.f32 %v24160_v44, %v2625_v9  ;;  %v3515_v14 = vmul.f32 %v24272_v59, %v2627_v32  ;;  %20607 = vmatmul.mubr.msk.bf16.vlgmr.msra.gmra.mrb[116].mxu1 %vm29191_vm12, %v24810_v48  ;;  %5293 = vrot.lane.b32.xlu0 %v24948_v49, %s22279_s28  ;;  %v24996_v46 = vadd.s32 4294967295, %v2776_v1  ;;  %v2282_v59 = vpop.f32.mrb[57].mxu0 }
 0x18e   : > { %v24998_v33 = vpack.c.bf16 %v3512_v28, %v3444_v25  ;;  %v25000_v17 = vpack.c.bf16 %v3514_v56, %v3446_v63  ;;  %v2281_v2 = vadd.f32 %v2280_v38, %v23951_v7  ;;  %v2324_v44 = vadd.f32 %v2323_v60, %v23951_v7  ;;  %20606 = vmatmul.mubr.msk.bf16.vlgmr.msra.gmra.mrb[116].mxu0 %vm29191_vm12, %v24810_v48  ;;  %v2284_v32 = vpop.f32.mrb[58].mxu0  ;;  %v2327_v56 = vpop.f32.mrb[58].mxu1 }
 0x18f   : > { %v25006_v31 = vpack.c.bf16 %v3513_v23, %v3445_v35  ;;  %v25008_v9 = vpack.c.bf16 %v3515_v14, %v3447_v43  ;;  %v2283_v1 = vadd.f32 %v2282_v59, %v23951_v7  ;;  %v2326_v25 = vadd.f32 %v2325_v50, %v23951_v7  ;;  %4936 = vmatprep.mubr.bf16.mxu1 %v29827_v52  ;;  %v2286_v43 = vpop.f32.mrb[59].mxu0  ;;  %v2329_v23 = vpop.f32.mrb[59].mxu1 }
 0x190   : > { %29939 = vst [vmem:[#allocation111_spill] sm:$0xff] %v24998_v33  ;;  %29940 = vst [vmem:[#allocation113_spill] sm:$0xff] %v25000_v17  ;;  %vm2912_vm15 = vcmp.ge.s32.totalorder %v24910_v47, 0  ;;  %vm2980_vm10 = vcmp.lt.s32.totalorder %v24910_v47, 11  ;;  %v2560_v63 = vmax.f32 %v2281_v2, 0.0  ;;  %v2562_v40 = vmax.f32 %v2324_v44, 0.0  ;;  %5287 = vrot.lane.b32.xlu1 %v24938_v36, %s22279_s28  ;;  %4893 = vmatprep.mubr.bf16.mxu0 %v29827_v52 }
 0x191   : > { %29941 = vst [vmem:[#allocation158_spill] sm:$0xff] %v25006_v31  ;;  %29942 = vst [vmem:[#allocation159_spill] sm:$0xff] %v25008_v9  ;;  %v2285_v28 = vadd.f32 %v2284_v32, %v24083_v16  ;;  %v2328_v35 = vadd.f32 %v2327_v56, %v24083_v16  ;;  %v2561_v14 = vmax.f32 %v2283_v1, 0.0  ;;  %v2563_v38 = vmax.f32 %v2326_v25, 0.0  ;;  %4904 = vmatprep.subr.bf16.mxu1 %v25008_v9 }
 0x192   : > { %v2287_v60 = vadd.f32 %v2286_v43, %v24083_v16  ;;  %v2330_v2 = vadd.f32 %v2329_v23, %v24083_v16  ;;  %5297 = vrot.lane.b32.xlu0 %v25006_v31, %s22279_s28  ;;  %4861 = vmatprep.subr.bf16.mxu0 %v25006_v31  ;;  %v3119_v50 = vand.u32 255, %v24848_v26  ;;  %v3117_v1 = vand.u32 255, %v24851_v54  ;;  %v25041_v26 = vpop.permute.xlu0 %5189  ;;  %v2409_v31 = vpop.f32.mrb[60].mxu1 }
 0x193   : > { %v2628_v44 = vmax.f32 %v2285_v28, 0.0  ;;  %v2630_v59 = vmax.f32 %v2328_v35, 0.0  ;;  %4905 = vmatpush1.bf16.msra.mxu1 %v25000_v17  ;;  %v3448_v25 = vmul.f32 %v24386_v34, %v2560_v63  ;;  %4862 = vmatpush1.bf16.msra.mxu0 %v24998_v33  ;;  %v3450_v28 = vmul.f32 %v24424_v8, %v2562_v40 }
 0x194   : > { %v2629_v32 = vmax.f32 %v2287_v60, 0.0  ;;  %v2631_v56 = vmax.f32 %v2330_v2, 0.0  ;;  %v3449_v35 = vmul.f32 %v24531_v15, %v2561_v14  ;;  %5291 = vrot.lane.b32.xlu1 %v24940_v11, %s22279_s28  ;;  %v3451_v54 = vmul.f32 %v24617_v55, %v2563_v38  ;;  %v2366_v2 = vpop.f32.mrb[60].mxu0  ;;  %v2411_v14 = vpop.f32.mrb[61].mxu1 }
 0x195   : > { %v3516_v43 = vmul.f32 %v24386_v34, %v2628_v44  ;;  %v3518_v23 = vmul.f32 %v24424_v8, %v2630_v59  ;;  %v2367_v40 = vadd.f32 %v2366_v2, %v23951_v7  ;;  %vm25091_vm13 = vcmp.lt.s32.totalorder %v3119_v50, 201 }
 0x196   : > { %v3517_v63 = vmul.f32 %v24531_v15, %v2629_v32  ;;  %v3519_v60 = vmul.f32 %v24617_v55, %v2631_v56  ;;  %20609 = vmatmul.mubr.msk.bf16.vlgmr.msra.gmra.mrb[120].mxu1 %vm29191_vm12, %v24810_v48  ;;  %5301 = vrot.lane.b32.xlu0 %v25008_v9, %s22279_s28  ;;  %v2410_v15 = vadd.f32 %v2409_v31, %v23951_v7  ;;  %v2368_v55 = vpop.f32.mrb[61].mxu0  ;;  %v2413_v56 = vpop.f32.mrb[62].mxu1  ;;  %vm29951_vm9 = vcmp.lt.s32.totalorder %v24981_v37, 11 }
 0x197   : > { %v25051_v34 = vpack.c.bf16 %v3516_v43, %v3448_v25  ;;  %v25053_v8 = vpack.c.bf16 %v3518_v23, %v3450_v28  ;;  %20608 = vmatmul.mubr.msk.bf16.vlgmr.msra.gmra.mrb[120].mxu0 %vm29191_vm12, %v24810_v48  ;;  %v2369_v59 = vadd.f32 %v2368_v55, %v23951_v7  ;;  %v2412_v25 = vadd.f32 %v2411_v14, %v23951_v7  ;;  %v2370_v32 = vpop.f32.mrb[62].mxu0  ;;  %v2415_v9 = vpop.f32.mrb[63].mxu1  ;;  %vm25086_vm12 = vmand %vm2912_vm15, %vm2980_vm10 }
 0x198   : > { %v25059_v38 = vpack.c.bf16 %v3517_v63, %v3449_v35  ;;  %v25061_v44 = vpack.c.bf16 %v3519_v60, %v3451_v54  ;;  %5022 = vmatprep.mubr.bf16.mxu1 %v29827_v52  ;;  %v2564_v28 = vmax.f32 %v2367_v40, 0.0  ;;  %v2566_v43 = vmax.f32 %v2410_v15, 0.0  ;;  %v2372_v2 = vpop.f32.mrb[63].mxu0  ;;  %5295 = vrot.lane.b32.xlu1 %v24998_v33, %s22279_s28  ;;  %v25077_v55 = vpop.permute.xlu0 %6969 }
 0x199   : > { %29943 = vst [vmem:[#allocation160_spill] sm:$0xff] %v25051_v34  ;;  %v2371_v31 = vadd.f32 %v2370_v32, %v24083_v16  ;;  %v2414_v23 = vadd.f32 %v2413_v56, %v24083_v16  ;;  %4979 = vmatprep.mubr.bf16.mxu0 %v29827_v52  ;;  %v2565_v35 = vmax.f32 %v2369_v59, 0.0  ;;  %v2567_v54 = vmax.f32 %v2412_v25, 0.0  ;;  %29946 = vst [vmem:[#allocation163_spill] sm:$0xff] %v25077_v55  ;;  %v25080_v14 = vpop.permute.xlu1 %5191 }
 0x19a   : > { %29944 = vst [vmem:[#allocation161_spill] sm:$0xff] %v25059_v38  ;;  %29945 = vst [vmem:[#allocation162_spill] sm:$0xff] %v25061_v44  ;;  %v2373_v63 = vadd.f32 %v2372_v2, %v24083_v16  ;;  %v2416_v60 = vadd.f32 %v2415_v9, %v24083_v16  ;;  %4990 = vmatprep.subr.bf16.mxu1 %v25061_v44  ;;  %5305 = vrot.lane.b32.xlu0 %v25059_v38, %s22279_s28  ;;  %vm29952_vm7 = vcmp.ge.s32.totalorder %v24981_v37, 0 }
 0x19b   : > { %v2632_v40 = vmax.f32 %v2371_v31, 0.0  ;;  %v2634_v15 = vmax.f32 %v2414_v23, 0.0  ;;  %4947 = vmatprep.subr.bf16.mxu0 %v25059_v38  ;;  %4991 = vmatpush1.bf16.msra.mxu1 %v25053_v8  ;;  %v3452_v25 = vmul.f32 %v24773_v6, %v2564_v28  ;;  %vm25101_vm15 = vmand %vm29952_vm7, %vm29951_vm9  ;;  %vm25105_vm10 = vcmp.lt.s32.totalorder %v3117_v1, 201 }
 0x19c   : > { %v2633_v32 = vmax.f32 %v2373_v63, 0.0  ;;  %v2635_v56 = vmax.f32 %v2416_v60, 0.0  ;;  %4948 = vmatpush1.bf16.msra.mxu0 %v25051_v34  ;;  %v3454_v50 = vmul.f32 %v24783_v13, %v2566_v43  ;;  %v3453_v28 = vmul.f32 %v24881_v58, %v2565_v35  ;;  %5299 = vrot.lane.b32.xlu1 %v25000_v17, %s22279_s28  ;;  %v2495_v63 = vpop.f32.mrb[64].mxu1  ;;  %v25150_v60 = vpop.permute.xlu0 %5197 }
 0x19d   : > { %v3520_v23 = vmul.f32 %v24773_v6, %v2632_v40  ;;  %v3522_v2 = vmul.f32 %v24783_v13, %v2634_v15  ;;  %vm29957_vm7 = vcmp.lt.s32.totalorder %v24996_v46, 11  ;;  %vm29958_vm9 = vcmp.ge.s32.totalorder %v24996_v46, 0  ;;  %v2452_v6 = vpop.f32.mrb[64].mxu0 }
 0x19e   : > { %vm25119_vm6 = vmand %vm29958_vm9, %vm29957_vm7  ;;  %v3455_v1 = vmul.f32 %v24975_v57, %v2567_v54  ;;  %v3521_v43 = vmul.f32 %v24881_v58, %v2633_v32  ;;  %v3523_v35 = vmul.f32 %v24975_v57, %v2635_v56  ;;  %vm29961_vm8 = vcmp.lt.s32.totalorder %v24977_v30, 11  ;;  %5309 = vrot.lane.b32.xlu0 %v25061_v44, %s22279_s28  ;;  %v2454_v56 = vpop.f32.mrb[65].mxu0 }
 0x19f   : > { %vm29962_vm0 = vcmp.ge.s32.totalorder %v24977_v30, 0  ;;  %vm29965_vm7 = vcmask 130048   ;;  %v25138_v46 = vpack.c.bf16 %v3520_v23, %v3452_v25  ;;  %v25140_v58 = vpack.c.bf16 %v3522_v2, %v3454_v50  ;;  %v2497_v30 = vpop.f32.mrb[65].mxu1  ;;  %v5196_v50 = vpop.permute.xlu1 %5195 }
 0x1a0   : > { %vm25130_vm11 = vmand %vm29962_vm0, %vm29961_vm8  ;;  %20611 = vmatmul.mubr.msk.bf16.vlgmr.msra.gmra.mrb[124].mxu1 %vm29965_vm7, %v24810_v48  ;;  %v2453_v57 = vadd.f32 %v2452_v6, %v23951_v7  ;;  %v2496_v54 = vadd.f32 %v2495_v63, %v23951_v7  ;;  %v25152_v40 = vpack.c.bf16 %v3521_v43, %v3453_v28  ;;  %v25154_v15 = vpack.c.bf16 %v3523_v35, %v3455_v1  ;;  %v2456_v1 = vpop.f32.mrb[66].mxu0  ;;  %v2499_v43 = vpop.f32.mrb[66].mxu1 }
 0x1a1   : > { %29966 = vst [vmem:[#allocation164_spill] sm:$0xff] %v25138_v46  ;;  %29967 = vst [vmem:[#allocation165_spill] sm:$0xff] %v25140_v58  ;;  %v20575_v25 = vsel %vm25086_vm12, 1.0, %v29470_v42  ;;  %v2498_v32 = vadd.f32 %v2497_v30, %v23951_v7  ;;  %5108 = vmatprep.mubr.bf16.mxu1 %v29827_v52  ;;  %v20577_v9 = vsel %vm25130_vm11, 1.0, %v29470_v42  ;;  %v2455_v2 = vadd.f32 %v2454_v56, %v23951_v7  ;;  %v5202_v37 = vpop.permute.xlu0 %5201 }
 0x1a2   : > { %vm29968_vm9 = vmmov %vm29965_vm7  ;;  %29969 = vst [vmem:[#allocation166_spill] sm:$0xff] %v25152_v40  ;;  %v2568_v28 = vmax.f32 %v2453_v57, 0.0  ;;  %v2570_v23 = vmax.f32 %v2496_v54, 0.0  ;;  %5303 = vrot.lane.b32.xlu1 %v25051_v34, %s22279_s28  ;;  %v2457_v63 = vadd.f32 %v2456_v1, %v24083_v16  ;;  %v2500_v13 = vadd.f32 %v2499_v43, %v24083_v16  ;;  %v2458_v57 = vpop.f32.mrb[67].mxu0  ;;  %v2501_v54 = vpop.f32.mrb[67].mxu1  ;;  %5076 = vmatprep.subr.bf16.mxu1 %v25154_v15 }
 0x1a3   : > { %20610 = vmatmul.mubr.msk.bf16.vlgmr.msra.gmra.mrb[124].mxu0 %vm29968_vm9, %v24810_v48  ;;  %vm3255_vm0 = vmand %vm25101_vm15, %vm25091_vm13  ;;  %v2571_v35 = vmax.f32 %v2498_v32, 0.0  ;;  %5313 = vrot.lane.b32.xlu0 %v25152_v40, %s22279_s28  ;;  %v2569_v7 = vmax.f32 %v2455_v2, 0.0  ;;  %v2459_v47 = vadd.f32 %v2458_v57, %v24083_v16  ;;  %vm29970_vm12 = vcmask 7168   ;;  %v5194_v1 = vpop.permute.xlu1 %5193 }
 0x1a4   : > { %vm3253_vm8 = vmand %vm25119_vm6, %vm25105_vm10  ;;  %5065 = vmatprep.mubr.bf16.mxu0 %v29827_v52  ;;  %v20578_v6 = vsel %vm3255_vm0, 1.0, %v29470_v42  ;;  %5033 = vmatprep.subr.bf16.mxu0 %v25152_v40  ;;  %v5323_v30 = vsel %vm29970_vm12, %v5196_v50, %v25150_v60  ;;  %v2636_v32 = vmax.f32 %v2457_v63, 0.0  ;;  %v2638_v56 = vmax.f32 %v2500_v13, 0.0 }
 0x1a5   : > { %v20576_v59 = vsel %vm3253_vm8, 1.0, %v29470_v42  ;;  %5077 = vmatpush1.bf16.msra.mxu1 %v25140_v58  ;;  %v2502_v2 = vadd.f32 %v2501_v54, %v24083_v16  ;;  %5034 = vmatpush1.bf16.msra.mxu0 %v25138_v46  ;;  %vm29971_vm11 = vmmov %vm29970_vm12  ;;  %v3456_v43 = vmul.f32 %v20575_v25, %v2568_v28  ;;  %v3458_v57 = vmul.f32 %v20577_v9, %v2570_v23 }
 0x1a6   : > { %5494 = vmatprep.subr.bf16.mxu1 %v5323_v30  ;;  %v5320_v31 = vsel %vm29971_vm11, %v25041_v26, %v25080_v14  ;;  %v2637_v42 = vmax.f32 %v2459_v47, 0.0  ;;  %5307 = vrot.lane.b32.xlu1 %v25053_v8, %s22279_s28  ;;  %vm29972_vm13 = vmmov %vm29971_vm11  ;;  %v3459_v13 = vmul.f32 %v20578_v6, %v2571_v35  ;;  %v3524_v16 = vmul.f32 %v20575_v25, %v2636_v32 }
 0x1a7   : > { %v5321_v63 = vsel %vm29972_vm13, %v25080_v14, %v5194_v1  ;;  %v3526_v54 = vmul.f32 %v20577_v9, %v2638_v56  ;;  %v2639_v40 = vmax.f32 %v2502_v2, 0.0  ;;  %vm29973_vm6 = vmmov %vm29965_vm7  ;;  %v3457_v30 = vmul.f32 %v20576_v59, %v2569_v7  ;;  %5317 = vrot.lane.b32.xlu0 %v25154_v15, %s22279_s28  ;;  %v25214_v23 = vpop.permute.xlu1 %6967  ;;  %v5206_v9 = vpop.permute.xlu0 %5205 }
 0x1a8   : > { %5451 = vmatprep.subr.bf16.mxu0 %v5321_v63  ;;  %20613 = vmatmul.mubr.msk.bf16.vlgmr.msra.gmra.mrb[128].mxu1 %vm29973_vm6, %v24810_v48  ;;  %v3525_v55 = vmul.f32 %v20576_v59, %v2637_v42  ;;  %vm29974_vm15 = vmmov %vm29973_vm6  ;;  %v25210_v28 = vpack.c.bf16 %v3524_v16, %v3456_v43  ;;  %v29993_v16 = vld [vmem:[#allocation124_spill] sm:$0xff] }
 0x1a9   : > { %vm29975_vm10 = vmmov %vm29971_vm11  ;;  %v25212_v14 = vpack.c.bf16 %v3526_v54, %v3458_v57  ;;  %v3527_v25 = vmul.f32 %v20578_v6, %v2639_v40  ;;  %5526 = vmatprep.mubr.bf16.mxu1 %v29827_v52  ;;  %v29992_v57 = vld [vmem:[#allocation127_spill] sm:$0xff] }
 0x1aa   : > { %v5322_v26 = vsel %vm29975_vm10, %v5194_v1, %v5196_v50  ;;  %29976 = vst [vmem:[#allocation167_spill] sm:$0xff] %v25210_v28  ;;  %v25216_v35 = vpack.c.bf16 %v3525_v55, %v3457_v30  ;;  %5311 = vrot.lane.b32.xlu1 %v25138_v46, %s22279_s28  ;;  %vm29980_vm7 = vmmov %vm29975_vm10 }
 0x1ab   : > { %20612 = vmatmul.mubr.msk.bf16.vlgmr.msra.gmra.mrb[128].mxu0 %vm29974_vm15, %v24810_v48  ;;  %29977 = vst [vmem:[#allocation168_spill] sm:$0xff] %v25212_v14  ;;  %5495 = vmatpush1.bf16.msra.mxu1 %v5322_v26  ;;  %v25221_v42 = vpack.c.bf16 %v3527_v25, %v3459_v13  ;;  %v25227_v48 = vld [vmem:[%s29821_s3] sm:$0xff]   ;;  %v5200_v40 = vpop.permute.xlu1 %5199  ;;  %v5210_v55 = vpop.permute.xlu0 %5209  ;;  %vm29981_vm9 = vmmov %vm29980_vm7  ;;  %v29997_v26 = vld [vmem:[#allocation130_spill] sm:$0xff] }
 0x1ac   : > { %5452 = vmatpush1.bf16.msra.mxu0 %v5320_v31  ;;  %29978 = vst [vmem:[#allocation169_spill] sm:$0xff] %v25216_v35  ;;  %5483 = vmatprep.mubr.bf16.mxu0 %v29827_v52  ;;  %v5325_v50 = vsel %vm29980_vm7, %v5200_v40, %v5202_v37  ;;  %v5324_v6 = vsel %vm29981_vm9, %v25150_v60, %v5200_v40  ;;  %vm29982_vm0 = vmmov %vm29973_vm6  ;;  %v29999_v40 = vld [vmem:[#allocation125_spill] sm:$0xff]  ;;  %v30050_v35 = vld [vmem:[#allocation148_spill] sm:$0xff] }
 0x1ad   : > { %29979 = vst [vmem:[#allocation170_spill] sm:$0xff] %v25221_v42  ;;  %6971 = vrot.lane.b32.xlu0 %v24185_v4, %s22281_s29  ;;  %5537 = vmatprep.subr.bf16.mxu0 %v5325_v50  ;;  %vm29983_vm8 = vmmov %vm29982_vm0 }
 0x1ae   : > { %5315 = vrot.lane.b32.xlu1 %v25140_v58, %s22279_s28  ;;  %vm29984_vm12 = vmmov %vm29980_vm7 }
 0x1af   : > { %v5204_v7 = vpop.permute.xlu1 %5203  ;;  %v5214_v59 = vpop.permute.xlu0 %5213  ;;  %vm29985_vm11 = vmmov %vm29980_vm7 }
 0x1b0   : > { %20616 = vmatmul.mubr.msk.bf16.vlgmr.msra.gmra.mrb[68].mxu1 %vm29982_vm0, %v25227_v48  ;;  %v5327_v60 = vsel %vm29984_vm12, %v5204_v7, %v5206_v9  ;;  %v5326_v47 = vsel %vm29985_vm11, %v5202_v37, %v5204_v7  ;;  %vm29986_vm13 = vmmov %vm29980_vm7 }
 0x1b1   : > { %6975 = vrot.lane.b32.xlu0 %v24246_v18, %s22281_s29  ;;  %5612 = vmatprep.mubr.bf16.mxu1 %v29827_v52  ;;  %vm29987_vm6 = vmmov %vm29980_vm7 }
 0x1b2   : > { %6965 = vrot.lane.b32.xlu1 %v24181_v24, %s22281_s29  ;;  %5580 = vmatprep.subr.bf16.mxu1 %v5327_v60  ;;  %vm29988_vm15 = vmmov %vm29982_vm0  ;;  %v30003_v60 = vld [vmem:[#allocation128_spill] sm:$0xff] }
 0x1b3   : > { %20615 = vmatmul.mubr.msk.bf16.vlgmr.msra.gmra.mrb[68].mxu0 %vm29983_vm8, %v25227_v48  ;;  %5581 = vmatpush1.bf16.msra.mxu1 %v5326_v47  ;;  %v5208_v32 = vpop.permute.xlu1 %5207  ;;  %v5218_v56 = vpop.permute.xlu0 %5217  ;;  %vm29989_vm10 = vmmov %vm29982_vm0 }
 0x1b4   : > { %5538 = vmatpush1.bf16.msra.mxu0 %v5324_v6  ;;  %5569 = vmatprep.mubr.bf16.mxu0 %v29827_v52  ;;  %v5329_v2 = vsel %vm29986_vm13, %v5208_v32, %v5210_v55  ;;  %v5328_v24 = vsel %vm29987_vm6, %v5206_v9, %v5208_v32  ;;  %vm29990_vm7 = vmmov %vm29987_vm6  ;;  %v30002_v6 = vld [vmem:[#allocation131_spill] sm:$0xff] }
 0x1b5   : > { %6979 = vrot.lane.b32.xlu0 %v24244_v3, %s22281_s29  ;;  %5623 = vmatprep.subr.bf16.mxu0 %v5329_v2  ;;  %vm29991_vm9 = vmmov %vm29987_vm6 }
 0x1b6   : > { %6973 = vrot.lane.b32.xlu1 %v24237_v61, %s22281_s29  ;;  %vm29994_vm0 = vmmov %vm29987_vm6 }
 0x1b7   : > { %v5212_v1 = vpop.permute.xlu1 %5211  ;;  %v5222_v37 = vpop.permute.xlu0 %5221  ;;  %vm29995_vm8 = vmmov %vm29994_vm0 }
 0x1b8   : > { %20618 = vmatmul.mubr.msk.bf16.vlgmr.msra.gmra.mrb[72].mxu1 %vm29988_vm15, %v25227_v48  ;;  %v5331_v31 = vsel %vm29990_vm7, %v5212_v1, %v5214_v59  ;;  %v5330_v43 = vsel %vm29991_vm9, %v5210_v55, %v5212_v1  ;;  %vm29996_vm12 = vmmov %vm29989_vm10  ;;  %v30009_v1 = vld [vmem:[#allocation129_spill] sm:$0xff] }
 0x1b9   : > { %6983 = vrot.lane.b32.xlu0 %v24309_v27, %s22281_s29  ;;  %5698 = vmatprep.mubr.bf16.mxu1 %v29827_v52  ;;  %vm29998_vm11 = vmmov %vm29989_vm10 }
 0x1ba   : > { %6977 = vrot.lane.b32.xlu1 %v24239_v21, %s22281_s29  ;;  %5666 = vmatprep.subr.bf16.mxu1 %v5331_v31  ;;  %vm30000_vm13 = vmmov %vm29994_vm0 }
 0x1bb   : > { %20617 = vmatmul.mubr.msk.bf16.vlgmr.msra.gmra.mrb[72].mxu0 %vm29989_vm10, %v25227_v48  ;;  %5667 = vmatpush1.bf16.msra.mxu1 %v5330_v43  ;;  %v5216_v63 = vpop.permute.xlu1 %5215  ;;  %v5226_v13 = vpop.permute.xlu0 %5225  ;;  %vm30001_vm6 = vmmov %vm29994_vm0  ;;  %v30011_v43 = vld [vmem:[#allocation137_spill] sm:$0xff] }
 0x1bc   : > { %5624 = vmatpush1.bf16.msra.mxu0 %v5328_v24  ;;  %5655 = vmatprep.mubr.bf16.mxu0 %v29827_v52  ;;  %v5333_v54 = vsel %vm29994_vm0, %v5216_v63, %v5218_v56  ;;  %v5332_v30 = vsel %vm29995_vm8, %v5214_v59, %v5216_v63  ;;  %vm30004_vm15 = vmmov %vm29994_vm0 }
 0x1bd   : > { %6987 = vrot.lane.b32.xlu0 %v29992_v57, %s22281_s29  ;;  %5709 = vmatprep.subr.bf16.mxu0 %v5333_v54  ;;  %vm30005_vm10 = vmmov %vm29994_vm0 }
 0x1be   : > { %6981 = vrot.lane.b32.xlu1 %v29993_v16, %s22281_s29  ;;  %vm30006_vm7 = vmmov %vm29998_vm11 }
 0x1bf   : > { %v5220_v25 = vpop.permute.xlu1 %5219  ;;  %v5230_v9 = vpop.permute.xlu0 %5229  ;;  %vm30008_vm9 = vmmov %vm30006_vm7 }
 0x1c0   : > { %20620 = vmatmul.mubr.msk.bf16.vlgmr.msra.gmra.mrb[76].mxu1 %vm29996_vm12, %v25227_v48  ;;  %v5335_v55 = vsel %vm30000_vm13, %v5220_v25, %v5222_v37  ;;  %v5334_v50 = vsel %vm30001_vm6, %v5218_v56, %v5220_v25  ;;  %v30007_v56 = vld [vmem:[#allocation136_spill] sm:$0xff]  ;;  %vm30010_vm8 = vmmov %vm29994_vm0 }
 0x1c1   : > { %6991 = vrot.lane.b32.xlu0 %v29997_v26, %s22281_s29  ;;  %5784 = vmatprep.mubr.bf16.mxu1 %v29827_v52  ;;  %vm30013_vm12 = vmmov %vm29994_vm0 }
 0x1c2   : > { %6985 = vrot.lane.b32.xlu1 %v29999_v40, %s22281_s29  ;;  %5752 = vmatprep.subr.bf16.mxu1 %v5335_v55  ;;  %vm30015_vm13 = vmmov %vm30006_vm7 }
 0x1c3   : > { %20619 = vmatmul.mubr.msk.bf16.vlgmr.msra.gmra.mrb[76].mxu0 %vm29998_vm11, %v25227_v48  ;;  %5753 = vmatpush1.bf16.msra.mxu1 %v5334_v50  ;;  %v5224_v7 = vpop.permute.xlu1 %5223  ;;  %v5234_v59 = vpop.permute.xlu0 %5233  ;;  %vm30014_vm11 = vmmov %vm29994_vm0 }
 0x1c4   : > { %5710 = vmatpush1.bf16.msra.mxu0 %v5332_v30  ;;  %5741 = vmatprep.mubr.bf16.mxu0 %v29827_v52  ;;  %v5337_v47 = vsel %vm30004_vm15, %v5224_v7, %v5226_v13  ;;  %v5336_v32 = vsel %vm30005_vm10, %v5222_v37, %v5224_v7  ;;  %v30012_v30 = vld [vmem:[#allocation134_spill] sm:$0xff]  ;;  %vm30017_vm6 = vmmov %vm30006_vm7 }
 0x1c5   : > { %6995 = vrot.lane.b32.xlu0 %v30002_v6, %s22281_s29  ;;  %5795 = vmatprep.subr.bf16.mxu0 %v5337_v47  ;;  %vm30018_vm15 = vmmov %vm29994_vm0 }
 0x1c6   : > { %6989 = vrot.lane.b32.xlu1 %v30003_v60, %s22281_s29  ;;  %vm30019_vm10 = vmmov %vm29994_vm0 }
 0x1c7   : > { %v5228_v2 = vpop.permute.xlu1 %5227  ;;  %v5238_v24 = vpop.permute.xlu0 %5237 }
 0x1c8   : > { %20622 = vmatmul.mubr.msk.bf16.vlgmr.msra.gmra.mrb[80].mxu1 %vm30006_vm7, %v25227_v48  ;;  %v5339_v37 = vsel %vm29994_vm0, %v5228_v2, %v5230_v9  ;;  %v5338_v31 = vsel %vm30010_vm8, %v5226_v13, %v5228_v2  ;;  %v30016_v13 = vld [vmem:[#allocation63_spill] sm:$0xff]  ;;  %vm30021_vm7 = vmmov %vm29994_vm0 }
 0x1c9   : > { %6999 = vrot.lane.b32.xlu0 %v30007_v56, %s22281_s29  ;;  %5870 = vmatprep.mubr.bf16.mxu1 %v29827_v52 }
 0x1ca   : > { %6993 = vrot.lane.b32.xlu1 %v30009_v1, %s22281_s29  ;;  %5838 = vmatprep.subr.bf16.mxu1 %v5339_v37  ;;  %v30020_v37 = vld [vmem:[#allocation58_spill] sm:$0xff] }
 0x1cb   : > { %20621 = vmatmul.mubr.msk.bf16.vlgmr.msra.gmra.mrb[80].mxu0 %vm30008_vm9, %v25227_v48  ;;  %5839 = vmatpush1.bf16.msra.mxu1 %v5338_v31  ;;  %v5232_v63 = vpop.permute.xlu1 %5231  ;;  %v5242_v54 = vpop.permute.xlu0 %5241  ;;  %vm30022_vm9 = vmmov %vm29994_vm0 }
 0x1cc   : > { %5796 = vmatpush1.bf16.msra.mxu0 %v5336_v32  ;;  %5827 = vmatprep.mubr.bf16.mxu0 %v29827_v52  ;;  %v5341_v25 = vsel %vm30013_vm12, %v5232_v63, %v5234_v59  ;;  %v5340_v55 = vsel %vm30014_vm11, %v5230_v9, %v5232_v63  ;;  %vm30023_vm0 = vmmov %vm30017_vm6 }
 0x1cd   : > { %7003 = vrot.lane.b32.xlu0 %v30011_v43, %s22281_s29  ;;  %5881 = vmatprep.subr.bf16.mxu0 %v5341_v25  ;;  %vm30025_vm8 = vmmov %vm30023_vm0 }
 0x1ce   : > { %6997 = vrot.lane.b32.xlu1 %v30012_v30, %s22281_s29  ;;  %vm30026_vm12 = vmmov %vm30021_vm7 }
 0x1cf   : > { %v5236_v50 = vpop.permute.xlu1 %5235  ;;  %v5246_v7 = vpop.permute.xlu0 %5245  ;;  %vm30027_vm11 = vmmov %vm30021_vm7 }
 0x1d0   : > { %20624 = vmatmul.mubr.msk.bf16.vlgmr.msra.gmra.mrb[84].mxu1 %vm30015_vm13, %v25227_v48  ;;  %v5343_v9 = vsel %vm30018_vm15, %v5236_v50, %v5238_v24  ;;  %v5342_v47 = vsel %vm30019_vm10, %v5234_v59, %v5236_v50  ;;  %v30024_v59 = vld [vmem:[#allocation69_spill] sm:$0xff]  ;;  %vm30028_vm13 = vmmov %vm30021_vm7 }
 0x1d1   : > { %7007 = vrot.lane.b32.xlu0 %v30016_v13, %s22281_s29  ;;  %5956 = vmatprep.mubr.bf16.mxu1 %v29827_v52  ;;  %vm30030_vm15 = vmmov %vm30023_vm0 }
 0x1d2   : > { %7001 = vrot.lane.b32.xlu1 %v24428_v62, %s22281_s29  ;;  %5924 = vmatprep.subr.bf16.mxu1 %v5343_v9  ;;  %vm30031_vm10 = vmmov %vm30023_vm0 }
 0x1d3   : > { %20623 = vmatmul.mubr.msk.bf16.vlgmr.msra.gmra.mrb[84].mxu0 %vm30017_vm6, %v25227_v48  ;;  %5925 = vmatpush1.bf16.msra.mxu1 %v5342_v47  ;;  %v5240_v32 = vpop.permute.xlu1 %5239  ;;  %v5250_v2 = vpop.permute.xlu0 %5249  ;;  %vm30029_vm6 = vmmov %vm30021_vm7 }
 0x1d4   : > { %5882 = vmatpush1.bf16.msra.mxu0 %v5340_v55  ;;  %5913 = vmatprep.mubr.bf16.mxu0 %v29827_v52  ;;  %v5345_v31 = vsel %vm30021_vm7, %v5240_v32, %v5242_v54  ;;  %v5344_v63 = vsel %vm30022_vm9, %v5238_v24, %v5240_v32  ;;  %vm30032_vm7 = vmmov %vm30029_vm6 }
 0x1d5   : > { %7011 = vrot.lane.b32.xlu0 %v24498_v22, %s22281_s29  ;;  %5967 = vmatprep.subr.bf16.mxu0 %v5345_v31  ;;  %vm30033_vm9 = vmmov %vm30029_vm6 }
 0x1d6   : > { %7005 = vrot.lane.b32.xlu1 %v30020_v37, %s22281_s29 }
 0x1d7   : > { %v5244_v25 = vpop.permute.xlu1 %5243  ;;  %v5254_v55 = vpop.permute.xlu0 %5253 }
 0x1d8   : > { %20626 = vmatmul.mubr.msk.bf16.vlgmr.msra.gmra.mrb[88].mxu1 %vm30023_vm0, %v25227_v48  ;;  %v5347_v24 = vsel %vm30026_vm12, %v5244_v25, %v5246_v7  ;;  %v5346_v50 = vsel %vm30027_vm11, %v5242_v54, %v5244_v25  ;;  %vm30035_vm0 = vmmov %vm30029_vm6 }
 0x1d9   : > { %7015 = vrot.lane.b32.xlu0 %v30024_v59, %s22281_s29  ;;  %6042 = vmatprep.mubr.bf16.mxu1 %v29827_v52  ;;  %vm30037_vm12 = vmmov %vm30031_vm10 }
 0x1da   : > { %7009 = vrot.lane.b32.xlu1 %v24490_v53, %s22281_s29  ;;  %6010 = vmatprep.subr.bf16.mxu1 %v5347_v24  ;;  %v30034_v24 = vld [vmem:[#allocation143_spill] sm:$0xff]  ;;  %vm30038_vm11 = vmmov %vm30031_vm10 }
 0x1db   : > { %20625 = vmatmul.mubr.msk.bf16.vlgmr.msra.gmra.mrb[88].mxu0 %vm30025_vm8, %v25227_v48  ;;  %6011 = vmatpush1.bf16.msra.mxu1 %v5346_v50  ;;  %v5248_v9 = vpop.permute.xlu1 %5247  ;;  %v5258_v47 = vpop.permute.xlu0 %5257  ;;  %vm30036_vm8 = vmmov %vm30035_vm0 }
 0x1dc   : > { %5968 = vmatpush1.bf16.msra.mxu0 %v5344_v63  ;;  %5999 = vmatprep.mubr.bf16.mxu0 %v29827_v52  ;;  %v5349_v32 = vsel %vm30028_vm13, %v5248_v9, %v5250_v2  ;;  %v5348_v31 = vsel %vm30029_vm6, %v5246_v7, %v5248_v9  ;;  %vm30039_vm13 = vmmov %vm30035_vm0 }
 0x1dd   : > { %7019 = vrot.lane.b32.xlu0 %v24561_v39, %s22281_s29  ;;  %6053 = vmatprep.subr.bf16.mxu0 %v5349_v32  ;;  %vm30040_vm6 = vmmov %vm30035_vm0 }
 0x1de   : > { %7013 = vrot.lane.b32.xlu1 %v24551_v45, %s22281_s29 }
 0x1df   : > { %v5252_v54 = vpop.permute.xlu1 %5251  ;;  %v5262_v63 = vpop.permute.xlu0 %5261 }
 0x1e0   : > { %20628 = vmatmul.mubr.msk.bf16.vlgmr.msra.gmra.mrb[92].mxu1 %vm30030_vm15, %v25227_v48  ;;  %v5351_v7 = vsel %vm30032_vm7, %v5252_v54, %v5254_v55  ;;  %v5350_v25 = vsel %vm30033_vm9, %v5250_v2, %v5252_v54  ;;  %vm30042_vm15 = vmmov %vm30035_vm0 }
 0x1e1   : > { %7023 = vrot.lane.b32.xlu0 %v24627_v20, %s22281_s29  ;;  %6128 = vmatprep.mubr.bf16.mxu1 %v29827_v52  ;;  %vm30044_vm7 = vmmov %vm30038_vm11 }
 0x1e2   : > { %7017 = vrot.lane.b32.xlu1 %v24553_v10, %s22281_s29  ;;  %6096 = vmatprep.subr.bf16.mxu1 %v5351_v7  ;;  %vm30046_vm9 = vmmov %vm30044_vm7 }
 0x1e3   : > { %20627 = vmatmul.mubr.msk.bf16.vlgmr.msra.gmra.mrb[92].mxu0 %vm30031_vm10, %v25227_v48  ;;  %6097 = vmatpush1.bf16.msra.mxu1 %v5350_v25  ;;  %v5256_v50 = vpop.permute.xlu1 %5255  ;;  %v5266_v9 = vpop.permute.xlu0 %5265  ;;  %vm30043_vm10 = vmmov %vm30035_vm0 }
 0x1e4   : > { %6054 = vmatpush1.bf16.msra.mxu0 %v5348_v31  ;;  %6085 = vmatprep.mubr.bf16.mxu0 %v29827_v52  ;;  %v5353_v32 = vsel %vm30035_vm0, %v5256_v50, %v5258_v47  ;;  %v5352_v31 = vsel %vm30036_vm8, %v5254_v55, %v5256_v50  ;;  %vm30048_vm8 = vmmov %vm30035_vm0 }
 0x1e5   : > { %7027 = vrot.lane.b32.xlu0 %v30034_v24, %s22281_s29  ;;  %6139 = vmatprep.subr.bf16.mxu0 %v5353_v32  ;;  %v30041_v32 = vld [vmem:[#allocation144_spill] sm:$0xff] }
 0x1e6   : > { %7021 = vrot.lane.b32.xlu1 %v24619_v29, %s22281_s29 }
 0x1e7   : > { %v5260_v2 = vpop.permute.xlu1 %5259  ;;  %v5270_v54 = vpop.permute.xlu0 %5269 }
 0x1e8   : > { %20630 = vmatmul.mubr.msk.bf16.vlgmr.msra.gmra.mrb[96].mxu1 %vm30037_vm12, %v25227_v48  ;;  %v5355_v55 = vsel %vm30039_vm13, %v5260_v2, %v5262_v63  ;;  %v5354_v7 = vsel %vm30040_vm6, %v5258_v47, %v5260_v2  ;;  %v30045_v47 = vld [vmem:[#allocation150_spill] sm:$0xff]  ;;  %vm30051_vm12 = vmmov %vm30035_vm0 }
 0x1e9   : > { %7031 = vrot.lane.b32.xlu0 %v24682_v0, %s22281_s29  ;;  %6214 = vmatprep.mubr.bf16.mxu1 %v29827_v52  ;;  %vm30053_vm13 = vmmov %vm30044_vm7 }
 0x1ea   : > { %7025 = vrot.lane.b32.xlu1 %v24621_v5, %s22281_s29  ;;  %6182 = vmatprep.subr.bf16.mxu1 %v5355_v55  ;;  %vm30055_vm6 = vmmov %vm30044_vm7 }
 0x1eb   : > { %20629 = vmatmul.mubr.msk.bf16.vlgmr.msra.gmra.mrb[96].mxu0 %vm30038_vm11, %v25227_v48  ;;  %6183 = vmatpush1.bf16.msra.mxu1 %v5354_v7  ;;  %v5264_v25 = vpop.permute.xlu1 %5263  ;;  %v5274_v50 = vpop.permute.xlu0 %5273  ;;  %v30047_v7 = vld [vmem:[#allocation145_spill] sm:$0xff]  ;;  %vm30052_vm11 = vmmov %vm30035_vm0 }
 0x1ec   : > { %6140 = vmatpush1.bf16.msra.mxu0 %v5352_v31  ;;  %6171 = vmatprep.mubr.bf16.mxu0 %v29827_v52  ;;  %v5357_v31 = vsel %vm30042_vm15, %v5264_v25, %v5266_v9  ;;  %v5356_v42 = vsel %vm30043_vm10, %v5262_v63, %v5264_v25  ;;  %vm30056_vm15 = vmmov %vm30035_vm0 }
 0x1ed   : > { %7035 = vrot.lane.b32.xlu0 %v24684_v41, %s22281_s29  ;;  %6225 = vmatprep.subr.bf16.mxu0 %v5357_v31  ;;  %v30049_v31 = vld [vmem:[#allocation151_spill] sm:$0xff]  ;;  %vm30057_vm10 = vmmov %vm30035_vm0 }
 0x1ee   : > { %7029 = vrot.lane.b32.xlu1 %v30041_v32, %s22281_s29 }
 0x1ef   : > { %v5268_v2 = vpop.permute.xlu1 %5267  ;;  %v5278_v55 = vpop.permute.xlu0 %5277 }
 0x1f0   : > { %20632 = vmatmul.mubr.msk.bf16.vlgmr.msra.gmra.mrb[100].mxu1 %vm30044_vm7, %v25227_v48  ;;  %v5359_v63 = vsel %vm30035_vm0, %v5268_v2, %v5270_v54  ;;  %v5358_v25 = vsel %vm30048_vm8, %v5266_v9, %v5268_v2  ;;  %v30054_v9 = vld [vmem:[#allocation155_spill] sm:$0xff]  ;;  %vm30060_vm7 = vmmov %vm30035_vm0 }
 0x1f1   : > { %7039 = vrot.lane.b32.xlu0 %v30045_v47, %s22281_s29  ;;  %6300 = vmatprep.mubr.bf16.mxu1 %v29827_v52 }
 0x1f2   : > { %7033 = vrot.lane.b32.xlu1 %v30047_v7, %s22281_s29  ;;  %6268 = vmatprep.subr.bf16.mxu1 %v5359_v63 }
 0x1f3   : > { %20631 = vmatmul.mubr.msk.bf16.vlgmr.msra.gmra.mrb[100].mxu0 %vm30046_vm9, %v25227_v48  ;;  %6269 = vmatpush1.bf16.msra.mxu1 %v5358_v25  ;;  %v5272_v14 = vpop.permute.xlu1 %5271  ;;  %vm30061_vm9 = vmmov %vm30035_vm0 }
 0x1f4   : > { %6226 = vmatpush1.bf16.msra.mxu0 %v5356_v42  ;;  %6257 = vmatprep.mubr.bf16.mxu0 %v29827_v52  ;;  %v5282_v42 = vpop.permute.xlu0 %5281  ;;  %v5361_v47 = vsel %vm30051_vm12, %v5272_v14, %v5274_v50  ;;  %v5360_v7 = vsel %vm30052_vm11, %v5270_v54, %v5272_v14  ;;  %vm30062_vm0 = vmmov %vm30055_vm6 }
 0x1f5   : > { %7043 = vrot.lane.b32.xlu0 %v30049_v31, %s22281_s29  ;;  %6311 = vmatprep.subr.bf16.mxu0 %v5361_v47  ;;  %v30058_v47 = vld [vmem:[#allocation156_spill] sm:$0xff]  ;;  %vm30064_vm8 = vmmov %vm30062_vm0 }
 0x1f6   : > { %7037 = vrot.lane.b32.xlu1 %v30050_v35, %s22281_s29  ;;  %vm30065_vm12 = vmmov %vm30060_vm7 }
 0x1f7   : > { %v5276_v2 = vpop.permute.xlu1 %5275  ;;  %vm30066_vm11 = vmmov %vm30060_vm7 }
 0x1f8   : > { %20634 = vmatmul.mubr.msk.bf16.vlgmr.msra.gmra.mrb[104].mxu1 %vm30053_vm13, %v25227_v48  ;;  %v5286_v63 = vpop.permute.xlu0 %5285  ;;  %v5363_v14 = vsel %vm30056_vm15, %v5276_v2, %v5278_v55  ;;  %v5362_v54 = vsel %vm30057_vm10, %v5274_v50, %v5276_v2  ;;  %v30063_v50 = vld [vmem:[#allocation105_spill] sm:$0xff]  ;;  %vm30069_vm13 = vmmov %vm30060_vm7 }
 0x1f9   : > { %7047 = vrot.lane.b32.xlu0 %v30054_v9, %s22281_s29  ;;  %6386 = vmatprep.mubr.bf16.mxu1 %v29827_v52  ;;  %v30059_v9 = vld [vmem:[#allocation153_spill] sm:$0xff]  ;;  %vm30071_vm15 = vmmov %vm30062_vm0 }
 0x1fa   : > { %7041 = vrot.lane.b32.xlu1 %v24723_v51, %s22281_s29  ;;  %6354 = vmatprep.subr.bf16.mxu1 %v5363_v14  ;;  %vm30073_vm10 = vmmov %vm30062_vm0 }
 0x1fb   : > { %20633 = vmatmul.mubr.msk.bf16.vlgmr.msra.gmra.mrb[104].mxu0 %vm30055_vm6, %v25227_v48  ;;  %6355 = vmatpush1.bf16.msra.mxu1 %v5362_v54  ;;  %v5280_v25 = vpop.permute.xlu1 %5279  ;;  %v30067_v54 = vld [vmem:[#allocation157_spill] sm:$0xff]  ;;  %vm30070_vm6 = vmmov %vm30060_vm7 }
 0x1fc   : > { %6312 = vmatpush1.bf16.msra.mxu0 %v5360_v7  ;;  %6343 = vmatprep.mubr.bf16.mxu0 %v29827_v52  ;;  %v5290_v7 = vpop.permute.xlu0 %5289  ;;  %v5365_v35 = vsel %vm30060_vm7, %v5280_v25, %v5282_v42  ;;  %v5364_v51 = vsel %vm30061_vm9, %v5278_v55, %v5280_v25  ;;  %vm30074_vm7 = vmmov %vm30070_vm6 }
 0x1fd   : > { %7051 = vrot.lane.b32.xlu0 %v30058_v47, %s22281_s29  ;;  %6397 = vmatprep.subr.bf16.mxu0 %v5365_v35  ;;  %vm30075_vm9 = vmmov %vm30070_vm6 }
 0x1fe   : > { %7045 = vrot.lane.b32.xlu1 %v30059_v9, %s22281_s29 }
 0x1ff   : > { %v5284_v2 = vpop.permute.xlu1 %5283 }
 0x200   : > { %20636 = vmatmul.mubr.msk.bf16.vlgmr.msra.gmra.mrb[108].mxu1 %vm30062_vm0, %v25227_v48  ;;  %v5294_v14 = vpop.permute.xlu0 %5293  ;;  %v5367_v55 = vsel %vm30065_vm12, %v5284_v2, %v5286_v63  ;;  %v5366_v35 = vsel %vm30066_vm11, %v5282_v42, %v5284_v2  ;;  %v30072_v42 = vld [vmem:[#allocation108_spill] sm:$0xff]  ;;  %vm30076_vm0 = vmmov %vm30070_vm6 }
 0x201   : > { %7055 = vrot.lane.b32.xlu0 %v30063_v50, %s22281_s29  ;;  %6472 = vmatprep.mubr.bf16.mxu1 %v29827_v52  ;;  %v30068_v50 = vld [vmem:[#allocation103_spill] sm:$0xff]  ;;  %vm30078_vm12 = vmmov %vm30073_vm10 }
 0x202   : > { %7049 = vrot.lane.b32.xlu1 %v24803_v12, %s22281_s29  ;;  %6440 = vmatprep.subr.bf16.mxu1 %v5367_v55  ;;  %vm30080_vm11 = vmmov %vm30073_vm10 }
 0x203   : > { %20635 = vmatmul.mubr.msk.bf16.vlgmr.msra.gmra.mrb[108].mxu0 %vm30064_vm8, %v25227_v48  ;;  %6441 = vmatpush1.bf16.msra.mxu1 %v5366_v35  ;;  %v5288_v25 = vpop.permute.xlu1 %5287  ;;  %vm30077_vm8 = vmmov %vm30076_vm0 }
 0x204   : > { %6398 = vmatpush1.bf16.msra.mxu0 %v5364_v51  ;;  %6429 = vmatprep.mubr.bf16.mxu0 %v29827_v52  ;;  %v5298_v51 = vpop.permute.xlu0 %5297  ;;  %v5369_v9 = vsel %vm30069_vm13, %v5288_v25, %v5290_v7  ;;  %v5368_v12 = vsel %vm30070_vm6, %v5286_v63, %v5288_v25  ;;  %vm30081_vm13 = vmmov %vm30076_vm0 }
 0x205   : > { %7059 = vrot.lane.b32.xlu0 %v30067_v54, %s22281_s29  ;;  %6483 = vmatprep.subr.bf16.mxu0 %v5369_v9  ;;  %vm30082_vm6 = vmmov %vm30076_vm0 }
 0x206   : > { %7053 = vrot.lane.b32.xlu1 %v30068_v50, %s22281_s29 }
 0x207   : > { %v5292_v2 = vpop.permute.xlu1 %5291 }
 0x208   : > { %20638 = vmatmul.mubr.msk.bf16.vlgmr.msra.gmra.mrb[112].mxu1 %vm30071_vm15, %v25227_v48  ;;  %v5302_v55 = vpop.permute.xlu0 %5301  ;;  %v5371_v63 = vsel %vm30074_vm7, %v5292_v2, %v5294_v14  ;;  %v5370_v9 = vsel %vm30075_vm9, %v5290_v7, %v5292_v2  ;;  %v30079_v7 = vld [vmem:[#allocation158_spill] sm:$0xff]  ;;  %vm30084_vm15 = vmmov %vm30076_vm0 }
 0x209   : > { %7063 = vrot.lane.b32.xlu0 %v30072_v42, %s22281_s29  ;;  %6558 = vmatprep.mubr.bf16.mxu1 %v29827_v52  ;;  %vm30086_vm7 = vmmov %vm30080_vm11 }
 0x20a   : > { %7057 = vrot.lane.b32.xlu1 %v24885_v19, %s22281_s29  ;;  %6526 = vmatprep.subr.bf16.mxu1 %v5371_v63  ;;  %vm30087_vm9 = vmmov %vm30086_vm7 }
 0x20b   : > { %20637 = vmatmul.mubr.msk.bf16.vlgmr.msra.gmra.mrb[112].mxu0 %vm30073_vm10, %v25227_v48  ;;  %6527 = vmatpush1.bf16.msra.mxu1 %v5370_v9  ;;  %v5296_v35 = vpop.permute.xlu1 %5295  ;;  %vm30085_vm10 = vmmov %vm30076_vm0 }
 0x20c   : > { %6484 = vmatpush1.bf16.msra.mxu0 %v5368_v12  ;;  %6515 = vmatprep.mubr.bf16.mxu0 %v29827_v52  ;;  %v5306_v12 = vpop.permute.xlu0 %5305  ;;  %v5373_v25 = vsel %vm30076_vm0, %v5296_v35, %v5298_v51  ;;  %v5372_v19 = vsel %vm30077_vm8, %v5294_v14, %v5296_v35  ;;  %v30083_v35 = vld [vmem:[#allocation159_spill] sm:$0xff]  ;;  %vm30088_vm8 = vmmov %vm30076_vm0 }
 0x20d   : > { %7067 = vrot.lane.b32.xlu0 %v24948_v49, %s22281_s29  ;;  %6569 = vmatprep.subr.bf16.mxu0 %v5373_v25 }
 0x20e   : > { %7061 = vrot.lane.b32.xlu1 %v24938_v36, %s22281_s29 }
 0x20f   : > { %v5300_v2 = vpop.permute.xlu1 %5299 }
 0x210   : > { %20640 = vmatmul.mubr.msk.bf16.vlgmr.msra.gmra.mrb[116].mxu1 %vm30078_vm12, %v25227_v48  ;;  %v5310_v63 = vpop.permute.xlu0 %5309  ;;  %v5375_v14 = vsel %vm30081_vm13, %v5300_v2, %v5302_v55  ;;  %v5374_v9 = vsel %vm30082_vm6, %v5298_v51, %v5300_v2  ;;  %vm30089_vm12 = vmmov %vm30076_vm0  ;;  %vm7095_vm13 = vcmask 1039360  }
 0x211   : > { %7071 = vrot.lane.b32.xlu0 %v30079_v7, %s22281_s29  ;;  %6644 = vmatprep.mubr.bf16.mxu1 %v29827_v52  ;;  %vm30091_vm6 = vmmov %vm30086_vm7 }
 0x212   : > { %7065 = vrot.lane.b32.xlu1 %v24940_v11, %s22281_s29  ;;  %6612 = vmatprep.subr.bf16.mxu1 %v5375_v14 }
 0x213   : > { %20639 = vmatmul.mubr.msk.bf16.vlgmr.msra.gmra.mrb[116].mxu0 %vm30080_vm11, %v25227_v48  ;;  %6613 = vmatpush1.bf16.msra.mxu1 %v5374_v9  ;;  %vm30090_vm11 = vmmov %vm30076_vm0 }
 0x214   : > { %6570 = vmatpush1.bf16.msra.mxu0 %v5372_v19  ;;  %6601 = vmatprep.mubr.bf16.mxu0 %v29827_v52  ;;  %v5304_v25 = vpop.permute.xlu1 %5303 }
 0x215   : > { %7075 = vrot.lane.b32.xlu0 %v30083_v35, %s22281_s29  ;;  %v5314_v19 = vpop.permute.xlu0 %5313  ;;  %v5377_v7 = vsel %vm30084_vm15, %v5304_v25, %v5306_v12  ;;  %v5376_v11 = vsel %vm30085_vm10, %v5302_v55, %v5304_v25  ;;  %vm30093_vm15 = vmmov %vm30091_vm6 }
 0x216   : > { %7069 = vrot.lane.b32.xlu1 %v24998_v33, %s22281_s29  ;;  %6655 = vmatprep.subr.bf16.mxu0 %v5377_v7  ;;  %vm30095_vm10 = vmmov %vm30076_vm0 }
 0x218   : > { %20642 = vmatmul.mubr.msk.bf16.vlgmr.msra.gmra.mrb[120].mxu1 %vm30086_vm7, %v25227_v48  ;;  %v5308_v51 = vpop.permute.xlu1 %5307  ;;  %vm30096_vm7 = vmmov %vm30076_vm0 }
 0x219   : > { %7079 = vrot.lane.b32.xlu0 %v25059_v38, %s22281_s29  ;;  %v5318_v2 = vpop.permute.xlu0 %5317  ;;  %v5379_v55 = vsel %vm30076_vm0, %v5308_v51, %v5310_v63  ;;  %v5378_v7 = vsel %vm30088_vm8, %v5306_v12, %v5308_v51  ;;  %6730 = vmatprep.mubr.bf16.mxu1 %v29827_v52  ;;  %v30092_v12 = vld [vmem:[#allocation118_spill] sm:$0xff]  ;;  %vm30099_vm0 = vmmov %vm30091_vm6 }
 0x21a   : > { %7073 = vrot.lane.b32.xlu1 %v25000_v17, %s22281_s29  ;;  %6698 = vmatprep.subr.bf16.mxu1 %v5379_v55  ;;  %v30094_v55 = vld [vmem:[#allocation163_spill] sm:$0xff]  ;;  %vm30101_vm8 = vmmov %vm30099_vm0 }
 0x21b   : > { %20641 = vmatmul.mubr.msk.bf16.vlgmr.msra.gmra.mrb[120].mxu0 %vm30087_vm9, %v25227_v48  ;;  %6699 = vmatpush1.bf16.msra.mxu1 %v5378_v7  ;;  %v7097_v7 = vsel %vm7095_vm13, %v25214_v23, %v30094_v55  ;;  %vm30098_vm9 = vmmov %vm30091_vm6 }
 0x21c   : > { %6656 = vmatpush1.bf16.msra.mxu0 %v5376_v11  ;;  %6687 = vmatprep.mubr.bf16.mxu0 %v29827_v52  ;;  %v5312_v14 = vpop.permute.xlu1 %5311 }
 0x21d   : > { %7083 = vrot.lane.b32.xlu0 %v25061_v44, %s22281_s29  ;;  %v5381_v9 = vsel %vm30089_vm12, %v5312_v14, %v5314_v19  ;;  %v5380_v25 = vsel %vm30090_vm11, %v5310_v63, %v5312_v14  ;;  %vm30102_vm12 = vmmov %vm30099_vm0 }
 0x21e   : > { %7077 = vrot.lane.b32.xlu1 %v25051_v34, %s22281_s29  ;;  %6741 = vmatprep.subr.bf16.mxu0 %v5381_v9  ;;  %vm30103_vm11 = vmmov %vm30099_vm0 }
 0x21f   : > { %v6972_v11 = vpop.permute.xlu0 %6971 }
 0x220   : > { %20644 = vmatmul.mubr.msk.bf16.vlgmr.msra.gmra.mrb[124].mxu1 %vm30091_vm6, %v25227_v48  ;;  %v5316_v51 = vpop.permute.xlu1 %5315  ;;  %vm30104_vm6 = vmmov %vm30099_vm0 }
 0x221   : > { %8871 = vrot.lane.b32.xlu0 %v30092_v12, %s22279_s28  ;;  %v5383_v14 = vsel %vm30095_vm10, %v5316_v51, %v5318_v2  ;;  %v5382_v9 = vsel %vm30096_vm7, %v5314_v19, %v5316_v51  ;;  %6816 = vmatprep.mubr.bf16.mxu1 %v29827_v52  ;;  %vm30106_vm10 = vmmov %vm30099_vm0 }
 0x222   : > { %7081 = vrot.lane.b32.xlu1 %v25053_v8, %s22281_s29  ;;  %6784 = vmatprep.subr.bf16.mxu1 %v5383_v14  ;;  %vm30107_vm7 = vmmov %vm30099_vm0 }
 0x223   : > { %20643 = vmatmul.mubr.msk.bf16.vlgmr.msra.gmra.mrb[124].mxu0 %vm30093_vm15, %v25227_v48  ;;  %v6976_v63 = vpop.permute.xlu0 %6975  ;;  %6785 = vmatpush1.bf16.msra.mxu1 %v5382_v9  ;;  %vm30105_vm15 = vmmov %vm30099_vm0 }
 0x224   : > { %6742 = vmatpush1.bf16.msra.mxu0 %v5380_v25  ;;  %6773 = vmatprep.mubr.bf16.mxu0 %v29827_v52  ;;  %v30097_v25 = vld [vmem:[#allocation166_spill] sm:$0xff]  ;;  %v6966_v12 = vpop.permute.xlu1 %6965 }
 0x225   : > { %7227 = vmatprep.subr.bf16.mxu0 %v7097_v7  ;;  %7087 = vrot.lane.b32.xlu0 %v30097_v25, %s22281_s29  ;;  %v7096_v34 = vsel %vm7095_vm13, %v6966_v12, %v25214_v23  ;;  %v7098_v12 = vsel %vm7095_vm13, %v30094_v55, %v6972_v11 }
 0x226   : > { %7085 = vrot.lane.b32.xlu1 %v25138_v46, %s22281_s29 }
 0x227   : > { %v6980_v7 = vpop.permute.xlu0 %6979 }
 0x228   : > { %20646 = vmatmul.mubr.msk.bf16.vlgmr.msra.gmra.mrb[128].mxu1 %vm30098_vm9, %v25227_v48  ;;  %v6974_v19 = vpop.permute.xlu1 %6973  ;;  %vm30108_vm9 = vmmov %vm30099_vm0 }
 0x229   : > { %7091 = vrot.lane.b32.xlu0 %v25154_v15, %s22281_s29  ;;  %v7099_v23 = vsel %vm7095_vm13, %v6972_v11, %v6974_v19  ;;  %7302 = vmatprep.mubr.bf16.mxu1 %v29827_v52  ;;  %v7100_v11 = vsel %vm7095_vm13, %v6974_v19, %v6976_v63 }
 0x22a   : > { %7089 = vrot.lane.b32.xlu1 %v25140_v58, %s22281_s29  ;;  %7270 = vmatprep.subr.bf16.mxu1 %v7099_v23 }
 0x22b   : > { %20645 = vmatmul.mubr.msk.bf16.vlgmr.msra.gmra.mrb[128].mxu0 %vm30099_vm0, %v25227_v48  ;;  %v6984_v2 = vpop.permute.xlu0 %6983  ;;  %v25525_v48 = vld [vmem:[%s29821_s3 + $0x10] sm:$0xff]   ;;  %7271 = vmatpush1.bf16.msra.mxu1 %v7098_v12 }
 0x22c   : > { %7228 = vmatpush1.bf16.msra.mxu0 %v7096_v34  ;;  %7259 = vmatprep.mubr.bf16.mxu0 %v29827_v52  ;;  %v30100_v34 = vld [vmem:[#allocation119_spill] sm:$0xff]  ;;  %v6978_v51 = vpop.permute.xlu1 %6977 }
 0x22d   : > { %8869 = vrot.lane.b32.xlu0 %v30100_v34, %s22279_s28  ;;  %v7101_v9 = vsel %vm7095_vm13, %v6976_v63, %v6978_v51  ;;  %v7102_v34 = vsel %vm7095_vm13, %v6978_v51, %v6980_v7 }
 0x22e   : > { %7093 = vrot.lane.b32.xlu1 %v25210_v28, %s22281_s29  ;;  %7313 = vmatprep.subr.bf16.mxu0 %v7101_v9 }
 0x22f   : > { %v6988_v14 = vpop.permute.xlu0 %6987 }
 0x230   : > { %20651 = vmatmul.mubr.msk.bf16.vlgmr.msra.gmra.mrb[68].mxu1 %vm30101_vm8, %v25525_v48  ;;  %v6982_v55 = vpop.permute.xlu1 %6981  ;;  %vm30109_vm8 = vmmov %vm30099_vm0 }
 0x231   : > { %8877 = vrot.lane.b32.xlu0 %v24246_v18, %s22279_s28  ;;  %v7103_v12 = vsel %vm7095_vm13, %v6980_v7, %v6982_v55  ;;  %7388 = vmatprep.mubr.bf16.mxu1 %v29827_v52  ;;  %v7104_v7 = vsel %vm7095_vm13, %v6982_v55, %v6984_v2 }
 0x232   : > { %8873 = vrot.lane.b32.xlu1 %v24185_v4, %s22279_s28  ;;  %7356 = vmatprep.subr.bf16.mxu1 %v7103_v12 }
 0x233   : > { %20650 = vmatmul.mubr.msk.bf16.vlgmr.msra.gmra.mrb[68].mxu0 %vm30102_vm12, %v25525_v48  ;;  %v6992_v23 = vpop.permute.xlu0 %6991  ;;  %7357 = vmatpush1.bf16.msra.mxu1 %v7102_v34  ;;  %vm30110_vm12 = vmmov %vm30099_vm0 }
 0x234   : > { %7314 = vmatpush1.bf16.msra.mxu0 %v7100_v11  ;;  %7345 = vmatprep.mubr.bf16.mxu0 %v29827_v52  ;;  %v6986_v63 = vpop.permute.xlu1 %6985 }
 0x235   : > { %8881 = vrot.lane.b32.xlu0 %v24244_v3, %s22279_s28  ;;  %v7105_v9 = vsel %vm7095_vm13, %v6984_v2, %v6986_v63  ;;  %v7106_v34 = vsel %vm7095_vm13, %v6986_v63, %v6988_v14 }
 0x236   : > { %8875 = vrot.lane.b32.xlu1 %v24237_v61, %s22279_s28  ;;  %7399 = vmatprep.subr.bf16.mxu0 %v7105_v9 }
 0x237   : > { %v6996_v19 = vpop.permute.xlu0 %6995 }
 0x238   : > { %20653 = vmatmul.mubr.msk.bf16.vlgmr.msra.gmra.mrb[72].mxu1 %vm30103_vm11, %v25525_v48  ;;  %v6990_v51 = vpop.permute.xlu1 %6989  ;;  %vm30111_vm11 = vmmov %vm30099_vm0 }
 0x239   : > { %8885 = vrot.lane.b32.xlu0 %v24309_v27, %s22279_s28  ;;  %v7107_v12 = vsel %vm7095_vm13, %v6988_v14, %v6990_v51  ;;  %7474 = vmatprep.mubr.bf16.mxu1 %v29827_v52  ;;  %v7108_v14 = vsel %vm7095_vm13, %v6990_v51, %v6992_v23 }
 0x23a   : > { %8879 = vrot.lane.b32.xlu1 %v24239_v21, %s22279_s28  ;;  %7442 = vmatprep.subr.bf16.mxu1 %v7107_v12 }
 0x23b   : > { %20652 = vmatmul.mubr.msk.bf16.vlgmr.msra.gmra.mrb[72].mxu0 %vm30104_vm6, %v25525_v48  ;;  %v7000_v11 = vpop.permute.xlu0 %6999  ;;  %7443 = vmatpush1.bf16.msra.mxu1 %v7106_v34  ;;  %vm30112_vm6 = vmmov %vm30099_vm0 }
 0x23c   : > { %7400 = vmatpush1.bf16.msra.mxu0 %v7104_v7  ;;  %7431 = vmatprep.mubr.bf16.mxu0 %v29827_v52  ;;  %v6994_v2 = vpop.permute.xlu1 %6993 }
 0x23d   : > { %8889 = vrot.lane.b32.xlu0 %v29992_v57, %s22279_s28  ;;  %v7109_v9 = vsel %vm7095_vm13, %v6992_v23, %v6994_v2  ;;  %v7110_v34 = vsel %vm7095_vm13, %v6994_v2, %v6996_v19 }
 0x23e   : > { %8883 = vrot.lane.b32.xlu1 %v29993_v16, %s22279_s28  ;;  %7485 = vmatprep.subr.bf16.mxu0 %v7109_v9 }
 0x23f   : > { %v7004_v55 = vpop.permute.xlu0 %7003 }
 0x240   : > { %20655 = vmatmul.mubr.msk.bf16.vlgmr.msra.gmra.mrb[76].mxu1 %vm30105_vm15, %v25525_v48  ;;  %v6998_v63 = vpop.permute.xlu1 %6997  ;;  %vm30113_vm15 = vmmov %vm30099_vm0 }
 0x241   : > { %8893 = vrot.lane.b32.xlu0 %v29997_v26, %s22279_s28  ;;  %v7111_v12 = vsel %vm7095_vm13, %v6996_v19, %v6998_v63  ;;  %7560 = vmatprep.mubr.bf16.mxu1 %v29827_v52  ;;  %v7112_v19 = vsel %vm7095_vm13, %v6998_v63, %v7000_v11 }
 0x242   : > { %8887 = vrot.lane.b32.xlu1 %v29999_v40, %s22279_s28  ;;  %7528 = vmatprep.subr.bf16.mxu1 %v7111_v12 }
 0x243   : > { %20654 = vmatmul.mubr.msk.bf16.vlgmr.msra.gmra.mrb[76].mxu0 %vm30106_vm10, %v25525_v48  ;;  %v7008_v7 = vpop.permute.xlu0 %7007  ;;  %7529 = vmatpush1.bf16.msra.mxu1 %v7110_v34  ;;  %vm30114_vm10 = vmmov %vm30099_vm0 }
 0x244   : > { %7486 = vmatpush1.bf16.msra.mxu0 %v7108_v14  ;;  %7517 = vmatprep.mubr.bf16.mxu0 %v29827_v52  ;;  %v7002_v23 = vpop.permute.xlu1 %7001 }
 0x245   : > { %8897 = vrot.lane.b32.xlu0 %v30002_v6, %s22279_s28  ;;  %v7113_v9 = vsel %vm7095_vm13, %v7000_v11, %v7002_v23  ;;  %v7114_v34 = vsel %vm7095_vm13, %v7002_v23, %v7004_v55 }
 0x246   : > { %8891 = vrot.lane.b32.xlu1 %v30003_v60, %s22279_s28  ;;  %7571 = vmatprep.subr.bf16.mxu0 %v7113_v9 }
 0x247   : > { %v7012_v51 = vpop.permute.xlu0 %7011 }
 0x248   : > { %20657 = vmatmul.mubr.msk.bf16.vlgmr.msra.gmra.mrb[80].mxu1 %vm30107_vm7, %v25525_v48  ;;  %v7006_v2 = vpop.permute.xlu1 %7005  ;;  %vm30115_vm7 = vmmov %vm30099_vm0 }
 0x249   : > { %8901 = vrot.lane.b32.xlu0 %v30007_v56, %s22279_s28  ;;  %v7115_v12 = vsel %vm7095_vm13, %v7004_v55, %v7006_v2  ;;  %7646 = vmatprep.mubr.bf16.mxu1 %v29827_v52  ;;  %v7116_v55 = vsel %vm7095_vm13, %v7006_v2, %v7008_v7 }
 0x24a   : > { %8895 = vrot.lane.b32.xlu1 %v30009_v1, %s22279_s28  ;;  %7614 = vmatprep.subr.bf16.mxu1 %v7115_v12 }
 0x24b   : > { %20656 = vmatmul.mubr.msk.bf16.vlgmr.msra.gmra.mrb[80].mxu0 %vm30108_vm9, %v25525_v48  ;;  %v7016_v14 = vpop.permute.xlu0 %7015  ;;  %7615 = vmatpush1.bf16.msra.mxu1 %v7114_v34  ;;  %vm30116_vm9 = vmmov %vm30099_vm0 }
 0x24c   : > { %7572 = vmatpush1.bf16.msra.mxu0 %v7112_v19  ;;  %7603 = vmatprep.mubr.bf16.mxu0 %v29827_v52  ;;  %v7010_v11 = vpop.permute.xlu1 %7009 }
 0x24d   : > { %8905 = vrot.lane.b32.xlu0 %v30011_v43, %s22279_s28  ;;  %v7117_v9 = vsel %vm7095_vm13, %v7008_v7, %v7010_v11  ;;  %v7118_v34 = vsel %vm7095_vm13, %v7010_v11, %v7012_v51 }
 0x24e   : > { %8899 = vrot.lane.b32.xlu1 %v30012_v30, %s22279_s28  ;;  %7657 = vmatprep.subr.bf16.mxu0 %v7117_v9 }
 0x24f   : > { %v7020_v63 = vpop.permute.xlu0 %7019 }
 0x250   : > { %20659 = vmatmul.mubr.msk.bf16.vlgmr.msra.gmra.mrb[84].mxu1 %vm30099_vm0, %v25525_v48  ;;  %v7014_v23 = vpop.permute.xlu1 %7013 }
 0x251   : > { %8909 = vrot.lane.b32.xlu0 %v30016_v13, %s22279_s28  ;;  %v7119_v12 = vsel %vm7095_vm13, %v7012_v51, %v7014_v23  ;;  %7732 = vmatprep.mubr.bf16.mxu1 %v29827_v52  ;;  %v7120_v51 = vsel %vm7095_vm13, %v7014_v23, %v7016_v14 }
 0x252   : > { %8903 = vrot.lane.b32.xlu1 %v24428_v62, %s22279_s28  ;;  %7700 = vmatprep.subr.bf16.mxu1 %v7119_v12 }
 0x253   : > { %20658 = vmatmul.mubr.msk.bf16.vlgmr.msra.gmra.mrb[84].mxu0 %vm30109_vm8, %v25525_v48  ;;  %v7024_v19 = vpop.permute.xlu0 %7023  ;;  %7701 = vmatpush1.bf16.msra.mxu1 %v7118_v34  ;;  %vm30120_vm8 = vmmov %vm30099_vm0 }
 0x254   : > { %7658 = vmatpush1.bf16.msra.mxu0 %v7116_v55  ;;  %7689 = vmatprep.mubr.bf16.mxu0 %v29827_v52  ;;  %v7018_v7 = vpop.permute.xlu1 %7017 }
 0x255   : > { %8913 = vrot.lane.b32.xlu0 %v24498_v22, %s22279_s28  ;;  %v7121_v9 = vsel %vm7095_vm13, %v7016_v14, %v7018_v7  ;;  %v7122_v34 = vsel %vm7095_vm13, %v7018_v7, %v7020_v63 }
 0x256   : > { %8907 = vrot.lane.b32.xlu1 %v30020_v37, %s22279_s28  ;;  %7743 = vmatprep.subr.bf16.mxu0 %v7121_v9 }
 0x257   : > { %v7028_v2 = vpop.permute.xlu0 %7027 }
 0x258   : > { %20661 = vmatmul.mubr.msk.bf16.vlgmr.msra.gmra.mrb[88].mxu1 %vm30110_vm12, %v25525_v48  ;;  %v7022_v11 = vpop.permute.xlu1 %7021  ;;  %vm30122_vm12 = vmmov %vm30099_vm0 }
 0x259   : > { %8917 = vrot.lane.b32.xlu0 %v30024_v59, %s22279_s28  ;;  %v7123_v12 = vsel %vm7095_vm13, %v7020_v63, %v7022_v11  ;;  %7818 = vmatprep.mubr.bf16.mxu1 %v29827_v52  ;;  %v7124_v63 = vsel %vm7095_vm13, %v7022_v11, %v7024_v19 }
 0x25a   : > { %8911 = vrot.lane.b32.xlu1 %v24490_v53, %s22279_s28  ;;  %7786 = vmatprep.subr.bf16.mxu1 %v7123_v12 }
 0x25b   : > { %20660 = vmatmul.mubr.msk.bf16.vlgmr.msra.gmra.mrb[88].mxu0 %vm30111_vm11, %v25525_v48  ;;  %v7032_v55 = vpop.permute.xlu0 %7031  ;;  %7787 = vmatpush1.bf16.msra.mxu1 %v7122_v34  ;;  %vm30125_vm11 = vmmov %vm30099_vm0 }
 0x25c   : > { %7744 = vmatpush1.bf16.msra.mxu0 %v7120_v51  ;;  %7775 = vmatprep.mubr.bf16.mxu0 %v29827_v52  ;;  %v7026_v14 = vpop.permute.xlu1 %7025 }
 0x25d   : > { %8921 = vrot.lane.b32.xlu0 %v24561_v39, %s22279_s28  ;;  %v7125_v9 = vsel %vm7095_vm13, %v7024_v19, %v7026_v14  ;;  %v7126_v34 = vsel %vm7095_vm13, %v7026_v14, %v7028_v2 }
 0x25e   : > { %8915 = vrot.lane.b32.xlu1 %v24551_v45, %s22279_s28  ;;  %7829 = vmatprep.subr.bf16.mxu0 %v7125_v9 }
 0x25f   : > { %v7036_v23 = vpop.permute.xlu0 %7035 }
 0x260   : > { %20663 = vmatmul.mubr.msk.bf16.vlgmr.msra.gmra.mrb[92].mxu1 %vm30112_vm6, %v25525_v48  ;;  %v7030_v7 = vpop.permute.xlu1 %7029  ;;  %vm30127_vm6 = vmmov %vm30099_vm0 }
 0x261   : > { %8925 = vrot.lane.b32.xlu0 %v24627_v20, %s22279_s28  ;;  %v7127_v12 = vsel %vm7095_vm13, %v7028_v2, %v7030_v7  ;;  %7904 = vmatprep.mubr.bf16.mxu1 %v29827_v52  ;;  %v7128_v2 = vsel %vm7095_vm13, %v7030_v7, %v7032_v55 }
 0x262   : > { %8919 = vrot.lane.b32.xlu1 %v24553_v10, %s22279_s28  ;;  %7872 = vmatprep.subr.bf16.mxu1 %v7127_v12 }
 0x263   : > { %20662 = vmatmul.mubr.msk.bf16.vlgmr.msra.gmra.mrb[92].mxu0 %vm30113_vm15, %v25525_v48  ;;  %v7040_v51 = vpop.permute.xlu0 %7039  ;;  %7873 = vmatpush1.bf16.msra.mxu1 %v7126_v34  ;;  %vm30129_vm15 = vmmov %vm30099_vm0 }
 0x264   : > { %7830 = vmatpush1.bf16.msra.mxu0 %v7124_v63  ;;  %7861 = vmatprep.mubr.bf16.mxu0 %v29827_v52  ;;  %v7034_v19 = vpop.permute.xlu1 %7033 }
 0x265   : > { %8929 = vrot.lane.b32.xlu0 %v30034_v24, %s22279_s28  ;;  %v7129_v9 = vsel %vm7095_vm13, %v7032_v55, %v7034_v19  ;;  %v7130_v34 = vsel %vm7095_vm13, %v7034_v19, %v7036_v23 }
 0x266   : > { %8923 = vrot.lane.b32.xlu1 %v24619_v29, %s22279_s28  ;;  %7915 = vmatprep.subr.bf16.mxu0 %v7129_v9 }
 0x267   : > { %v7044_v11 = vpop.permute.xlu0 %7043 }
 0x268   : > { %20665 = vmatmul.mubr.msk.bf16.vlgmr.msra.gmra.mrb[96].mxu1 %vm30114_vm10, %v25525_v48  ;;  %v7038_v14 = vpop.permute.xlu1 %7037  ;;  %vm30130_vm10 = vmmov %vm30099_vm0 }
 0x269   : > { %8933 = vrot.lane.b32.xlu0 %v24682_v0, %s22279_s28  ;;  %v7131_v12 = vsel %vm7095_vm13, %v7036_v23, %v7038_v14  ;;  %7990 = vmatprep.mubr.bf16.mxu1 %v29827_v52  ;;  %v7132_v23 = vsel %vm7095_vm13, %v7038_v14, %v7040_v51 }
 0x26a   : > { %8927 = vrot.lane.b32.xlu1 %v24621_v5, %s22279_s28  ;;  %7958 = vmatprep.subr.bf16.mxu1 %v7131_v12 }
 0x26b   : > { %20664 = vmatmul.mubr.msk.bf16.vlgmr.msra.gmra.mrb[96].mxu0 %vm30115_vm7, %v25525_v48  ;;  %v7048_v63 = vpop.permute.xlu0 %7047  ;;  %7959 = vmatpush1.bf16.msra.mxu1 %v7130_v34  ;;  %v30118_v34 = vld [vmem:[#allocation145_spill] sm:$0xff]  ;;  %vm30132_vm7 = vmmov %vm30099_vm0 }
 0x26c   : > { %7916 = vmatpush1.bf16.msra.mxu0 %v7128_v2  ;;  %7947 = vmatprep.mubr.bf16.mxu0 %v29827_v52  ;;  %v7042_v55 = vpop.permute.xlu1 %7041  ;;  %v30117_v2 = vld [vmem:[#allocation150_spill] sm:$0xff] }
 0x26d   : > { %8937 = vrot.lane.b32.xlu0 %v24684_v41, %s22279_s28  ;;  %v7133_v9 = vsel %vm7095_vm13, %v7040_v51, %v7042_v55 }
 0x26e   : > { %8931 = vrot.lane.b32.xlu1 %v30041_v32, %s22279_s28  ;;  %8001 = vmatprep.subr.bf16.mxu0 %v7133_v9 }
 0x26f   : > { %v7052_v7 = vpop.permute.xlu0 %7051 }
 0x270   : > { %20667 = vmatmul.mubr.msk.bf16.vlgmr.msra.gmra.mrb[100].mxu1 %vm30116_vm9, %v25525_v48  ;;  %v7046_v19 = vpop.permute.xlu1 %7045  ;;  %vm30134_vm9 = vmmov %vm30099_vm0 }
 0x271   : > { %8941 = vrot.lane.b32.xlu0 %v30117_v2, %s22279_s28  ;;  %v7135_v9 = vsel %vm7095_vm13, %v7044_v11, %v7046_v19  ;;  %8076 = vmatprep.mubr.bf16.mxu1 %v29827_v52  ;;  %v7134_v2 = vsel %vm7095_vm13, %v7042_v55, %v7044_v11  ;;  %v7136_v11 = vsel %vm7095_vm13, %v7046_v19, %v7048_v63 }
 0x272   : > { %8935 = vrot.lane.b32.xlu1 %v30118_v34, %s22279_s28  ;;  %8044 = vmatprep.subr.bf16.mxu1 %v7135_v9  ;;  %v30121_v34 = vld [vmem:[#allocation155_spill] sm:$0xff]  ;;  %v30123_v9 = vld [vmem:[#allocation149_spill] sm:$0xff] }
 0x273   : > { %20666 = vmatmul.mubr.msk.bf16.vlgmr.msra.gmra.mrb[100].mxu0 %vm30099_vm0, %v25525_v48  ;;  %v7056_v12 = vpop.permute.xlu0 %7055  ;;  %8045 = vmatpush1.bf16.msra.mxu1 %v7134_v2 }
 0x274   : > { %8002 = vmatpush1.bf16.msra.mxu0 %v7132_v23  ;;  %8033 = vmatprep.mubr.bf16.mxu0 %v29827_v52  ;;  %v7050_v51 = vpop.permute.xlu1 %7049  ;;  %v30119_v23 = vld [vmem:[#allocation148_spill] sm:$0xff] }
 0x275   : > { %8945 = vrot.lane.b32.xlu0 %v30049_v31, %s22279_s28  ;;  %v7137_v32 = vsel %vm7095_vm13, %v7048_v63, %v7050_v51 }
 0x276   : > { %8939 = vrot.lane.b32.xlu1 %v30119_v23, %s22279_s28  ;;  %8087 = vmatprep.subr.bf16.mxu0 %v7137_v32 }
 0x277   : > { %v7060_v14 = vpop.permute.xlu0 %7059 }
 0x278   : > { %20669 = vmatmul.mubr.msk.bf16.vlgmr.msra.gmra.mrb[104].mxu1 %vm30120_vm8, %v25525_v48  ;;  %v7054_v55 = vpop.permute.xlu1 %7053  ;;  %vm30136_vm8 = vmmov %vm30099_vm0 }
 0x279   : > { %8949 = vrot.lane.b32.xlu0 %v30121_v34, %s22279_s28  ;;  %v7139_v32 = vsel %vm7095_vm13, %v7052_v7, %v7054_v55  ;;  %8162 = vmatprep.mubr.bf16.mxu1 %v29827_v52  ;;  %v7138_v34 = vsel %vm7095_vm13, %v7050_v51, %v7052_v7  ;;  %v7140_v7 = vsel %vm7095_vm13, %v7054_v55, %v7056_v12 }
 0x27a   : > { %8943 = vrot.lane.b32.xlu1 %v30123_v9, %s22279_s28  ;;  %8130 = vmatprep.subr.bf16.mxu1 %v7139_v32  ;;  %v30126_v9 = vld [vmem:[#allocation105_spill] sm:$0xff]  ;;  %v30128_v32 = vld [vmem:[#allocation154_spill] sm:$0xff] }
 0x27b   : > { %20668 = vmatmul.mubr.msk.bf16.vlgmr.msra.gmra.mrb[104].mxu0 %vm30122_vm12, %v25525_v48  ;;  %v7064_v2 = vpop.permute.xlu0 %7063  ;;  %8131 = vmatpush1.bf16.msra.mxu1 %v7138_v34  ;;  %vm30138_vm12 = vmmov %vm30099_vm0 }
 0x27c   : > { %8088 = vmatpush1.bf16.msra.mxu0 %v7136_v11  ;;  %8119 = vmatprep.mubr.bf16.mxu0 %v29827_v52  ;;  %v7058_v63 = vpop.permute.xlu1 %7057  ;;  %v30124_v11 = vld [vmem:[#allocation153_spill] sm:$0xff] }
 0x27d   : > { %8953 = vrot.lane.b32.xlu0 %v30058_v47, %s22279_s28  ;;  %v7141_v23 = vsel %vm7095_vm13, %v7056_v12, %v7058_v63 }
 0x27e   : > { %8947 = vrot.lane.b32.xlu1 %v30124_v11, %s22279_s28  ;;  %8173 = vmatprep.subr.bf16.mxu0 %v7141_v23 }
 0x27f   : > { %v7068_v19 = vpop.permute.xlu0 %7067 }
 0x280   : > { %20671 = vmatmul.mubr.msk.bf16.vlgmr.msra.gmra.mrb[108].mxu1 %vm30125_vm11, %v25525_v48  ;;  %v7062_v34 = vpop.permute.xlu1 %7061  ;;  %vm30139_vm11 = vmmov %vm30099_vm0 }
 0x281   : > { %8957 = vrot.lane.b32.xlu0 %v30126_v9, %s22279_s28  ;;  %v7143_v23 = vsel %vm7095_vm13, %v7060_v14, %v7062_v34  ;;  %8248 = vmatprep.mubr.bf16.mxu1 %v29827_v52  ;;  %v7142_v9 = vsel %vm7095_vm13, %v7058_v63, %v7060_v14  ;;  %v7144_v14 = vsel %vm7095_vm13, %v7062_v34, %v7064_v2 }
 0x282   : > { %8951 = vrot.lane.b32.xlu1 %v30128_v32, %s22279_s28  ;;  %8216 = vmatprep.subr.bf16.mxu1 %v7143_v23  ;;  %v30131_v23 = vld [vmem:[#allocation104_spill] sm:$0xff] }
 0x283   : > { %20670 = vmatmul.mubr.msk.bf16.vlgmr.msra.gmra.mrb[108].mxu0 %vm30127_vm6, %v25525_v48  ;;  %v7072_v51 = vpop.permute.xlu0 %7071  ;;  %8217 = vmatpush1.bf16.msra.mxu1 %v7142_v9  ;;  %vm30140_vm6 = vcmask 7168  }
 0x284   : > { %8174 = vmatpush1.bf16.msra.mxu0 %v7140_v7  ;;  %8205 = vmatprep.mubr.bf16.mxu0 %v29827_v52  ;;  %v7066_v12 = vpop.permute.xlu1 %7065 }
 0x285   : > { %8961 = vrot.lane.b32.xlu0 %v30067_v54, %s22279_s28  ;;  %v7145_v7 = vsel %vm7095_vm13, %v7064_v2, %v7066_v12 }
 0x286   : > { %8955 = vrot.lane.b32.xlu1 %v30068_v50, %s22279_s28  ;;  %8259 = vmatprep.subr.bf16.mxu0 %v7145_v7 }
 0x287   : > { %v7076_v55 = vpop.permute.xlu0 %7075 }
 0x288   : > { %20673 = vmatmul.mubr.msk.bf16.vlgmr.msra.gmra.mrb[112].mxu1 %vm30129_vm15, %v25525_v48  ;;  %v7070_v9 = vpop.permute.xlu1 %7069  ;;  %vm30141_vm15 = vmmov %vm30099_vm0 }
 0x289   : > { %8965 = vrot.lane.b32.xlu0 %v30072_v42, %s22279_s28  ;;  %v7147_v7 = vsel %vm7095_vm13, %v7068_v19, %v7070_v9  ;;  %8334 = vmatprep.mubr.bf16.mxu1 %v29827_v52  ;;  %v7146_v42 = vsel %vm7095_vm13, %v7066_v12, %v7068_v19  ;;  %v7148_v19 = vsel %vm7095_vm13, %v7070_v9, %v7072_v51 }
 0x28a   : > { %8959 = vrot.lane.b32.xlu1 %v30131_v23, %s22279_s28  ;;  %8302 = vmatprep.subr.bf16.mxu1 %v7147_v7  ;;  %v30133_v23 = vld [vmem:[#allocation158_spill] sm:$0xff]  ;;  %v30135_v7 = vld [vmem:[#allocation107_spill] sm:$0xff] }
 0x28b   : > { %20672 = vmatmul.mubr.msk.bf16.vlgmr.msra.gmra.mrb[112].mxu0 %vm30130_vm10, %v25525_v48  ;;  %v7080_v63 = vpop.permute.xlu0 %7079  ;;  %8303 = vmatpush1.bf16.msra.mxu1 %v7146_v42  ;;  %vm30142_vm10 = vmmov %vm30140_vm6 }
 0x28c   : > { %8260 = vmatpush1.bf16.msra.mxu0 %v7144_v14  ;;  %8291 = vmatprep.mubr.bf16.mxu0 %v29827_v52  ;;  %v7074_v2 = vpop.permute.xlu1 %7073 }
 0x28d   : > { %8969 = vrot.lane.b32.xlu0 %v24948_v49, %s22279_s28  ;;  %v7149_v14 = vsel %vm7095_vm13, %v7072_v51, %v7074_v2 }
 0x28e   : > { %8963 = vrot.lane.b32.xlu1 %v24938_v36, %s22279_s28  ;;  %8345 = vmatprep.subr.bf16.mxu0 %v7149_v14 }
 0x28f   : > { %v7084_v34 = vpop.permute.xlu0 %7083 }
 0x290   : > { %20675 = vmatmul.mubr.msk.bf16.vlgmr.msra.gmra.mrb[116].mxu1 %vm30132_vm7, %v25525_v48  ;;  %v7078_v42 = vpop.permute.xlu1 %7077  ;;  %vm30144_vm7 = vmmov %vm30099_vm0 }
 0x291   : > { %8973 = vrot.lane.b32.xlu0 %v30133_v23, %s22279_s28  ;;  %v7151_v14 = vsel %vm7095_vm13, %v7076_v55, %v7078_v42  ;;  %8420 = vmatprep.mubr.bf16.mxu1 %v29827_v52  ;;  %v7150_v23 = vsel %vm7095_vm13, %v7074_v2, %v7076_v55  ;;  %v7152_v55 = vsel %vm7095_vm13, %v7078_v42, %v7080_v63 }
 0x292   : > { %8967 = vrot.lane.b32.xlu1 %v30135_v7, %s22279_s28  ;;  %8388 = vmatprep.subr.bf16.mxu1 %v7151_v14 }
 0x293   : > { %20674 = vmatmul.mubr.msk.bf16.vlgmr.msra.gmra.mrb[116].mxu0 %vm30134_vm9, %v25525_v48  ;;  %v8872_v12 = vpop.permute.xlu0 %8871  ;;  %8389 = vmatpush1.bf16.msra.mxu1 %v7150_v23  ;;  %vm30145_vm9 = vmmov %vm30140_vm6 }
 0x294   : > { %8346 = vmatpush1.bf16.msra.mxu0 %v7148_v19  ;;  %8377 = vmatprep.mubr.bf16.mxu0 %v29827_v52  ;;  %v7082_v51 = vpop.permute.xlu1 %7081 }
 0x295   : > { %8977 = vrot.lane.b32.xlu0 %v30083_v35, %s22279_s28  ;;  %v7153_v19 = vsel %vm7095_vm13, %v7080_v63, %v7082_v51 }
 0x296   : > { %8971 = vrot.lane.b32.xlu1 %v24998_v33, %s22279_s28  ;;  %8431 = vmatprep.subr.bf16.mxu0 %v7153_v19  ;;  %v7154_v19 = vsel %vm7095_vm13, %v7082_v51, %v7084_v34 }
 0x297   : > { %v7088_v9 = vpop.permute.xlu0 %7087 }
 0x298   : > { %20677 = vmatmul.mubr.msk.bf16.vlgmr.msra.gmra.mrb[120].mxu1 %vm30099_vm0, %v25525_v48  ;;  %v7086_v23 = vpop.permute.xlu1 %7085  ;;  %vm30146_vm0 = vmmov %vm30140_vm6 }
 0x299   : > { %8981 = vrot.lane.b32.xlu0 %v25059_v38, %s22279_s28  ;;  %v7155_v14 = vsel %vm7095_vm13, %v7084_v34, %v7086_v23  ;;  %8506 = vmatprep.mubr.bf16.mxu1 %v29827_v52  ;;  %v7156_v34 = vsel %vm7095_vm13, %v7086_v23, %v7088_v9 }
 0x29a   : > { %8975 = vrot.lane.b32.xlu1 %v25000_v17, %s22279_s28  ;;  %8474 = vmatprep.subr.bf16.mxu1 %v7155_v14 }
 0x29b   : > { %20676 = vmatmul.mubr.msk.bf16.vlgmr.msra.gmra.mrb[120].mxu0 %vm30136_vm8, %v25525_v48  ;;  %v7092_v2 = vpop.permute.xlu0 %7091  ;;  %8475 = vmatpush1.bf16.msra.mxu1 %v7154_v19  ;;  %vm30147_vm8 = vmmov %vm30146_vm0 }
 0x29c   : > { %8432 = vmatpush1.bf16.msra.mxu0 %v7152_v55  ;;  %8463 = vmatprep.mubr.bf16.mxu0 %v29827_v52  ;;  %v7090_v63 = vpop.permute.xlu1 %7089  ;;  %v30137_v55 = vld [vmem:[#allocation160_spill] sm:$0xff] }
 0x29d   : > { %8985 = vrot.lane.b32.xlu0 %v25061_v44, %s22279_s28  ;;  %v7157_v38 = vsel %vm7095_vm13, %v7088_v9, %v7090_v63  ;;  %v7158_v19 = vsel %vm7095_vm13, %v7090_v63, %v7092_v2 }
 0x29e   : > { %8979 = vrot.lane.b32.xlu1 %v30137_v55, %s22279_s28  ;;  %8517 = vmatprep.subr.bf16.mxu0 %v7157_v38 }
 0x29f   : > { %v8870_v42 = vpop.permute.xlu0 %8869 }
 0x2a0   : > { %20679 = vmatmul.mubr.msk.bf16.vlgmr.msra.gmra.mrb[124].mxu1 %vm30138_vm12, %v25525_v48  ;;  %v7094_v51 = vpop.permute.xlu1 %7093  ;;  %vm30148_vm12 = vmmov %vm30146_vm0 }
 0x2a1   : > { %8989 = vrot.lane.b32.xlu0 %v30097_v25, %s22279_s28  ;;  %v7159_v38 = vsel %vm7095_vm13, %v7092_v2, %v7094_v51  ;;  %8592 = vmatprep.mubr.bf16.mxu1 %v29827_v52  ;;  %v8999_v51 = vsel %vm30142_vm10, %v8870_v42, %v8872_v12  ;;  %vm30152_vm10 = vmmov %vm30146_vm0 }
 0x2a2   : > { %8983 = vrot.lane.b32.xlu1 %v25053_v8, %s22279_s28  ;;  %8560 = vmatprep.subr.bf16.mxu1 %v7159_v38  ;;  %v30143_v38 = vld [vmem:[#allocation169_spill] sm:$0xff] }
 0x2a3   : > { %20678 = vmatmul.mubr.msk.bf16.vlgmr.msra.gmra.mrb[124].mxu0 %vm30139_vm11, %v25525_v48  ;;  %v8878_v14 = vpop.permute.xlu0 %8877  ;;  %8561 = vmatpush1.bf16.msra.mxu1 %v7158_v19  ;;  %vm30149_vm11 = vmmov %vm30144_vm7 }
 0x2a4   : > { %8518 = vmatpush1.bf16.msra.mxu0 %v7156_v34  ;;  %8549 = vmatprep.mubr.bf16.mxu0 %v29827_v52  ;;  %v8874_v9 = vpop.permute.xlu1 %8873 }
 0x2a5   : > { %8993 = vrot.lane.b32.xlu0 %v25154_v15, %s22279_s28  ;;  %v9000_v34 = vsel %vm30140_vm6, %v8872_v12, %v8874_v9  ;;  %v25818_v12 = vld [vmem:[%s29821_s3 + $0x18] sm:$0xff]   ;;  %vm30150_vm6 = vmmov %vm30144_vm7 }
 0x2a6   : > { %8987 = vrot.lane.b32.xlu1 %v25138_v46, %s22279_s28  ;;  %9130 = vmatprep.subr.bf16.mxu0 %v9000_v34 }
 0x2a7   : > { %v8882_v23 = vpop.permute.xlu0 %8881 }
 0x2a8   : > { %20681 = vmatmul.mubr.msk.bf16.vlgmr.msra.gmra.mrb[128].mxu1 %vm30141_vm15, %v25525_v48  ;;  %v8876_v2 = vpop.permute.xlu1 %8875  ;;  %vm30151_vm15 = vmmov %vm30146_vm0 }
 0x2a9   : > { %8997 = vrot.lane.b32.xlu0 %v30143_v38, %s22279_s28  ;;  %v9002_v19 = vsel %vm30145_vm9, %v8876_v2, %v8878_v14  ;;  %v9001_v34 = vsel %vm30146_vm0, %v8874_v9, %v8876_v2  ;;  %9205 = vmatprep.mubr.bf16.mxu1 %v29827_v52  ;;  %vm30155_vm9 = vmmov %vm30146_vm0 }
 0x2aa   : > { %8991 = vrot.lane.b32.xlu1 %v25140_v58, %s22279_s28  ;;  %9173 = vmatprep.subr.bf16.mxu1 %v9002_v19 }
 0x2ab   : > { %20680 = vmatmul.mubr.msk.bf16.vlgmr.msra.gmra.mrb[128].mxu0 %vm30144_vm7, %v25525_v48  ;;  %v8886_v63 = vpop.permute.xlu0 %8885  ;;  %9174 = vmatpush1.bf16.msra.mxu1 %v9001_v34  ;;  %vm30154_vm7 = vmmov %vm30146_vm0 }
 0x2ac   : > { %9131 = vmatpush1.bf16.msra.mxu0 %v8999_v51  ;;  %9162 = vmatprep.mubr.bf16.mxu0 %v29827_v52  ;;  %v8880_v48 = vpop.permute.xlu1 %8879  ;;  %vm30156_vm0 = vmmov %vm30150_vm6 }
 0x2ad   : > { %12291 = vrot.lane.b32.xlu0 %v24237_v61, %s22281_s29  ;;  %v9004_v51 = vsel %vm30147_vm8, %v8880_v48, %v8882_v23  ;;  %v9003_v9 = vsel %vm30148_vm12, %v8878_v14, %v8880_v48  ;;  %vm30157_vm8 = vmmov %vm30156_vm0 }
 0x2ae   : > { %8995 = vrot.lane.b32.xlu1 %v25210_v28, %s22279_s28  ;;  %9216 = vmatprep.subr.bf16.mxu0 %v9004_v51  ;;  %vm30158_vm12 = vmmov %vm30154_vm7 }
 0x2af   : > { %v8890_v42 = vpop.permute.xlu0 %8889 }
 0x2b0   : > { %20686 = vmatmul.mubr.msk.bf16.vlgmr.msra.gmra.mrb[68].mxu1 %vm30149_vm11, %v25818_v12  ;;  %v8884_v2 = vpop.permute.xlu1 %8883  ;;  %vm30159_vm11 = vmmov %vm30154_vm7 }
 0x2b1   : > { %12293 = vrot.lane.b32.xlu0 %v24246_v18, %s22281_s29  ;;  %v9006_v14 = vsel %vm30151_vm15, %v8884_v2, %v8886_v63  ;;  %v9005_v34 = vsel %vm30152_vm10, %v8882_v23, %v8884_v2  ;;  %9291 = vmatprep.mubr.bf16.mxu1 %v29827_v52  ;;  %vm30162_vm10 = vmmov %vm30156_vm0 }
 0x2b2   : > { %12289 = vrot.lane.b32.xlu1 %v24185_v4, %s22281_s29  ;;  %9259 = vmatprep.subr.bf16.mxu1 %v9006_v14 }
 0x2b3   : > { %20685 = vmatmul.mubr.msk.bf16.vlgmr.msra.gmra.mrb[68].mxu0 %vm30150_vm6, %v25818_v12  ;;  %v8894_v19 = vpop.permute.xlu0 %8893  ;;  %9260 = vmatpush1.bf16.msra.mxu1 %v9005_v34  ;;  %vm30160_vm6 = vmmov %vm30154_vm7 }
 0x2b4   : > { %9217 = vmatpush1.bf16.msra.mxu0 %v9003_v9  ;;  %9248 = vmatprep.mubr.bf16.mxu0 %v29827_v52  ;;  %v8888_v48 = vpop.permute.xlu1 %8887  ;;  %v30153_v9 = vld [vmem:[#allocation118_spill] sm:$0xff]  ;;  %vm30161_vm15 = vmmov %vm30160_vm6 }
 0x2b5   : > { %12297 = vrot.lane.b32.xlu0 %v24244_v3, %s22281_s29  ;;  %v9008_v28 = vsel %vm30154_vm7, %v8888_v48, %v8890_v42  ;;  %v9007_v58 = vsel %vm30155_vm9, %v8886_v63, %v8888_v48  ;;  %vm30163_vm7 = vmmov %vm30156_vm0 }
 0x2b6   : > { %12287 = vrot.lane.b32.xlu1 %v30153_v9, %s22281_s29  ;;  %9302 = vmatprep.subr.bf16.mxu0 %v9008_v28  ;;  %vm30164_vm9 = vmmov %vm30160_vm6 }
 0x2b7   : > { %v8898_v51 = vpop.permute.xlu0 %8897 }
 0x2b8   : > { %20688 = vmatmul.mubr.msk.bf16.vlgmr.msra.gmra.mrb[72].mxu1 %vm30156_vm0, %v25818_v12  ;;  %v8892_v23 = vpop.permute.xlu1 %8891  ;;  %vm30165_vm0 = vmmov %vm30160_vm6 }
 0x2b9   : > { %12301 = vrot.lane.b32.xlu0 %v24309_v27, %s22281_s29  ;;  %v9010_v63 = vsel %vm30158_vm12, %v8892_v23, %v8894_v19  ;;  %v9009_v28 = vsel %vm30159_vm11, %v8890_v42, %v8892_v23  ;;  %9377 = vmatprep.mubr.bf16.mxu1 %v29827_v52  ;;  %vm30167_vm12 = vmmov %vm30165_vm0 }
 0x2ba   : > { %12295 = vrot.lane.b32.xlu1 %v24239_v21, %s22281_s29  ;;  %9345 = vmatprep.subr.bf16.mxu1 %v9010_v63  ;;  %vm30168_vm11 = vmmov %vm30163_vm7 }
 0x2bb   : > { %20687 = vmatmul.mubr.msk.bf16.vlgmr.msra.gmra.mrb[72].mxu0 %vm30157_vm8, %v25818_v12  ;;  %v8902_v2 = vpop.permute.xlu0 %8901  ;;  %9346 = vmatpush1.bf16.msra.mxu1 %v9009_v28  ;;  %vm30166_vm8 = vmmov %vm30165_vm0 }
 0x2bc   : > { %9303 = vmatpush1.bf16.msra.mxu0 %v9007_v58  ;;  %9334 = vmatprep.mubr.bf16.mxu0 %v29827_v52  ;;  %v8896_v14 = vpop.permute.xlu1 %8895 }
 0x2bd   : > { %12305 = vrot.lane.b32.xlu0 %v29992_v57, %s22281_s29  ;;  %v9012_v34 = vsel %vm30160_vm6, %v8896_v14, %v8898_v51  ;;  %v9011_v48 = vsel %vm30161_vm15, %v8894_v19, %v8896_v14  ;;  %vm30169_vm6 = vmmov %vm30163_vm7 }
 0x2be   : > { %12299 = vrot.lane.b32.xlu1 %v29993_v16, %s22281_s29  ;;  %9388 = vmatprep.subr.bf16.mxu0 %v9012_v34  ;;  %vm30170_vm15 = vmmov %vm30165_vm0 }
 0x2bf   : > { %v8906_v58 = vpop.permute.xlu0 %8905 }
 0x2c0   : > { %20690 = vmatmul.mubr.msk.bf16.vlgmr.msra.gmra.mrb[76].mxu1 %vm30162_vm10, %v25818_v12  ;;  %v8900_v42 = vpop.permute.xlu1 %8899  ;;  %vm30171_vm10 = vmmov %vm30165_vm0 }
 0x2c1   : > { %12309 = vrot.lane.b32.xlu0 %v29997_v26, %s22281_s29  ;;  %v9014_v19 = vsel %vm30164_vm9, %v8900_v42, %v8902_v2  ;;  %v9013_v63 = vsel %vm30165_vm0, %v8898_v51, %v8900_v42  ;;  %9463 = vmatprep.mubr.bf16.mxu1 %v29827_v52  ;;  %vm30173_vm9 = vmmov %vm30165_vm0 }
 0x2c2   : > { %12303 = vrot.lane.b32.xlu1 %v29999_v40, %s22281_s29  ;;  %9431 = vmatprep.subr.bf16.mxu1 %v9014_v19 }
 0x2c3   : > { %20689 = vmatmul.mubr.msk.bf16.vlgmr.msra.gmra.mrb[76].mxu0 %vm30163_vm7, %v25818_v12  ;;  %v8910_v23 = vpop.permute.xlu0 %8909  ;;  %9432 = vmatpush1.bf16.msra.mxu1 %v9013_v63  ;;  %vm30172_vm7 = vmmov %vm30165_vm0 }
 0x2c4   : > { %9389 = vmatpush1.bf16.msra.mxu0 %v9011_v48  ;;  %9420 = vmatprep.mubr.bf16.mxu0 %v29827_v52  ;;  %v8904_v28 = vpop.permute.xlu1 %8903  ;;  %vm30174_vm0 = vmmov %vm30169_vm6 }
 0x2c5   : > { %12313 = vrot.lane.b32.xlu0 %v30002_v6, %s22281_s29  ;;  %v9016_v34 = vsel %vm30166_vm8, %v8904_v28, %v8906_v58  ;;  %v9015_v48 = vsel %vm30167_vm12, %v8902_v2, %v8904_v28  ;;  %vm30175_vm8 = vmmov %vm30174_vm0 }
 0x2c6   : > { %12307 = vrot.lane.b32.xlu1 %v30003_v60, %s22281_s29  ;;  %9474 = vmatprep.subr.bf16.mxu0 %v9016_v34  ;;  %vm30176_vm12 = vmmov %vm30172_vm7 }
 0x2c7   : > { %v8914_v14 = vpop.permute.xlu0 %8913 }
 0x2c8   : > { %20692 = vmatmul.mubr.msk.bf16.vlgmr.msra.gmra.mrb[80].mxu1 %vm30168_vm11, %v25818_v12  ;;  %v8908_v51 = vpop.permute.xlu1 %8907  ;;  %vm30177_vm11 = vmmov %vm30172_vm7 }
 0x2c9   : > { %12317 = vrot.lane.b32.xlu0 %v30007_v56, %s22281_s29  ;;  %v9018_v2 = vsel %vm30170_vm15, %v8908_v51, %v8910_v23  ;;  %v9017_v19 = vsel %vm30171_vm10, %v8906_v58, %v8908_v51  ;;  %9549 = vmatprep.mubr.bf16.mxu1 %v29827_v52  ;;  %vm30180_vm10 = vmmov %vm30174_vm0 }
 0x2ca   : > { %12311 = vrot.lane.b32.xlu1 %v30009_v1, %s22281_s29  ;;  %9517 = vmatprep.subr.bf16.mxu1 %v9018_v2 }
 0x2cb   : > { %20691 = vmatmul.mubr.msk.bf16.vlgmr.msra.gmra.mrb[80].mxu0 %vm30169_vm6, %v25818_v12  ;;  %v8918_v42 = vpop.permute.xlu0 %8917  ;;  %9518 = vmatpush1.bf16.msra.mxu1 %v9017_v19  ;;  %vm30178_vm6 = vmmov %vm30172_vm7 }
 0x2cc   : > { %9475 = vmatpush1.bf16.msra.mxu0 %v9015_v48  ;;  %9506 = vmatprep.mubr.bf16.mxu0 %v29827_v52  ;;  %v8912_v63 = vpop.permute.xlu1 %8911  ;;  %vm30179_vm15 = vmmov %vm30178_vm6 }
 0x2cd   : > { %12321 = vrot.lane.b32.xlu0 %v30011_v43, %s22281_s29  ;;  %v9020_v34 = vsel %vm30172_vm7, %v8912_v63, %v8914_v14  ;;  %v9019_v48 = vsel %vm30173_vm9, %v8910_v23, %v8912_v63  ;;  %vm30181_vm7 = vmmov %vm30174_vm0 }
 0x2ce   : > { %12315 = vrot.lane.b32.xlu1 %v30012_v30, %s22281_s29  ;;  %9560 = vmatprep.subr.bf16.mxu0 %v9020_v34  ;;  %vm30182_vm9 = vmmov %vm30178_vm6 }
 0x2cf   : > { %v8922_v28 = vpop.permute.xlu0 %8921 }
 0x2d0   : > { %20694 = vmatmul.mubr.msk.bf16.vlgmr.msra.gmra.mrb[84].mxu1 %vm30174_vm0, %v25818_v12  ;;  %v8916_v58 = vpop.permute.xlu1 %8915  ;;  %vm30183_vm0 = vmmov %vm30178_vm6 }
 0x2d1   : > { %12325 = vrot.lane.b32.xlu0 %v30016_v13, %s22281_s29  ;;  %v9022_v23 = vsel %vm30176_vm12, %v8916_v58, %v8918_v42  ;;  %v9021_v2 = vsel %vm30177_vm11, %v8914_v14, %v8916_v58  ;;  %9635 = vmatprep.mubr.bf16.mxu1 %v29827_v52  ;;  %vm30185_vm12 = vmmov %vm30183_vm0 }
 0x2d2   : > { %12319 = vrot.lane.b32.xlu1 %v24428_v62, %s22281_s29  ;;  %9603 = vmatprep.subr.bf16.mxu1 %v9022_v23  ;;  %vm30186_vm11 = vmmov %vm30181_vm7 }
 0x2d3   : > { %20693 = vmatmul.mubr.msk.bf16.vlgmr.msra.gmra.mrb[84].mxu0 %vm30175_vm8, %v25818_v12  ;;  %v8926_v51 = vpop.permute.xlu0 %8925  ;;  %9604 = vmatpush1.bf16.msra.mxu1 %v9021_v2  ;;  %vm30184_vm8 = vmmov %vm30183_vm0 }
 0x2d4   : > { %9561 = vmatpush1.bf16.msra.mxu0 %v9019_v48  ;;  %9592 = vmatprep.mubr.bf16.mxu0 %v29827_v52  ;;  %v8920_v19 = vpop.permute.xlu1 %8919 }
 0x2d5   : > { %12329 = vrot.lane.b32.xlu0 %v24498_v22, %s22281_s29  ;;  %v9024_v34 = vsel %vm30178_vm6, %v8920_v19, %v8922_v28  ;;  %v9023_v48 = vsel %vm30179_vm15, %v8918_v42, %v8920_v19  ;;  %vm30187_vm6 = vmmov %vm30181_vm7 }
 0x2d6   : > { %12323 = vrot.lane.b32.xlu1 %v30020_v37, %s22281_s29  ;;  %9646 = vmatprep.subr.bf16.mxu0 %v9024_v34  ;;  %vm30188_vm15 = vmmov %vm30183_vm0 }
 0x2d7   : > { %v8930_v63 = vpop.permute.xlu0 %8929 }
 0x2d8   : > { %20696 = vmatmul.mubr.msk.bf16.vlgmr.msra.gmra.mrb[88].mxu1 %vm30180_vm10, %v25818_v12  ;;  %v8924_v14 = vpop.permute.xlu1 %8923  ;;  %vm30189_vm10 = vmmov %vm30183_vm0 }
 0x2d9   : > { %12333 = vrot.lane.b32.xlu0 %v30024_v59, %s22281_s29  ;;  %v9026_v42 = vsel %vm30182_vm9, %v8924_v14, %v8926_v51  ;;  %v9025_v23 = vsel %vm30183_vm0, %v8922_v28, %v8924_v14  ;;  %9721 = vmatprep.mubr.bf16.mxu1 %v29827_v52  ;;  %vm30191_vm9 = vmmov %vm30183_vm0 }
 0x2da   : > { %12327 = vrot.lane.b32.xlu1 %v24490_v53, %s22281_s29  ;;  %9689 = vmatprep.subr.bf16.mxu1 %v9026_v42 }
 0x2db   : > { %20695 = vmatmul.mubr.msk.bf16.vlgmr.msra.gmra.mrb[88].mxu0 %vm30181_vm7, %v25818_v12  ;;  %v8934_v58 = vpop.permute.xlu0 %8933  ;;  %9690 = vmatpush1.bf16.msra.mxu1 %v9025_v23  ;;  %vm30190_vm7 = vmmov %vm30183_vm0 }
 0x2dc   : > { %9647 = vmatpush1.bf16.msra.mxu0 %v9023_v48  ;;  %9678 = vmatprep.mubr.bf16.mxu0 %v29827_v52  ;;  %v8928_v2 = vpop.permute.xlu1 %8927  ;;  %vm30192_vm0 = vmmov %vm30187_vm6 }
 0x2dd   : > { %12337 = vrot.lane.b32.xlu0 %v24561_v39, %s22281_s29  ;;  %v9028_v34 = vsel %vm30184_vm8, %v8928_v2, %v8930_v63  ;;  %v9027_v48 = vsel %vm30185_vm12, %v8926_v51, %v8928_v2  ;;  %vm30193_vm8 = vmmov %vm30192_vm0 }
 0x2de   : > { %12331 = vrot.lane.b32.xlu1 %v24551_v45, %s22281_s29  ;;  %9732 = vmatprep.subr.bf16.mxu0 %v9028_v34  ;;  %vm30194_vm12 = vmmov %vm30190_vm7 }
 0x2df   : > { %v8938_v19 = vpop.permute.xlu0 %8937 }
 0x2e0   : > { %20698 = vmatmul.mubr.msk.bf16.vlgmr.msra.gmra.mrb[92].mxu1 %vm30186_vm11, %v25818_v12  ;;  %v8932_v28 = vpop.permute.xlu1 %8931  ;;  %vm30195_vm11 = vmmov %vm30190_vm7 }
 0x2e1   : > { %12341 = vrot.lane.b32.xlu0 %v24627_v20, %s22281_s29  ;;  %v9030_v51 = vsel %vm30188_vm15, %v8932_v28, %v8934_v58  ;;  %v9029_v42 = vsel %vm30189_vm10, %v8930_v63, %v8932_v28  ;;  %9807 = vmatprep.mubr.bf16.mxu1 %v29827_v52  ;;  %vm30199_vm10 = vmmov %vm30192_vm0 }
 0x2e2   : > { %12335 = vrot.lane.b32.xlu1 %v24553_v10, %s22281_s29  ;;  %9775 = vmatprep.subr.bf16.mxu1 %v9030_v51 }
 0x2e3   : > { %20697 = vmatmul.mubr.msk.bf16.vlgmr.msra.gmra.mrb[92].mxu0 %vm30187_vm6, %v25818_v12  ;;  %v8942_v14 = vpop.permute.xlu0 %8941  ;;  %9776 = vmatpush1.bf16.msra.mxu1 %v9029_v42  ;;  %vm30197_vm6 = vmmov %vm30190_vm7 }
 0x2e4   : > { %9733 = vmatpush1.bf16.msra.mxu0 %v9027_v48  ;;  %9764 = vmatprep.mubr.bf16.mxu0 %v29827_v52  ;;  %v8936_v23 = vpop.permute.xlu1 %8935  ;;  %vm30198_vm15 = vmmov %vm30197_vm6 }
 0x2e5   : > { %12345 = vrot.lane.b32.xlu0 %v30034_v24, %s22281_s29  ;;  %v9032_v34 = vsel %vm30190_vm7, %v8936_v23, %v8938_v19  ;;  %v9031_v48 = vsel %vm30191_vm9, %v8934_v58, %v8936_v23  ;;  %vm30201_vm7 = vmmov %vm30192_vm0 }
 0x2e6   : > { %12339 = vrot.lane.b32.xlu1 %v24619_v29, %s22281_s29  ;;  %9818 = vmatprep.subr.bf16.mxu0 %v9032_v34  ;;  %v30196_v34 = vld [vmem:[#allocation144_spill] sm:$0xff]  ;;  %vm30203_vm9 = vmmov %vm30197_vm6 }
 0x2e7   : > { %v8946_v2 = vpop.permute.xlu0 %8945 }
 0x2e8   : > { %20700 = vmatmul.mubr.msk.bf16.vlgmr.msra.gmra.mrb[96].mxu1 %vm30192_vm0, %v25818_v12  ;;  %v8940_v63 = vpop.permute.xlu1 %8939  ;;  %vm30204_vm0 = vmmov %vm30197_vm6 }
 0x2e9   : > { %12349 = vrot.lane.b32.xlu0 %v24682_v0, %s22281_s29  ;;  %v9034_v58 = vsel %vm30194_vm12, %v8940_v63, %v8942_v14  ;;  %v9033_v51 = vsel %vm30195_vm11, %v8938_v19, %v8940_v63  ;;  %9893 = vmatprep.mubr.bf16.mxu1 %v29827_v52  ;;  %v30200_v19 = vld [vmem:[#allocation150_spill] sm:$0xff]  ;;  %vm30207_vm12 = vmmov %vm30204_vm0 }
 0x2ea   : > { %12343 = vrot.lane.b32.xlu1 %v24621_v5, %s22281_s29  ;;  %9861 = vmatprep.subr.bf16.mxu1 %v9034_v58  ;;  %vm30208_vm11 = vmmov %vm30201_vm7 }
 0x2eb   : > { %20699 = vmatmul.mubr.msk.bf16.vlgmr.msra.gmra.mrb[96].mxu0 %vm30193_vm8, %v25818_v12  ;;  %v8950_v28 = vpop.permute.xlu0 %8949  ;;  %9862 = vmatpush1.bf16.msra.mxu1 %v9033_v51  ;;  %v30202_v51 = vld [vmem:[#allocation145_spill] sm:$0xff]  ;;  %vm30206_vm8 = vmmov %vm30204_vm0 }
 0x2ec   : > { %9819 = vmatpush1.bf16.msra.mxu0 %v9031_v48  ;;  %9850 = vmatprep.mubr.bf16.mxu0 %v29827_v52  ;;  %v8944_v42 = vpop.permute.xlu1 %8943 }
 0x2ed   : > { %12353 = vrot.lane.b32.xlu0 %v24684_v41, %s22281_s29  ;;  %v9036_v48 = vsel %vm30197_vm6, %v8944_v42, %v8946_v2  ;;  %v9035_v5 = vsel %vm30198_vm15, %v8942_v14, %v8944_v42  ;;  %v30205_v41 = vld [vmem:[#allocation148_spill] sm:$0xff]  ;;  %vm30210_vm6 = vmmov %vm30201_vm7 }
 0x2ee   : > { %12347 = vrot.lane.b32.xlu1 %v30196_v34, %s22281_s29  ;;  %9904 = vmatprep.subr.bf16.mxu0 %v9036_v48  ;;  %vm30212_vm15 = vmmov %vm30204_vm0 }
 0x2ef   : > { %v8954_v23 = vpop.permute.xlu0 %8953 }
 0x2f0   : > { %20702 = vmatmul.mubr.msk.bf16.vlgmr.msra.gmra.mrb[100].mxu1 %vm30199_vm10, %v25818_v12  ;;  %v8948_v63 = vpop.permute.xlu1 %8947  ;;  %vm30213_vm10 = vmmov %vm30204_vm0 }
 0x2f1   : > { %12357 = vrot.lane.b32.xlu0 %v30200_v19, %s22281_s29  ;;  %v9038_v14 = vsel %vm30203_vm9, %v8948_v63, %v8950_v28  ;;  %v9037_v42 = vsel %vm30204_vm0, %v8946_v2, %v8948_v63  ;;  %9979 = vmatprep.mubr.bf16.mxu1 %v29827_v52  ;;  %v30209_v2 = vld [vmem:[#allocation155_spill] sm:$0xff]  ;;  %vm30215_vm9 = vmmov %vm30204_vm0 }
 0x2f2   : > { %12351 = vrot.lane.b32.xlu1 %v30202_v51, %s22281_s29  ;;  %9947 = vmatprep.subr.bf16.mxu1 %v9038_v14 }
 0x2f3   : > { %20701 = vmatmul.mubr.msk.bf16.vlgmr.msra.gmra.mrb[100].mxu0 %vm30201_vm7, %v25818_v12  ;;  %v8958_v58 = vpop.permute.xlu0 %8957  ;;  %9948 = vmatpush1.bf16.msra.mxu1 %v9037_v42  ;;  %v30211_v42 = vld [vmem:[#allocation149_spill] sm:$0xff]  ;;  %vm30214_vm7 = vmmov %vm30204_vm0 }
 0x2f4   : > { %9905 = vmatpush1.bf16.msra.mxu0 %v9035_v5  ;;  %9936 = vmatprep.mubr.bf16.mxu0 %v29827_v52  ;;  %v8952_v48 = vpop.permute.xlu1 %8951  ;;  %vm30216_vm0 = vmmov %vm30210_vm6 }
 0x2f5   : > { %12361 = vrot.lane.b32.xlu0 %v30049_v31, %s22281_s29  ;;  %v9040_v19 = vsel %vm30206_vm8, %v8952_v48, %v8954_v23  ;;  %v9039_v51 = vsel %vm30207_vm12, %v8950_v28, %v8952_v48  ;;  %vm30218_vm8 = vmmov %vm30216_vm0 }
 0x2f6   : > { %12355 = vrot.lane.b32.xlu1 %v30205_v41, %s22281_s29  ;;  %9990 = vmatprep.subr.bf16.mxu0 %v9040_v19  ;;  %vm30219_vm12 = vmmov %vm30214_vm7 }
 0x2f7   : > { %v8962_v5 = vpop.permute.xlu0 %8961 }
 0x2f8   : > { %20704 = vmatmul.mubr.msk.bf16.vlgmr.msra.gmra.mrb[104].mxu1 %vm30208_vm11, %v25818_v12  ;;  %v8956_v63 = vpop.permute.xlu1 %8955  ;;  %vm30220_vm11 = vmmov %vm30214_vm7 }
 0x2f9   : > { %12365 = vrot.lane.b32.xlu0 %v30209_v2, %s22281_s29  ;;  %v9042_v28 = vsel %vm30212_vm15, %v8956_v63, %v8958_v58  ;;  %v9041_v19 = vsel %vm30213_vm10, %v8954_v23, %v8956_v63  ;;  %10065 = vmatprep.mubr.bf16.mxu1 %v29827_v52  ;;  %v30217_v23 = vld [vmem:[#allocation105_spill] sm:$0xff]  ;;  %vm30223_vm10 = vmmov %vm30216_vm0 }
 0x2fa   : > { %12359 = vrot.lane.b32.xlu1 %v30211_v42, %s22281_s29  ;;  %10033 = vmatprep.subr.bf16.mxu1 %v9042_v28 }
 0x2fb   : > { %20703 = vmatmul.mubr.msk.bf16.vlgmr.msra.gmra.mrb[104].mxu0 %vm30210_vm6, %v25818_v12  ;;  %v8966_v14 = vpop.permute.xlu0 %8965  ;;  %10034 = vmatpush1.bf16.msra.mxu1 %v9041_v19  ;;  %vm30221_vm6 = vmmov %vm30214_vm7 }
 0x2fc   : > { %9991 = vmatpush1.bf16.msra.mxu0 %v9039_v51  ;;  %10022 = vmatprep.mubr.bf16.mxu0 %v29827_v52  ;;  %v8960_v48 = vpop.permute.xlu1 %8959  ;;  %vm30222_vm15 = vmmov %vm30221_vm6 }
 0x2fd   : > { %12369 = vrot.lane.b32.xlu0 %v30058_v47, %s22281_s29  ;;  %v9044_v31 = vsel %vm30214_vm7, %v8960_v48, %v8962_v5  ;;  %v9043_v42 = vsel %vm30215_vm9, %v8958_v58, %v8960_v48  ;;  %vm30225_vm7 = vmmov %vm30216_vm0 }
 0x2fe   : > { %12363 = vrot.lane.b32.xlu1 %v30124_v11, %s22281_s29  ;;  %10076 = vmatprep.subr.bf16.mxu0 %v9044_v31  ;;  %vm30227_vm9 = vmmov %vm30221_vm6 }
 0x2ff   : > { %v8970_v51 = vpop.permute.xlu0 %8969 }
 0x300   : > { %20706 = vmatmul.mubr.msk.bf16.vlgmr.msra.gmra.mrb[108].mxu1 %vm30216_vm0, %v25818_v12  ;;  %v8964_v63 = vpop.permute.xlu1 %8963  ;;  %vm30228_vm0 = vmmov %vm30221_vm6 }
 0x301   : > { %12373 = vrot.lane.b32.xlu0 %v30217_v23, %s22281_s29  ;;  %v9046_v58 = vsel %vm30219_vm12, %v8964_v63, %v8966_v14  ;;  %v9045_v31 = vsel %vm30220_vm11, %v8962_v5, %v8964_v63  ;;  %10151 = vmatprep.mubr.bf16.mxu1 %v29827_v52  ;;  %v30224_v5 = vld [vmem:[#allocation108_spill] sm:$0xff]  ;;  %vm30230_vm12 = vmmov %vm30228_vm0 }
 0x302   : > { %12367 = vrot.lane.b32.xlu1 %v30128_v32, %s22281_s29  ;;  %10119 = vmatprep.subr.bf16.mxu1 %v9046_v58  ;;  %vm30231_vm11 = vmmov %vm30225_vm7 }
 0x303   : > { %20705 = vmatmul.mubr.msk.bf16.vlgmr.msra.gmra.mrb[108].mxu0 %vm30218_vm8, %v25818_v12  ;;  %v8974_v28 = vpop.permute.xlu0 %8973  ;;  %10120 = vmatpush1.bf16.msra.mxu1 %v9045_v31  ;;  %v30226_v31 = vld [vmem:[#allocation104_spill] sm:$0xff]  ;;  %vm30229_vm8 = vmmov %vm30228_vm0 }
 0x304   : > { %10077 = vmatpush1.bf16.msra.mxu0 %v9043_v42  ;;  %10108 = vmatprep.mubr.bf16.mxu0 %v29827_v52  ;;  %v8968_v19 = vpop.permute.xlu1 %8967 }
 0x305   : > { %12377 = vrot.lane.b32.xlu0 %v30067_v54, %s22281_s29  ;;  %v9048_v48 = vsel %vm30221_vm6, %v8968_v19, %v8970_v51  ;;  %v9047_v32 = vsel %vm30222_vm15, %v8966_v14, %v8968_v19  ;;  %vm30233_vm6 = vmmov %vm30225_vm7 }
 0x306   : > { %12371 = vrot.lane.b32.xlu1 %v30068_v50, %s22281_s29  ;;  %10162 = vmatprep.subr.bf16.mxu0 %v9048_v48  ;;  %vm30234_vm15 = vmmov %vm30228_vm0 }
 0x307   : > { %v8978_v42 = vpop.permute.xlu0 %8977 }
 0x308   : > { %20708 = vmatmul.mubr.msk.bf16.vlgmr.msra.gmra.mrb[112].mxu1 %vm30223_vm10, %v25818_v12  ;;  %v8972_v63 = vpop.permute.xlu1 %8971  ;;  %vm30235_vm10 = vmmov %vm30228_vm0 }
 0x309   : > { %12381 = vrot.lane.b32.xlu0 %v30224_v5, %s22281_s29  ;;  %v9050_v14 = vsel %vm30227_vm9, %v8972_v63, %v8974_v28  ;;  %v9049_v19 = vsel %vm30228_vm0, %v8970_v51, %v8972_v63  ;;  %10237 = vmatprep.mubr.bf16.mxu1 %v29827_v52  ;;  %v30232_v51 = vld [vmem:[#allocation158_spill] sm:$0xff]  ;;  %vm30237_vm9 = vmmov %vm30228_vm0 }
 0x30a   : > { %12375 = vrot.lane.b32.xlu1 %v30226_v31, %s22281_s29  ;;  %10205 = vmatprep.subr.bf16.mxu1 %v9050_v14 }
 0x30b   : > { %20707 = vmatmul.mubr.msk.bf16.vlgmr.msra.gmra.mrb[112].mxu0 %vm30225_vm7, %v25818_v12  ;;  %v8982_v58 = vpop.permute.xlu0 %8981  ;;  %10206 = vmatpush1.bf16.msra.mxu1 %v9049_v19  ;;  %vm30236_vm7 = vmmov %vm30228_vm0 }
 0x30c   : > { %10163 = vmatpush1.bf16.msra.mxu0 %v9047_v32  ;;  %10194 = vmatprep.mubr.bf16.mxu0 %v29827_v52  ;;  %v8976_v48 = vpop.permute.xlu1 %8975  ;;  %vm30238_vm0 = vmmov %vm30233_vm6 }
 0x30d   : > { %12385 = vrot.lane.b32.xlu0 %v24948_v49, %s22281_s29  ;;  %v9052_v54 = vsel %vm30229_vm8, %v8976_v48, %v8978_v42  ;;  %v9051_v31 = vsel %vm30230_vm12, %v8974_v28, %v8976_v48  ;;  %vm30240_vm8 = vmmov %vm30238_vm0 }
 0x30e   : > { %12379 = vrot.lane.b32.xlu1 %v24938_v36, %s22281_s29  ;;  %10248 = vmatprep.subr.bf16.mxu0 %v9052_v54  ;;  %vm30241_vm12 = vmmov %vm30236_vm7 }
 0x30f   : > { %v8986_v32 = vpop.permute.xlu0 %8985 }
 0x310   : > { %20710 = vmatmul.mubr.msk.bf16.vlgmr.msra.gmra.mrb[116].mxu1 %vm30231_vm11, %v25818_v12  ;;  %v8980_v63 = vpop.permute.xlu1 %8979  ;;  %vm30242_vm11 = vmmov %vm30236_vm7 }
 0x311   : > { %12389 = vrot.lane.b32.xlu0 %v30232_v51, %s22281_s29  ;;  %v9054_v28 = vsel %vm30234_vm15, %v8980_v63, %v8982_v58  ;;  %v9053_v54 = vsel %vm30235_vm10, %v8978_v42, %v8980_v63  ;;  %10323 = vmatprep.mubr.bf16.mxu1 %v29827_v52  ;;  %v30239_v42 = vld [vmem:[#allocation161_spill] sm:$0xff]  ;;  %vm30245_vm10 = vmmov %vm30238_vm0 }
 0x312   : > { %12383 = vrot.lane.b32.xlu1 %v30135_v7, %s22281_s29  ;;  %10291 = vmatprep.subr.bf16.mxu1 %v9054_v28 }
 0x313   : > { %20709 = vmatmul.mubr.msk.bf16.vlgmr.msra.gmra.mrb[116].mxu0 %vm30233_vm6, %v25818_v12  ;;  %v8990_v14 = vpop.permute.xlu0 %8989  ;;  %10292 = vmatpush1.bf16.msra.mxu1 %v9053_v54  ;;  %vm30243_vm6 = vmmov %vm30236_vm7 }
 0x314   : > { %10249 = vmatpush1.bf16.msra.mxu0 %v9051_v31  ;;  %10280 = vmatprep.mubr.bf16.mxu0 %v29827_v52  ;;  %v8984_v19 = vpop.permute.xlu1 %8983  ;;  %vm30244_vm15 = vmmov %vm30243_vm6 }
 0x315   : > { %12393 = vrot.lane.b32.xlu0 %v30083_v35, %s22281_s29  ;;  %v9056_v48 = vsel %vm30236_vm7, %v8984_v19, %v8986_v32  ;;  %v9055_v7 = vsel %vm30237_vm9, %v8982_v58, %v8984_v19  ;;  %vm30246_vm7 = vmmov %vm30238_vm0 }
 0x316   : > { %12387 = vrot.lane.b32.xlu1 %v24998_v33, %s22281_s29  ;;  %10334 = vmatprep.subr.bf16.mxu0 %v9056_v48  ;;  %vm30247_vm9 = vmmov %vm30243_vm6 }
 0x317   : > { %v8994_v31 = vpop.permute.xlu0 %8993 }
 0x318   : > { %20712 = vmatmul.mubr.msk.bf16.vlgmr.msra.gmra.mrb[120].mxu1 %vm30238_vm0, %v25818_v12  ;;  %v8988_v63 = vpop.permute.xlu1 %8987  ;;  %vm30248_vm0 = vmmov %vm30243_vm6 }
 0x319   : > { %12397 = vrot.lane.b32.xlu0 %v30239_v42, %s22281_s29  ;;  %v9058_v58 = vsel %vm30241_vm12, %v8988_v63, %v8990_v14  ;;  %v9057_v54 = vsel %vm30242_vm11, %v8986_v32, %v8988_v63  ;;  %10409 = vmatprep.mubr.bf16.mxu1 %v29827_v52  ;;  %vm30250_vm12 = vmmov %vm30246_vm7 }
 0x31a   : > { %12391 = vrot.lane.b32.xlu1 %v25000_v17, %s22281_s29  ;;  %10377 = vmatprep.subr.bf16.mxu1 %v9058_v58  ;;  %vm30254_vm11 = vmmov %vm30246_vm7 }
 0x31b   : > { %20711 = vmatmul.mubr.msk.bf16.vlgmr.msra.gmra.mrb[120].mxu0 %vm30240_vm8, %v25818_v12  ;;  %v8998_v28 = vpop.permute.xlu0 %8997  ;;  %10378 = vmatpush1.bf16.msra.mxu1 %v9057_v54  ;;  %vm30249_vm8 = vmmov %vm30246_vm7 }
 0x31c   : > { %10335 = vmatpush1.bf16.msra.mxu0 %v9055_v7  ;;  %10366 = vmatprep.mubr.bf16.mxu0 %v29827_v52  ;;  %v8992_v19 = vpop.permute.xlu1 %8991 }
 0x31d   : > { %12401 = vrot.lane.b32.xlu0 %v25061_v44, %s22281_s29  ;;  %v9060_v48 = vsel %vm30243_vm6, %v8992_v19, %v8994_v31  ;;  %v9059_v17 = vsel %vm30244_vm15, %v8990_v14, %v8992_v19  ;;  %v30251_v19 = vld [vmem:[#allocation165_spill] sm:$0xff]  ;;  %vm30255_vm6 = vmmov %vm30246_vm7 }
 0x31e   : > { %12395 = vrot.lane.b32.xlu1 %v30137_v55, %s22281_s29  ;;  %10420 = vmatprep.subr.bf16.mxu0 %v9060_v48  ;;  %vm30258_vm15 = vmmov %vm30255_vm6 }
 0x31f   : > { %v26074_v7 = vpop.permute.xlu0 %12291 }
 0x320   : > { %20714 = vmatmul.mubr.msk.bf16.vlgmr.msra.gmra.mrb[124].mxu1 %vm30245_vm10, %v25818_v12  ;;  %v8996_v32 = vpop.permute.xlu1 %8995  ;;  %vm30259_vm10 = vmmov %vm30255_vm6 }
 0x321   : > { %12405 = vrot.lane.b32.xlu0 %v30097_v25, %s22281_s29  ;;  %v9062_v14 = vsel %vm30247_vm9, %v8996_v32, %v8998_v28  ;;  %v9061_v58 = vsel %vm30248_vm0, %v8994_v31, %v8996_v32  ;;  %10495 = vmatprep.mubr.bf16.mxu1 %v29827_v52  ;;  %v30253_v32 = vld [vmem:[#allocation167_spill] sm:$0xff]  ;;  %vm30262_vm9 = vmmov %vm30255_vm6 }
 0x322   : > { %12399 = vrot.lane.b32.xlu1 %v25053_v8, %s22281_s29  ;;  %10463 = vmatprep.subr.bf16.mxu1 %v9062_v14  ;;  %vm30263_vm0 = vmmov %vm30255_vm6 }
 0x323   : > { %20713 = vmatmul.mubr.msk.bf16.vlgmr.msra.gmra.mrb[124].mxu0 %vm30246_vm7, %v25818_v12  ;;  %v26088_v63 = vpop.permute.xlu0 %12293  ;;  %10464 = vmatpush1.bf16.msra.mxu1 %v9061_v58  ;;  %vm30260_vm7 = vmmov %vm30255_vm6 }
 0x324   : > { %10421 = vmatpush1.bf16.msra.mxu0 %v9059_v17  ;;  %10452 = vmatprep.mubr.bf16.mxu0 %v29827_v52  ;;  %v26098_v17 = vpop.permute.xlu1 %12289 }
 0x325   : > { %10645 = vmatprep.subr.bf16.mxu0 %v24185_v4  ;;  %12409 = vrot.lane.b32.xlu0 %v25154_v15, %s22281_s29 }
 0x326   : > { %10688 = vmatprep.subr.bf16.mxu1 %v24246_v18  ;;  %12403 = vrot.lane.b32.xlu1 %v25138_v46, %s22281_s29 }
 0x327   : > { %v26100_v54 = vpop.permute.xlu0 %12297 }
 0x328   : > { %20716 = vmatmul.mubr.msk.bf16.vlgmr.msra.gmra.mrb[128].mxu1 %vm30249_vm8, %v25818_v12  ;;  %v26112_v31 = vpop.permute.xlu1 %12287  ;;  %vm30264_vm8 = vmmov %vm30263_vm0 }
 0x329   : > { %12413 = vrot.lane.b32.xlu0 %v30143_v38, %s22281_s29  ;;  %10689 = vmatpush1.bf16.msra.mxu1 %v24237_v61 }
 0x32a   : > { %10774 = vmatprep.subr.bf16.mxu1 %v24309_v27  ;;  %12407 = vrot.lane.b32.xlu1 %v30251_v19, %s22281_s29 }
 0x32b   : > { %20715 = vmatmul.mubr.msk.bf16.vlgmr.msra.gmra.mrb[128].mxu0 %vm30250_vm12, %v25818_v12  ;;  %v26116_v28 = vpop.permute.xlu0 %12301  ;;  %v26124_v12 = vld [vmem:[%s29821_s3 + $0x20] sm:$0xff]   ;;  %10720 = vmatprep.mubr.bf16.mxu1 %v29827_v52  ;;  %vm30265_vm12 = vmmov %vm30263_vm0 }
 0x32c   : > { %10646 = vmatpush1.bf16.msra.mxu0 %v30153_v9  ;;  %10677 = vmatprep.mubr.bf16.mxu0 %v29827_v52  ;;  %v26129_v9 = vpop.permute.xlu1 %12295 }
 0x32d   : > { %10731 = vmatprep.subr.bf16.mxu0 %v24244_v3  ;;  %14192 = vrot.lane.b32.xlu0 %v24237_v61, %s22279_s28  ;;  %v30256_v61 = vld [vmem:[#allocation168_spill] sm:$0xff] }
 0x32e   : > { %12411 = vrot.lane.b32.xlu1 %v30253_v32, %s22281_s29 }
 0x32f   : > { %v26131_v48 = vpop.permute.xlu0 %12305 }
 0x330   : > { %30252 = vst [vmem:[#allocation125_spill] sm:$0xff] %v26131_v48  ;;  %20721 = vmatmul.mubr.msk.bf16.vlgmr.msra.gmra.mrb[68].mxu1 %vm30254_vm11, %v26124_v12  ;;  %v26143_v14 = vpop.permute.xlu1 %12299  ;;  %vm30266_vm11 = vmmov %vm30263_vm0 }
 0x331   : > { %14190 = vrot.lane.b32.xlu0 %v24185_v4, %s22279_s28  ;;  %10775 = vmatpush1.bf16.msra.mxu1 %v29993_v16 }
 0x332   : > { %10860 = vmatprep.subr.bf16.mxu1 %v29997_v26  ;;  %12415 = vrot.lane.b32.xlu1 %v30256_v61, %s22281_s29 }
 0x333   : > { %20720 = vmatmul.mubr.msk.bf16.vlgmr.msra.gmra.mrb[68].mxu0 %vm30255_vm6, %v26124_v12  ;;  %v26147_v58 = vpop.permute.xlu0 %12309  ;;  %10806 = vmatprep.mubr.bf16.mxu1 %v29827_v52  ;;  %vm30267_vm6 = vmmov %vm30263_vm0 }
 0x334   : > { %10732 = vmatpush1.bf16.msra.mxu0 %v24239_v21  ;;  %10763 = vmatprep.mubr.bf16.mxu0 %v29827_v52  ;;  %v26155_v4 = vpop.permute.xlu1 %12303 }
 0x335   : > { %10817 = vmatprep.subr.bf16.mxu0 %v29992_v57  ;;  %14198 = vrot.lane.b32.xlu0 %v24244_v3, %s22279_s28 }
 0x336   : > { %14194 = vrot.lane.b32.xlu1 %v24246_v18, %s22279_s28 }
 0x337   : > { %v26157_v48 = vpop.permute.xlu0 %12313 }
 0x338   : > { %30257 = vst [vmem:[#allocation163_spill] sm:$0xff] %v26157_v48  ;;  %20723 = vmatmul.mubr.msk.bf16.vlgmr.msra.gmra.mrb[72].mxu1 %vm30258_vm15, %v26124_v12  ;;  %v26169_v3 = vpop.permute.xlu1 %12307  ;;  %vm30268_vm15 = vmmov %vm30263_vm0 }
 0x339   : > { %14202 = vrot.lane.b32.xlu0 %v24309_v27, %s22279_s28  ;;  %10861 = vmatpush1.bf16.msra.mxu1 %v30003_v60 }
 0x33a   : > { %10946 = vmatprep.subr.bf16.mxu1 %v30007_v56  ;;  %14196 = vrot.lane.b32.xlu1 %v24239_v21, %s22279_s28 }
 0x33b   : > { %20722 = vmatmul.mubr.msk.bf16.vlgmr.msra.gmra.mrb[72].mxu0 %vm30259_vm10, %v26124_v12  ;;  %v26173_v48 = vpop.permute.xlu0 %12317  ;;  %10892 = vmatprep.mubr.bf16.mxu1 %v29827_v52  ;;  %vm30269_vm10 = vmmov %vm30263_vm0 }
 0x33c   : > { %10818 = vmatpush1.bf16.msra.mxu0 %v29999_v40  ;;  %10849 = vmatprep.mubr.bf16.mxu0 %v29827_v52  ;;  %v26181_v27 = vpop.permute.xlu1 %12311 }
 0x33d   : > { %10903 = vmatprep.subr.bf16.mxu0 %v30002_v6  ;;  %14206 = vrot.lane.b32.xlu0 %v29992_v57, %s22279_s28 }
 0x33e   : > { %14200 = vrot.lane.b32.xlu1 %v29993_v16, %s22279_s28 }
 0x33f   : > { %v26187_v18 = vpop.permute.xlu0 %12321 }
 0x340   : > { %20725 = vmatmul.mubr.msk.bf16.vlgmr.msra.gmra.mrb[76].mxu1 %vm30260_vm7, %v26124_v12  ;;  %30261 = vst [vmem:[#allocation119_spill] sm:$0xff] %v26187_v18  ;;  %v26195_v57 = vpop.permute.xlu1 %12315  ;;  %vm30270_vm7 = vmmov %vm30263_vm0 }
 0x341   : > { %14210 = vrot.lane.b32.xlu0 %v29997_v26, %s22279_s28  ;;  %10947 = vmatpush1.bf16.msra.mxu1 %v30012_v30 }
 0x342   : > { %11032 = vmatprep.subr.bf16.mxu1 %v30016_v13  ;;  %14204 = vrot.lane.b32.xlu1 %v29999_v40, %s22279_s28 }
 0x343   : > { %20724 = vmatmul.mubr.msk.bf16.vlgmr.msra.gmra.mrb[76].mxu0 %vm30262_vm9, %v26124_v12  ;;  %10978 = vmatprep.mubr.bf16.mxu1 %v29827_v52  ;;  %v26207_v26 = vpop.permute.xlu0 %12325  ;;  %vm30275_vm9 = vmmov %vm30263_vm0 }
 0x344   : > { %10904 = vmatpush1.bf16.msra.mxu0 %v30009_v1  ;;  %10935 = vmatprep.mubr.bf16.mxu0 %v29827_v52  ;;  %v26205_v18 = vpop.permute.xlu1 %12319 }
 0x345   : > { %10989 = vmatprep.subr.bf16.mxu0 %v30011_v43  ;;  %14214 = vrot.lane.b32.xlu0 %v30002_v6, %s22279_s28 }
 0x346   : > { %14208 = vrot.lane.b32.xlu1 %v30003_v60, %s22279_s28 }
 0x347   : > { %v26226_v60 = vpop.permute.xlu0 %12329 }
 0x348   : > { %20727 = vmatmul.mubr.msk.bf16.vlgmr.msra.gmra.mrb[80].mxu1 %vm30263_vm0, %v26124_v12  ;;  %v26221_v6 = vpop.permute.xlu1 %12323 }
 0x349   : > { %14218 = vrot.lane.b32.xlu0 %v30007_v56, %s22279_s28  ;;  %11033 = vmatpush1.bf16.msra.mxu1 %v30020_v37 }
 0x34a   : > { %11118 = vmatprep.subr.bf16.mxu1 %v30024_v59  ;;  %14212 = vrot.lane.b32.xlu1 %v30009_v1, %s22279_s28 }
 0x34b   : > { %20726 = vmatmul.mubr.msk.bf16.vlgmr.msra.gmra.mrb[80].mxu0 %vm30264_vm8, %v26124_v12  ;;  %11064 = vmatprep.mubr.bf16.mxu1 %v29827_v52  ;;  %vm30278_vm8 = vmmov %vm30263_vm0 }
 0x34c   : > { %10990 = vmatpush1.bf16.msra.mxu0 %v24428_v62  ;;  %11021 = vmatprep.mubr.bf16.mxu0 %v29827_v52  ;;  %v26239_v1 = vpop.permute.xlu1 %12327 }
 0x34d   : > { %11075 = vmatprep.subr.bf16.mxu0 %v24498_v22  ;;  %14222 = vrot.lane.b32.xlu0 %v30011_v43, %s22279_s28  ;;  %v26243_v43 = vpop.permute.xlu0 %12333 }
 0x34e   : > { %14216 = vrot.lane.b32.xlu1 %v30012_v30, %s22279_s28 }
 0x350   : > { %20729 = vmatmul.mubr.msk.bf16.vlgmr.msra.gmra.mrb[84].mxu1 %vm30265_vm12, %v26124_v12  ;;  %vm30279_vm12 = vmmov %vm30263_vm0 }
 0x351   : > { %14226 = vrot.lane.b32.xlu0 %v30016_v13, %s22279_s28  ;;  %11119 = vmatpush1.bf16.msra.mxu1 %v24551_v45  ;;  %v26253_v13 = vpop.permute.xlu1 %12331  ;;  %v26259_v30 = vpop.permute.xlu0 %12337 }
 0x352   : > { %11204 = vmatprep.subr.bf16.mxu1 %v24627_v20  ;;  %14220 = vrot.lane.b32.xlu1 %v24428_v62, %s22279_s28 }
 0x353   : > { %20728 = vmatmul.mubr.msk.bf16.vlgmr.msra.gmra.mrb[84].mxu0 %vm30266_vm11, %v26124_v12  ;;  %11150 = vmatprep.mubr.bf16.mxu1 %v29827_v52  ;;  %vm30281_vm11 = vmmov %vm30263_vm0 }
 0x354   : > { %11076 = vmatpush1.bf16.msra.mxu0 %v24490_v53  ;;  %11107 = vmatprep.mubr.bf16.mxu0 %v29827_v52 }
 0x355   : > { %11161 = vmatprep.subr.bf16.mxu0 %v24561_v39  ;;  %14230 = vrot.lane.b32.xlu0 %v24498_v22, %s22279_s28  ;;  %v30273_v22 = vld [vmem:[#allocation147_spill] sm:$0xff] }
 0x356   : > { %14224 = vrot.lane.b32.xlu1 %v30020_v37, %s22279_s28  ;;  %v26277_v37 = vpop.permute.xlu0 %12341 }
 0x358   : > { %20731 = vmatmul.mubr.msk.bf16.vlgmr.msra.gmra.mrb[88].mxu1 %vm30267_vm6, %v26124_v12  ;;  %vm30282_vm6 = vmmov %vm30263_vm0 }
 0x359   : > { %14234 = vrot.lane.b32.xlu0 %v30024_v59, %s22279_s28  ;;  %11205 = vmatpush1.bf16.msra.mxu1 %v24619_v29  ;;  %v26275_v59 = vpop.permute.xlu1 %12335 }
 0x35a   : > { %11290 = vmatprep.subr.bf16.mxu1 %v24682_v0  ;;  %14228 = vrot.lane.b32.xlu1 %v24490_v53, %s22279_s28  ;;  %v30271_v53 = vld [vmem:[#allocation96_spill] sm:$0xff] }
 0x35b   : > { %20730 = vmatmul.mubr.msk.bf16.vlgmr.msra.gmra.mrb[88].mxu0 %vm30268_vm15, %v26124_v12  ;;  %11236 = vmatprep.mubr.bf16.mxu1 %v29827_v52  ;;  %vm30285_vm15 = vmmov %vm30263_vm0 }
 0x35c   : > { %11162 = vmatpush1.bf16.msra.mxu0 %v24553_v10  ;;  %11193 = vmatprep.mubr.bf16.mxu0 %v29827_v52 }
 0x35d   : > { %11247 = vmatprep.subr.bf16.mxu0 %v30034_v24  ;;  %14238 = vrot.lane.b32.xlu0 %v24561_v39, %s22279_s28  ;;  %v30272_v39 = vld [vmem:[#allocation150_spill] sm:$0xff]  ;;  %v26291_v62 = vpop.permute.xlu1 %12339 }
 0x35e   : > { %14232 = vrot.lane.b32.xlu1 %v24551_v45, %s22279_s28  ;;  %v26296_v45 = vpop.permute.xlu0 %12345 }
 0x35f   : > { %30274 = vst [vmem:[#allocation169_spill] sm:$0xff] %v26296_v45 }
 0x360   : > { %20733 = vmatmul.mubr.msk.bf16.vlgmr.msra.gmra.mrb[92].mxu1 %vm30269_vm10, %v26124_v12  ;;  %vm30286_vm10 = vmmov %vm30263_vm0 }
 0x361   : > { %14242 = vrot.lane.b32.xlu0 %v24627_v20, %s22279_s28  ;;  %11291 = vmatpush1.bf16.msra.mxu1 %v30196_v34  ;;  %v30276_v20 = vld [vmem:[#allocation145_spill] sm:$0xff] }
 0x362   : > { %11376 = vmatprep.subr.bf16.mxu1 %v30272_v39  ;;  %14236 = vrot.lane.b32.xlu1 %v24553_v10, %s22279_s28  ;;  %v26309_v10 = vpop.permute.xlu1 %12343 }
 0x363   : > { %20732 = vmatmul.mubr.msk.bf16.vlgmr.msra.gmra.mrb[92].mxu0 %vm30270_vm7, %v26124_v12  ;;  %11322 = vmatprep.mubr.bf16.mxu1 %v29827_v52  ;;  %vm30288_vm7 = vmmov %vm30263_vm0 }
 0x364   : > { %11248 = vmatpush1.bf16.msra.mxu0 %v30271_v53  ;;  %11279 = vmatprep.mubr.bf16.mxu0 %v29827_v52 }
 0x365   : > { %11333 = vmatprep.subr.bf16.mxu0 %v30273_v22  ;;  %14246 = vrot.lane.b32.xlu0 %v30034_v24, %s22279_s28  ;;  %v26313_v24 = vpop.permute.xlu0 %12349 }
 0x366   : > { %14240 = vrot.lane.b32.xlu1 %v24619_v29, %s22279_s28  ;;  %v30277_v29 = vld [vmem:[#allocation151_spill] sm:$0xff] }
 0x368   : > { %20735 = vmatmul.mubr.msk.bf16.vlgmr.msra.gmra.mrb[96].mxu1 %vm30275_vm9, %v26124_v12  ;;  %vm30289_vm9 = vmmov %vm30263_vm0 }
 0x369   : > { %14250 = vrot.lane.b32.xlu0 %v24682_v0, %s22279_s28  ;;  %11377 = vmatpush1.bf16.msra.mxu1 %v30205_v41  ;;  %v26323_v0 = vpop.permute.xlu1 %12347  ;;  %v26329_v45 = vpop.permute.xlu0 %12353 }
 0x36a   : > { %11462 = vmatprep.subr.bf16.mxu1 %v30209_v2  ;;  %14244 = vrot.lane.b32.xlu1 %v30271_v53, %s22279_s28  ;;  %v30280_v53 = vld [vmem:[#allocation149_spill] sm:$0xff] }
 0x36b   : > { %20734 = vmatmul.mubr.msk.bf16.vlgmr.msra.gmra.mrb[96].mxu0 %vm30263_vm0, %v26124_v12  ;;  %11408 = vmatprep.mubr.bf16.mxu1 %v29827_v52 }
 0x36c   : > { %11334 = vmatpush1.bf16.msra.mxu0 %v30276_v20  ;;  %11365 = vmatprep.mubr.bf16.mxu0 %v29827_v52 }
 0x36d   : > { %11419 = vmatprep.subr.bf16.mxu0 %v30277_v29  ;;  %14254 = vrot.lane.b32.xlu0 %v30273_v22, %s22279_s28 }
 0x36e   : > { %14248 = vrot.lane.b32.xlu1 %v30196_v34, %s22279_s28  ;;  %v26347_v34 = vpop.permute.xlu0 %12357 }
 0x370   : > { %20737 = vmatmul.mubr.msk.bf16.vlgmr.msra.gmra.mrb[100].mxu1 %vm30278_vm8, %v26124_v12  ;;  %vm30291_vm8 = vmmov %vm30263_vm0 }
 0x371   : > { %14258 = vrot.lane.b32.xlu0 %v30272_v39, %s22279_s28  ;;  %11463 = vmatpush1.bf16.msra.mxu1 %v30124_v11  ;;  %v26345_v39 = vpop.permute.xlu1 %12351 }
 0x372   : > { %11548 = vmatprep.subr.bf16.mxu1 %v30217_v23  ;;  %14252 = vrot.lane.b32.xlu1 %v30276_v20, %s22279_s28  ;;  %v30283_v20 = vld [vmem:[#allocation154_spill] sm:$0xff] }
 0x373   : > { %20736 = vmatmul.mubr.msk.bf16.vlgmr.msra.gmra.mrb[100].mxu0 %vm30279_vm12, %v26124_v12  ;;  %11494 = vmatprep.mubr.bf16.mxu1 %v29827_v52  ;;  %vm30293_vm12 = vmmov %vm30263_vm0 }
 0x374   : > { %11420 = vmatpush1.bf16.msra.mxu0 %v30280_v53  ;;  %11451 = vmatprep.mubr.bf16.mxu0 %v29827_v52 }
 0x375   : > { %11505 = vmatprep.subr.bf16.mxu0 %v30058_v47  ;;  %14262 = vrot.lane.b32.xlu0 %v30277_v29, %s22279_s28  ;;  %v30284_v29 = vld [vmem:[#allocation157_spill] sm:$0xff]  ;;  %v26361_v22 = vpop.permute.xlu1 %12355 }
 0x376   : > { %14256 = vrot.lane.b32.xlu1 %v30205_v41, %s22279_s28  ;;  %v26366_v41 = vpop.permute.xlu0 %12361 }
 0x378   : > { %20739 = vmatmul.mubr.msk.bf16.vlgmr.msra.gmra.mrb[104].mxu1 %vm30281_vm11, %v26124_v12  ;;  %vm30294_vm11 = vmmov %vm30263_vm0 }
 0x379   : > { %14266 = vrot.lane.b32.xlu0 %v30209_v2, %s22279_s28  ;;  %11549 = vmatpush1.bf16.msra.mxu1 %v30068_v50  ;;  %v30287_v2 = vld [vmem:[#allocation104_spill] sm:$0xff] }
 0x37a   : > { %11634 = vmatprep.subr.bf16.mxu1 %v30224_v5  ;;  %14260 = vrot.lane.b32.xlu1 %v30280_v53, %s22279_s28  ;;  %v26379_v53 = vpop.permute.xlu1 %12359 }
 0x37b   : > { %20738 = vmatmul.mubr.msk.bf16.vlgmr.msra.gmra.mrb[104].mxu0 %vm30282_vm6, %v26124_v12  ;;  %11580 = vmatprep.mubr.bf16.mxu1 %v29827_v52  ;;  %vm30295_vm6 = vmmov %vm30263_vm0 }
 0x37c   : > { %11506 = vmatpush1.bf16.msra.mxu0 %v30283_v20  ;;  %11537 = vmatprep.mubr.bf16.mxu0 %v29827_v52 }
 0x37d   : > { %11591 = vmatprep.subr.bf16.mxu0 %v30284_v29  ;;  %14270 = vrot.lane.b32.xlu0 %v30058_v47, %s22279_s28  ;;  %v26383_v47 = vpop.permute.xlu0 %12365 }
 0x37e   : > { %14264 = vrot.lane.b32.xlu1 %v30124_v11, %s22279_s28 }
 0x380   : > { %20741 = vmatmul.mubr.msk.bf16.vlgmr.msra.gmra.mrb[108].mxu1 %vm30285_vm15, %v26124_v12  ;;  %vm30296_vm15 = vmmov %vm30263_vm0 }
 0x381   : > { %14274 = vrot.lane.b32.xlu0 %v30217_v23, %s22279_s28  ;;  %11635 = vmatpush1.bf16.msra.mxu1 %v24938_v36  ;;  %v26393_v23 = vpop.permute.xlu1 %12363  ;;  %v26399_v11 = vpop.permute.xlu0 %12369 }
 0x382   : > { %11720 = vmatprep.subr.bf16.mxu1 %v30232_v51  ;;  %14268 = vrot.lane.b32.xlu1 %v30283_v20, %s22279_s28  ;;  %v30290_v20 = vld [vmem:[#allocation107_spill] sm:$0xff] }
 0x383   : > { %20740 = vmatmul.mubr.msk.bf16.vlgmr.msra.gmra.mrb[108].mxu0 %vm30286_vm10, %v26124_v12  ;;  %11666 = vmatprep.mubr.bf16.mxu1 %v29827_v52  ;;  %vm30297_vm10 = vmmov %vm30263_vm0 }
 0x384   : > { %11592 = vmatpush1.bf16.msra.mxu0 %v30287_v2  ;;  %11623 = vmatprep.mubr.bf16.mxu0 %v29827_v52 }
 0x385   : > { %11677 = vmatprep.subr.bf16.mxu0 %v24948_v49  ;;  %14278 = vrot.lane.b32.xlu0 %v30284_v29, %s22279_s28 }
 0x386   : > { %14272 = vrot.lane.b32.xlu1 %v30068_v50, %s22279_s28  ;;  %v26417_v50 = vpop.permute.xlu0 %12373 }
 0x388   : > { %20743 = vmatmul.mubr.msk.bf16.vlgmr.msra.gmra.mrb[112].mxu1 %vm30288_vm7, %v26124_v12  ;;  %vm30298_vm7 = vmmov %vm30263_vm0 }
 0x389   : > { %14282 = vrot.lane.b32.xlu0 %v30224_v5, %s22279_s28  ;;  %11721 = vmatpush1.bf16.msra.mxu1 %v24998_v33  ;;  %v26415_v5 = vpop.permute.xlu1 %12367 }
 0x38a   : > { %11806 = vmatprep.subr.bf16.mxu1 %v30239_v42  ;;  %14276 = vrot.lane.b32.xlu1 %v30287_v2, %s22279_s28  ;;  %v30292_v2 = vld [vmem:[#allocation113_spill] sm:$0xff] }
 0x38b   : > { %20742 = vmatmul.mubr.msk.bf16.vlgmr.msra.gmra.mrb[112].mxu0 %vm30289_vm9, %v26124_v12  ;;  %11752 = vmatprep.mubr.bf16.mxu1 %v29827_v52  ;;  %vm30300_vm9 = vmmov %vm30263_vm0 }
 0x38c   : > { %11678 = vmatpush1.bf16.msra.mxu0 %v30290_v20  ;;  %11709 = vmatprep.mubr.bf16.mxu0 %v29827_v52 }
 0x38d   : > { %11763 = vmatprep.subr.bf16.mxu0 %v30083_v35  ;;  %14286 = vrot.lane.b32.xlu0 %v24948_v49, %s22279_s28  ;;  %v26431_v49 = vpop.permute.xlu1 %12371 }
 0x38e   : > { %14280 = vrot.lane.b32.xlu1 %v24938_v36, %s22279_s28  ;;  %v26436_v36 = vpop.permute.xlu0 %12377 }
 0x390   : > { %20745 = vmatmul.mubr.msk.bf16.vlgmr.msra.gmra.mrb[116].mxu1 %vm30263_vm0, %v26124_v12 }
 0x391   : > { %14290 = vrot.lane.b32.xlu0 %v30232_v51, %s22279_s28  ;;  %11807 = vmatpush1.bf16.msra.mxu1 %v30137_v55 }
 0x392   : > { %11892 = vmatprep.subr.bf16.mxu1 %v30097_v25  ;;  %14284 = vrot.lane.b32.xlu1 %v30290_v20, %s22279_s28  ;;  %v26449_v20 = vpop.permute.xlu1 %12375 }
 0x393   : > { %20744 = vmatmul.mubr.msk.bf16.vlgmr.msra.gmra.mrb[116].mxu0 %vm30291_vm8, %v26124_v12  ;;  %11838 = vmatprep.mubr.bf16.mxu1 %v29827_v52  ;;  %vm30304_vm8 = vmmov %vm30263_vm0 }
 0x394   : > { %11764 = vmatpush1.bf16.msra.mxu0 %v30292_v2  ;;  %11795 = vmatprep.mubr.bf16.mxu0 %v29827_v52 }
 0x395   : > { %11849 = vmatprep.subr.bf16.mxu0 %v25061_v44  ;;  %14294 = vrot.lane.b32.xlu0 %v30083_v35, %s22279_s28  ;;  %v26453_v35 = vpop.permute.xlu0 %12381 }
 0x396   : > { %14288 = vrot.lane.b32.xlu1 %v24998_v33, %s22279_s28 }
 0x398   : > { %20747 = vmatmul.mubr.msk.bf16.vlgmr.msra.gmra.mrb[120].mxu1 %vm30293_vm12, %v26124_v12  ;;  %vm30306_vm12 = vmmov %vm30263_vm0 }
 0x399   : > { %14298 = vrot.lane.b32.xlu0 %v30239_v42, %s22279_s28  ;;  %11893 = vmatpush1.bf16.msra.mxu1 %v25138_v46  ;;  %v26463_v42 = vpop.permute.xlu1 %12379  ;;  %v26469_v33 = vpop.permute.xlu0 %12385 }
 0x39a   : > { %11978 = vmatprep.subr.bf16.mxu1 %v30143_v38  ;;  %14292 = vrot.lane.b32.xlu1 %v30292_v2, %s22279_s28 }
 0x39b   : > { %20746 = vmatmul.mubr.msk.bf16.vlgmr.msra.gmra.mrb[120].mxu0 %vm30294_vm11, %v26124_v12  ;;  %11924 = vmatprep.mubr.bf16.mxu1 %v29827_v52  ;;  %vm30310_vm11 = vmmov %vm30263_vm0 }
 0x39c   : > { %11850 = vmatpush1.bf16.msra.mxu0 %v25053_v8  ;;  %11881 = vmatprep.mubr.bf16.mxu0 %v29827_v52 }
 0x39d   : > { %11935 = vmatprep.subr.bf16.mxu0 %v25154_v15  ;;  %14302 = vrot.lane.b32.xlu0 %v25061_v44, %s22279_s28  ;;  %v12420_v44 = vsel %vm7095_vm13, %v26088_v63, %v26129_v9  ;;  %v26491_v2 = vpop.permute.xlu0 %12389 }
 0x39e   : > { %14296 = vrot.lane.b32.xlu1 %v30137_v55, %s22279_s28  ;;  %v12418_v55 = vsel %vm7095_vm13, %v26098_v17, %v26074_v7 }
 0x3a0   : > { %20749 = vmatmul.mubr.msk.bf16.vlgmr.msra.gmra.mrb[124].mxu1 %vm30295_vm6, %v26124_v12  ;;  %vm30312_vm6 = vmmov %vm30263_vm0 }
 0x3a1   : > { %14306 = vrot.lane.b32.xlu0 %v30097_v25, %s22279_s28  ;;  %11979 = vmatpush1.bf16.msra.mxu1 %v30253_v32  ;;  %v26489_v25 = vpop.permute.xlu1 %12383 }
 0x3a2   : > { %12591 = vmatprep.subr.bf16.mxu1 %v12420_v44  ;;  %14300 = vrot.lane.b32.xlu1 %v25053_v8, %s22279_s28  ;;  %v12417_v44 = vsel %vm7095_vm13, %v26112_v31, %v26098_v17  ;;  %v12422_v17 = vsel %vm7095_vm13, %v26100_v54, %v26143_v14 }
 0x3a3   : > { %20748 = vmatmul.mubr.msk.bf16.vlgmr.msra.gmra.mrb[124].mxu0 %vm30296_vm15, %v26124_v12  ;;  %12010 = vmatprep.mubr.bf16.mxu1 %v29827_v52  ;;  %vm30316_vm15 = vmmov %vm30263_vm0 }
 0x3a4   : > { %11936 = vmatpush1.bf16.msra.mxu0 %v30251_v19  ;;  %11967 = vmatprep.mubr.bf16.mxu0 %v29827_v52 }
 0x3a5   : > { %12548 = vmatprep.subr.bf16.mxu0 %v12418_v55  ;;  %14310 = vrot.lane.b32.xlu0 %v25154_v15, %s22279_s28  ;;  %v12419_v55 = vsel %vm7095_vm13, %v26074_v7, %v26088_v63  ;;  %v26513_v31 = vpop.permute.xlu1 %12387  ;;  %v26521_v7 = vld [vmem:[%s29821_s3 + $0x28] sm:$0xff]   ;;  %v26523_v63 = vpop.permute.xlu0 %12393 }
 0x3a6   : > { %14304 = vrot.lane.b32.xlu1 %v25138_v46, %s22279_s28  ;;  %v12424_v46 = vsel %vm7095_vm13, %v26116_v28, %v26155_v4 }
 0x3a8   : > { %20751 = vmatmul.mubr.msk.bf16.vlgmr.msra.gmra.mrb[128].mxu1 %vm30297_vm10, %v26124_v12  ;;  %vm30317_vm10 = vmmov %vm30263_vm0 }
 0x3a9   : > { %14314 = vrot.lane.b32.xlu0 %v30143_v38, %s22279_s28  ;;  %12592 = vmatpush1.bf16.msra.mxu1 %v12419_v55  ;;  %v26542_v55 = vpop.permute.xlu1 %12391 }
 0x3aa   : > { %12677 = vmatprep.subr.bf16.mxu1 %v12424_v46  ;;  %14308 = vrot.lane.b32.xlu1 %v30251_v19, %s22279_s28  ;;  %v12421_v46 = vsel %vm7095_vm13, %v26129_v9, %v26100_v54  ;;  %v30302_v54 = vld [vmem:[#allocation122_spill] sm:$0xff]  ;;  %v30303_v9 = vld [vmem:[#allocation123_spill] sm:$0xff] }
 0x3ab   : > { %20750 = vmatmul.mubr.msk.bf16.vlgmr.msra.gmra.mrb[128].mxu0 %vm30298_vm7, %v26124_v12  ;;  %12623 = vmatprep.mubr.bf16.mxu1 %v29827_v52  ;;  %v30299_v12 = vld [vmem:[#allocation170_spill] sm:$0xff]  ;;  %vm30321_vm7 = vmmov %vm30263_vm0 }
 0x3ac   : > { %12549 = vmatpush1.bf16.msra.mxu0 %v12417_v44  ;;  %12580 = vmatprep.mubr.bf16.mxu0 %v29827_v52  ;;  %v12423_v44 = vsel %vm7095_vm13, %v26143_v14, %v26116_v28 }
 0x3ad   : > { %12634 = vmatprep.subr.bf16.mxu0 %v12422_v17  ;;  %14318 = vrot.lane.b32.xlu0 %v30299_v12, %s22279_s28  ;;  %v12428_v17 = vsel %vm7095_vm13, %v26147_v58, %v26181_v27  ;;  %v26550_v12 = vpop.permute.xlu0 %12397  ;;  %v26558_v28 = vpop.permute.xlu1 %12395 }
 0x3ae   : > { %14312 = vrot.lane.b32.xlu1 %v30253_v32, %s22279_s28 }
 0x3b0   : > { %20756 = vmatmul.mubr.msk.bf16.vlgmr.msra.gmra.mrb[68].mxu1 %vm30300_vm9, %v26521_v7  ;;  %vm30323_vm9 = vmmov %vm30263_vm0 }
 0x3b1   : > { %17612 = vrot.lane.b32.xlu0 %v24239_v21, %s22281_s29  ;;  %12678 = vmatpush1.bf16.msra.mxu1 %v12423_v44  ;;  %v30301_v21 = vld [vmem:[#allocation125_spill] sm:$0xff]  ;;  %v26564_v14 = vpop.permute.xlu0 %12401  ;;  %v12427_v44 = vsel %vm7095_vm13, %v26169_v3, %v26147_v58 }
 0x3b2   : > { %v12426_v32 = vsel %vm7095_vm13, %v30301_v21, %v26169_v3  ;;  %12763 = vmatprep.subr.bf16.mxu1 %v12428_v17  ;;  %14316 = vrot.lane.b32.xlu1 %v30256_v61, %s22279_s28  ;;  %v12432_v17 = vsel %vm7095_vm13, %v26173_v48, %v26205_v18  ;;  %v26588_v3 = vpop.permute.xlu1 %12399 }
 0x3b3   : > { %20755 = vmatmul.mubr.msk.bf16.vlgmr.msra.gmra.mrb[68].mxu0 %vm30263_vm0, %v26521_v7  ;;  %12709 = vmatprep.mubr.bf16.mxu1 %v29827_v52 }
 0x3b4   : > { %12635 = vmatpush1.bf16.msra.mxu0 %v12421_v46  ;;  %12666 = vmatprep.mubr.bf16.mxu0 %v29827_v52  ;;  %v12425_v46 = vsel %vm7095_vm13, %v26155_v4, %v30301_v21  ;;  %v30309_v21 = vld [vmem:[#allocation127_spill] sm:$0xff]  ;;  %v30311_v4 = vld [vmem:[#allocation130_spill] sm:$0xff] }
 0x3b5   : > { %12720 = vmatprep.subr.bf16.mxu0 %v12426_v32  ;;  %17614 = vrot.lane.b32.xlu0 %v30302_v54, %s22281_s29  ;;  %v30305_v32 = vld [vmem:[#allocation126_spill] sm:$0xff]  ;;  %v30308_v54 = vld [vmem:[#allocation120_spill] sm:$0xff]  ;;  %v26590_v58 = vpop.permute.xlu0 %12405 }
 0x3b6   : > { %17610 = vrot.lane.b32.xlu1 %v30303_v9, %s22281_s29  ;;  %v30307_v9 = vld [vmem:[#allocation163_spill] sm:$0xff] }
 0x3b8   : > { %20758 = vmatmul.mubr.msk.bf16.vlgmr.msra.gmra.mrb[72].mxu1 %vm30304_vm8, %v26521_v7  ;;  %vm30328_vm8 = vmmov %vm30263_vm0 }
 0x3b9   : > { %17618 = vrot.lane.b32.xlu0 %v30305_v32, %s22281_s29  ;;  %12764 = vmatpush1.bf16.msra.mxu1 %v12427_v44  ;;  %v12430_v32 = vsel %vm7095_vm13, %v30307_v9, %v26195_v57  ;;  %v12436_v44 = vsel %vm7095_vm13, %v26207_v26, %v26239_v1 }
 0x3ba   : > { %12849 = vmatprep.subr.bf16.mxu1 %v12432_v17  ;;  %17608 = vrot.lane.b32.xlu1 %v30308_v54, %s22281_s29  ;;  %v30313_v17 = vld [vmem:[#allocation119_spill] sm:$0xff] }
 0x3bb   : > { %20757 = vmatmul.mubr.msk.bf16.vlgmr.msra.gmra.mrb[72].mxu0 %vm30306_vm12, %v26521_v7  ;;  %12795 = vmatprep.mubr.bf16.mxu1 %v29827_v52  ;;  %vm30333_vm12 = vmmov %vm30263_vm0 }
 0x3bc   : > { %12721 = vmatpush1.bf16.msra.mxu0 %v12425_v46  ;;  %12752 = vmatprep.mubr.bf16.mxu0 %v29827_v52  ;;  %v12431_v46 = vsel %vm7095_vm13, %v26195_v57, %v26173_v48  ;;  %v30314_v57 = vld [vmem:[#allocation131_spill] sm:$0xff]  ;;  %v30315_v48 = vld [vmem:[#allocation128_spill] sm:$0xff] }
 0x3bd   : > { %12806 = vmatprep.subr.bf16.mxu0 %v12430_v32  ;;  %17622 = vrot.lane.b32.xlu0 %v30309_v21, %s22281_s29  ;;  %v12429_v32 = vsel %vm7095_vm13, %v26181_v27, %v30307_v9  ;;  %v26617_v27 = vpop.permute.xlu0 %12409  ;;  %v12433_v9 = vsel %vm7095_vm13, %v26205_v18, %v30313_v17  ;;  %v30318_v18 = vld [vmem:[#allocation129_spill] sm:$0xff] }
 0x3be   : > { %17616 = vrot.lane.b32.xlu1 %v29993_v16, %s22281_s29  ;;  %v26612_v16 = vpop.permute.xlu1 %12403 }
 0x3c0   : > { %20760 = vmatmul.mubr.msk.bf16.vlgmr.msra.gmra.mrb[76].mxu1 %vm30310_vm11, %v26521_v7  ;;  %vm30335_vm11 = vmmov %vm30263_vm0 }
 0x3c1   : > { %17626 = vrot.lane.b32.xlu0 %v30311_v4, %s22281_s29  ;;  %12850 = vmatpush1.bf16.msra.mxu1 %v12431_v46  ;;  %v12434_v4 = vsel %vm7095_vm13, %v30313_v17, %v26221_v6  ;;  %v12440_v46 = vsel %vm7095_vm13, %v26243_v43, %v26275_v59  ;;  %v30320_v17 = vld [vmem:[#allocation134_spill] sm:$0xff] }
 0x3c2   : > { %12935 = vmatprep.subr.bf16.mxu1 %v12436_v44  ;;  %17620 = vrot.lane.b32.xlu1 %v29999_v40, %s22281_s29  ;;  %v12438_v44 = vsel %vm7095_vm13, %v26226_v60, %v26253_v13 }
 0x3c3   : > { %20759 = vmatmul.mubr.msk.bf16.vlgmr.msra.gmra.mrb[76].mxu0 %vm30312_vm6, %v26521_v7  ;;  %12881 = vmatprep.mubr.bf16.mxu1 %v29827_v52  ;;  %vm30339_vm6 = vmmov %vm30263_vm0 }
 0x3c4   : > { %12807 = vmatpush1.bf16.msra.mxu0 %v12429_v32  ;;  %12838 = vmatprep.mubr.bf16.mxu0 %v29827_v52  ;;  %v26636_v32 = vpop.permute.xlu1 %12407 }
 0x3c5   : > { %12892 = vmatprep.subr.bf16.mxu0 %v12434_v4  ;;  %17630 = vrot.lane.b32.xlu0 %v30314_v57, %s22281_s29  ;;  %v12435_v4 = vsel %vm7095_vm13, %v26221_v6, %v26207_v26  ;;  %v30319_v26 = vld [vmem:[#allocation137_spill] sm:$0xff] }
 0x3c6   : > { %17624 = vrot.lane.b32.xlu1 %v30315_v48, %s22281_s29 }
 0x3c8   : > { %20762 = vmatmul.mubr.msk.bf16.vlgmr.msra.gmra.mrb[80].mxu1 %vm30316_vm15, %v26521_v7  ;;  %v26652_v6 = vpop.permute.xlu1 %12411  ;;  %vm30341_vm15 = vmmov %vm30263_vm0 }
 0x3c9   : > { %17634 = vrot.lane.b32.xlu0 %v30007_v56, %s22281_s29  ;;  %12936 = vmatpush1.bf16.msra.mxu1 %v12435_v4  ;;  %v26644_v56 = vpop.permute.xlu0 %12413  ;;  %v30322_v4 = vld [vmem:[#allocation63_spill] sm:$0xff] }
 0x3ca   : > { %13021 = vmatprep.subr.bf16.mxu1 %v12440_v46  ;;  %17628 = vrot.lane.b32.xlu1 %v30318_v18, %s22281_s29  ;;  %v12437_v46 = vsel %vm7095_vm13, %v26239_v1, %v26226_v60  ;;  %v30325_v60 = vld [vmem:[#allocation140_spill] sm:$0xff] }
 0x3cb   : > { %20761 = vmatmul.mubr.msk.bf16.vlgmr.msra.gmra.mrb[80].mxu0 %vm30317_vm10, %v26521_v7  ;;  %12967 = vmatprep.mubr.bf16.mxu1 %v29827_v52  ;;  %vm30345_vm10 = vmmov %vm30263_vm0 }
 0x3cc   : > { %12893 = vmatpush1.bf16.msra.mxu0 %v12433_v9  ;;  %12924 = vmatprep.mubr.bf16.mxu0 %v29827_v52  ;;  %v26682_v1 = vpop.permute.xlu1 %12415 }
 0x3cd   : > { %12978 = vmatprep.subr.bf16.mxu0 %v12438_v44  ;;  %17638 = vrot.lane.b32.xlu0 %v30319_v26, %s22281_s29  ;;  %v26658_v9 = vpop.permute.xlu0 %14192  ;;  %v12439_v44 = vsel %vm7095_vm13, %v26253_v13, %v26243_v43  ;;  %v30324_v26 = vld [vmem:[#allocation135_spill] sm:$0xff]  ;;  %v30326_v13 = vld [vmem:[#allocation58_spill] sm:$0xff] }
 0x3ce   : > { %17632 = vrot.lane.b32.xlu1 %v30320_v17, %s22281_s29  ;;  %v12444_v17 = vsel %vm7095_vm13, %v26277_v37, %v26309_v10 }
 0x3d0   : > { %20764 = vmatmul.mubr.msk.bf16.vlgmr.msra.gmra.mrb[84].mxu1 %vm30321_vm7, %v26521_v7  ;;  %vm30347_vm7 = vmmov %vm30263_vm0 }
 0x3d1   : > { %17642 = vrot.lane.b32.xlu0 %v30322_v4, %s22281_s29  ;;  %13022 = vmatpush1.bf16.msra.mxu1 %v12439_v44  ;;  %v12442_v4 = vsel %vm7095_vm13, %v26259_v30, %v26291_v62  ;;  %v26684_v43 = vpop.permute.xlu0 %14190  ;;  %v12448_v44 = vsel %vm7095_vm13, %v26313_v24, %v26345_v39 }
 0x3d2   : > { %13107 = vmatprep.subr.bf16.mxu1 %v12444_v17  ;;  %17636 = vrot.lane.b32.xlu1 %v30324_v26, %s22281_s29  ;;  %v30327_v17 = vld [vmem:[#allocation69_spill] sm:$0xff] }
 0x3d3   : > { %20763 = vmatmul.mubr.msk.bf16.vlgmr.msra.gmra.mrb[84].mxu0 %vm30323_vm9, %v26521_v7  ;;  %13053 = vmatprep.mubr.bf16.mxu1 %v29827_v52  ;;  %vm30351_vm9 = vmmov %vm30263_vm0 }
 0x3d4   : > { %12979 = vmatpush1.bf16.msra.mxu0 %v12437_v46  ;;  %13010 = vmatprep.mubr.bf16.mxu0 %v29827_v52  ;;  %v12443_v46 = vsel %vm7095_vm13, %v26291_v62, %v26277_v37  ;;  %v30331_v37 = vld [vmem:[#allocation70_spill] sm:$0xff] }
 0x3d5   : > { %13064 = vmatprep.subr.bf16.mxu0 %v12442_v4  ;;  %17646 = vrot.lane.b32.xlu0 %v30325_v60, %s22281_s29  ;;  %v12441_v4 = vsel %vm7095_vm13, %v26275_v59, %v26259_v30  ;;  %v26706_v60 = vpop.permute.xlu1 %14194  ;;  %v30330_v30 = vld [vmem:[#allocation62_spill] sm:$0xff]  ;;  %v26711_v62 = vpop.permute.xlu0 %14198  ;;  %v30332_v59 = vld [vmem:[#allocation64_spill] sm:$0xff] }
 0x3d6   : > { %17640 = vrot.lane.b32.xlu1 %v30326_v13, %s22281_s29  ;;  %v30329_v13 = vld [vmem:[#allocation169_spill] sm:$0xff] }
 0x3d8   : > { %20766 = vmatmul.mubr.msk.bf16.vlgmr.msra.gmra.mrb[88].mxu1 %vm30263_vm0, %v26521_v7 }
 0x3d9   : > { %17650 = vrot.lane.b32.xlu0 %v30327_v17, %s22281_s29  ;;  %13108 = vmatpush1.bf16.msra.mxu1 %v12443_v46  ;;  %v12446_v17 = vsel %vm7095_vm13, %v30329_v13, %v26323_v0  ;;  %v12447_v46 = vsel %vm7095_vm13, %v26323_v0, %v26313_v24  ;;  %v30337_v0 = vld [vmem:[#allocation143_spill] sm:$0xff] }
 0x3da   : > { %13193 = vmatprep.subr.bf16.mxu1 %v12448_v44  ;;  %17644 = vrot.lane.b32.xlu1 %v30330_v30, %s22281_s29  ;;  %v26730_v44 = vpop.permute.xlu1 %14196 }
 0x3db   : > { %20765 = vmatmul.mubr.msk.bf16.vlgmr.msra.gmra.mrb[88].mxu0 %vm30328_vm8, %v26521_v7  ;;  %13139 = vmatprep.mubr.bf16.mxu1 %v29827_v52  ;;  %vm30356_vm8 = vmmov %vm30263_vm0 }
 0x3dc   : > { %13065 = vmatpush1.bf16.msra.mxu0 %v12441_v4  ;;  %13096 = vmatprep.mubr.bf16.mxu0 %v29827_v52  ;;  %v12445_v4 = vsel %vm7095_vm13, %v26309_v10, %v30329_v13  ;;  %v30336_v10 = vld [vmem:[#allocation65_spill] sm:$0xff]  ;;  %v30338_v13 = vld [vmem:[#allocation95_spill] sm:$0xff] }
 0x3dd   : > { %13150 = vmatprep.subr.bf16.mxu0 %v12446_v17  ;;  %17654 = vrot.lane.b32.xlu0 %v30331_v37, %s22281_s29  ;;  %v30334_v17 = vld [vmem:[#allocation142_spill] sm:$0xff]  ;;  %v26738_v37 = vpop.permute.xlu0 %14202 }
 0x3de   : > { %17648 = vrot.lane.b32.xlu1 %v30332_v59, %s22281_s29  ;;  %v12452_v59 = vsel %vm7095_vm13, %v26347_v34, %v26379_v53  ;;  %v26746_v24 = vpop.permute.xlu1 %14200 }
 0x3e0   : > { %20768 = vmatmul.mubr.msk.bf16.vlgmr.msra.gmra.mrb[92].mxu1 %vm30333_vm12, %v26521_v7  ;;  %vm30358_vm12 = vmmov %vm30263_vm0 }
 0x3e1   : > { %17658 = vrot.lane.b32.xlu0 %v30334_v17, %s22281_s29  ;;  %13194 = vmatpush1.bf16.msra.mxu1 %v12447_v46  ;;  %v12450_v17 = vsel %vm7095_vm13, %v26329_v45, %v26361_v22  ;;  %v12451_v46 = vsel %vm7095_vm13, %v26361_v22, %v26347_v34  ;;  %v30344_v34 = vld [vmem:[#allocation144_spill] sm:$0xff] }
 0x3e2   : > { %13279 = vmatprep.subr.bf16.mxu1 %v12452_v59  ;;  %17652 = vrot.lane.b32.xlu1 %v30336_v10, %s22281_s29  ;;  %v26752_v59 = vpop.permute.xlu0 %14206  ;;  %v26776_v22 = vpop.permute.xlu1 %14204 }
 0x3e3   : > { %20767 = vmatmul.mubr.msk.bf16.vlgmr.msra.gmra.mrb[92].mxu0 %vm30335_vm11, %v26521_v7  ;;  %13225 = vmatprep.mubr.bf16.mxu1 %v29827_v52  ;;  %vm30361_vm11 = vmmov %vm30263_vm0 }
 0x3e4   : > { %13151 = vmatpush1.bf16.msra.mxu0 %v12445_v4  ;;  %13182 = vmatprep.mubr.bf16.mxu0 %v29827_v52  ;;  %v12449_v4 = vsel %vm7095_vm13, %v26345_v39, %v26329_v45  ;;  %v30343_v45 = vld [vmem:[#allocation147_spill] sm:$0xff] }
 0x3e5   : > { %13236 = vmatprep.subr.bf16.mxu0 %v12450_v17  ;;  %17662 = vrot.lane.b32.xlu0 %v30337_v0, %s22281_s29  ;;  %v30340_v17 = vld [vmem:[#allocation146_spill] sm:$0xff]  ;;  %v30342_v0 = vld [vmem:[#allocation96_spill] sm:$0xff] }
 0x3e6   : > { %17656 = vrot.lane.b32.xlu1 %v30338_v13, %s22281_s29  ;;  %v12456_v13 = vsel %vm7095_vm13, %v26383_v47, %v26415_v5  ;;  %v26778_v39 = vpop.permute.xlu0 %14210 }
 0x3e8   : > { %20770 = vmatmul.mubr.msk.bf16.vlgmr.msra.gmra.mrb[96].mxu1 %vm30339_vm6, %v26521_v7  ;;  %vm30363_vm6 = vmmov %vm30263_vm0 }
 0x3e9   : > { %17666 = vrot.lane.b32.xlu0 %v30340_v17, %s22281_s29  ;;  %13280 = vmatpush1.bf16.msra.mxu1 %v12451_v46  ;;  %v12454_v17 = vsel %vm7095_vm13, %v26366_v41, %v26393_v23  ;;  %v12460_v46 = vsel %vm7095_vm13, %v26417_v50, %v26449_v20 }
 0x3ea   : > { %13365 = vmatprep.subr.bf16.mxu1 %v12456_v13  ;;  %17660 = vrot.lane.b32.xlu1 %v30342_v0, %s22281_s29  ;;  %v30346_v13 = vld [vmem:[#allocation150_spill] sm:$0xff] }
 0x3eb   : > { %20769 = vmatmul.mubr.msk.bf16.vlgmr.msra.gmra.mrb[96].mxu0 %vm30341_vm15, %v26521_v7  ;;  %13311 = vmatprep.mubr.bf16.mxu1 %v29827_v52  ;;  %vm30367_vm15 = vmmov %vm30263_vm0 }
 0x3ec   : > { %13237 = vmatpush1.bf16.msra.mxu0 %v12449_v4  ;;  %13268 = vmatprep.mubr.bf16.mxu0 %v29827_v52  ;;  %v12455_v4 = vsel %vm7095_vm13, %v26393_v23, %v26383_v47  ;;  %v30349_v47 = vld [vmem:[#allocation151_spill] sm:$0xff]  ;;  %v30350_v23 = vld [vmem:[#allocation148_spill] sm:$0xff] }
 0x3ed   : > { %13322 = vmatprep.subr.bf16.mxu0 %v12454_v17  ;;  %17670 = vrot.lane.b32.xlu0 %v30343_v45, %s22281_s29  ;;  %v12453_v17 = vsel %vm7095_vm13, %v26379_v53, %v26366_v41  ;;  %v30348_v53 = vld [vmem:[#allocation145_spill] sm:$0xff]  ;;  %v26805_v41 = vpop.permute.xlu0 %14214 }
 0x3ee   : > { %17664 = vrot.lane.b32.xlu1 %v30344_v34, %s22281_s29  ;;  %v26800_v34 = vpop.permute.xlu1 %14208 }
 0x3f0   : > { %20772 = vmatmul.mubr.msk.bf16.vlgmr.msra.gmra.mrb[100].mxu1 %vm30345_vm10, %v26521_v7  ;;  %vm30368_vm10 = vmmov %vm30263_vm0 }
 0x3f1   : > { %17674 = vrot.lane.b32.xlu0 %v30346_v13, %s22281_s29  ;;  %13366 = vmatpush1.bf16.msra.mxu1 %v12455_v4  ;;  %v12458_v13 = vsel %vm7095_vm13, %v26399_v11, %v26431_v49  ;;  %v12459_v4 = vsel %vm7095_vm13, %v26431_v49, %v26417_v50  ;;  %v30354_v49 = vld [vmem:[#allocation156_spill] sm:$0xff] }
 0x3f2   : > { %13451 = vmatprep.subr.bf16.mxu1 %v12460_v46  ;;  %17668 = vrot.lane.b32.xlu1 %v30348_v53, %s22281_s29  ;;  %v26824_v46 = vpop.permute.xlu1 %14212 }
 0x3f3   : > { %20771 = vmatmul.mubr.msk.bf16.vlgmr.msra.gmra.mrb[100].mxu0 %vm30347_vm7, %v26521_v7  ;;  %13397 = vmatprep.mubr.bf16.mxu1 %v29827_v52  ;;  %vm30372_vm7 = vmmov %vm30263_vm0 }
 0x3f4   : > { %13323 = vmatpush1.bf16.msra.mxu0 %v12453_v17  ;;  %13354 = vmatprep.mubr.bf16.mxu0 %v29827_v52  ;;  %v12457_v17 = vsel %vm7095_vm13, %v26415_v5, %v26399_v11  ;;  %v30353_v11 = vld [vmem:[#allocation149_spill] sm:$0xff] }
 0x3f5   : > { %13408 = vmatprep.subr.bf16.mxu0 %v12458_v13  ;;  %17678 = vrot.lane.b32.xlu0 %v30349_v47, %s22281_s29  ;;  %v30352_v13 = vld [vmem:[#allocation155_spill] sm:$0xff]  ;;  %v26832_v47 = vpop.permute.xlu0 %14218  ;;  %v30355_v5 = vld [vmem:[#allocation153_spill] sm:$0xff] }
 0x3f6   : > { %17672 = vrot.lane.b32.xlu1 %v30350_v23, %s22281_s29  ;;  %v12464_v23 = vsel %vm7095_vm13, %v26453_v35, %v26489_v25  ;;  %v26840_v50 = vpop.permute.xlu1 %14216 }
 0x3f8   : > { %20774 = vmatmul.mubr.msk.bf16.vlgmr.msra.gmra.mrb[104].mxu1 %vm30351_vm9, %v26521_v7  ;;  %vm30374_vm9 = vmmov %vm30263_vm0 }
 0x3f9   : > { %17682 = vrot.lane.b32.xlu0 %v30352_v13, %s22281_s29  ;;  %13452 = vmatpush1.bf16.msra.mxu1 %v12459_v4  ;;  %v12462_v13 = vsel %vm7095_vm13, %v26436_v36, %v26463_v42  ;;  %v12463_v4 = vsel %vm7095_vm13, %v26463_v42, %v26453_v35  ;;  %v30360_v35 = vld [vmem:[#allocation103_spill] sm:$0xff]  ;;  %v30362_v42 = vld [vmem:[#allocation108_spill] sm:$0xff] }
 0x3fa   : > { %13537 = vmatprep.subr.bf16.mxu1 %v12464_v23  ;;  %17676 = vrot.lane.b32.xlu1 %v30353_v11, %s22281_s29  ;;  %v26846_v23 = vpop.permute.xlu0 %14222 }
 0x3fb   : > { %20773 = vmatmul.mubr.msk.bf16.vlgmr.msra.gmra.mrb[104].mxu0 %vm30263_vm0, %v26521_v7  ;;  %13483 = vmatprep.mubr.bf16.mxu1 %v29827_v52 }
 0x3fc   : > { %13409 = vmatpush1.bf16.msra.mxu0 %v12457_v17  ;;  %13440 = vmatprep.mubr.bf16.mxu0 %v29827_v52  ;;  %v12461_v17 = vsel %vm7095_vm13, %v26449_v20, %v26436_v36  ;;  %v26870_v20 = vpop.permute.xlu1 %14220 }
 0x3fd   : > { %13494 = vmatprep.subr.bf16.mxu0 %v12462_v13  ;;  %17686 = vrot.lane.b32.xlu0 %v30354_v49, %s22281_s29  ;;  %v30357_v13 = vld [vmem:[#allocation105_spill] sm:$0xff]  ;;  %v30359_v49 = vld [vmem:[#allocation154_spill] sm:$0xff] }
 0x3fe   : > { %17680 = vrot.lane.b32.xlu1 %v30355_v5, %s22281_s29  ;;  %v12468_v5 = vsel %vm7095_vm13, %v26491_v2, %v26542_v55  ;;  %v26872_v36 = vpop.permute.xlu0 %14226 }
 0x400   : > { %20776 = vmatmul.mubr.msk.bf16.vlgmr.msra.gmra.mrb[108].mxu1 %vm30356_vm8, %v26521_v7  ;;  %vm30379_vm8 = vmmov %vm30263_vm0 }
 0x401   : > { %17690 = vrot.lane.b32.xlu0 %v30357_v13, %s22281_s29  ;;  %13538 = vmatpush1.bf16.msra.mxu1 %v12463_v4  ;;  %v12466_v13 = vsel %vm7095_vm13, %v26469_v33, %v26513_v31  ;;  %v12470_v4 = vsel %vm7095_vm13, %v26523_v63, %v26558_v28 }
 0x402   : > { %13623 = vmatprep.subr.bf16.mxu1 %v12468_v5  ;;  %17684 = vrot.lane.b32.xlu1 %v30359_v49, %s22281_s29  ;;  %v12465_v5 = vsel %vm7095_vm13, %v26489_v25, %v26469_v33  ;;  %v30364_v33 = vld [vmem:[#allocation104_spill] sm:$0xff]  ;;  %v26899_v25 = vpop.permute.xlu0 %14230 }
 0x403   : > { %20775 = vmatmul.mubr.msk.bf16.vlgmr.msra.gmra.mrb[108].mxu0 %vm30358_vm12, %v26521_v7  ;;  %13569 = vmatprep.mubr.bf16.mxu1 %v29827_v52  ;;  %vm30380_vm12 = vcmask 7168  }
 0x404   : > { %13495 = vmatpush1.bf16.msra.mxu0 %v12461_v17  ;;  %13526 = vmatprep.mubr.bf16.mxu0 %v29827_v52  ;;  %v12472_v17 = vsel %vm7095_vm13, %v26550_v12, %v26588_v3 }
 0x405   : > { %13580 = vmatprep.subr.bf16.mxu0 %v12466_v13  ;;  %17694 = vrot.lane.b32.xlu0 %v30284_v29, %s22281_s29  ;;  %v12467_v13 = vsel %vm7095_vm13, %v26513_v31, %v26491_v2  ;;  %v30365_v2 = vld [vmem:[#allocation109_spill] sm:$0xff]  ;;  %v30366_v31 = vld [vmem:[#allocation106_spill] sm:$0xff] }
 0x406   : > { %17688 = vrot.lane.b32.xlu1 %v30360_v35, %s22281_s29 }
 0x408   : > { %20778 = vmatmul.mubr.msk.bf16.vlgmr.msra.gmra.mrb[112].mxu1 %vm30361_vm11, %v26521_v7  ;;  %vm30381_vm11 = vmmov %vm30380_vm12 }
 0x409   : > { %17698 = vrot.lane.b32.xlu0 %v30362_v42, %s22281_s29  ;;  %13624 = vmatpush1.bf16.msra.mxu1 %v12467_v13  ;;  %v26894_v42 = vpop.permute.xlu1 %14224  ;;  %v12471_v13 = vsel %vm7095_vm13, %v26558_v28, %v26550_v12  ;;  %v30370_v12 = vld [vmem:[#allocation159_spill] sm:$0xff] }
 0x40a   : > { %13709 = vmatprep.subr.bf16.mxu1 %v12472_v17  ;;  %17692 = vrot.lane.b32.xlu1 %v30364_v33, %s22281_s29  ;;  %v30371_v28 = vld [vmem:[#allocation111_spill] sm:$0xff] }
 0x40b   : > { %20777 = vmatmul.mubr.msk.bf16.vlgmr.msra.gmra.mrb[112].mxu0 %vm30363_vm6, %v26521_v7  ;;  %13655 = vmatprep.mubr.bf16.mxu1 %v29827_v52  ;;  %vm30383_vm6 = vmmov %vm30263_vm0 }
 0x40c   : > { %13581 = vmatpush1.bf16.msra.mxu0 %v12465_v5  ;;  %13612 = vmatprep.mubr.bf16.mxu0 %v29827_v52  ;;  %v12469_v5 = vsel %vm7095_vm13, %v26542_v55, %v26523_v63  ;;  %v30369_v63 = vld [vmem:[#allocation107_spill] sm:$0xff] }
 0x40d   : > { %13666 = vmatprep.subr.bf16.mxu0 %v12470_v4  ;;  %17702 = vrot.lane.b32.xlu0 %v30365_v2, %s22281_s29  ;;  %v26918_v17 = vpop.permute.xlu1 %14228  ;;  %v12476_v4 = vsel %vm7095_vm13, %v26590_v58, %v26636_v32 }
 0x40e   : > { %17696 = vrot.lane.b32.xlu1 %v30366_v31, %s22281_s29  ;;  %v26926_v31 = vpop.permute.xlu0 %14234 }
 0x410   : > { %20780 = vmatmul.mubr.msk.bf16.vlgmr.msra.gmra.mrb[116].mxu1 %vm30367_vm15, %v26521_v7  ;;  %vm30384_vm15 = vmmov %vm30381_vm11 }
 0x411   : > { %17706 = vrot.lane.b32.xlu0 %v30232_v51, %s22281_s29  ;;  %13710 = vmatpush1.bf16.msra.mxu1 %v12471_v13  ;;  %v12474_v51 = vsel %vm7095_vm13, %v26564_v14, %v26612_v16  ;;  %v26934_v55 = vpop.permute.xlu1 %14232  ;;  %v12473_v13 = vsel %vm7095_vm13, %v26588_v3, %v26564_v14  ;;  %v30376_v14 = vld [vmem:[#allocation162_spill] sm:$0xff] }
 0x412   : > { %13795 = vmatprep.subr.bf16.mxu1 %v12476_v4  ;;  %17700 = vrot.lane.b32.xlu1 %v30369_v63, %s22281_s29  ;;  %v12475_v4 = vsel %vm7095_vm13, %v26612_v16, %v26590_v58  ;;  %v30377_v58 = vld [vmem:[#allocation160_spill] sm:$0xff] }
 0x413   : > { %20779 = vmatmul.mubr.msk.bf16.vlgmr.msra.gmra.mrb[116].mxu0 %vm30368_vm10, %v26521_v7  ;;  %13741 = vmatprep.mubr.bf16.mxu1 %v29827_v52  ;;  %vm30385_vm10 = vmmov %vm30263_vm0 }
 0x414   : > { %13667 = vmatpush1.bf16.msra.mxu0 %v12469_v5  ;;  %13698 = vmatprep.mubr.bf16.mxu0 %v29827_v52  ;;  %v26940_v5 = vpop.permute.xlu0 %14238 }
 0x415   : > { %13752 = vmatprep.subr.bf16.mxu0 %v12474_v51  ;;  %17710 = vrot.lane.b32.xlu0 %v30370_v12, %s22281_s29  ;;  %v30373_v51 = vld [vmem:[#allocation161_spill] sm:$0xff]  ;;  %v26964_v16 = vpop.permute.xlu1 %14236 }
 0x416   : > { %17704 = vrot.lane.b32.xlu1 %v30371_v28, %s22281_s29  ;;  %v12480_v28 = vsel %vm7095_vm13, %v26644_v56, %v26682_v1  ;;  %v30375_v12 = vld [vmem:[#allocation113_spill] sm:$0xff]  ;;  %v30378_v1 = vld [vmem:[#allocation166_spill] sm:$0xff] }
 0x418   : > { %20782 = vmatmul.mubr.msk.bf16.vlgmr.msra.gmra.mrb[120].mxu1 %vm30372_vm7, %v26521_v7  ;;  %v26966_v3 = vpop.permute.xlu0 %14242  ;;  %vm30386_vm7 = vmmov %vm30381_vm11 }
 0x419   : > { %17714 = vrot.lane.b32.xlu0 %v30373_v51, %s22281_s29  ;;  %13796 = vmatpush1.bf16.msra.mxu1 %v12475_v4  ;;  %v12478_v51 = vsel %vm7095_vm13, %v26617_v27, %v26652_v6  ;;  %v14321_v4 = vsel %vm30381_vm11, %v26658_v9, %v26706_v60 }
 0x41a   : > { %13881 = vmatprep.subr.bf16.mxu1 %v12480_v28  ;;  %17708 = vrot.lane.b32.xlu1 %v30375_v12, %s22281_s29  ;;  %v12477_v28 = vsel %vm7095_vm13, %v26636_v32, %v26617_v27  ;;  %v30382_v27 = vld [vmem:[#allocation164_spill] sm:$0xff]  ;;  %v14320_v32 = vsel %vm30384_vm15, %v26684_v43, %v26658_v9 }
 0x41b   : > { %20781 = vmatmul.mubr.msk.bf16.vlgmr.msra.gmra.mrb[120].mxu0 %vm30374_vm9, %v26521_v7  ;;  %13827 = vmatprep.mubr.bf16.mxu1 %v29827_v52  ;;  %vm30387_vm9 = vmmov %vm30386_vm7 }
 0x41c   : > { %13753 = vmatpush1.bf16.msra.mxu0 %v12473_v13  ;;  %13784 = vmatprep.mubr.bf16.mxu0 %v29827_v52  ;;  %v14323_v13 = vsel %vm30380_vm12, %v26730_v44, %v26711_v62  ;;  %vm30392_vm12 = vmmov %vm30383_vm6 }
 0x41d   : > { %13838 = vmatprep.subr.bf16.mxu0 %v12478_v51  ;;  %17718 = vrot.lane.b32.xlu0 %v30376_v14, %s22281_s29  ;;  %v12479_v51 = vsel %vm7095_vm13, %v26652_v6, %v26644_v56  ;;  %v26993_v56 = vpop.permute.xlu0 %14246  ;;  %v14322_v6 = vsel %vm30386_vm7, %v26706_v60, %v26730_v44  ;;  %v30389_v60 = vld [vmem:[#allocation170_spill] sm:$0xff]  ;;  %v19373_v44 = vld [vmem:[%s28896_s4] sm:$0xff] }
 0x41e   : > { %17712 = vrot.lane.b32.xlu1 %v30377_v58, %s22281_s29 }
 0x420   : > { %20784 = vmatmul.mubr.msk.bf16.vlgmr.msra.gmra.mrb[124].mxu1 %vm30263_vm0, %v26521_v7  ;;  %vm30388_vm0 = vmmov %vm30386_vm7 }
 0x421   : > { %17722 = vrot.lane.b32.xlu0 %v30378_v1, %s22281_s29  ;;  %13882 = vmatpush1.bf16.msra.mxu1 %v12479_v51  ;;  %v26988_v1 = vpop.permute.xlu1 %14240  ;;  %v14327_v51 = vsel %vm30387_vm9, %v26776_v22, %v26752_v59  ;;  %v14325_v9 = vsel %vm30388_vm0, %v26746_v24, %v26738_v37  ;;  %v27020_v43 = vpop.permute.xlu0 %14250  ;;  %vm30393_vm11 = vmmov %vm30388_vm0 }
 0x422   : > { %14494 = vmatprep.subr.bf16.mxu1 %v14323_v13  ;;  %17716 = vrot.lane.b32.xlu1 %v25053_v8, %s22281_s29  ;;  %vm30395_vm15 = vmmov %vm30388_vm0 }
 0x423   : > { %20783 = vmatmul.mubr.msk.bf16.vlgmr.msra.gmra.mrb[124].mxu0 %vm30379_vm8, %v26521_v7  ;;  %13913 = vmatprep.mubr.bf16.mxu1 %v29827_v52  ;;  %vm30391_vm8 = vmmov %vm30383_vm6 }
 0x424   : > { %13839 = vmatpush1.bf16.msra.mxu0 %v12477_v28  ;;  %13870 = vmatprep.mubr.bf16.mxu0 %v29827_v52  ;;  %vm30397_vm7 = vmmov %vm30391_vm8 }
 0x425   : > { %14451 = vmatprep.subr.bf16.mxu0 %v14321_v4  ;;  %17726 = vrot.lane.b32.xlu0 %v25154_v15, %s22281_s29  ;;  %v27012_v28 = vpop.permute.xlu1 %14244  ;;  %v30390_v4 = vld [vmem:[#allocation167_spill] sm:$0xff]  ;;  %vm30398_vm9 = vmmov %vm30388_vm0 }
 0x426   : > { %17720 = vrot.lane.b32.xlu1 %v30382_v27, %s22281_s29 }
 0x428   : > { %20786 = vmatmul.mubr.msk.bf16.vlgmr.msra.gmra.mrb[128].mxu1 %vm30383_vm6, %v26521_v7  ;;  %vm30394_vm6 = vmmov %vm30388_vm0 }
 0x429   : > { %17730 = vrot.lane.b32.xlu0 %v30143_v38, %s22281_s29  ;;  %14495 = vmatpush1.bf16.msra.mxu1 %v14322_v6  ;;  %v27036_v13 = vpop.permute.xlu1 %14248  ;;  %v14324_v6 = vsel %vm30393_vm11, %v26711_v62, %v26746_v24  ;;  %vm30402_vm11 = vmmov %vm30394_vm6 }
 0x42a   : > { %14580 = vmatprep.subr.bf16.mxu1 %v14327_v51  ;;  %17724 = vrot.lane.b32.xlu1 %v30251_v19, %s22281_s29  ;;  %v14326_v51 = vsel %vm30394_vm6, %v26738_v37, %v26776_v22  ;;  %v14330_v37 = vsel %vm30398_vm9, %v26778_v39, %v26824_v46 }
 0x42b   : > { %20785 = vmatmul.mubr.msk.bf16.vlgmr.msra.gmra.mrb[128].mxu0 %vm30385_vm10, %v26521_v7  ;;  %14526 = vmatprep.mubr.bf16.mxu1 %v29827_v52  ;;  %v27028_v7 = vld [vmem:[%s29821_s3 + $0x30] sm:$0xff]   ;;  %vm30396_vm10 = vmmov %vm30388_vm0 }
 0x42c   : > { %14452 = vmatpush1.bf16.msra.mxu0 %v14320_v32  ;;  %14483 = vmatprep.mubr.bf16.mxu0 %v29827_v52  ;;  %v27042_v32 = vpop.permute.xlu0 %14254  ;;  %vm30399_vm0 = vmmov %vm30397_vm7 }
 0x42d   : > { %14537 = vmatprep.subr.bf16.mxu0 %v14325_v9  ;;  %17734 = vrot.lane.b32.xlu0 %v30389_v60, %s22281_s29  ;;  %v14331_v9 = vsel %vm30395_vm15, %v26824_v46, %v26805_v41  ;;  %v27062_v62 = vpop.permute.xlu1 %14252 }
 0x42e   : > { %17728 = vrot.lane.b32.xlu1 %v30390_v4, %s22281_s29 }
 0x430   : > { %20791 = vmatmul.mubr.msk.bf16.vlgmr.msra.gmra.mrb[68].mxu1 %vm30391_vm8, %v27028_v7  ;;  %vm30400_vm8 = vmmov %vm30394_vm6  ;;  %v27086_v46 = vpop.permute.xlu0 %14258 }
 0x431   : > { %19377 = vperm.xlu0 %22050, %v19373_v44   ;;  %14581 = vmatpush1.bf16.msra.mxu1 %v14326_v51  ;;  %v14329_v44 = vsel %vm30396_vm10, %v26800_v34, %v26778_v39  ;;  %v14328_v24 = vsel %vm30400_vm8, %v26752_v59, %v26800_v34  ;;  %v27083_v39 = vpop.permute.xlu1 %14256  ;;  %vm30404_vm15 = vmmov %vm30400_vm8 }
 0x432   : > { %14666 = vmatprep.subr.bf16.mxu1 %v14331_v9  ;;  %17732 = vrot.lane.b32.xlu1 %v30256_v61, %s22281_s29  ;;  %v14334_v59 = vsel %vm30404_vm15, %v26832_v47, %v26870_v20  ;;  %vm30405_vm10 = vmmov %vm30399_vm0 }
 0x433   : > { %20790 = vmatmul.mubr.msk.bf16.vlgmr.msra.gmra.mrb[68].mxu0 %vm30392_vm12, %v27028_v7  ;;  %14612 = vmatprep.mubr.bf16.mxu1 %v29827_v52  ;;  %vm30401_vm12 = vmmov %vm30394_vm6 }
 0x434   : > { %14538 = vmatpush1.bf16.msra.mxu0 %v14324_v6  ;;  %14569 = vmatprep.mubr.bf16.mxu0 %v29827_v52  ;;  %v14335_v22 = vsel %vm30401_vm12, %v26870_v20, %v26846_v23  ;;  %v14333_v6 = vsel %vm30402_vm11, %v26840_v50, %v26832_v47  ;;  %vm30403_vm6 = vmmov %vm30399_vm0  ;;  %v27107_v20 = vpop.permute.xlu0 %14262 }
 0x435   : > { %14623 = vmatprep.subr.bf16.mxu0 %v14329_v44  ;;  %v27101_v9 = vpop.permute.xlu1 %14260  ;;  %vm30411_vm11 = vmmov %vm30403_vm6 }
 0x436   : > { %17736 = vrot.lane.b32.xlu1 %v29827_v52, %s22281_s29  ;;  %s28822_s29 = scalar_lea.hbm %s28902_s10, %s20956_s22 }
 0x438   : > { %20793 = vmatmul.mubr.msk.bf16.vlgmr.msra.gmra.mrb[72].mxu1 %vm30397_vm7, %v27028_v7  ;;  %vm30406_vm7 = vmmov %vm30400_vm8 }
 0x439   : > { %14667 = vmatpush1.bf16.msra.mxu1 %v14330_v37  ;;  %14698 = vmatprep.mubr.bf16.mxu1 %v29827_v52  ;;  %v14332_v34 = vsel %vm30406_vm7, %v26805_v41, %v26840_v50  ;;  %vm30407_vm9 = vmmov %vm30406_vm7  ;;  %v27110_v41 = vpop.permute.xlu1 %14264 }
 0x43a   : > { %14752 = vmatprep.subr.bf16.mxu1 %v14335_v22  ;;  %v14339_v51 = vsel %vm30407_vm9, %v26918_v17, %v26899_v25  ;;  %vm30409_vm8 = vmmov %vm30403_vm6 }
 0x43b   : > { %20792 = vmatmul.mubr.msk.bf16.vlgmr.msra.gmra.mrb[72].mxu0 %vm30399_vm0, %v27028_v7  ;;  %vm30408_vm0 = vmmov %vm30406_vm7 }
 0x43c   : > { %14624 = vmatpush1.bf16.msra.mxu0 %v14328_v24  ;;  %14655 = vmatprep.mubr.bf16.mxu0 %v29827_v52  ;;  %v14337_v47 = vsel %vm30408_vm0, %v26894_v42, %v26872_v36  ;;  %vm30410_vm12 = vmmov %vm30408_vm0  ;;  %v27125_v24 = vpop.permute.xlu0 %14266 }
 0x43d   : > { %14709 = vmatprep.subr.bf16.mxu0 %v14333_v6  ;;  %v14338_v50 = vsel %vm30410_vm12, %v26872_v36, %v26918_v17  ;;  %vm30413_vm15 = vmmov %vm30408_vm0  ;;  %v14269_v17 = vpop.permute.xlu1 %14268 }
 0x43e   : > { %v14343_v37 = vsel %vm30413_vm15, %v26964_v16, %v26940_v5  ;;  %vm30415_vm7 = vmmov %vm30409_vm8 }
 0x43f   : > { %vm30416_vm9 = vmmov %vm30408_vm0 }
 0x440   : > { %20795 = vmatmul.mubr.msk.bf16.vlgmr.msra.gmra.mrb[76].mxu1 %vm30403_vm6, %v27028_v7  ;;  %vm30412_vm6 = vmmov %vm30408_vm0 }
 0x441   : > { %14753 = vmatpush1.bf16.msra.mxu1 %v14334_v59  ;;  %14784 = vmatprep.mubr.bf16.mxu1 %v29827_v52  ;;  %v14336_v44 = vsel %vm30412_vm6, %v26846_v23, %v26894_v42  ;;  %v27132_v23 = vpop.permute.xlu0 %14270  ;;  %v14342_v42 = vsel %vm30416_vm9, %v26926_v31, %v26964_v16  ;;  %vm30419_vm12 = vmmov %vm30412_vm6 }
 0x442   : > { %14838 = vmatprep.subr.bf16.mxu1 %v14339_v51  ;;  %v14347_v6 = vsel %vm30419_vm12, %v27012_v28, %v26993_v56 }
 0x443   : > { %20794 = vmatmul.mubr.msk.bf16.vlgmr.msra.gmra.mrb[76].mxu0 %vm30405_vm10, %v27028_v7  ;;  %vm30414_vm10 = vmmov %vm30408_vm0 }
 0x444   : > { %14710 = vmatpush1.bf16.msra.mxu0 %v14332_v34  ;;  %14741 = vmatprep.mubr.bf16.mxu0 %v29827_v52  ;;  %v14341_v36 = vsel %vm30414_vm10, %v26934_v55, %v26926_v31  ;;  %vm30417_vm0 = vmmov %vm30415_vm7  ;;  %v27151_v31 = vpop.permute.xlu1 %14272 }
 0x445   : > { %14795 = vmatprep.subr.bf16.mxu0 %v14337_v47  ;;  %v14275_v16 = vpop.permute.xlu0 %14274  ;;  %vm30423_vm10 = vmmov %vm30417_vm0 }
 0x448   : > { %20797 = vmatmul.mubr.msk.bf16.vlgmr.msra.gmra.mrb[80].mxu1 %vm30409_vm8, %v27028_v7  ;;  %vm30418_vm8 = vmmov %vm30412_vm6  ;;  %v14277_v51 = vpop.permute.xlu1 %14276 }
 0x449   : > { %14839 = vmatpush1.bf16.msra.mxu1 %v14338_v50  ;;  %14870 = vmatprep.mubr.bf16.mxu1 %v29827_v52  ;;  %v14340_v22 = vsel %vm30418_vm8, %v26899_v25, %v26934_v55  ;;  %vm30422_vm15 = vmmov %vm30418_vm8 }
 0x44a   : > { %14924 = vmatprep.subr.bf16.mxu1 %v14343_v37  ;;  %v14346_v25 = vsel %vm30422_vm15, %v26966_v3, %v27012_v28 }
 0x44b   : > { %20796 = vmatmul.mubr.msk.bf16.vlgmr.msra.gmra.mrb[80].mxu0 %vm30411_vm11, %v27028_v7  ;;  %vm30420_vm11 = vmmov %vm30412_vm6 }
 0x44c   : > { %14796 = vmatpush1.bf16.msra.mxu0 %v14336_v44  ;;  %14827 = vmatprep.mubr.bf16.mxu0 %v29827_v52  ;;  %v14345_v59 = vsel %vm30420_vm11, %v26988_v1, %v26966_v3  ;;  %vm30421_vm6 = vmmov %vm30417_vm0  ;;  %v27171_v3 = vpop.permute.xlu0 %14278 }
 0x44d   : > { %14881 = vmatprep.subr.bf16.mxu0 %v14341_v36  ;;  %vm30429_vm11 = vmmov %vm30421_vm6 }
 0x450   : > { %20799 = vmatmul.mubr.msk.bf16.vlgmr.msra.gmra.mrb[84].mxu1 %vm30415_vm7, %v27028_v7  ;;  %vm30424_vm7 = vmmov %vm30418_vm8  ;;  %v14283_v44 = vpop.permute.xlu0 %14282 }
 0x451   : > { %14925 = vmatpush1.bf16.msra.mxu1 %v14342_v42  ;;  %14956 = vmatprep.mubr.bf16.mxu1 %v29827_v52  ;;  %v14344_v55 = vsel %vm30424_vm7, %v26940_v5, %v26988_v1  ;;  %vm30425_vm9 = vmmov %vm30424_vm7  ;;  %v27174_v5 = vpop.permute.xlu1 %14280 }
 0x452   : > { %15010 = vmatprep.subr.bf16.mxu1 %v14347_v6  ;;  %v14351_v34 = vsel %vm30425_vm9, %v27062_v62, %v27042_v32  ;;  %vm30427_vm8 = vmmov %vm30421_vm6 }
 0x453   : > { %20798 = vmatmul.mubr.msk.bf16.vlgmr.msra.gmra.mrb[84].mxu0 %vm30417_vm0, %v27028_v7  ;;  %vm30426_vm0 = vmmov %vm30424_vm7 }
 0x454   : > { %14882 = vmatpush1.bf16.msra.mxu0 %v14340_v22  ;;  %14913 = vmatprep.mubr.bf16.mxu0 %v29827_v52  ;;  %v14349_v47 = vsel %vm30426_vm0, %v27036_v13, %v27020_v43  ;;  %vm30428_vm12 = vmmov %vm30426_vm0 }
 0x455   : > { %14967 = vmatprep.subr.bf16.mxu0 %v14345_v59  ;;  %v14350_v1 = vsel %vm30428_vm12, %v27020_v43, %v27062_v62  ;;  %vm30431_vm15 = vmmov %vm30426_vm0  ;;  %v14285_v43 = vpop.permute.xlu1 %14284  ;;  %v14287_v62 = vpop.permute.xlu0 %14286 }
 0x456   : > { %v14355_v50 = vsel %vm30431_vm15, %v27101_v9, %v27107_v20  ;;  %vm30433_vm7 = vmmov %vm30427_vm8 }
 0x457   : > { %vm30434_vm9 = vmmov %vm30426_vm0 }
 0x458   : > { %20801 = vmatmul.mubr.msk.bf16.vlgmr.msra.gmra.mrb[88].mxu1 %vm30421_vm6, %v27028_v7  ;;  %vm30430_vm6 = vmmov %vm30426_vm0 }
 0x459   : > { %15011 = vmatpush1.bf16.msra.mxu1 %v14346_v25  ;;  %15042 = vmatprep.mubr.bf16.mxu1 %v29827_v52  ;;  %v14348_v28 = vsel %vm30430_vm6, %v26993_v56, %v27036_v13  ;;  %v14354_v56 = vsel %vm30434_vm9, %v27086_v46, %v27101_v9  ;;  %vm30437_vm12 = vmmov %vm30430_vm6  ;;  %v14291_v9 = vpop.permute.xlu0 %14290 }
 0x45a   : > { %15096 = vmatprep.subr.bf16.mxu1 %v14351_v34  ;;  %v14359_v36 = vsel %vm30437_vm12, %v14269_v17, %v27132_v23  ;;  %vm30442_vm9 = vmmov %vm30430_vm6 }
 0x45b   : > { %20800 = vmatmul.mubr.msk.bf16.vlgmr.msra.gmra.mrb[88].mxu0 %vm30423_vm10, %v27028_v7  ;;  %vm30432_vm10 = vmmov %vm30426_vm0  ;;  %v14363_v22 = vsel %vm30442_vm9, %v14277_v51, %v27171_v3 }
 0x45c   : > { %14968 = vmatpush1.bf16.msra.mxu0 %v14344_v55  ;;  %14999 = vmatprep.mubr.bf16.mxu0 %v29827_v52  ;;  %v14353_v37 = vsel %vm30432_vm10, %v27083_v39, %v27086_v46  ;;  %vm30435_vm0 = vmmov %vm30433_vm7  ;;  %v14289_v46 = vpop.permute.xlu1 %14288 }
 0x45d   : > { %15053 = vmatprep.subr.bf16.mxu0 %v14349_v47  ;;  %vm30439_vm15 = vmmov %vm30435_vm0 }
 0x45e   : > { %vm30440_vm10 = vmmov %vm30435_vm0 }
 0x45f   : > { %vm30445_vm12 = vmmov %vm30440_vm10 }
 0x460   : > { %20803 = vmatmul.mubr.msk.bf16.vlgmr.msra.gmra.mrb[92].mxu1 %vm30427_vm8, %v27028_v7  ;;  %vm30436_vm8 = vmmov %vm30430_vm6  ;;  %v14293_v6 = vpop.permute.xlu1 %14292 }
 0x461   : > { %15097 = vmatpush1.bf16.msra.mxu1 %v14350_v1  ;;  %15128 = vmatprep.mubr.bf16.mxu1 %v29827_v52  ;;  %v14352_v13 = vsel %vm30436_vm8, %v27042_v32, %v27083_v39  ;;  %v14358_v32 = vsel %vm30430_vm6, %v27125_v24, %v14269_v17  ;;  %v14295_v17 = vpop.permute.xlu0 %14294 }
 0x462   : > { %15182 = vmatprep.subr.bf16.mxu1 %v14355_v50 }
 0x463   : > { %20802 = vmatmul.mubr.msk.bf16.vlgmr.msra.gmra.mrb[92].mxu0 %vm30429_vm11, %v27028_v7  ;;  %vm30438_vm11 = vmmov %vm30430_vm6 }
 0x464   : > { %15054 = vmatpush1.bf16.msra.mxu0 %v14348_v28  ;;  %15085 = vmatprep.mubr.bf16.mxu0 %v29827_v52  ;;  %v14357_v42 = vsel %vm30438_vm11, %v27110_v41, %v27125_v24  ;;  %v14297_v25 = vpop.permute.xlu1 %14296 }
 0x465   : > { %15139 = vmatprep.subr.bf16.mxu0 %v14353_v37  ;;  %v14299_v55 = vpop.permute.xlu0 %14298 }
 0x468   : > { %20805 = vmatmul.mubr.msk.bf16.vlgmr.msra.gmra.mrb[96].mxu1 %vm30433_vm7, %v27028_v7  ;;  %vm30441_vm7 = vmmov %vm30430_vm6  ;;  %v14301_v34 = vpop.permute.xlu1 %14300 }
 0x469   : > { %15183 = vmatpush1.bf16.msra.mxu1 %v14354_v56  ;;  %15214 = vmatprep.mubr.bf16.mxu1 %v29827_v52  ;;  %v14356_v39 = vsel %vm30441_vm7, %v27107_v20, %v27110_v41 }
 0x46a   : > { %15268 = vmatprep.subr.bf16.mxu1 %v14359_v36 }
 0x46b   : > { %20804 = vmatmul.mubr.msk.bf16.vlgmr.msra.gmra.mrb[96].mxu0 %vm30435_vm0, %v27028_v7  ;;  %vm30443_vm0 = vmmov %vm30430_vm6 }
 0x46c   : > { %15140 = vmatpush1.bf16.msra.mxu0 %v14352_v13  ;;  %15171 = vmatprep.mubr.bf16.mxu0 %v29827_v52  ;;  %v14361_v24 = vsel %vm30443_vm0, %v27151_v31, %v14275_v16  ;;  %vm30444_vm8 = vmmov %vm30443_vm0  ;;  %v14305_v28 = vpop.permute.xlu1 %14304 }
 0x46d   : > { %15225 = vmatprep.subr.bf16.mxu0 %v14357_v42  ;;  %v14362_v59 = vsel %vm30444_vm8, %v14275_v16, %v14277_v51  ;;  %vm30446_vm11 = vmmov %vm30443_vm0  ;;  %v14364_v51 = vsel %vm30443_vm0, %v27171_v3, %v27174_v5 }
 0x46e   : > { %v14360_v20 = vsel %vm30446_vm11, %v27132_v23, %v27151_v31  ;;  %vm30447_vm6 = vmmov %vm30440_vm10  ;;  %v14303_v31 = vpop.permute.xlu0 %14302 }
 0x46f   : > { %vm30450_vm7 = vmmov %vm30443_vm0 }
 0x470   : > { %20807 = vmatmul.mubr.msk.bf16.vlgmr.msra.gmra.mrb[100].mxu1 %vm30439_vm15, %v27028_v7  ;;  %vm30448_vm15 = vmmov %vm30443_vm0  ;;  %v14366_v23 = vsel %vm30450_vm7, %v14283_v44, %v14285_v43  ;;  %v14309_v37 = vpop.permute.xlu1 %14308 }
 0x471   : > { %15269 = vmatpush1.bf16.msra.mxu1 %v14358_v32  ;;  %15300 = vmatprep.mubr.bf16.mxu1 %v29827_v52  ;;  %v14367_v41 = vsel %vm30448_vm15, %v14285_v43, %v14287_v62  ;;  %vm30451_vm9 = vmmov %vm30447_vm6  ;;  %v14373_v43 = vsel %vm30443_vm0, %v14297_v25, %v14299_v55 }
 0x472   : > { %15354 = vmatprep.subr.bf16.mxu1 %v14363_v22  ;;  %vm30452_vm8 = vmmov %vm30447_vm6  ;;  %v14307_v50 = vpop.permute.xlu0 %14306 }
 0x473   : > { %20806 = vmatmul.mubr.msk.bf16.vlgmr.msra.gmra.mrb[100].mxu0 %vm30440_vm10, %v27028_v7  ;;  %vm30449_vm10 = vmmov %vm30443_vm0 }
 0x474   : > { %15226 = vmatpush1.bf16.msra.mxu0 %v14356_v39  ;;  %15257 = vmatprep.mubr.bf16.mxu0 %v29827_v52  ;;  %v14365_v16 = vsel %vm30449_vm10, %v27174_v5, %v14283_v44  ;;  %vm30454_vm11 = vmmov %vm30443_vm0 }
 0x475   : > { %15311 = vmatprep.subr.bf16.mxu0 %v14361_v24  ;;  %v14369_v1 = vsel %vm30454_vm11, %v14289_v46, %v14291_v9  ;;  %vm30456_vm15 = vmmov %vm30452_vm8 }
 0x476   : > { %vm30457_vm10 = vmmov %vm30443_vm0  ;;  %v14311_v56 = vpop.permute.xlu0 %14310 }
 0x477   : > { %v14368_v3 = vsel %vm30457_vm10, %v14287_v62, %v14289_v46  ;;  %vm30458_vm7 = vmmov %vm30452_vm8  ;;  %v14313_v62 = vpop.permute.xlu1 %14312 }
 0x478   : > { %20809 = vmatmul.mubr.msk.bf16.vlgmr.msra.gmra.mrb[104].mxu1 %vm30445_vm12, %v27028_v7  ;;  %vm30453_vm12 = vmmov %vm30443_vm0 }
 0x479   : > { %15355 = vmatpush1.bf16.msra.mxu1 %v14362_v59  ;;  %15386 = vmatprep.mubr.bf16.mxu1 %v29827_v52  ;;  %v14371_v47 = vsel %vm30453_vm12, %v14293_v6, %v14295_v17  ;;  %vm30461_vm12 = vmmov %vm30458_vm7 }
 0x47a   : > { %15440 = vmatprep.subr.bf16.mxu1 %v14367_v41  ;;  %vm30462_vm11 = vmmov %vm30443_vm0  ;;  %v14315_v46 = vpop.permute.xlu0 %14314  ;;  %v30476_v41 = vld [vmem:[#allocation123_spill] sm:$0xff] }
 0x47b   : > { %20808 = vmatmul.mubr.msk.bf16.vlgmr.msra.gmra.mrb[104].mxu0 %vm30447_vm6, %v27028_v7  ;;  %vm30455_vm6 = vmmov %vm30443_vm0  ;;  %v14372_v36 = vsel %vm30462_vm11, %v14295_v17, %v14297_v25  ;;  %v14317_v32 = vpop.permute.xlu1 %14316 }
 0x47c   : > { %15312 = vmatpush1.bf16.msra.mxu0 %v14360_v20  ;;  %15343 = vmatprep.mubr.bf16.mxu0 %v29827_v52  ;;  %v14370_v44 = vsel %vm30455_vm6, %v14291_v9, %v14293_v6  ;;  %vm30463_vm6 = vmmov %vm30458_vm7  ;;  %v14376_v6 = vsel %vm30443_vm0, %v14303_v31, %v14305_v28  ;;  %v30475_v20 = vld [vmem:[#allocation122_spill] sm:$0xff] }
 0x47d   : > { %15397 = vmatprep.subr.bf16.mxu0 %v14365_v16  ;;  %vm30465_vm10 = vmmov %vm30443_vm0  ;;  %v30480_v16 = vld [vmem:[#allocation126_spill] sm:$0xff] }
 0x47e   : > { %v14377_v9 = vsel %vm30465_vm10, %v14305_v28, %v14307_v50  ;;  %v14319_v22 = vpop.permute.xlu0 %14318  ;;  %vm30470_vm11 = vmmov %vm30443_vm0  ;;  %v30506_v28 = vld [vmem:[#allocation146_spill] sm:$0xff] }
 0x47f   : > { %v14381_v17 = vsel %vm30470_vm11, %v14313_v62, %v14315_v46  ;;  %vm30473_vm10 = vmmov %vm30443_vm0 }
 0x480   : > { %20811 = vmatmul.mubr.msk.bf16.vlgmr.msra.gmra.mrb[108].mxu1 %vm30451_vm9, %v27028_v7  ;;  %vm30459_vm9 = vmmov %vm30443_vm0  ;;  %v14380_v25 = vsel %vm30473_vm10, %v14311_v56, %v14313_v62  ;;  %v30516_v62 = vld [vmem:[#allocation155_spill] sm:$0xff] }
 0x481   : > { %15441 = vmatpush1.bf16.msra.mxu1 %v14366_v23  ;;  %15472 = vmatprep.mubr.bf16.mxu1 %v29827_v52  ;;  %v14375_v5 = vsel %vm30459_vm9, %v14301_v34, %v14303_v31  ;;  %vm30467_vm9 = vmmov %vm30463_vm6  ;;  %v30496_v23 = vld [vmem:[#allocation58_spill] sm:$0xff]  ;;  %v30498_v31 = vld [vmem:[#allocation69_spill] sm:$0xff] }
 0x482   : > { %15526 = vmatprep.subr.bf16.mxu1 %v14371_v47  ;;  %v30502_v47 = vld [vmem:[#allocation142_spill] sm:$0xff] }
 0x483   : > { %20810 = vmatmul.mubr.msk.bf16.vlgmr.msra.gmra.mrb[108].mxu0 %vm30452_vm8, %v27028_v7  ;;  %vm30460_vm8 = vmmov %vm30443_vm0 }
 0x484   : > { %15398 = vmatpush1.bf16.msra.mxu0 %v14364_v51  ;;  %15429 = vmatprep.mubr.bf16.mxu0 %v29827_v52  ;;  %v14374_v13 = vsel %vm30460_vm8, %v14299_v55, %v14301_v34  ;;  %vm30468_vm8 = vmmov %vm30463_vm6  ;;  %v30479_v55 = vld [vmem:[#allocation121_spill] sm:$0xff]  ;;  %v27304_v34 = vld [vmem:[%s29821_s3 + $0x38] sm:$0xff]  }
 0x485   : > { %15483 = vmatprep.subr.bf16.mxu0 %v14369_v1  ;;  %v30500_v51 = vld [vmem:[#allocation64_spill] sm:$0xff]  ;;  %v27356_v1 = vpop.permute.xlu1 %17610 }
 0x488   : > { %20813 = vmatmul.mubr.msk.bf16.vlgmr.msra.gmra.mrb[112].mxu1 %vm30456_vm15, %v27028_v7  ;;  %vm30464_vm15 = vmmov %vm30443_vm0 }
 0x489   : > { %15527 = vmatpush1.bf16.msra.mxu1 %v14370_v44  ;;  %15558 = vmatprep.mubr.bf16.mxu1 %v29827_v52  ;;  %v14379_v42 = vsel %vm30464_vm15, %v14309_v37, %v14311_v56  ;;  %vm30472_vm15 = vmmov %vm30468_vm8  ;;  %v27370_v44 = vpop.permute.xlu0 %17612  ;;  %v30514_v56 = vld [vmem:[#allocation148_spill] sm:$0xff] }
 0x48a   : > { %15612 = vmatprep.subr.bf16.mxu1 %v14375_v5  ;;  %v30511_v5 = vld [vmem:[#allocation150_spill] sm:$0xff] }
 0x48b   : > { %20812 = vmatmul.mubr.msk.bf16.vlgmr.msra.gmra.mrb[112].mxu0 %vm30458_vm7, %v27028_v7  ;;  %vm30466_vm7 = vmmov %vm30443_vm0 }
 0x48c   : > { %15484 = vmatpush1.bf16.msra.mxu0 %v14368_v3  ;;  %15515 = vmatprep.mubr.bf16.mxu0 %v29827_v52  ;;  %v14378_v39 = vsel %vm30466_vm7, %v14307_v50, %v14309_v37  ;;  %vm30474_vm7 = vmmov %vm30468_vm8  ;;  %v27367_v50 = vpop.permute.xlu1 %17608  ;;  %v30510_v3 = vld [vmem:[#allocation151_spill] sm:$0xff] }
 0x48d   : > { %15569 = vmatprep.subr.bf16.mxu0 %v14373_v43  ;;  %v27383_v37 = vpop.permute.xlu0 %17614 }
 0x490   : > { %20815 = vmatmul.mubr.msk.bf16.vlgmr.msra.gmra.mrb[116].mxu1 %vm30461_vm12, %v27028_v7  ;;  %vm30469_vm12 = vmmov %vm30443_vm0 }
 0x491   : > { %15613 = vmatpush1.bf16.msra.mxu1 %v14374_v13  ;;  %15644 = vmatprep.mubr.bf16.mxu1 %v29827_v52  ;;  %v14383_v24 = vsel %vm30469_vm12, %v14317_v32, %v14319_v22  ;;  %v30515_v13 = vld [vmem:[#allocation156_spill] sm:$0xff] }
 0x492   : > { %15698 = vmatprep.subr.bf16.mxu1 %v14379_v42 }
 0x493   : > { %20814 = vmatmul.mubr.msk.bf16.vlgmr.msra.gmra.mrb[116].mxu0 %vm30463_vm6, %v27028_v7  ;;  %vm30471_vm6 = vmmov %vm30443_vm0 }
 0x494   : > { %15570 = vmatpush1.bf16.msra.mxu0 %v14372_v36  ;;  %15601 = vmatprep.mubr.bf16.mxu0 %v29827_v52  ;;  %v14382_v59 = vsel %vm30471_vm6, %v14315_v46, %v14317_v32  ;;  %vm30478_vm0 = vmmov %vm30474_vm7  ;;  %v30519_v46 = vld [vmem:[#allocation105_spill] sm:$0xff] }
 0x495   : > { %15655 = vmatprep.subr.bf16.mxu0 %v14377_v9  ;;  %vm30482_vm12 = vmmov %vm30478_vm0 }
 0x496   : > { %vm30485_vm11 = vmmov %vm30478_vm0 }
 0x497   : > { %vm30486_vm6 = vmmov %vm30478_vm0 }
 0x498   : > { %20817 = vmatmul.mubr.msk.bf16.vlgmr.msra.gmra.mrb[120].mxu1 %vm30467_vm9, %v27028_v7  ;;  %vm30477_vm9 = vmmov %vm30474_vm7 }
 0x499   : > { %15699 = vmatpush1.bf16.msra.mxu1 %v14378_v39  ;;  %15730 = vmatprep.mubr.bf16.mxu1 %v29827_v52  ;;  %vm30490_vm10 = vmmov %vm30478_vm0 }
 0x49a   : > { %15784 = vmatprep.subr.bf16.mxu1 %v14383_v24  ;;  %v19374_v24 = vld [vmem:[%s28896_s4 + $0x8] sm:$0xff] }
 0x49b   : > { %20816 = vmatmul.mubr.msk.bf16.vlgmr.msra.gmra.mrb[120].mxu0 %vm30468_vm8, %v27028_v7  ;;  %vm30481_vm8 = vmmov %vm30478_vm0  ;;  %19382 = vperm.xlu1 %22051, %v19374_v24  }
 0x49c   : > { %15656 = vmatpush1.bf16.msra.mxu0 %v14376_v6  ;;  %15687 = vmatprep.mubr.bf16.mxu0 %v29827_v52  ;;  %v30527_v6 = vld [vmem:[#allocation158_spill] sm:$0xff] }
 0x49d   : > { %15741 = vmatprep.subr.bf16.mxu0 %v14381_v17 }
 0x4a0   : > { %20819 = vmatmul.mubr.msk.bf16.vlgmr.msra.gmra.mrb[124].mxu1 %vm30472_vm15, %v27028_v7  ;;  %vm30489_vm15 = vmmov %vm30478_vm0 }
 0x4a1   : > { %15785 = vmatpush1.bf16.msra.mxu1 %v14382_v59  ;;  %15816 = vmatprep.mubr.bf16.mxu1 %v29827_v52  ;;  %v30530_v59 = vld [vmem:[#allocation111_spill] sm:$0xff] }
 0x4a2   : > { %16009 = vmatprep.subr.bf16.mxu1 %v30475_v20 }
 0x4a3   : > { %20818 = vmatmul.mubr.msk.bf16.vlgmr.msra.gmra.mrb[124].mxu0 %vm30474_vm7, %v27028_v7  ;;  %vm30494_vm7 = vmmov %vm30478_vm0 }
 0x4a4   : > { %15742 = vmatpush1.bf16.msra.mxu0 %v14380_v25  ;;  %15773 = vmatprep.mubr.bf16.mxu0 %v29827_v52  ;;  %v30531_v25 = vld [vmem:[#allocation161_spill] sm:$0xff] }
 0x4a5   : > { %15966 = vmatprep.subr.bf16.mxu0 %v30476_v41 }
 0x4a8   : > { %20821 = vmatmul.mubr.msk.bf16.vlgmr.msra.gmra.mrb[128].mxu1 %vm30477_vm9, %v27028_v7  ;;  %vm30495_vm9 = vmmov %vm30478_vm0 }
 0x4a9   : > { %16010 = vmatpush1.bf16.msra.mxu1 %v30479_v55  ;;  %16041 = vmatprep.mubr.bf16.mxu1 %v29827_v52 }
 0x4aa   : > { %16095 = vmatprep.subr.bf16.mxu1 %v30309_v21  ;;  %v30484_v21 = vld [vmem:[#allocation130_spill] sm:$0xff] }
 0x4ab   : > { %20820 = vmatmul.mubr.msk.bf16.vlgmr.msra.gmra.mrb[128].mxu0 %vm30478_vm0, %v27028_v7  ;;  %v30488_v7 = vld [vmem:[#allocation136_spill] sm:$0xff] }
 0x4ac   : > { %15967 = vmatpush1.bf16.msra.mxu0 %v30308_v54  ;;  %15998 = vmatprep.mubr.bf16.mxu0 %v29827_v52  ;;  %v30483_v54 = vld [vmem:[#allocation124_spill] sm:$0xff] }
 0x4ad   : > { %16052 = vmatprep.subr.bf16.mxu0 %v30480_v16 }
 0x4b0   : > { %20826 = vmatmul.mubr.msk.bf16.vlgmr.msra.gmra.mrb[68].mxu1 %vm30481_vm8, %v27304_v34  ;;  %vm30499_vm8 = vmmov %vm30478_vm0 }
 0x4b1   : > { %16096 = vmatpush1.bf16.msra.mxu1 %v29999_v40  ;;  %16127 = vmatprep.mubr.bf16.mxu1 %v29827_v52  ;;  %v30487_v40 = vld [vmem:[#allocation137_spill] sm:$0xff] }
 0x4b2   : > { %16181 = vmatprep.subr.bf16.mxu1 %v30314_v57  ;;  %v30491_v57 = vld [vmem:[#allocation134_spill] sm:$0xff] }
 0x4b3   : > { %20825 = vmatmul.mubr.msk.bf16.vlgmr.msra.gmra.mrb[68].mxu0 %vm30482_vm12, %v27304_v34  ;;  %vm30503_vm12 = vmmov %vm30478_vm0 }
 0x4b4   : > { %16053 = vmatpush1.bf16.msra.mxu0 %v30483_v54  ;;  %16084 = vmatprep.mubr.bf16.mxu0 %v29827_v52 }
 0x4b5   : > { %16138 = vmatprep.subr.bf16.mxu0 %v30484_v21 }
 0x4b8   : > { %20828 = vmatmul.mubr.msk.bf16.vlgmr.msra.gmra.mrb[72].mxu1 %vm30485_vm11, %v27304_v34  ;;  %vm30504_vm11 = vmmov %vm30478_vm0 }
 0x4b9   : > { %16182 = vmatpush1.bf16.msra.mxu1 %v30318_v18  ;;  %16213 = vmatprep.mubr.bf16.mxu1 %v29827_v52  ;;  %v30492_v18 = vld [vmem:[#allocation140_spill] sm:$0xff] }
 0x4ba   : > { %16267 = vmatprep.subr.bf16.mxu1 %v30487_v40 }
 0x4bb   : > { %20827 = vmatmul.mubr.msk.bf16.vlgmr.msra.gmra.mrb[72].mxu0 %vm30486_vm6, %v27304_v34  ;;  %vm30507_vm6 = vmmov %vm30478_vm0 }
 0x4bc   : > { %16139 = vmatpush1.bf16.msra.mxu0 %v30315_v48  ;;  %16170 = vmatprep.mubr.bf16.mxu0 %v29827_v52  ;;  %v30493_v48 = vld [vmem:[#allocation63_spill] sm:$0xff] }
 0x4bd   : > { %16224 = vmatprep.subr.bf16.mxu0 %v30488_v7 }
 0x4c0   : > { %20830 = vmatmul.mubr.msk.bf16.vlgmr.msra.gmra.mrb[76].mxu1 %vm30489_vm15, %v27304_v34  ;;  %vm30508_vm15 = vmmov %vm30478_vm0 }
 0x4c1   : > { %16268 = vmatpush1.bf16.msra.mxu1 %v30324_v26  ;;  %16299 = vmatprep.mubr.bf16.mxu1 %v29827_v52  ;;  %v30497_v26 = vld [vmem:[#allocation70_spill] sm:$0xff] }
 0x4c2   : > { %16353 = vmatprep.subr.bf16.mxu1 %v30492_v18 }
 0x4c3   : > { %20829 = vmatmul.mubr.msk.bf16.vlgmr.msra.gmra.mrb[76].mxu0 %vm30490_vm10, %v27304_v34  ;;  %vm30512_vm10 = vmmov %vm30478_vm0 }
 0x4c4   : > { %16225 = vmatpush1.bf16.msra.mxu0 %v30491_v57  ;;  %16256 = vmatprep.mubr.bf16.mxu0 %v29827_v52 }
 0x4c5   : > { %16310 = vmatprep.subr.bf16.mxu0 %v30493_v48 }
 0x4c8   : > { %20832 = vmatmul.mubr.msk.bf16.vlgmr.msra.gmra.mrb[80].mxu1 %vm30494_vm7, %v27304_v34  ;;  %vm30513_vm7 = vmmov %vm30478_vm0 }
 0x4c9   : > { %16354 = vmatpush1.bf16.msra.mxu1 %v30330_v30  ;;  %16385 = vmatprep.mubr.bf16.mxu1 %v29827_v52  ;;  %v30501_v30 = vld [vmem:[#allocation143_spill] sm:$0xff] }
 0x4ca   : > { %16439 = vmatprep.subr.bf16.mxu1 %v30497_v26 }
 0x4cb   : > { %20831 = vmatmul.mubr.msk.bf16.vlgmr.msra.gmra.mrb[80].mxu0 %vm30495_vm9, %v27304_v34  ;;  %vm30517_vm9 = vmmov %vm30478_vm0 }
 0x4cc   : > { %16311 = vmatpush1.bf16.msra.mxu0 %v30496_v23  ;;  %16342 = vmatprep.mubr.bf16.mxu0 %v29827_v52 }
 0x4cd   : > { %16396 = vmatprep.subr.bf16.mxu0 %v30498_v31 }
 0x4d0   : > { %20834 = vmatmul.mubr.msk.bf16.vlgmr.msra.gmra.mrb[84].mxu1 %vm30478_vm0, %v27304_v34 }
 0x4d1   : > { %16440 = vmatpush1.bf16.msra.mxu1 %v30336_v10  ;;  %16471 = vmatprep.mubr.bf16.mxu1 %v29827_v52  ;;  %v30505_v10 = vld [vmem:[#allocation95_spill] sm:$0xff] }
 0x4d2   : > { %16525 = vmatprep.subr.bf16.mxu1 %v30501_v30 }
 0x4d3   : > { %20833 = vmatmul.mubr.msk.bf16.vlgmr.msra.gmra.mrb[84].mxu0 %vm30499_vm8, %v27304_v34  ;;  %vm30520_vm8 = vmmov %vm30478_vm0 }
 0x4d4   : > { %16397 = vmatpush1.bf16.msra.mxu0 %v30500_v51  ;;  %16428 = vmatprep.mubr.bf16.mxu0 %v29827_v52 }
 0x4d5   : > { %16482 = vmatprep.subr.bf16.mxu0 %v30502_v47 }
 0x4d8   : > { %20836 = vmatmul.mubr.msk.bf16.vlgmr.msra.gmra.mrb[88].mxu1 %vm30503_vm12, %v27304_v34  ;;  %vm30521_vm12 = vmmov %vm30478_vm0 }
 0x4d9   : > { %16526 = vmatpush1.bf16.msra.mxu1 %v30342_v0  ;;  %16557 = vmatprep.mubr.bf16.mxu1 %v29827_v52  ;;  %v27377_v0 = vpop.permute.xlu1 %17616 }
 0x4da   : > { %16611 = vmatprep.subr.bf16.mxu1 %v30343_v45  ;;  %v30509_v45 = vld [vmem:[#allocation144_spill] sm:$0xff] }
 0x4db   : > { %20835 = vmatmul.mubr.msk.bf16.vlgmr.msra.gmra.mrb[88].mxu0 %vm30504_vm11, %v27304_v34  ;;  %vm30523_vm11 = vmmov %vm30478_vm0 }
 0x4dc   : > { %16483 = vmatpush1.bf16.msra.mxu0 %v30505_v10  ;;  %16514 = vmatprep.mubr.bf16.mxu0 %v29827_v52 }
 0x4dd   : > { %16568 = vmatprep.subr.bf16.mxu0 %v30506_v28  ;;  %v27386_v43 = vpop.permute.xlu1 %17620 }
 0x4e0   : > { %20838 = vmatmul.mubr.msk.bf16.vlgmr.msra.gmra.mrb[92].mxu1 %vm30507_vm6, %v27304_v34  ;;  %vm30524_vm6 = vmmov %vm30478_vm0 }
 0x4e1   : > { %16612 = vmatpush1.bf16.msra.mxu1 %v30348_v53  ;;  %16643 = vmatprep.mubr.bf16.mxu1 %v29827_v52  ;;  %v27393_v53 = vpop.permute.xlu0 %17618  ;;  %v27400_v36 = vpop.permute.xlu1 %17624 }
 0x4e2   : > { %16697 = vmatprep.subr.bf16.mxu1 %v30510_v3  ;;  %v17743_v40 = vsel %vm7095_vm13, %v27393_v53, %v27386_v43  ;;  %v17742_v48 = vsel %vm7095_vm13, %v27377_v0, %v27393_v53 }
 0x4e3   : > { %20837 = vmatmul.mubr.msk.bf16.vlgmr.msra.gmra.mrb[92].mxu0 %vm30508_vm15, %v27304_v34  ;;  %vm30528_vm15 = vmmov %vm30478_vm0 }
 0x4e4   : > { %16569 = vmatpush1.bf16.msra.mxu0 %v30509_v45  ;;  %16600 = vmatprep.mubr.bf16.mxu0 %v29827_v52 }
 0x4e5   : > { %16654 = vmatprep.subr.bf16.mxu0 %v30511_v5  ;;  %v27402_v42 = vpop.permute.xlu0 %17622  ;;  %v27413_v9 = vpop.permute.xlu1 %17628 }
 0x4e6   : > { %v17745_v54 = vsel %vm7095_vm13, %v27402_v42, %v27400_v36  ;;  %v17744_v57 = vsel %vm7095_vm13, %v27386_v43, %v27402_v42 }
 0x4e8   : > { %20840 = vmatmul.mubr.msk.bf16.vlgmr.msra.gmra.mrb[96].mxu1 %vm30512_vm10, %v27304_v34  ;;  %vm30529_vm10 = vmmov %vm30478_vm0 }
 0x4e9   : > { %16698 = vmatpush1.bf16.msra.mxu1 %v30353_v11  ;;  %16729 = vmatprep.mubr.bf16.mxu1 %v29827_v52  ;;  %v30518_v11 = vld [vmem:[#allocation153_spill] sm:$0xff]  ;;  %v27416_v32 = vpop.permute.xlu0 %17626 }
 0x4ea   : > { %16783 = vmatprep.subr.bf16.mxu1 %v30515_v13  ;;  %v17747_v31 = vsel %vm7095_vm13, %v27416_v32, %v27413_v9 }
 0x4eb   : > { %20839 = vmatmul.mubr.msk.bf16.vlgmr.msra.gmra.mrb[96].mxu0 %vm30513_vm7, %v27304_v34  ;;  %vm30532_vm7 = vmmov %vm30478_vm0 }
 0x4ec   : > { %16655 = vmatpush1.bf16.msra.mxu0 %v30514_v56  ;;  %16686 = vmatprep.mubr.bf16.mxu0 %v29827_v52 }
 0x4ed   : > { %16740 = vmatprep.subr.bf16.mxu0 %v30516_v62  ;;  %v27429_v39 = vpop.permute.xlu0 %17630 }
 0x4ee   : > { %v17748_v30 = vsel %vm7095_vm13, %v27413_v9, %v27429_v39 }
 0x4f0   : > { %20842 = vmatmul.mubr.msk.bf16.vlgmr.msra.gmra.mrb[100].mxu1 %vm30517_vm9, %v27304_v34  ;;  %vm30533_vm9 = vmmov %vm30478_vm0 }
 0x4f1   : > { %16784 = vmatpush1.bf16.msra.mxu1 %v30359_v49  ;;  %16815 = vmatprep.mubr.bf16.mxu1 %v29827_v52  ;;  %v27423_v49 = vpop.permute.xlu1 %17632 }
 0x4f2   : > { %16869 = vmatprep.subr.bf16.mxu1 %v30284_v29  ;;  %v30522_v29 = vld [vmem:[#allocation108_spill] sm:$0xff]  ;;  %v17749_v23 = vsel %vm7095_vm13, %v27429_v39, %v27423_v49 }
 0x4f3   : > { %20841 = vmatmul.mubr.msk.bf16.vlgmr.msra.gmra.mrb[100].mxu0 %vm30478_vm0, %v27304_v34 }
 0x4f4   : > { %16741 = vmatpush1.bf16.msra.mxu0 %v30518_v11  ;;  %16772 = vmatprep.mubr.bf16.mxu0 %v29827_v52 }
 0x4f5   : > { %16826 = vmatprep.subr.bf16.mxu0 %v30519_v46  ;;  %v27432_v22 = vpop.permute.xlu1 %17636 }
 0x4f8   : > { %20844 = vmatmul.mubr.msk.bf16.vlgmr.msra.gmra.mrb[104].mxu1 %vm30520_vm8, %v27304_v34  ;;  %vm30535_vm8 = vmmov %vm30478_vm0 }
 0x4f9   : > { %16870 = vmatpush1.bf16.msra.mxu1 %v30364_v33  ;;  %16901 = vmatprep.mubr.bf16.mxu1 %v29827_v52  ;;  %v30525_v33 = vld [vmem:[#allocation106_spill] sm:$0xff]  ;;  %v27449_v17 = vpop.permute.xlu1 %17640 }
 0x4fa   : > { %16955 = vmatprep.subr.bf16.mxu1 %v30365_v2  ;;  %v30526_v2 = vld [vmem:[#allocation159_spill] sm:$0xff] }
 0x4fb   : > { %20843 = vmatmul.mubr.msk.bf16.vlgmr.msra.gmra.mrb[104].mxu0 %vm30521_vm12, %v27304_v34  ;;  %vm30536_vm12 = vmmov %vm30478_vm0 }
 0x4fc   : > { %16827 = vmatpush1.bf16.msra.mxu0 %v30360_v35  ;;  %16858 = vmatprep.mubr.bf16.mxu0 %v29827_v52  ;;  %v27439_v35 = vpop.permute.xlu0 %17634 }
 0x4fd   : > { %16912 = vmatprep.subr.bf16.mxu0 %v30522_v29  ;;  %v27462_v20 = vpop.permute.xlu1 %17644  ;;  %v17751_v28 = vsel %vm7095_vm13, %v27439_v35, %v27432_v22  ;;  %v17750_v45 = vsel %vm7095_vm13, %v27423_v49, %v27439_v35 }
 0x500   : > { %20846 = vmatmul.mubr.msk.bf16.vlgmr.msra.gmra.mrb[108].mxu1 %vm30523_vm11, %v27304_v34  ;;  %vm30537_vm11 = vmmov %vm30478_vm0 }
 0x501   : > { %16956 = vmatpush1.bf16.msra.mxu1 %v30369_v63  ;;  %16987 = vmatprep.mubr.bf16.mxu1 %v29827_v52  ;;  %v27451_v63 = vpop.permute.xlu0 %17638 }
 0x502   : > { %17041 = vmatprep.subr.bf16.mxu1 %v30526_v2  ;;  %v17753_v10 = vsel %vm7095_vm13, %v27451_v63, %v27449_v17 }
 0x503   : > { %20845 = vmatmul.mubr.msk.bf16.vlgmr.msra.gmra.mrb[108].mxu0 %vm30524_vm6, %v27304_v34  ;;  %vm30538_vm6 = vmmov %vm30478_vm0 }
 0x504   : > { %16913 = vmatpush1.bf16.msra.mxu0 %v30525_v33  ;;  %16944 = vmatprep.mubr.bf16.mxu0 %v29827_v52 }
 0x505   : > { %16998 = vmatprep.subr.bf16.mxu0 %v30527_v6  ;;  %v27465_v41 = vpop.permute.xlu0 %17642 }
 0x506   : > { %v17754_v13 = vsel %vm7095_vm13, %v27449_v17, %v27465_v41 }
 0x508   : > { %20848 = vmatmul.mubr.msk.bf16.vlgmr.msra.gmra.mrb[112].mxu1 %vm30528_vm15, %v27304_v34  ;;  %vm30539_vm15 = vmmov %vm30478_vm0 }
 0x509   : > { %17042 = vmatpush1.bf16.msra.mxu1 %v30375_v12  ;;  %17073 = vmatprep.mubr.bf16.mxu1 %v29827_v52  ;;  %v27472_v12 = vpop.permute.xlu1 %17648  ;;  %v27478_v55 = vpop.permute.xlu0 %17646 }
 0x50a   : > { %17127 = vmatprep.subr.bf16.mxu1 %v30376_v14  ;;  %v30534_v14 = vld [vmem:[#allocation166_spill] sm:$0xff]  ;;  %v17757_v3 = vsel %vm7095_vm13, %v27478_v55, %v27472_v12  ;;  %v17756_v53 = vsel %vm7095_vm13, %v27462_v20, %v27478_v55 }
 0x50b   : > { %20847 = vmatmul.mubr.msk.bf16.vlgmr.msra.gmra.mrb[112].mxu0 %vm30529_vm10, %v27304_v34  ;;  %vm30540_vm10 = vmmov %vm30478_vm0 }
 0x50c   : > { %16999 = vmatpush1.bf16.msra.mxu0 %v30530_v59  ;;  %17030 = vmatprep.mubr.bf16.mxu0 %v29827_v52 }
 0x50d   : > { %17084 = vmatprep.subr.bf16.mxu0 %v30531_v25  ;;  %v27481_v16 = vpop.permute.xlu1 %17652 }
 0x510   : > { %20850 = vmatmul.mubr.msk.bf16.vlgmr.msra.gmra.mrb[116].mxu1 %vm30532_vm7, %v27304_v34  ;;  %vm30541_vm7 = vmmov %vm30478_vm0 }
 0x511   : > { %17128 = vmatpush1.bf16.msra.mxu1 %v25053_v8  ;;  %17159 = vmatprep.mubr.bf16.mxu1 %v29827_v52  ;;  %v27488_v8 = vpop.permute.xlu0 %17650 }
 0x512   : > { %17213 = vmatprep.subr.bf16.mxu1 %v25154_v15  ;;  %v27495_v15 = vpop.permute.xlu1 %17656  ;;  %v17759_v42 = vsel %vm7095_vm13, %v27488_v8, %v27481_v16 }
 0x513   : > { %20849 = vmatmul.mubr.msk.bf16.vlgmr.msra.gmra.mrb[116].mxu0 %vm30533_vm9, %v27304_v34  ;;  %vm30542_vm9 = vmmov %vm30478_vm0 }
 0x514   : > { %17085 = vmatpush1.bf16.msra.mxu0 %v30377_v58  ;;  %17116 = vmatprep.mubr.bf16.mxu0 %v29827_v52 }
 0x515   : > { %17170 = vmatprep.subr.bf16.mxu0 %v30534_v14  ;;  %v27497_v58 = vpop.permute.xlu0 %17654 }
 0x516   : > { %v17761_v62 = vsel %vm7095_vm13, %v27497_v58, %v27495_v15  ;;  %v17760_v46 = vsel %vm7095_vm13, %v27481_v16, %v27497_v58 }
 0x518   : > { %20852 = vmatmul.mubr.msk.bf16.vlgmr.msra.gmra.mrb[120].mxu1 %vm30478_vm0, %v27304_v34 }
 0x519   : > { %17214 = vmatpush1.bf16.msra.mxu1 %v30251_v19  ;;  %17245 = vmatprep.mubr.bf16.mxu1 %v29827_v52  ;;  %v17739_v19 = vsel %vm7095_vm13, %v27356_v1, %v27370_v44 }
 0x51a   : > { %17299 = vmatprep.subr.bf16.mxu1 %v30389_v60  ;;  %v27515_v60 = vpop.permute.xlu0 %17658 }
 0x51b   : > { %20851 = vmatmul.mubr.msk.bf16.vlgmr.msra.gmra.mrb[120].mxu0 %vm30535_vm8, %v27304_v34  ;;  %vm30543_vm8 = vmmov %vm30478_vm0  ;;  %v17762_v33 = vsel %vm7095_vm13, %v27495_v15, %v27515_v60 }
 0x51c   : > { %17171 = vmatpush1.bf16.msra.mxu0 %v30382_v27  ;;  %17202 = vmatprep.mubr.bf16.mxu0 %v29827_v52  ;;  %v27512_v27 = vpop.permute.xlu1 %17660 }
 0x51d   : > { %17256 = vmatprep.subr.bf16.mxu0 %v30143_v38  ;;  %v17741_v38 = vsel %vm7095_vm13, %v27383_v37, %v27377_v0  ;;  %v17752_v0 = vsel %vm7095_vm13, %v27432_v22, %v27451_v63  ;;  %v17763_v29 = vsel %vm7095_vm13, %v27515_v60, %v27512_v27 }
 0x51e   : > { %v27536_v7 = vpop.permute.xlu0 %17662 }
 0x51f   : > { %v17764_v35 = vsel %vm7095_vm13, %v27512_v27, %v27536_v7 }
 0x520   : > { %20854 = vmatmul.mubr.msk.bf16.vlgmr.msra.gmra.mrb[124].mxu1 %vm30536_vm12, %v27304_v34  ;;  %v27530_v21 = vpop.permute.xlu1 %17664  ;;  %vm30544_vm12 = vmmov %vm30478_vm0 }
 0x521   : > { %17300 = vmatpush1.bf16.msra.mxu1 %v30256_v61  ;;  %17331 = vmatprep.mubr.bf16.mxu1 %v29827_v52  ;;  %v17740_v61 = vsel %vm7095_vm13, %v27370_v44, %v27383_v37  ;;  %v17755_v37 = vsel %vm7095_vm13, %v27465_v41, %v27462_v20  ;;  %v17765_v49 = vsel %vm7095_vm13, %v27536_v7, %v27530_v21 }
 0x522   : > { %17912 = vmatprep.subr.bf16.mxu1 %v17741_v38  ;;  %v27559_v26 = vpop.permute.xlu0 %17666 }
 0x523   : > { %20853 = vmatmul.mubr.msk.bf16.vlgmr.msra.gmra.mrb[124].mxu0 %vm30537_vm11, %v27304_v34  ;;  %vm30545_vm11 = vmmov %vm30478_vm0  ;;  %v17766_v25 = vsel %vm7095_vm13, %v27530_v21, %v27559_v26 }
 0x524   : > { %17257 = vmatpush1.bf16.msra.mxu0 %v30390_v4  ;;  %17288 = vmatprep.mubr.bf16.mxu0 %v29827_v52  ;;  %v17738_v4 = vsel %vm7095_vm13, %v27367_v50, %v27356_v1  ;;  %v27547_v18 = vpop.permute.xlu1 %17668  ;;  %v17746_v1 = vsel %vm7095_vm13, %v27400_v36, %v27416_v32  ;;  %v17758_v32 = vsel %vm7095_vm13, %v27472_v12, %v27488_v8 }
 0x525   : > { %17869 = vmatprep.subr.bf16.mxu0 %v17739_v19  ;;  %v17767_v24 = vsel %vm7095_vm13, %v27559_v26, %v27547_v18 }
 0x526   : > { %v27571_v47 = vpop.permute.xlu0 %17670 }
 0x527   : > { %v17768_v63 = vsel %vm7095_vm13, %v27547_v18, %v27571_v47 }
 0x528   : > { %20856 = vmatmul.mubr.msk.bf16.vlgmr.msra.gmra.mrb[128].mxu1 %vm30538_vm6, %v27304_v34  ;;  %v27566_v51 = vpop.permute.xlu1 %17672  ;;  %vm30546_vm6 = vmmov %vm30478_vm0 }
 0x529   : > { %17913 = vmatpush1.bf16.msra.mxu1 %v17740_v61  ;;  %17944 = vmatprep.mubr.bf16.mxu1 %v29827_v52  ;;  %v17769_v2 = vsel %vm7095_vm13, %v27571_v47, %v27566_v51 }
 0x52a   : > { %17998 = vmatprep.subr.bf16.mxu1 %v17745_v54  ;;  %v27590_v44 = vpop.permute.xlu0 %17674 }
 0x52b   : > { %20855 = vmatmul.mubr.msk.bf16.vlgmr.msra.gmra.mrb[128].mxu0 %vm30539_vm15, %v27304_v34  ;;  %v27542_v34 = vld [vmem:[%s29821_s3 + $0x40] sm:$0xff]   ;;  %vm30547_vm15 = vmmov %vm30478_vm0  ;;  %v17770_v8 = vsel %vm7095_vm13, %v27566_v51, %v27590_v44  ;;  %s22171_s3 = scalar_lea.vmem %s22170_s2, 32 }
 0x52c   : > { %17870 = vmatpush1.bf16.msra.mxu0 %v17738_v4  ;;  %17901 = vmatprep.mubr.bf16.mxu0 %v29827_v52  ;;  %v27587_v50 = vpop.permute.xlu1 %17676  ;;  %p22173_p2 = scmp.lt.s32.totalorder %s22171_s3, %s22165_s0 }
 0x52d   : > { %17955 = vmatprep.subr.bf16.mxu0 %v17743_v40  ;;  %v17771_v12 = vsel %vm7095_vm13, %v27590_v44, %v27587_v50 }
 0x52e   : > { %v17679_v43 = vpop.permute.xlu0 %17678  ;;  %p22174_p3 = por %p22173_p2, %p22172_p1 }
 0x52f   : > { %v17772_v55 = vsel %vm7095_vm13, %v27587_v50, %v17679_v43 }
 0x530   : > { %20861 = vmatmul.mubr.msk.bf16.vlgmr.msra.gmra.mrb[68].mxu1 %vm30540_vm10, %v27542_v34  ;;  %v27605_v5 = vpop.permute.xlu1 %17680  ;;  %vm30548_vm10 = vmmov %vm30478_vm0  ;;  %p22175_p5 = pnand %p22174_p3, %p22168_p0 }
 0x531   : > { %17999 = vmatpush1.bf16.msra.mxu1 %v17744_v57  ;;  %18030 = vmatprep.mubr.bf16.mxu1 %v29827_v52  ;;  %v17773_v20 = vsel %vm7095_vm13, %v17679_v43, %v27605_v5 }
 0x532   : > { %18084 = vmatprep.subr.bf16.mxu1 %v17749_v23  ;;  %v27627_v36 = vpop.permute.xlu0 %17682 }
 0x533   : > { %20860 = vmatmul.mubr.msk.bf16.vlgmr.msra.gmra.mrb[68].mxu0 %vm30541_vm7, %v27542_v34  ;;  %vm30549_vm7 = vmmov %vm30478_vm0  ;;  %v17774_v60 = vsel %vm7095_vm13, %v27605_v5, %v27627_v36 }
 0x534   : > { %17956 = vmatpush1.bf16.msra.mxu0 %v17742_v48  ;;  %17987 = vmatprep.mubr.bf16.mxu0 %v29827_v52  ;;  %v27615_v56 = vpop.permute.xlu1 %17684 }
 0x535   : > { %18041 = vmatprep.subr.bf16.mxu0 %v17747_v31  ;;  %v17775_v58 = vsel %vm7095_vm13, %v27627_v36, %v27615_v56 }
 0x536   : > { %v17687_v9 = vpop.permute.xlu0 %17686 }
 0x537   : > { %v17776_v27 = vsel %vm7095_vm13, %v27615_v56, %v17687_v9 }
 0x538   : > { %20863 = vmatmul.mubr.msk.bf16.vlgmr.msra.gmra.mrb[72].mxu1 %vm30542_vm9, %v27542_v34  ;;  %v27634_v11 = vpop.permute.xlu1 %17688  ;;  %vm30550_vm9 = vmmov %vm30478_vm0 }
 0x539   : > { %18085 = vmatpush1.bf16.msra.mxu1 %v17748_v30  ;;  %18116 = vmatprep.mubr.bf16.mxu1 %v29827_v52  ;;  %v17777_v15 = vsel %vm7095_vm13, %v17687_v9, %v27634_v11 }
 0x53a   : > { %18170 = vmatprep.subr.bf16.mxu1 %v17753_v10  ;;  %v27654_v22 = vpop.permute.xlu0 %17690 }
 0x53b   : > { %20862 = vmatmul.mubr.msk.bf16.vlgmr.msra.gmra.mrb[72].mxu0 %vm30478_vm0, %v27542_v34  ;;  %v17778_v57 = vsel %vm7095_vm13, %v27634_v11, %v27654_v22 }
 0x53c   : > { %18042 = vmatpush1.bf16.msra.mxu0 %v17746_v1  ;;  %18073 = vmatprep.mubr.bf16.mxu0 %v29827_v52  ;;  %v17693_v39 = vpop.permute.xlu1 %17692 }
 0x53d   : > { %18127 = vmatprep.subr.bf16.mxu0 %v17751_v28  ;;  %v17779_v54 = vsel %vm7095_vm13, %v27654_v22, %v17693_v39 }
 0x53e   : > { %v17695_v17 = vpop.permute.xlu0 %17694 }
 0x53f   : > { %v17780_v40 = vsel %vm7095_vm13, %v17693_v39, %v17695_v17  ;;  %v30568_v39 = vld [vmem:[#allocation11_spill] sm:$0xff] }
 0x540   : > { %20865 = vmatmul.mubr.msk.bf16.vlgmr.msra.gmra.mrb[76].mxu1 %vm30543_vm8, %v27542_v34  ;;  %v27669_v6 = vpop.permute.xlu1 %17696  ;;  %vm30551_vm8 = vmmov %vm30478_vm0  ;;  %v30569_v22 = vshra.s32 %v30568_v39, 8 }
 0x541   : > { %18171 = vmatpush1.bf16.msra.mxu1 %v17752_v0  ;;  %18202 = vmatprep.mubr.bf16.mxu1 %v29827_v52  ;;  %v17781_v61 = vsel %vm7095_vm13, %v17695_v17, %v27669_v6  ;;  %v30807_v17 = vld [vmem:[#allocation98_spill] sm:$0xff] }
 0x542   : > { %18256 = vmatprep.subr.bf16.mxu1 %v17757_v3  ;;  %v17699_v41 = vpop.permute.xlu0 %17698 }
 0x543   : > { %20864 = vmatmul.mubr.msk.bf16.vlgmr.msra.gmra.mrb[76].mxu0 %vm30544_vm12, %v27542_v34  ;;  %vm30552_vm12 = vmmov %vm30478_vm0  ;;  %v17782_v30 = vsel %vm7095_vm13, %v27669_v6, %v17699_v41  ;;  %v30649_v6 = vld [vmem:[#allocation46_spill] sm:$0xff] }
 0x544   : > { %18128 = vmatpush1.bf16.msra.mxu0 %v17750_v45  ;;  %18159 = vmatprep.mubr.bf16.mxu0 %v29827_v52  ;;  %v17701_v59 = vpop.permute.xlu1 %17700 }
 0x545   : > { %18213 = vmatprep.subr.bf16.mxu0 %v17755_v37  ;;  %v17783_v23 = vsel %vm7095_vm13, %v17699_v41, %v17701_v59 }
 0x546   : > { %v17703_v16 = vpop.permute.xlu0 %17702 }
 0x547   : > { %v17784_v31 = vsel %vm7095_vm13, %v17701_v59, %v17703_v16 }
 0x548   : > { %20867 = vmatmul.mubr.msk.bf16.vlgmr.msra.gmra.mrb[80].mxu1 %vm30545_vm11, %v27542_v34  ;;  %v27693_v14 = vpop.permute.xlu1 %17704  ;;  %vm30553_vm11 = vmmov %vm30478_vm0 }
 0x549   : > { %18257 = vmatpush1.bf16.msra.mxu1 %v17756_v53  ;;  %18288 = vmatprep.mubr.bf16.mxu1 %v29827_v52  ;;  %v17785_v18 = vsel %vm7095_vm13, %v17703_v16, %v27693_v14  ;;  %v30592_v16 = vld [vmem:[#allocation22_spill] sm:$0xff] }
 0x54a   : > { %18342 = vmatprep.subr.bf16.mxu1 %v17761_v62  ;;  %v17707_v19 = vpop.permute.xlu0 %17706 }
 0x54b   : > { %20866 = vmatmul.mubr.msk.bf16.vlgmr.msra.gmra.mrb[80].mxu0 %vm30546_vm6, %v27542_v34  ;;  %vm30554_vm6 = vmmov %vm30478_vm0  ;;  %v17786_v44 = vsel %vm7095_vm13, %v27693_v14, %v17707_v19 }
 0x54c   : > { %18214 = vmatpush1.bf16.msra.mxu0 %v17754_v13  ;;  %18245 = vmatprep.mubr.bf16.mxu0 %v29827_v52  ;;  %v17709_v38 = vpop.permute.xlu1 %17708 }
 0x54d   : > { %18299 = vmatprep.subr.bf16.mxu0 %v17759_v42  ;;  %v17787_v1 = vsel %vm7095_vm13, %v17707_v19, %v17709_v38 }
 0x54e   : > { %v17711_v21 = vpop.permute.xlu0 %17710 }
 0x54f   : > { %v17788_v50 = vsel %vm7095_vm13, %v17709_v38, %v17711_v21  ;;  %v30598_v38 = vld [vmem:[#allocation23_spill] sm:$0xff] }
 0x550   : > { %20869 = vmatmul.mubr.msk.bf16.vlgmr.msra.gmra.mrb[84].mxu1 %vm30547_vm15, %v27542_v34  ;;  %vm30555_vm15 = vmmov %vm30478_vm0  ;;  %v17713_v4 = vpop.permute.xlu1 %17712  ;;  %v30599_v19 = vshra.s32 %v30598_v38, 8  ;;  %v30671_v38 = vld [vmem:[#allocation45_spill] sm:$0xff] }
 0x551   : > { %18343 = vmatpush1.bf16.msra.mxu1 %v17760_v46  ;;  %18374 = vmatprep.mubr.bf16.mxu1 %v29827_v52  ;;  %v17789_v47 = vsel %vm7095_vm13, %v17711_v21, %v17713_v4  ;;  %v30606_v21 = vld [vmem:[#allocation29_spill] sm:$0xff] }
 0x552   : > { %18428 = vmatprep.subr.bf16.mxu1 %v17765_v49  ;;  %v17715_v48 = vpop.permute.xlu0 %17714  ;;  %vm27841_vm3 = vcmp.lt.s32.totalorder %v30599_v19, 11  ;;  %vm30607_vm4 = vnez %v30606_v21  ;;  %v30672_v19 = vshra.s32 %v30671_v38, 8  ;;  %v30729_v38 = vld [vmem:[#allocation78_spill] sm:$0xff] }
 0x553   : > { %20868 = vmatmul.mubr.msk.bf16.vlgmr.msra.gmra.mrb[84].mxu0 %vm30548_vm10, %v27542_v34  ;;  %vm30556_vm10 = vmmov %vm30478_vm0  ;;  %v17790_v53 = vsel %vm7095_vm13, %v17713_v4, %v17715_v48  ;;  %v30604_v4 = vld [vmem:[#allocation15_spill] sm:$0xff] }
 0x554   : > { %18300 = vmatpush1.bf16.msra.mxu0 %v17758_v32  ;;  %18331 = vmatprep.mubr.bf16.mxu0 %v29827_v52  ;;  %v17717_v7 = vpop.permute.xlu1 %17716 }
 0x555   : > { %18385 = vmatprep.subr.bf16.mxu0 %v17763_v29  ;;  %v17791_v3 = vsel %vm7095_vm13, %v17715_v48, %v17717_v7 }
 0x556   : > { %v17719_v51 = vpop.permute.xlu0 %17718 }
 0x557   : > { %v17792_v37 = vsel %vm7095_vm13, %v17717_v7, %v17719_v51 }
 0x558   : > { %20871 = vmatmul.mubr.msk.bf16.vlgmr.msra.gmra.mrb[88].mxu1 %vm30549_vm7, %v27542_v34  ;;  %vm30557_vm7 = vmmov %vm30478_vm0  ;;  %v17721_v26 = vpop.permute.xlu1 %17720 }
 0x559   : > { %18429 = vmatpush1.bf16.msra.mxu1 %v17764_v35  ;;  %18460 = vmatprep.mubr.bf16.mxu1 %v29827_v52  ;;  %v17793_v0 = vsel %vm7095_vm13, %v17719_v51, %v17721_v26  ;;  %v30615_v51 = vld [vmem:[#allocation28_spill] sm:$0xff] }
 0x55a   : > { %18514 = vmatprep.subr.bf16.mxu1 %v17769_v2  ;;  %v17723_v28 = vpop.permute.xlu0 %17722 }
 0x55b   : > { %20870 = vmatmul.mubr.msk.bf16.vlgmr.msra.gmra.mrb[88].mxu0 %vm30550_vm9, %v27542_v34  ;;  %vm30558_vm9 = vmmov %vm30478_vm0  ;;  %v17794_v46 = vsel %vm7095_vm13, %v17721_v26, %v17723_v28 }
 0x55c   : > { %18386 = vmatpush1.bf16.msra.mxu0 %v17762_v33  ;;  %18417 = vmatprep.mubr.bf16.mxu0 %v29827_v52  ;;  %v17725_v10 = vpop.permute.xlu1 %17724  ;;  %v30572_v33 = vld [vmem:[#allocation12_spill] sm:$0xff] }
 0x55d   : > { %18471 = vmatprep.subr.bf16.mxu0 %v17767_v24  ;;  %v17795_v62 = vsel %vm7095_vm13, %v17723_v28, %v17725_v10  ;;  %v30573_v2 = vshra.s32 %v30572_v33, 8  ;;  %v30576_v24 = vld [vmem:[#allocation16_spill] sm:$0xff] }
 0x55e   : > { %v17727_v5 = vpop.permute.xlu0 %17726 }
 0x55f   : > { %v17796_v42 = vsel %vm7095_vm13, %v17725_v10, %v17727_v5  ;;  %v30619_v10 = vld [vmem:[#allocation20_spill] sm:$0xff] }
 0x560   : > { %20873 = vmatmul.mubr.msk.bf16.vlgmr.msra.gmra.mrb[92].mxu1 %vm30478_vm0, %v27542_v34  ;;  %v17729_v45 = vpop.permute.xlu1 %17728  ;;  %v30620_v28 = vshra.s32 %v30619_v10, 8  ;;  %v30689_v10 = vld [vmem:[#allocation55_spill] sm:$0xff] }
 0x561   : > { %18515 = vmatpush1.bf16.msra.mxu1 %v17768_v63  ;;  %18546 = vmatprep.mubr.bf16.mxu1 %v29827_v52  ;;  %v17797_v56 = vsel %vm7095_vm13, %v17727_v5, %v17729_v45  ;;  %v30580_v63 = vld [vmem:[#allocation18_spill] sm:$0xff]  ;;  %v30699_v5 = vld [vmem:[#allocation43_spill] sm:$0xff] }
 0x562   : > { %18600 = vmatprep.subr.bf16.mxu1 %v17773_v20  ;;  %v17731_v13 = vpop.permute.xlu0 %17730  ;;  %v30586_v20 = vld [vmem:[#allocation10_spill] sm:$0xff] }
 0x563   : > { %20872 = vmatmul.mubr.msk.bf16.vlgmr.msra.gmra.mrb[92].mxu0 %vm30551_vm8, %v27542_v34  ;;  %vm30559_vm8 = vmmov %vm30478_vm0  ;;  %v17798_v29 = vsel %vm7095_vm13, %v17729_v45, %v17731_v13  ;;  %v30587_v41 = vshra.s32 %v30586_v20, 8  ;;  %v30625_v45 = vld [vmem:[#allocation31_spill] sm:$0xff] }
 0x564   : > { %18472 = vmatpush1.bf16.msra.mxu0 %v17766_v25  ;;  %18503 = vmatprep.mubr.bf16.mxu0 %v29827_v52  ;;  %v17733_v43 = vpop.permute.xlu1 %17732  ;;  %v30659_v25 = vld [vmem:[#allocation34_spill] sm:$0xff] }
 0x565   : > { %18557 = vmatprep.subr.bf16.mxu0 %v17771_v12  ;;  %v17799_v32 = vsel %vm7095_vm13, %v17731_v13, %v17733_v43  ;;  %v30588_v12 = vld [vmem:[#allocation13_spill] sm:$0xff]  ;;  %v30632_v13 = vld [vmem:[#allocation32_spill] sm:$0xff]  ;;  %v30660_v20 = vshra.s32 %v30659_v25, 8  ;;  %v30721_v25 = vld [vmem:[#allocation75_spill] sm:$0xff] }
 0x566   : > { %v17735_v11 = vpop.permute.xlu0 %17734  ;;  %v30589_v14 = vshra.s32 %v30588_v12, 8  ;;  %v30663_v12 = vld [vmem:[#allocation44_spill] sm:$0xff] }
 0x567   : > { %v17800_v49 = vsel %vm7095_vm13, %v17733_v43, %v17735_v11 }
 0x568   : > { %20875 = vmatmul.mubr.msk.bf16.vlgmr.msra.gmra.mrb[96].mxu1 %vm30552_vm12, %v27542_v34  ;;  %vm30560_vm12 = vmmov %vm30478_vm0  ;;  %v17737_v36 = vpop.permute.xlu1 %17736 }
 0x569   : > { %18601 = vmatpush1.bf16.msra.mxu1 %v17772_v55  ;;  %18632 = vmatprep.mubr.bf16.mxu1 %v29827_v52  ;;  %v17801_v9 = vsel %vm7095_vm13, %v17735_v11, %v17737_v36  ;;  %vm27801_vm13 = vcmp.lt.s32.totalorder %v30573_v2, 11  ;;  %v30590_v55 = vld [vmem:[#allocation19_spill] sm:$0xff]  ;;  %v30637_v11 = vld [vmem:[#allocation24_spill] sm:$0xff]  ;;  %v30784_v36 = vld [vmem:[#allocation89_spill] sm:$0xff] }
 0x56a   : > { %18686 = vmatprep.subr.bf16.mxu1 %v17777_v15 }
 0x56b   : > { %20874 = vmatmul.mubr.msk.bf16.vlgmr.msra.gmra.mrb[96].mxu0 %vm30553_vm11, %v27542_v34  ;;  %vm30561_vm11 = vmmov %vm30478_vm0 }
 0x56c   : > { %18558 = vmatpush1.bf16.msra.mxu0 %v17770_v8  ;;  %18589 = vmatprep.mubr.bf16.mxu0 %v29827_v52  ;;  %v30593_v8 = vshra.s32 %v30592_v16, 8 }
 0x56d   : > { %18643 = vmatprep.subr.bf16.mxu0 %v17775_v58  ;;  %v30596_v58 = vld [vmem:[#allocation26_spill] sm:$0xff] }
 0x570   : > { %20877 = vmatmul.mubr.msk.bf16.vlgmr.msra.gmra.mrb[100].mxu1 %vm30554_vm6, %v27542_v34  ;;  %vm30562_vm6 = vmmov %vm30478_vm0 }
 0x571   : > { %18687 = vmatpush1.bf16.msra.mxu1 %v17776_v27  ;;  %18718 = vmatprep.mubr.bf16.mxu1 %v29827_v52  ;;  %v30745_v27 = vmov 0 }
 0x572   : > { %18772 = vmatprep.subr.bf16.mxu1 %v17781_v61 }
 0x573   : > { %20876 = vmatmul.mubr.msk.bf16.vlgmr.msra.gmra.mrb[100].mxu0 %vm30555_vm15, %v27542_v34  ;;  %vm30563_vm15 = vmmov %vm30478_vm0 }
 0x574   : > { %18644 = vmatpush1.bf16.msra.mxu0 %v17774_v60  ;;  %18675 = vmatprep.mubr.bf16.mxu0 %v29827_v52  ;;  %v30602_v60 = vld [vmem:[#allocation14_spill] sm:$0xff] }
 0x575   : > { %18729 = vmatprep.subr.bf16.mxu0 %v17779_v54  ;;  %v30603_v61 = vshra.s32 %v30602_v60, 8  ;;  %v30605_v54 = vshra.s32 %v30604_v4, 8 }
 0x578   : > { %20879 = vmatmul.mubr.msk.bf16.vlgmr.msra.gmra.mrb[104].mxu1 %vm30556_vm10, %v27542_v34  ;;  %vm30564_vm10 = vmmov %vm30478_vm0 }
 0x579   : > { %18773 = vmatpush1.bf16.msra.mxu1 %v17780_v40  ;;  %18804 = vmatprep.mubr.bf16.mxu1 %v29827_v52  ;;  %v30608_v40 = vld [vmem:[#allocation27_spill] sm:$0xff] }
 0x57a   : > { %18858 = vmatprep.subr.bf16.mxu1 %v17785_v18  ;;  %v30609_v7 = vshra.s32 %v30608_v40, 8  ;;  %v30612_v18 = vmov 0.0   ;;  %v30681_v40 = vld [vmem:[#allocation49_spill] sm:$0xff] }
 0x57b   : > { %20878 = vmatmul.mubr.msk.bf16.vlgmr.msra.gmra.mrb[104].mxu0 %vm30557_vm7, %v27542_v34  ;;  %vm30565_vm7 = vmmov %vm30478_vm0 }
 0x57c   : > { %18730 = vmatpush1.bf16.msra.mxu0 %v17778_v57  ;;  %18761 = vmatprep.mubr.bf16.mxu0 %v29827_v52  ;;  %vm27855_vm2 = vcmp.lt.s32.totalorder %v30609_v7, 11  ;;  %v30683_v7 = vld [vmem:[#allocation51_spill] sm:$0xff] }
 0x57d   : > { %18815 = vmatprep.subr.bf16.mxu0 %v17783_v23  ;;  %v30684_v57 = vshra.s32 %v30683_v7, 8 }
 0x580   : > { %20881 = vmatmul.mubr.msk.bf16.vlgmr.msra.gmra.mrb[108].mxu1 %vm30558_vm9, %v27542_v34  ;;  %vm30566_vm9 = vmmov %vm30478_vm0 }
 0x581   : > { %18859 = vmatpush1.bf16.msra.mxu1 %v17784_v31  ;;  %18890 = vmatprep.mubr.bf16.mxu1 %v29827_v52  ;;  %v30613_v31 = vld [vmem:[#allocation33_spill] sm:$0xff] }
 0x582   : > { %18944 = vmatprep.subr.bf16.mxu1 %v17789_v47 }
 0x583   : > { %20880 = vmatmul.mubr.msk.bf16.vlgmr.msra.gmra.mrb[108].mxu0 %vm30478_vm0, %v27542_v34 }
 0x584   : > { %18816 = vmatpush1.bf16.msra.mxu0 %v17782_v30  ;;  %18847 = vmatprep.mubr.bf16.mxu0 %v29827_v52  ;;  %v30616_v30 = vshra.s32 %v30615_v51, 8 }
 0x585   : > { %18901 = vmatprep.subr.bf16.mxu0 %v17787_v1 }
 0x586   : > { %vm27874_vm5 = vcmp.lt.s32.totalorder %v30616_v30, 11 }
 0x588   : > { %20883 = vmatmul.mubr.msk.bf16.vlgmr.msra.gmra.mrb[112].mxu1 %vm30559_vm8, %v27542_v34  ;;  %vm30567_vm8 = vmmov %vm30478_vm0 }
 0x589   : > { %18945 = vmatpush1.bf16.msra.mxu1 %v17788_v50  ;;  %18976 = vmatprep.mubr.bf16.mxu1 %v29827_v52  ;;  %v30621_v50 = vld [vmem:[#allocation21_spill] sm:$0xff] }
 0x58a   : > { %19030 = vmatprep.subr.bf16.mxu1 %v17793_v0  ;;  %v30623_v0 = vld [vmem:[#allocation35_spill] sm:$0xff] }
 0x58b   : > { %20882 = vmatmul.mubr.msk.bf16.vlgmr.msra.gmra.mrb[112].mxu0 %vm30560_vm12, %v27542_v34  ;;  %vm27795_vm12 = vcmp.lt.s32.totalorder %v30569_v22, 11 }
 0x58c   : > { %18902 = vmatpush1.bf16.msra.mxu0 %v17786_v44  ;;  %18933 = vmatprep.mubr.bf16.mxu0 %v29827_v52  ;;  %v30622_v44 = vshra.s32 %v30621_v50, 8 }
 0x58d   : > { %18987 = vmatprep.subr.bf16.mxu0 %v17791_v3  ;;  %v30626_v3 = vshra.s32 %v30625_v45, 8  ;;  %v30697_v45 = vld [vmem:[#allocation42_spill] sm:$0xff] }
 0x58f   : > { %vm27891_vm1 = vcmp.lt.s32.totalorder %v30626_v3, 11  ;;  %v30698_v3 = vshra.s32 %v30697_v45, 8 }
 0x590   : > { %20885 = vmatmul.mubr.msk.bf16.vlgmr.msra.gmra.mrb[116].mxu1 %vm30561_vm11, %v27542_v34 }
 0x591   : > { %19031 = vmatpush1.bf16.msra.mxu1 %v17792_v37  ;;  %19062 = vmatprep.mubr.bf16.mxu1 %v29827_v52 }
 0x592   : > { %19116 = vmatprep.subr.bf16.mxu1 %v17797_v56  ;;  %v30630_v56 = vld [vmem:[#allocation39_spill] sm:$0xff] }
 0x593   : > { %20884 = vmatmul.mubr.msk.bf16.vlgmr.msra.gmra.mrb[116].mxu0 %vm30562_vm6, %v27542_v34  ;;  %vm30581_vm6 = vnez %v30580_v63 }
 0x594   : > { %18988 = vmatpush1.bf16.msra.mxu0 %v17790_v53  ;;  %19019 = vmatprep.mubr.bf16.mxu0 %v29827_v52 }
 0x595   : > { %19073 = vmatprep.subr.bf16.mxu0 %v17795_v62  ;;  %v30633_v62 = vshra.s32 %v30632_v13, 8  ;;  %v30701_v13 = vld [vmem:[#allocation56_spill] sm:$0xff] }
 0x598   : > { %20887 = vmatmul.mubr.msk.bf16.vlgmr.msra.gmra.mrb[120].mxu1 %vm30563_vm15, %v27542_v34  ;;  %vm19771_vm15 = vmand %vm27795_vm12, %vm30581_vm6  ;;  %vm27831_vm12 = vcmp.lt.s32.totalorder %v30593_v8, 11  ;;  %vm30597_vm6 = vnez %v30596_v58  ;;  %v30669_v58 = vld [vmem:[#allocation48_spill] sm:$0xff] }
 0x599   : > { %19117 = vmatpush1.bf16.msra.mxu1 %v17796_v42  ;;  %19148 = vmatprep.mubr.bf16.mxu1 %v29827_v52  ;;  %v27866_v26 = vsel %vm19771_vm15, 1.0, %v30612_v18  ;;  %vm19716_vm15 = vcmp.lt.s32.totalorder %v30622_v44, 11 }
 0x59a   : > { %19202 = vmatprep.subr.bf16.mxu1 %v17801_v9  ;;  %v30639_v9 = vld [vmem:[#allocation25_spill] sm:$0xff]  ;;  %v27945_v33 = vsel %vm19716_vm15, 1.0, %v30612_v18 }
 0x59b   : > { %20886 = vmatmul.mubr.msk.bf16.vlgmr.msra.gmra.mrb[120].mxu0 %vm30564_vm10, %v27542_v34 }
 0x59c   : > { %19074 = vmatpush1.bf16.msra.mxu0 %v17794_v46  ;;  %19105 = vmatprep.mubr.bf16.mxu0 %v29827_v52  ;;  %v30638_v46 = vshra.s32 %v30637_v11, 8 }
 0x59d   : > { %19159 = vmatprep.subr.bf16.mxu0 %v17799_v32  ;;  %v30640_v32 = vshra.s32 %v30639_v9, 8 }
 0x5a0   : > { %20889 = vmatmul.mubr.msk.bf16.vlgmr.msra.gmra.mrb[124].mxu1 %vm30565_vm7, %v27542_v34  ;;  %vm19706_vm7 = vcmp.lt.s32.totalorder %v30587_v41, 11  ;;  %v30661_v41 = vld [vmem:[#allocation47_spill] sm:$0xff] }
 0x5a1   : > { %19203 = vmatpush1.bf16.msra.mxu1 %v17800_v49  ;;  %19234 = vmatprep.mubr.bf16.mxu1 %v29827_v52  ;;  %v27860_v48 = vsel %vm19706_vm7, 1.0, %v30612_v18  ;;  %vm19714_vm7 = vcmp.lt.s32.totalorder %v30620_v28, 11  ;;  %v30641_v49 = vld [vmem:[#allocation41_spill] sm:$0xff] }
 0x5a2   : > { %v27942_v35 = vsel %vm19714_vm7, 1.0, %v30612_v18  ;;  %v30691_v28 = vld [vmem:[#allocation53_spill] sm:$0xff] }
 0x5a3   : > { %20888 = vmatmul.mubr.msk.bf16.vlgmr.msra.gmra.mrb[124].mxu0 %vm30566_vm9, %v27542_v34  ;;  %vm19708_vm9 = vcmp.lt.s32.totalorder %v30589_v14, 11  ;;  %v30664_v14 = vshra.s32 %v30663_v12, 8  ;;  %v30692_v50 = vshra.s32 %v30691_v28, 8 }
 0x5a4   : > { %19160 = vmatpush1.bf16.msra.mxu0 %v17798_v29  ;;  %19191 = vmatprep.mubr.bf16.mxu0 %v29827_v52  ;;  %v30577_v52 = vshra.s32 %v30576_v24, 8  ;;  %v27863_v23 = vsel %vm19708_vm9, 1.0, %v30612_v18  ;;  %vm30624_vm9 = vnez %v30623_v0  ;;  %v30643_v29 = vld [vmem:[#allocation37_spill] sm:$0xff]  ;;  %v30651_v24 = vld [vmem:[#allocation38_spill] sm:$0xff] }
 0x5a5   : > { %v30644_v39 = vshra.s32 %v30643_v29, 8  ;;  %vm30655_vm15 = vmmov %vm30624_vm9  ;;  %v30711_v29 = vld [vmem:[#allocation61_spill] sm:$0xff] }
 0x5a6   : > { %vm27807_vm11 = vcmp.lt.s32.totalorder %v30577_v52, 11  ;;  %v30652_v52 = vshra.s32 %v30651_v24, 8  ;;  %v30717_v24 = vld [vmem:[#allocation50_spill] sm:$0xff] }
 0x5a7   : > { %vm27937_vm14 = vcmp.lt.s32.totalorder %v30644_v39, 11  ;;  %v30712_v39 = vshra.s32 %v30711_v29, 8  ;;  %v30759_v29 = vld [vmem:[#allocation67_spill] sm:$0xff] }
 0x5a8   : > { %20891 = vmatmul.mubr.msk.bf16.vlgmr.msra.gmra.mrb[128].mxu1 %vm30478_vm0, %v27542_v34  ;;  %vm30591_vm0 = vnez %v30590_v55  ;;  %vm27961_vm7 = vcmp.lt.s32.totalorder %v30652_v52, 11  ;;  %v30718_v52 = vshra.s32 %v30717_v24, 8  ;;  %v30761_v24 = vld [vmem:[#allocation83_spill] sm:$0xff] }
 0x5ab   : > { %20890 = vmatmul.mubr.msk.bf16.vlgmr.msra.gmra.mrb[128].mxu0 %vm30567_vm8, %v27542_v34  ;;  %v30582_v34 = vld [vmem:[#allocation17_spill] sm:$0xff]  ;;  %vm19773_vm8 = vmand %vm27801_vm13, %vm30591_vm0  ;;  %vm19710_vm13 = vcmp.lt.s32.totalorder %v30603_v61, 11  ;;  %vm19712_vm0 = vcmp.lt.s32.totalorder %v30605_v54, 11  ;;  %v30677_v61 = vld [vmem:[#allocation36_spill] sm:$0xff] }
 0x5ac   : > { %v30583_v59 = vshra.s32 %v30582_v34, 8  ;;  %v27879_v1 = vsel %vm19773_vm8, 1.0, %v30612_v18  ;;  %v27896_v37 = vsel %vm19710_vm13, 1.0, %v30612_v18  ;;  %v27899_v43 = vsel %vm19712_vm0, 1.0, %v30612_v18  ;;  %vm30629_vm8 = vmand %vm27807_vm11, %vm30597_vm6  ;;  %v30657_v34 = vld [vmem:[#allocation30_spill] sm:$0xff]  ;;  %v30679_v54 = vld [vmem:[#allocation40_spill] sm:$0xff] }
 0x5ad   : > { %v27907_v53 = vsel %vm30629_vm8, 1.0, %v30612_v18  ;;  %vm27915_vm13 = vcmp.lt.s32.totalorder %v30633_v62, 11  ;;  %vm19718_vm11 = vcmp.lt.s32.totalorder %v30638_v46, 11  ;;  %vm19720_vm6 = vcmp.lt.s32.totalorder %v30640_v32, 11  ;;  %vm30656_vm8 = vmand %vm27841_vm3, %vm30655_vm15  ;;  %v30703_v62 = vld [vmem:[#allocation60_spill] sm:$0xff] }
 0x5ae   : > { %vm27817_vm10 = vcmp.lt.s32.totalorder %v30583_v59, 11  ;;  %v27971_v63 = vsel %vm30656_vm8, 1.0, %v30612_v18  ;;  %v30658_v59 = vshra.s32 %v30657_v34, 8  ;;  %v27988_v16 = vsel %vm19718_vm11, 1.0, %v30612_v18  ;;  %v30719_v34 = vld [vmem:[#allocation52_spill] sm:$0xff] }
 0x5af   : > { %vm30636_vm0 = vmand %vm27817_vm10, %vm30607_vm4  ;;  %vm30647_vm4 = vnez %v30613_v31  ;;  %v27991_v8 = vsel %vm19720_vm6, 1.0, %v30612_v18  ;;  %vm30667_vm3 = vnez %v30630_v56  ;;  %vm28007_vm11 = vcmp.lt.s32.totalorder %v30672_v19, 11  ;;  %v30731_v19 = vld [vmem:[#allocation71_spill] sm:$0xff] }
 0x5b0   : > { %v27925_v42 = vsel %vm30636_vm0, 1.0, %v30612_v18  ;;  %vm30648_vm10 = vmand %vm27831_vm12, %vm30647_vm4  ;;  %vm19722_vm12 = vcmp.lt.s32.totalorder %v30658_v59, 11  ;;  %vm19724_vm4 = vcmp.lt.s32.totalorder %v30660_v20, 11  ;;  %vm27983_vm0 = vcmp.lt.s32.totalorder %v30664_v14, 11  ;;  %v30723_v20 = vld [vmem:[#allocation68_spill] sm:$0xff] }
 0x5b1   : > { %v27953_v2 = vsel %vm30648_vm10, 1.0, %v30612_v18  ;;  %vm30668_vm8 = vmand %vm27855_vm2, %vm30667_vm3  ;;  %vm30675_vm6 = vnez %v30641_v49  ;;  %v30678_v4 = vshra.s32 %v30677_v61, 8  ;;  %v30680_v21 = vshra.s32 %v30679_v54, 8  ;;  %v30709_v49 = vld [vmem:[#allocation73_spill] sm:$0xff] }
 0x5b2   : > { %v27999_v15 = vsel %vm30668_vm8, 1.0, %v30612_v18  ;;  %vm30676_vm10 = vmand %vm27874_vm5, %vm30675_vm6  ;;  %vm28029_vm15 = vcmp.lt.s32.totalorder %v30684_v57, 11  ;;  %v28034_v51 = vsel %vm19722_vm12, 1.0, %v30612_v18  ;;  %v28037_v30 = vsel %vm19724_vm4, 1.0, %v30612_v18  ;;  %v30737_v54 = vld [vmem:[#allocation57_spill] sm:$0xff]  ;;  %v30741_v57 = vld [vmem:[#allocation80_spill] sm:$0xff] }
 0x5b3   : > { %v28017_v60 = vsel %vm30676_vm10, 1.0, %v30612_v18  ;;  %vm19726_vm2 = vcmp.lt.s32.totalorder %v30678_v4, 11  ;;  %vm19728_vm3 = vcmp.lt.s32.totalorder %v30680_v21, 11  ;;  %vm30687_vm5 = vnez %v30649_v6  ;;  %v30811_v4 = vld [vmem:[#allocation86_spill] sm:$0xff] }
 0x5b4   : > { %vm30688_vm10 = vmand %vm27891_vm1, %vm30687_vm5  ;;  %vm28053_vm12 = vcmp.lt.s32.totalorder %v30692_v50, 11  ;;  %vm30695_vm4 = vnez %v30661_v41  ;;  %vm19730_vm1 = vcmp.lt.s32.totalorder %v30698_v3, 11  ;;  %v30700_v56 = vshra.s32 %v30699_v5, 8  ;;  %v30749_v5 = vld [vmem:[#allocation82_spill] sm:$0xff] }
 0x5b5   : > { %v28045_v47 = vsel %vm30688_vm10, 1.0, %v30612_v18  ;;  %vm30696_vm8 = vmand %vm27915_vm13, %vm30695_vm4  ;;  %v30704_v11 = vshra.s32 %v30703_v62, 8  ;;  %v28080_v46 = vsel %vm19726_vm2, 1.0, %v30612_v18  ;;  %v28083_v9 = vsel %vm19728_vm3, 1.0, %v30612_v18  ;;  %v28360_v62 = vpop.permute.xlu0 %19377 }
 0x5b6   : > { %v28063_v0 = vsel %vm30696_vm8, 1.0, %v30612_v18  ;;  %vm19732_vm5 = vcmp.lt.s32.totalorder %v30700_v56, 11  ;;  %vm30707_vm13 = vnez %v30669_v58  ;;  %vm28099_vm2 = vcmp.lt.s32.totalorder %v30712_v39, 11  ;;  %v30751_v56 = vld [vmem:[#allocation77_spill] sm:$0xff] }
 0x5b7   : > { %vm28075_vm6 = vcmp.lt.s32.totalorder %v30704_v11, 11  ;;  %vm30708_vm8 = vmand %vm27937_vm14, %vm30707_vm13  ;;  %vm30715_vm3 = vnez %v30681_v40  ;;  %vm19734_vm14 = vcmp.lt.s32.totalorder %v30718_v52, 11  ;;  %v30720_v59 = vshra.s32 %v30719_v34, 8  ;;  %v30739_v40 = vld [vmem:[#allocation59_spill] sm:$0xff]  ;;  %v30757_v11 = vld [vmem:[#allocation66_spill] sm:$0xff] }
 0x5b8   : > { %v28091_v32 = vsel %vm30708_vm8, 1.0, %v30612_v18  ;;  %vm30716_vm10 = vmand %vm27961_vm7, %vm30715_vm3  ;;  %v30724_v41 = vshra.s32 %v30723_v20, 8  ;;  %v28126_v12 = vsel %vm19730_vm1, 1.0, %v30612_v18  ;;  %v28129_v14 = vsel %vm19732_vm5, 1.0, %v30612_v18  ;;  %v30763_v52 = vld [vmem:[#allocation81_spill] sm:$0xff]  ;;  %v30767_v20 = vld [vmem:[#allocation72_spill] sm:$0xff] }
 0x5b9   : > { %v28109_v22 = vsel %vm30716_vm10, 1.0, %v30612_v18  ;;  %vm19736_vm13 = vcmp.lt.s32.totalorder %v30720_v59, 11  ;;  %vm30727_vm7 = vnez %v30689_v10  ;;  %v30732_v61 = vshra.s32 %v30731_v19, 8  ;;  %v30743_v10 = vld [vmem:[#allocation76_spill] sm:$0xff]  ;;  %v30769_v19 = vld [vmem:[#allocation87_spill] sm:$0xff] }
 0x5ba   : > { %vm28121_vm4 = vcmp.lt.s32.totalorder %v30724_v41, 11  ;;  %vm30728_vm10 = vmand %vm27983_vm0, %vm30727_vm7  ;;  %vm30735_vm5 = vnez %v30701_v13  ;;  %v30738_v21 = vshra.s32 %v30737_v54, 8  ;;  %v30740_v7 = vshra.s32 %v30739_v40, 8 }
 0x5bb   : > { %v28137_v58 = vsel %vm30728_vm10, 1.0, %v30612_v18  ;;  %vm28145_vm1 = vcmp.lt.s32.totalorder %v30732_v61, 11  ;;  %vm30736_vm8 = vmand %vm28007_vm11, %vm30735_vm5  ;;  %v30744_v28 = vshra.s32 %v30743_v10, 8  ;;  %v28172_v50 = vsel %vm19734_vm14, 1.0, %v30612_v18  ;;  %v30771_v61 = vld [vmem:[#allocation84_spill] sm:$0xff]  ;;  %v30780_v10 = vld [vmem:[#allocation74_spill] sm:$0xff] }
 0x5bc   : > { %v28155_v55 = vsel %vm30736_vm8, 1.0, %v30612_v18  ;;  %vm19738_vm0 = vcmp.lt.s32.totalorder %v30738_v21, 11  ;;  %vm19740_vm7 = vcmp.lt.s32.totalorder %v30740_v7, 11  ;;  %v28175_v45 = vsel %vm19736_vm13, 1.0, %v30612_v18 }
 0x5bd   : > { %vm28167_vm3 = vcmp.lt.s32.totalorder %v30744_v28, 11  ;;  %vm30747_vm11 = vnez %v30709_v49  ;;  %v30752_v13 = vshra.s32 %v30751_v56, 8  ;;  %vm30755_vm13 = vnez %v30721_v25  ;;  %v30782_v56 = vld [vmem:[#allocation88_spill] sm:$0xff] }
 0x5be   : > { %v30746_v27 = vsel %vm28167_vm3, 4294967295, %v30745_v27  ;;  %vm30748_vm8 = vmand %vm28029_vm15, %vm30747_vm11  ;;  %v30758_v49 = vshra.s32 %v30757_v11, 8  ;;  %v30760_v39 = vshra.s32 %v30759_v29, 8  ;;  %v30764_v34 = vshra.s32 %v30763_v52, 8  ;;  %v30790_v11 = vld [vmem:[#allocation79_spill] sm:$0xff]  ;;  %v30792_v29 = vld [vmem:[#allocation97_spill] sm:$0xff] }
 0x5bf   : > { %v28183_v3 = vsel %vm30748_vm8, 1.0, %v30612_v18  ;;  %vm28191_vm14 = vcmp.lt.s32.totalorder %v30752_v13, 11  ;;  %vm30756_vm10 = vmand %vm28053_vm12, %vm30755_vm13  ;;  %v28218_v59 = vsel %vm19738_vm0, 1.0, %v30612_v18  ;;  %v28221_v25 = vsel %vm19740_vm7, 1.0, %v30612_v18 }
 0x5c0   : > { %v28201_v31 = vsel %vm30756_vm10, 1.0, %v30612_v18  ;;  %vm19742_vm15 = vcmp.lt.s32.totalorder %v30758_v49, 11  ;;  %vm19744_vm11 = vcmp.lt.s32.totalorder %v30760_v39, 11  ;;  %vm28213_vm5 = vcmp.lt.s32.totalorder %v30764_v34, 11  ;;  %v30794_v39 = vld [vmem:[#allocation90_spill] sm:$0xff] }
 0x5c1   : > { %v30768_v41 = vshra.s32 %v30767_v20, 8  ;;  %v30772_v54 = vshra.s32 %v30771_v61, 8  ;;  %v30773_v21 = vmov 0  ;;  %vm30775_vm0 = vnez %v30729_v38 }
 0x5c2   : > { %vm30776_vm7 = vmand %vm28075_vm6, %vm30775_vm0  ;;  %vm30777_vm8 = vnez %v30741_v57  ;;  %v30781_v28 = vshra.s32 %v30780_v10, 8  ;;  %vm30783_vm3 = vnez %v30782_v56  ;;  %v30785_v38 = vshra.s32 %v30784_v36, 8  ;;  %v30815_v36 = vld [vmem:[#allocation91_spill] sm:$0xff] }
 0x5c3   : > { %vm19746_vm12 = vcmp.lt.s32.totalorder %v30768_v41, 11  ;;  %vm28231_vm9 = vcmp.lt.s32.totalorder %v30772_v54, 11  ;;  %v28241_v40 = vsel %vm30776_vm7, 1.0, %v30612_v18  ;;  %vm30778_vm13 = vmand %vm28099_vm2, %vm30777_vm8  ;;  %v28264_v6 = vsel %vm19742_vm15, 1.0, %v30612_v18  ;;  %v30805_v54 = vld [vmem:[#allocation85_spill] sm:$0xff] }
 0x5c4   : > { %v30774_v21 = vsel %vm28231_vm9, 4294967295, %v30773_v21  ;;  %v28249_v7 = vsel %vm30778_vm13, 1.0, %v30612_v18  ;;  %vm19748_vm10 = vcmp.lt.s32.totalorder %v30781_v28, 11  ;;  %vm28259_vm6 = vcmp.lt.s32.totalorder %v30785_v38, 11  ;;  %30788 = vst [vmem:[#allocation165_spill] sm:$0xff] %v28264_v6 }
 0x5c5   : > { %30779 = vst [vmem:[#allocation118_spill] sm:$0xff] %v28249_v7  ;;  %v28267_v57 = vsel %vm19744_vm11, 1.0, %v30612_v18  ;;  %v30791_v49 = vshra.s32 %v30790_v11, 8  ;;  %v30795_v52 = vshra.s32 %v30794_v39, 8  ;;  %vm30798_vm15 = vnez %v30749_v5  ;;  %v30821_v39 = vld [vmem:[#allocation94_spill] sm:$0xff] }
 0x5c6   : > { %30789 = vst [vmem:[#allocation168_spill] sm:$0xff] %v28267_v57  ;;  %vm30799_vm11 = vmand %vm28121_vm4, %vm30798_vm15  ;;  %vm30801_vm7 = vnez %v30761_v24  ;;  %v28298_v61 = vsel %vm19746_vm12, 1.0, %v30612_v18  ;;  %v30806_v10 = vshra.s32 %v30805_v54, 8  ;;  %vm30808_vm8 = vnez %v30807_v17  ;;  %v30858_v17 = vld [vmem:[#allocation110_spill] sm:$0xff]  ;;  %v30879_v57 = vld [vmem:[#allocation133_spill] sm:$0xff] }
 0x5c7   : > { %vm19750_vm2 = vcmp.lt.s32.totalorder %v30791_v49, 11  ;;  %vm28277_vm0 = vcmp.lt.s32.totalorder %v30795_v52, 11  ;;  %v28287_v20 = vsel %vm30799_vm11, 1.0, %v30612_v18  ;;  %vm30802_vm13 = vmand %vm28145_vm1, %vm30801_vm7  ;;  %30804 = vst [vmem:[#allocation163_spill] sm:$0xff] %v28298_v61  ;;  %vm30809_vm4 = vnez %v30774_v21  ;;  %v30819_v49 = vld [vmem:[#allocation99_spill] sm:$0xff] }
 0x5c8   : > { %30800 = vst [vmem:[#allocation157_spill] sm:$0xff] %v28287_v20  ;;  %v28295_v41 = vsel %vm30802_vm13, 1.0, %v30612_v18  ;;  %vm19752_vm9 = vcmp.lt.s32.totalorder %v30806_v10, 11  ;;  %v28307_v5 = vsel %vm19748_vm10, 1.0, %v30612_v18  ;;  %v30812_v28 = vshra.s32 %v30811_v4, 8  ;;  %vm30829_vm13 = vmand %vm28191_vm14, %vm30783_vm3 }
 0x5c9   : > { %30803 = vst [vmem:[#allocation125_spill] sm:$0xff] %v28295_v41  ;;  %30810 = vst [vmem:[#allocation120_spill] sm:$0xff] %v28307_v5  ;;  %v30813_v24 = vmov 0  ;;  %v30816_v38 = vshra.s32 %v30815_v36, 8  ;;  %v30822_v52 = vshra.s32 %v30821_v39, 8  ;;  %v30823_v54 = vmov 0 }
 0x5ca   : > { %vm28311_vm11 = vcmp.lt.s32.totalorder %v30812_v28, 11  ;;  %vm30825_vm7 = vnez %v30746_v27  ;;  %vm30826_vm15 = vnez %v30769_v19  ;;  %v28345_v4 = vsel %vm30829_vm13, 1.0, %v30612_v18  ;;  %v30832_v36 = vld [vmem:[#allocation101_spill] sm:$0xff]  ;;  %v30834_v27 = vld [vmem:[#allocation92_spill] sm:$0xff]  ;;  %v30877_v41 = vld [vmem:[#allocation114_spill] sm:$0xff] }
 0x5cb   : > { %v30814_v24 = vsel %vm28311_vm11, 4294967295, %v30813_v24  ;;  %vm28317_vm1 = vcmp.lt.s32.totalorder %v30816_v38, 11  ;;  %vm28327_vm10 = vcmp.lt.s32.totalorder %v30822_v52, 11  ;;  %vm30827_vm11 = vmand %vm30825_vm7, %vm30826_vm15  ;;  %30830 = vst [vmem:[#allocation119_spill] sm:$0xff] %v28345_v4  ;;  %v28348_v28 = vsel %vm19750_vm2, 1.0, %v30612_v18  ;;  %v30842_v52 = vld [vmem:[#allocation93_spill] sm:$0xff] }
 0x5cc   : > { %v30824_v54 = vsel %vm28327_vm10, 4294967295, %v30823_v54  ;;  %v28337_v10 = vsel %vm30827_vm11, 1.0, %v30612_v18  ;;  %30831 = vst [vmem:[#allocation131_spill] sm:$0xff] %v28348_v28  ;;  %vm30833_vm10 = vnez %v30832_v36  ;;  %v30835_v19 = vshra.s32 %v30834_v27, 8  ;;  %v30868_v38 = vld [vmem:[#allocation117_spill] sm:$0xff] }
 0x5cd   : > { %30828 = vst [vmem:[#allocation127_spill] sm:$0xff] %v28337_v10  ;;  %vm19821_vm12 = vmand %vm28277_vm0, %vm30833_vm10  ;;  %v28363_v56 = vsel %vm19752_vm9, 1.0, %v30612_v18  ;;  %vm30839_vm3 = vnez %v30792_v29  ;;  %v30843_v28 = vshra.s32 %v30842_v52, 8  ;;  %v28385_v10 = vpop.permute.xlu1 %19382  ;;  %vm30855_vm13 = vnez %v30819_v49  ;;  %v30863_v49 = vld [vmem:[#allocation115_spill] sm:$0xff] }
 0x5ce   : > { %vm28356_vm15 = vcmp.lt.s32.totalorder %v30835_v19, 11  ;;  %30838 = vst [vmem:[#allocation128_spill] sm:$0xff] %v28363_v56  ;;  %vm30840_vm14 = vmand %vm28213_vm5, %vm30839_vm3  ;;  %v30846_v19 = vld [vmem:[#allocation100_spill] sm:$0xff]  ;;  %vm30852_vm5 = vnez %v30814_v24  ;;  %v28424_v13 = vsel %vm19821_vm12, 1.0, %v30612_v18  ;;  %vm30869_vm0 = vnez %v30868_v38 }
 0x5cf   : > { %v28371_v39 = vsel %vm30840_vm14, 1.0, %v30612_v18  ;;  %vm28375_vm2 = vcmp.lt.s32.totalorder %v30843_v28, 11  ;;  %v30847_v4 = vshra.s32 %v30846_v19, 8  ;;  %vm30850_vm9 = vmand %vm30809_vm4, %vm30808_vm8  ;;  %v28398_v29 = vsel %vm30852_vm5, 1.0, %v30612_v18  ;;  %30861 = vst [vmem:[#allocation96_spill] sm:$0xff] %v28424_v13 }
 0x5d0   : > { %30841 = vst [vmem:[#allocation129_spill] sm:$0xff] %v28371_v39  ;;  %v28393_v44 = vsel %vm30850_vm9, 1.0, %v30612_v18  ;;  %30853 = vst [vmem:[#allocation169_spill] sm:$0xff] %v28398_v29  ;;  %vm30859_vm8 = vnez %v30858_v17  ;;  %vm30860_vm4 = vnez %v30824_v54  ;;  %v28429_v11 = vsel %vm28356_vm15, 1.0, %v30612_v18 }
 0x5d1   : > { %vm28381_vm11 = vcmp.lt.s32.totalorder %v30847_v4, 11  ;;  %30851 = vst [vmem:[#allocation135_spill] sm:$0xff] %v28393_v44  ;;  %v28403_v4 = vsel %vm28317_vm1, 1.0, %v30612_v18  ;;  %vm30856_vm7 = vmand %vm28259_vm6, %vm30855_vm13  ;;  %v30864_v19 = vshra.s32 %v30863_v49, 8  ;;  %v28442_v13 = vsel %vm28375_vm2, 1.0, %v30612_v18  ;;  %v30870_v49 = vld [vmem:[#allocation116_spill] sm:$0xff] }
 0x5d2   : > { %30854 = vst [vmem:[#allocation62_spill] sm:$0xff] %v28403_v4  ;;  %v28411_v21 = vsel %vm30856_vm7, 1.0, %v30612_v18  ;;  %vm19823_vm3 = vmand %vm30860_vm4, %vm30859_vm8  ;;  %vm30880_vm14 = vnez %v30879_v57 }
 0x5d3   : > { %30857 = vst [vmem:[#allocation65_spill] sm:$0xff] %v28411_v21  ;;  %30862 = vst [vmem:[#allocation147_spill] sm:$0xff] %v28429_v11  ;;  %vm28433_vm6 = vcmp.lt.s32.totalorder %v30864_v19, 11  ;;  %v30871_v19 = vshra.s32 %v30870_v49, 8  ;;  %v28462_v27 = vsel %vm19823_vm3, 1.0, %v30612_v18 }
 0x5d4   : > { %30867 = vst [vmem:[#allocation145_spill] sm:$0xff] %v28442_v13  ;;  %vm19825_vm1 = vmand %vm28381_vm11, %vm30869_vm0  ;;  %v30875_v13 = vld [vmem:[#allocation112_spill] sm:$0xff] }
 0x5d5   : > { %vm28450_vm12 = vcmp.lt.s32.totalorder %v30871_v19, 11  ;;  %30874 = vst [vmem:[#allocation149_spill] sm:$0xff] %v28462_v27  ;;  %v30876_v49 = vshra.s32 %v30875_v13, 8  ;;  %vm19827_vm2 = vmand %vm28433_vm6, %vm30880_vm14  ;;  %v28481_v13 = vsel %vm19825_vm1, 1.0, %v30612_v18  ;;  %vm30931_vm1 = vcmask 7168  }
 0x5d6   : > { %30881 = vst [vmem:[#allocation154_spill] sm:$0xff] %v28481_v13 }
 0x5d7   : > { %vm19762_vm10 = vcmp.lt.s32.totalorder %v30876_v49, 11 }
 0x603   : > { %v17946_v56 = vpop.f32.mrb[68].mxu1 }
 0x604   : > { %v19387_v28 = vadd.f32 %v28360_v62, %v17946_v56  ;;  %v17948_v52 = vpop.f32.mrb[69].mxu1 }
 0x605   : > { %v19388_v34 = vadd.f32 %v28360_v62, %v17948_v52  ;;  %v17950_v36 = vpop.f32.mrb[70].mxu1 }
 0x606   : > { %v17903_v24 = vpop.f32.mrb[68].mxu0  ;;  %v19451_v29 = vadd.f32 %v28385_v10, %v17950_v36  ;;  %v17952_v44 = vpop.f32.mrb[71].mxu1  ;;  %v30878_v36 = vshra.s32 %v30877_v41, 8  ;;  %v19515_v54 = vmax.f32 %v19387_v28, 0.0 }
 0x607   : > { %v19385_v56 = vadd.f32 %v28360_v62, %v17903_v24  ;;  %v17905_v21 = vpop.f32.mrb[69].mxu0 }
 0x608   : > { %v19386_v24 = vadd.f32 %v28360_v62, %v17905_v21  ;;  %v17907_v52 = vpop.f32.mrb[70].mxu0  ;;  %v19452_v21 = vadd.f32 %v28385_v10, %v17952_v44  ;;  %vm19764_vm15 = vcmp.lt.s32.totalorder %v30878_v36, 11  ;;  %v30882_v44 = vld [vmem:[#allocation141_spill] sm:$0xff] }
 0x609   : > { %v19513_v19 = vmax.f32 %v19385_v56, 0.0  ;;  %v19449_v39 = vadd.f32 %v28385_v10, %v17907_v52  ;;  %v17909_v61 = vpop.f32.mrb[71].mxu0  ;;  %vm30883_vm9 = vnez %v30882_v44  ;;  %v19516_v56 = vmax.f32 %v19388_v34, 0.0 }
 0x60a   : > { %v19514_v17 = vmax.f32 %v19386_v24, 0.0  ;;  %v19450_v27 = vadd.f32 %v28385_v10, %v17909_v61  ;;  %vm19829_vm5 = vmand %vm28450_vm12, %vm30883_vm9  ;;  %v28489_v24 = vsel %vm19762_vm10, 1.0, %v30612_v18  ;;  %v19579_v52 = vmax.f32 %v19451_v29, 0.0 }
 0x60b   : > { %v19964_v41 = vmul.f32 %v27860_v48, %v19513_v19  ;;  %v19577_v28 = vmax.f32 %v19449_v39, 0.0  ;;  %30884 = vst [vmem:[#allocation103_spill] sm:$0xff] %v28489_v24  ;;  %v28493_v38 = vsel %vm19764_vm15, 1.0, %v30612_v18  ;;  %v19580_v36 = vmax.f32 %v19452_v21, 0.0  ;;  %v18032_v44 = vpop.f32.mrb[72].mxu1  ;;  %vm30932_vm12 = vmmov %vm30931_vm1 }
 0x60c   : > { %v19965_v61 = vmul.f32 %v27866_v26, %v19514_v17  ;;  %v19578_v5 = vmax.f32 %v19450_v27, 0.0  ;;  %30885 = vst [vmem:[#allocation104_spill] sm:$0xff] %v28493_v38  ;;  %v28502_v39 = vsel %vm19827_vm2, 1.0, %v30612_v18  ;;  %v28505_v11 = vsel %vm19829_vm5, 1.0, %v30612_v18  ;;  %v18034_v21 = vpop.f32.mrb[73].mxu1 }
 0x60d   : > { %v20028_v49 = vmul.f32 %v27860_v48, %v19577_v28  ;;  %30886 = vst [vmem:[#allocation109_spill] sm:$0xff] %v28502_v39  ;;  %30887 = vst [vmem:[#allocation107_spill] sm:$0xff] %v28505_v11  ;;  %v19966_v29 = vmul.f32 %v27863_v23, %v19515_v54  ;;  %v19391_v48 = vadd.f32 %v28360_v62, %v18032_v44  ;;  %v18036_v38 = vpop.f32.mrb[74].mxu1  ;;  %v30888_v39 = vld [vmem:[#allocation132_spill] sm:$0xff] }
 0x60e   : > { %v20092_v34 = vadd.f32 %v19965_v61, %v19964_v41  ;;  %v20029_v27 = vmul.f32 %v27866_v26, %v19578_v5  ;;  %v17989_v19 = vpop.f32.mrb[72].mxu0  ;;  %v19967_v17 = vmul.f32 %v27879_v1, %v19516_v56  ;;  %v19392_v28 = vadd.f32 %v28360_v62, %v18034_v21  ;;  %v18038_v56 = vpop.f32.mrb[75].mxu1 }
 0x60f   : > { %v19389_v4 = vadd.f32 %v28360_v62, %v17989_v19  ;;  %v17991_v57 = vpop.f32.mrb[73].mxu0  ;;  %v30889_v24 = vshra.s32 %v30888_v39, 8  ;;  %v20030_v26 = vmul.f32 %v27863_v23, %v19579_v52  ;;  %v20031_v44 = vmul.f32 %v27879_v1, %v19580_v36 }
 0x610   : > { %v20093_v54 = vadd.f32 %v20092_v34, %v19966_v29  ;;  %v20157_v41 = vadd.f32 %v20029_v27, %v20028_v49  ;;  %v19390_v61 = vadd.f32 %v28360_v62, %v17991_v57  ;;  %v17993_v5 = vpop.f32.mrb[74].mxu0  ;;  %v19455_v13 = vadd.f32 %v28385_v10, %v18036_v38  ;;  %v30892_v49 = vld [vmem:[#allocation138_spill] sm:$0xff] }
 0x611   : > { %vm28515_vm11 = vcmp.lt.s32.totalorder %v30889_v24, 11  ;;  %v19517_v19 = vmax.f32 %v19389_v4, 0.0  ;;  %v19453_v21 = vadd.f32 %v28385_v10, %v17993_v5  ;;  %v17995_v39 = vpop.f32.mrb[75].mxu0  ;;  %v19519_v6 = vmax.f32 %v19391_v48, 0.0 }
 0x612   : > { %v20094_v24 = vadd.f32 %v20093_v54, %v19967_v17  ;;  %v20158_v20 = vadd.f32 %v20157_v41, %v20030_v26  ;;  %v19518_v7 = vmax.f32 %v19390_v61, 0.0  ;;  %v19520_v23 = vmax.f32 %v19392_v28, 0.0 }
 0x613   : > { %v19968_v29 = vmul.f32 %v27896_v37, %v19517_v19  ;;  %v19581_v52 = vmax.f32 %v19453_v21, 0.0  ;;  %v30893_v34 = vshra.s32 %v30892_v49, 8  ;;  %v19454_v36 = vadd.f32 %v28385_v10, %v17995_v39  ;;  %v18118_v48 = vpop.f32.mrb[76].mxu1 }
 0x614   : > { %v20159_v27 = vadd.f32 %v20158_v20, %v20031_v44  ;;  %v19969_v1 = vmul.f32 %v27907_v53, %v19518_v7  ;;  %v19456_v4 = vadd.f32 %v28385_v10, %v18038_v56  ;;  %v19583_v57 = vmax.f32 %v19455_v13, 0.0  ;;  %v18120_v41 = vpop.f32.mrb[77].mxu1 }
 0x615   : > { %vm19768_vm13 = vcmp.lt.s32.totalorder %v30893_v34, 11  ;;  %v20095_v38 = vadd.f32 %v20094_v24, %v19968_v29  ;;  %v20032_v17 = vmul.f32 %v27896_v37, %v19581_v52  ;;  %v28534_v28 = vsel %vm28515_vm11, 1.0, %v30612_v18  ;;  %v18122_v19 = vpop.f32.mrb[78].mxu1 }
 0x616   : > { %v19970_v54 = vmul.f32 %v27899_v43, %v19519_v6  ;;  %v19582_v26 = vmax.f32 %v19454_v36, 0.0  ;;  %v18075_v20 = vpop.f32.mrb[76].mxu0  ;;  %v19395_v7 = vadd.f32 %v28360_v62, %v18118_v48  ;;  %v28539_v61 = vsel %vm19768_vm13, 1.0, %v30612_v18  ;;  %v18124_v29 = vpop.f32.mrb[79].mxu1 }
 0x617   : > { %v20096_v5 = vadd.f32 %v20095_v38, %v19969_v1  ;;  %v20160_v56 = vadd.f32 %v20159_v27, %v20032_v17  ;;  %v19584_v37 = vmax.f32 %v19456_v4, 0.0  ;;  %v19393_v13 = vadd.f32 %v28360_v62, %v18075_v20  ;;  %v18077_v44 = vpop.f32.mrb[77].mxu0 }
 0x618   : > { %v19971_v11 = vmul.f32 %v27925_v42, %v19520_v23  ;;  %v20033_v21 = vmul.f32 %v27907_v53, %v19582_v26  ;;  %v19394_v6 = vadd.f32 %v28360_v62, %v18077_v44  ;;  %v19396_v39 = vadd.f32 %v28360_v62, %v18120_v41  ;;  %v18079_v24 = vpop.f32.mrb[78].mxu0 }
 0x619   : > { %v20097_v52 = vadd.f32 %v20096_v5, %v19970_v54  ;;  %v20034_v49 = vmul.f32 %v27899_v43, %v19583_v57  ;;  %v19521_v34 = vmax.f32 %v19393_v13, 0.0  ;;  %v19457_v27 = vadd.f32 %v28385_v10, %v18079_v24  ;;  %v18081_v1 = vpop.f32.mrb[79].mxu0 }
 0x61a   : > { %v20161_v36 = vadd.f32 %v20160_v56, %v20033_v21  ;;  %v19523_v4 = vmax.f32 %v19395_v7, 0.0  ;;  %v19522_v38 = vmax.f32 %v19394_v6, 0.0  ;;  %v19459_v23 = vadd.f32 %v28385_v10, %v18122_v19 }
 0x61b   : > { %v20098_v17 = vadd.f32 %v20097_v52, %v19971_v11  ;;  %v20035_v53 = vmul.f32 %v27925_v42, %v19584_v37  ;;  %v19972_v48 = vmul.f32 %v27942_v35, %v19521_v34  ;;  %v19585_v26 = vmax.f32 %v19457_v27, 0.0  ;;  %v18204_v13 = vpop.f32.mrb[80].mxu1 }
 0x61c   : > { %v20162_v20 = vadd.f32 %v20161_v36, %v20034_v49  ;;  %v19973_v54 = vmul.f32 %v27953_v2, %v19522_v38  ;;  %v19524_v41 = vmax.f32 %v19396_v39, 0.0  ;;  %v19458_v43 = vadd.f32 %v28385_v10, %v18081_v1  ;;  %v18206_v21 = vpop.f32.mrb[81].mxu1 }
 0x61d   : > { %v20099_v57 = vadd.f32 %v20098_v17, %v19972_v48  ;;  %v20036_v5 = vmul.f32 %v27942_v35, %v19585_v26  ;;  %v19587_v56 = vmax.f32 %v19459_v23, 0.0  ;;  %v19460_v7 = vadd.f32 %v28385_v10, %v18124_v29  ;;  %v18208_v35 = vpop.f32.mrb[82].mxu1 }
 0x61e   : > { %v20163_v44 = vadd.f32 %v20162_v20, %v20035_v53  ;;  %v19974_v19 = vmul.f32 %v27945_v33, %v19523_v4  ;;  %v19586_v42 = vmax.f32 %v19458_v43, 0.0  ;;  %v18161_v37 = vpop.f32.mrb[80].mxu0  ;;  %v19399_v11 = vadd.f32 %v28360_v62, %v18204_v13  ;;  %v18210_v4 = vpop.f32.mrb[83].mxu1 }
 0x61f   : > { %v20100_v6 = vadd.f32 %v20099_v57, %v19973_v54  ;;  %v19588_v24 = vmax.f32 %v19460_v7, 0.0  ;;  %v19397_v39 = vadd.f32 %v28360_v62, %v18161_v37  ;;  %v18163_v52 = vpop.f32.mrb[81].mxu0  ;;  %v19400_v49 = vadd.f32 %v28360_v62, %v18206_v21 }
 0x620   : > { %v19975_v34 = vmul.f32 %v27971_v63, %v19524_v41  ;;  %v20164_v29 = vadd.f32 %v20163_v44, %v20036_v5  ;;  %v20037_v27 = vmul.f32 %v27953_v2, %v19586_v42  ;;  %v19398_v1 = vadd.f32 %v28360_v62, %v18163_v52  ;;  %v18165_v36 = vpop.f32.mrb[82].mxu0 }
 0x621   : > { %v20101_v38 = vadd.f32 %v20100_v6, %v19974_v19  ;;  %v20038_v23 = vmul.f32 %v27945_v33, %v19587_v56  ;;  %v19525_v17 = vmax.f32 %v19397_v39, 0.0  ;;  %v19527_v53 = vmax.f32 %v19399_v11, 0.0  ;;  %v18167_v48 = vpop.f32.mrb[83].mxu0 }
 0x622   : > { %v20165_v26 = vadd.f32 %v20164_v29, %v20037_v27  ;;  %v20039_v20 = vmul.f32 %v27971_v63, %v19588_v24  ;;  %v19526_v54 = vmax.f32 %v19398_v1, 0.0  ;;  %v19461_v43 = vadd.f32 %v28385_v10, %v18165_v36 }
 0x623   : > { %v20102_v41 = vadd.f32 %v20101_v38, %v19975_v34  ;;  %v19976_v57 = vmul.f32 %v27988_v16, %v19525_v17  ;;  %v19528_v2 = vmax.f32 %v19400_v49, 0.0  ;;  %v19463_v5 = vadd.f32 %v28385_v10, %v18208_v35  ;;  %v18290_v37 = vpop.f32.mrb[84].mxu1 }
 0x624   : > { %v20166_v7 = vadd.f32 %v20165_v26, %v20038_v23  ;;  %v19977_v13 = vmul.f32 %v27999_v15, %v19526_v54  ;;  %v19589_v44 = vmax.f32 %v19461_v43, 0.0  ;;  %v19462_v33 = vadd.f32 %v28385_v10, %v18167_v48  ;;  %v18292_v52 = vpop.f32.mrb[85].mxu1 }
 0x625   : > { %v20103_v56 = vadd.f32 %v20102_v41, %v19976_v57  ;;  %v19978_v19 = vmul.f32 %v27991_v8, %v19527_v53  ;;  %v19591_v42 = vmax.f32 %v19463_v5, 0.0  ;;  %v19464_v63 = vadd.f32 %v28385_v10, %v18210_v4  ;;  %v18294_v1 = vpop.f32.mrb[86].mxu1 }
 0x626   : > { %v20167_v11 = vadd.f32 %v20166_v7, %v20039_v20  ;;  %v20040_v21 = vmul.f32 %v27988_v16, %v19589_v44  ;;  %v19590_v6 = vmax.f32 %v19462_v33, 0.0  ;;  %v18247_v24 = vpop.f32.mrb[84].mxu0  ;;  %v19403_v39 = vadd.f32 %v28360_v62, %v18290_v37  ;;  %v18296_v17 = vpop.f32.mrb[87].mxu1 }
 0x627   : > { %v20104_v49 = vadd.f32 %v20103_v56, %v19977_v13  ;;  %v19979_v35 = vmul.f32 %v28017_v60, %v19528_v2  ;;  %v19592_v34 = vmax.f32 %v19464_v63, 0.0  ;;  %v19401_v29 = vadd.f32 %v28360_v62, %v18247_v24  ;;  %v18249_v27 = vpop.f32.mrb[85].mxu0 }
 0x628   : > { %v20168_v36 = vadd.f32 %v20167_v11, %v20040_v21  ;;  %v20042_v4 = vmul.f32 %v27991_v8, %v19591_v42  ;;  %v20041_v38 = vmul.f32 %v27999_v15, %v19590_v6  ;;  %v19402_v16 = vadd.f32 %v28360_v62, %v18249_v27  ;;  %v18251_v23 = vpop.f32.mrb[86].mxu0 }
 0x629   : > { %v20105_v53 = vadd.f32 %v20104_v49, %v19978_v19  ;;  %v19529_v48 = vmax.f32 %v19401_v29, 0.0  ;;  %v19531_v26 = vmax.f32 %v19403_v39, 0.0  ;;  %v19404_v20 = vadd.f32 %v28360_v62, %v18292_v52  ;;  %v18253_v54 = vpop.f32.mrb[87].mxu0 }
 0x62a   : > { %v20169_v43 = vadd.f32 %v20168_v36, %v20041_v38  ;;  %v20043_v41 = vmul.f32 %v28017_v60, %v19592_v34  ;;  %v19530_v57 = vmax.f32 %v19402_v16, 0.0  ;;  %v19465_v2 = vadd.f32 %v28385_v10, %v18251_v23 }
 0x62b   : > { %v20106_v5 = vadd.f32 %v20105_v53, %v19979_v35  ;;  %v19980_v8 = vmul.f32 %v28034_v51, %v19529_v48  ;;  %v19532_v15 = vmax.f32 %v19404_v20, 0.0  ;;  %v19467_v7 = vadd.f32 %v28385_v10, %v18294_v1  ;;  %v18376_v37 = vpop.f32.mrb[88].mxu1 }
 0x62c   : > { %v20170_v13 = vadd.f32 %v20169_v43, %v20042_v4  ;;  %v19981_v44 = vmul.f32 %v28045_v47, %v19530_v57  ;;  %v19593_v33 = vmax.f32 %v19465_v2, 0.0  ;;  %v19466_v56 = vadd.f32 %v28385_v10, %v18253_v54  ;;  %v18378_v52 = vpop.f32.mrb[89].mxu1 }
 0x62d   : > { %v20107_v19 = vadd.f32 %v20106_v5, %v19980_v8  ;;  %v19982_v42 = vmul.f32 %v28037_v30, %v19531_v26  ;;  %v19595_v63 = vmax.f32 %v19467_v7, 0.0  ;;  %v19468_v60 = vadd.f32 %v28385_v10, %v18296_v17  ;;  %v18380_v1 = vpop.f32.mrb[90].mxu1 }
 0x62e   : > { %v20171_v11 = vadd.f32 %v20170_v13, %v20043_v41  ;;  %v20044_v21 = vmul.f32 %v28034_v51, %v19593_v33  ;;  %v19594_v6 = vmax.f32 %v19466_v56, 0.0  ;;  %v18333_v24 = vpop.f32.mrb[88].mxu0  ;;  %v19407_v39 = vadd.f32 %v28360_v62, %v18376_v37  ;;  %v18382_v23 = vpop.f32.mrb[91].mxu1 }
 0x62f   : > { %v20108_v49 = vadd.f32 %v20107_v19, %v19981_v44  ;;  %v19983_v35 = vmul.f32 %v28063_v0, %v19532_v15  ;;  %v19596_v34 = vmax.f32 %v19468_v60, 0.0  ;;  %v19405_v29 = vadd.f32 %v28360_v62, %v18333_v24  ;;  %v18335_v27 = vpop.f32.mrb[89].mxu0 }
 0x630   : > { %v20172_v36 = vadd.f32 %v20171_v11, %v20044_v21  ;;  %v20046_v4 = vmul.f32 %v28037_v30, %v19595_v63  ;;  %v20045_v38 = vmul.f32 %v28045_v47, %v19594_v6  ;;  %v19406_v51 = vadd.f32 %v28360_v62, %v18335_v27  ;;  %v18337_v16 = vpop.f32.mrb[90].mxu0 }
 0x631   : > { %v20109_v17 = vadd.f32 %v20108_v49, %v19982_v42  ;;  %v19533_v53 = vmax.f32 %v19405_v29, 0.0  ;;  %v19535_v48 = vmax.f32 %v19407_v39, 0.0  ;;  %v19408_v26 = vadd.f32 %v28360_v62, %v18378_v52  ;;  %v18339_v20 = vpop.f32.mrb[91].mxu0 }
 0x632   : > { %v20173_v54 = vadd.f32 %v20172_v36, %v20045_v38  ;;  %v20047_v43 = vmul.f32 %v28063_v0, %v19596_v34  ;;  %v19534_v41 = vmax.f32 %v19406_v51, 0.0  ;;  %v19469_v57 = vadd.f32 %v28385_v10, %v18337_v16 }
 0x633   : > { %v20110_v2 = vadd.f32 %v20109_v17, %v19983_v35  ;;  %v19984_v30 = vmul.f32 %v28080_v46, %v19533_v53  ;;  %v19536_v47 = vmax.f32 %v19408_v26, 0.0  ;;  %v19471_v5 = vadd.f32 %v28385_v10, %v18380_v1  ;;  %v18462_v19 = vpop.f32.mrb[92].mxu1 }
 0x634   : > { %v20174_v8 = vadd.f32 %v20173_v54, %v20046_v4  ;;  %v19985_v15 = vmul.f32 %v28091_v32, %v19534_v41  ;;  %v19597_v7 = vmax.f32 %v19469_v57, 0.0  ;;  %v19470_v13 = vadd.f32 %v28385_v10, %v18339_v20  ;;  %v18464_v21 = vpop.f32.mrb[93].mxu1 }
 0x635   : > { %v20111_v44 = vadd.f32 %v20110_v2, %v19984_v30  ;;  %v19986_v33 = vmul.f32 %v28083_v9, %v19535_v48  ;;  %v19599_v56 = vmax.f32 %v19471_v5, 0.0  ;;  %v19472_v0 = vadd.f32 %v28385_v10, %v18382_v23  ;;  %v18466_v35 = vpop.f32.mrb[94].mxu1 }
 0x636   : > { %v20175_v42 = vadd.f32 %v20174_v8, %v20047_v43  ;;  %v20048_v63 = vmul.f32 %v28080_v46, %v19597_v7  ;;  %v19598_v60 = vmax.f32 %v19470_v13, 0.0  ;;  %v18419_v37 = vpop.f32.mrb[92].mxu0  ;;  %v19411_v11 = vadd.f32 %v28360_v62, %v18462_v19  ;;  %v18468_v36 = vpop.f32.mrb[95].mxu1 }
 0x637   : > { %v20112_v6 = vadd.f32 %v20111_v44, %v19985_v15  ;;  %v19987_v24 = vmul.f32 %v28109_v22, %v19536_v47  ;;  %v19600_v39 = vmax.f32 %v19472_v0, 0.0  ;;  %v19409_v52 = vadd.f32 %v28360_v62, %v18419_v37  ;;  %v18421_v49 = vpop.f32.mrb[93].mxu0 }
 0x638   : > { %v20176_v34 = vadd.f32 %v20175_v42, %v20048_v63  ;;  %v20050_v29 = vmul.f32 %v28083_v9, %v19599_v56  ;;  %v20049_v27 = vmul.f32 %v28091_v32, %v19598_v60  ;;  %v19410_v46 = vadd.f32 %v28360_v62, %v18421_v49  ;;  %v18423_v1 = vpop.f32.mrb[94].mxu0 }
 0x639   : > { %v20113_v4 = vadd.f32 %v20112_v6, %v19986_v33  ;;  %v19537_v38 = vmax.f32 %v19409_v52, 0.0  ;;  %v19539_v51 = vmax.f32 %v19411_v11, 0.0  ;;  %v19412_v16 = vadd.f32 %v28360_v62, %v18464_v21  ;;  %v18425_v23 = vpop.f32.mrb[95].mxu0 }
 0x63a   : > { %v20177_v17 = vadd.f32 %v20176_v34, %v20049_v27  ;;  %v20051_v53 = vmul.f32 %v28109_v22, %v19600_v39  ;;  %v19538_v48 = vmax.f32 %v19410_v46, 0.0  ;;  %v19473_v26 = vadd.f32 %v28385_v10, %v18423_v1 }
 0x63b   : > { %v20114_v20 = vadd.f32 %v20113_v4, %v19987_v24  ;;  %v19988_v9 = vmul.f32 %v28126_v12, %v19537_v38  ;;  %v19540_v32 = vmax.f32 %v19412_v16, 0.0  ;;  %v19475_v54 = vadd.f32 %v28385_v10, %v18466_v35  ;;  %v18548_v8 = vpop.f32.mrb[96].mxu1 }
 0x63c   : > { %v20178_v43 = vadd.f32 %v20177_v17, %v20050_v29  ;;  %v19989_v41 = vmul.f32 %v28137_v58, %v19538_v48  ;;  %v19601_v57 = vmax.f32 %v19473_v26, 0.0  ;;  %v19474_v2 = vadd.f32 %v28385_v10, %v18425_v23  ;;  %v18550_v56 = vpop.f32.mrb[97].mxu1 }
 0x63d   : > { %v20115_v30 = vadd.f32 %v20114_v20, %v19988_v9  ;;  %v19990_v47 = vmul.f32 %v28129_v14, %v19539_v51  ;;  %v19603_v5 = vmax.f32 %v19475_v54, 0.0  ;;  %v19476_v22 = vadd.f32 %v28385_v10, %v18468_v36  ;;  %v18552_v37 = vpop.f32.mrb[98].mxu1 }
 0x63e   : > { %v20179_v15 = vadd.f32 %v20178_v43, %v20051_v53  ;;  %v20052_v7 = vmul.f32 %v28126_v12, %v19601_v57  ;;  %v19602_v13 = vmax.f32 %v19474_v2, 0.0  ;;  %v18505_v44 = vpop.f32.mrb[96].mxu0  ;;  %v19415_v33 = vadd.f32 %v28360_v62, %v18548_v8  ;;  %v18554_v39 = vpop.f32.mrb[99].mxu1 }
 0x63f   : > { %v20116_v0 = vadd.f32 %v20115_v30, %v19989_v41  ;;  %v19991_v19 = vmul.f32 %v28155_v55, %v19540_v32  ;;  %v19604_v42 = vmax.f32 %v19476_v22, 0.0  ;;  %v19413_v63 = vadd.f32 %v28360_v62, %v18505_v44  ;;  %v18507_v60 = vpop.f32.mrb[97].mxu0 }
 0x640   : > { %v20180_v11 = vadd.f32 %v20179_v15, %v20052_v7  ;;  %v20054_v21 = vmul.f32 %v28129_v14, %v19603_v5  ;;  %v20053_v6 = vmul.f32 %v28137_v58, %v19602_v13  ;;  %v19414_v12 = vadd.f32 %v28360_v62, %v18507_v60  ;;  %v18509_v24 = vpop.f32.mrb[98].mxu0 }
 0x641   : > { %v20117_v52 = vadd.f32 %v20116_v0, %v19990_v47  ;;  %v19541_v49 = vmax.f32 %v19413_v63, 0.0  ;;  %v19543_v35 = vmax.f32 %v19415_v33, 0.0  ;;  %v19416_v34 = vadd.f32 %v28360_v62, %v18550_v56  ;;  %v18511_v29 = vpop.f32.mrb[99].mxu0 }
 0x642   : > { %v20181_v27 = vadd.f32 %v20180_v11, %v20053_v6  ;;  %v20055_v46 = vmul.f32 %v28155_v55, %v19604_v42  ;;  %v19542_v1 = vmax.f32 %v19414_v12, 0.0  ;;  %v19477_v36 = vadd.f32 %v28385_v10, %v18509_v24 }
 0x643   : > { %v20118_v4 = vadd.f32 %v20117_v52, %v19991_v19  ;;  %v19992_v14 = vmul.f32 %v28172_v50, %v19541_v49  ;;  %v19544_v58 = vmax.f32 %v19416_v34, 0.0  ;;  %v19479_v38 = vadd.f32 %v28385_v10, %v18552_v37  ;;  %v18634_v20 = vpop.f32.mrb[100].mxu1 }
 0x644   : > { %v20182_v51 = vadd.f32 %v20181_v27, %v20054_v21  ;;  %v19993_v16 = vmul.f32 %v28183_v3, %v19542_v1  ;;  %v19605_v23 = vmax.f32 %v19477_v36, 0.0  ;;  %v19478_v17 = vadd.f32 %v28385_v10, %v18511_v29  ;;  %v18636_v57 = vpop.f32.mrb[101].mxu1 }
 0x645   : > { %v20119_v53 = vadd.f32 %v20118_v4, %v19992_v14  ;;  %v19994_v48 = vmul.f32 %v28175_v45, %v19543_v35  ;;  %v19607_v26 = vmax.f32 %v19479_v38, 0.0  ;;  %v19480_v55 = vadd.f32 %v28385_v10, %v18554_v39  ;;  %v18638_v8 = vpop.f32.mrb[102].mxu1 }
 0x646   : > { %v20183_v9 = vadd.f32 %v20182_v51, %v20055_v46  ;;  %v20056_v32 = vmul.f32 %v28172_v50, %v19605_v23  ;;  %v19606_v54 = vmax.f32 %v19478_v17, 0.0  ;;  %v18591_v43 = vpop.f32.mrb[100].mxu0  ;;  %v19419_v41 = vadd.f32 %v28360_v62, %v18634_v20  ;;  %v18640_v33 = vpop.f32.mrb[103].mxu1  ;;  %v30894_v51 = vld [vmem:[#allocation118_spill] sm:$0xff] }
 0x647   : > { %v20120_v2 = vadd.f32 %v20119_v53, %v19993_v16  ;;  %v19995_v30 = vmul.f32 %v28201_v31, %v19544_v58  ;;  %v19608_v47 = vmax.f32 %v19480_v55, 0.0  ;;  %v19417_v5 = vadd.f32 %v28360_v62, %v18591_v43  ;;  %v18593_v22 = vpop.f32.mrb[101].mxu0 }
 0x648   : > { %v20184_v15 = vadd.f32 %v20183_v9, %v20056_v32  ;;  %v20058_v7 = vmul.f32 %v28175_v45, %v19607_v26  ;;  %v20057_v13 = vmul.f32 %v28183_v3, %v19606_v54  ;;  %v19418_v50 = vadd.f32 %v28360_v62, %v18593_v22  ;;  %v18595_v44 = vpop.f32.mrb[102].mxu0 }
 0x649   : > { %v20121_v56 = vadd.f32 %v20120_v2, %v19994_v48  ;;  %v19545_v0 = vmax.f32 %v19417_v5, 0.0  ;;  %v19547_v19 = vmax.f32 %v19419_v41, 0.0  ;;  %v19420_v42 = vadd.f32 %v28360_v62, %v18636_v57  ;;  %v18597_v63 = vpop.f32.mrb[103].mxu0 }
 0x64a   : > { %v20185_v60 = vadd.f32 %v20184_v15, %v20057_v13  ;;  %v20059_v37 = vmul.f32 %v28201_v31, %v19608_v47  ;;  %v19546_v11 = vmax.f32 %v19418_v50, 0.0  ;;  %v19481_v21 = vadd.f32 %v28385_v10, %v18595_v44  ;;  %v30896_v50 = vld [vmem:[#allocation157_spill] sm:$0xff] }
 0x64b   : > { %v20122_v6 = vadd.f32 %v20121_v56, %v19995_v30  ;;  %v19996_v45 = vmul.f32 %v28218_v59, %v19545_v0  ;;  %v19548_v3 = vmax.f32 %v19420_v42, 0.0  ;;  %v19483_v12 = vadd.f32 %v28385_v10, %v18638_v8  ;;  %v18720_v27 = vpop.f32.mrb[104].mxu1 }
 0x64c   : > { %v20186_v24 = vadd.f32 %v20185_v60, %v20058_v7  ;;  %v19997_v39 = vmul.f32 %v28241_v40, %v19546_v11  ;;  %v19609_v52 = vmax.f32 %v19481_v21, 0.0  ;;  %v19482_v49 = vadd.f32 %v28385_v10, %v18597_v63  ;;  %v18722_v58 = vpop.f32.mrb[105].mxu1 }
 0x64d   : > { %v20123_v35 = vadd.f32 %v20122_v6, %v19996_v45  ;;  %v19998_v34 = vmul.f32 %v28221_v25, %v19547_v19  ;;  %v19611_v29 = vmax.f32 %v19483_v12, 0.0  ;;  %v19484_v31 = vadd.f32 %v28385_v10, %v18640_v33  ;;  %v18724_v48 = vpop.f32.mrb[106].mxu1  ;;  %v30897_v19 = vld [vmem:[#allocation168_spill] sm:$0xff] }
 0x64e   : > { %v20187_v46 = vadd.f32 %v20186_v24, %v20059_v37  ;;  %v20060_v1 = vmul.f32 %v28218_v59, %v19609_v52  ;;  %v19610_v36 = vmax.f32 %v19482_v49, 0.0  ;;  %v18677_v4 = vpop.f32.mrb[104].mxu0  ;;  %v19423_v14 = vadd.f32 %v28360_v62, %v18720_v27  ;;  %v18726_v32 = vpop.f32.mrb[107].mxu1 }
 0x64f   : > { %v20124_v38 = vadd.f32 %v20123_v35, %v19997_v39  ;;  %v19999_v16 = vmul.f32 %v30894_v51, %v19548_v3  ;;  %v19612_v23 = vmax.f32 %v19484_v31, 0.0  ;;  %v19421_v17 = vadd.f32 %v28360_v62, %v18677_v4  ;;  %v18679_v53 = vpop.f32.mrb[105].mxu0  ;;  %v30898_v39 = vld [vmem:[#allocation125_spill] sm:$0xff] }
 0x650   : > { %v20188_v26 = vadd.f32 %v20187_v46, %v20060_v1  ;;  %v20062_v55 = vmul.f32 %v28221_v25, %v19611_v29  ;;  %v20061_v20 = vmul.f32 %v28241_v40, %v19610_v36  ;;  %v19422_v59 = vadd.f32 %v28360_v62, %v18679_v53  ;;  %v18681_v9 = vpop.f32.mrb[106].mxu0  ;;  %v30895_v25 = vld [vmem:[#allocation165_spill] sm:$0xff] }
 0x651   : > { %v20125_v54 = vadd.f32 %v20124_v38, %v19998_v34  ;;  %v19549_v43 = vmax.f32 %v19421_v17, 0.0  ;;  %v19551_v41 = vmax.f32 %v19423_v14, 0.0  ;;  %v19424_v57 = vadd.f32 %v28360_v62, %v18722_v58  ;;  %v18683_v2 = vpop.f32.mrb[107].mxu0 }
 0x652   : > { %v20189_v30 = vadd.f32 %v20188_v26, %v20061_v20  ;;  %v20063_v47 = vmul.f32 %v30894_v51, %v19612_v23  ;;  %v19550_v5 = vmax.f32 %v19422_v59, 0.0  ;;  %v19485_v22 = vadd.f32 %v28385_v10, %v18681_v9 }
 0x653   : > { %v20126_v8 = vadd.f32 %v20125_v54, %v19999_v16  ;;  %v20000_v15 = vmul.f32 %v30895_v25, %v19549_v43  ;;  %v19552_v40 = vmax.f32 %v19424_v57, 0.0  ;;  %v19487_v7 = vadd.f32 %v28385_v10, %v18724_v48  ;;  %v18806_v37 = vpop.f32.mrb[108].mxu1  ;;  %v30900_v54 = vld [vmem:[#allocation127_spill] sm:$0xff] }
 0x654   : > { %v20190_v13 = vadd.f32 %v20189_v30, %v20062_v55  ;;  %v20001_v44 = vmul.f32 %v30896_v50, %v19550_v5  ;;  %v19613_v33 = vmax.f32 %v19485_v22, 0.0  ;;  %v19486_v56 = vadd.f32 %v28385_v10, %v18683_v2  ;;  %v18808_v12 = vpop.f32.mrb[109].mxu1  ;;  %v30899_v55 = vld [vmem:[#allocation163_spill] sm:$0xff]  ;;  %v30901_v30 = vld [vmem:[#allocation120_spill] sm:$0xff] }
 0x655   : > { %v20127_v0 = vadd.f32 %v20126_v8, %v20000_v15  ;;  %v20002_v42 = vmul.f32 %v30897_v19, %v19551_v41  ;;  %v19615_v63 = vmax.f32 %v19487_v7, 0.0  ;;  %v19488_v60 = vadd.f32 %v28385_v10, %v18726_v32  ;;  %v18810_v29 = vpop.f32.mrb[110].mxu1 }
 0x656   : > { %v20191_v11 = vadd.f32 %v20190_v13, %v20063_v47  ;;  %v20064_v21 = vmul.f32 %v30895_v25, %v19613_v33  ;;  %v19614_v6 = vmax.f32 %v19486_v56, 0.0  ;;  %v18763_v45 = vpop.f32.mrb[108].mxu0  ;;  %v19427_v3 = vadd.f32 %v28360_v62, %v18806_v37  ;;  %v18812_v4 = vpop.f32.mrb[111].mxu1  ;;  %v30902_v33 = vld [vmem:[#allocation119_spill] sm:$0xff] }
 0x657   : > { %v20128_v24 = vadd.f32 %v20127_v0, %v20001_v44  ;;  %v20003_v52 = vmul.f32 %v30898_v39, %v19552_v40  ;;  %v19616_v49 = vmax.f32 %v19488_v60, 0.0  ;;  %v19425_v35 = vadd.f32 %v28360_v62, %v18763_v45  ;;  %v18765_v34 = vpop.f32.mrb[109].mxu0 }
 0x658   : > { %v20192_v31 = vadd.f32 %v20191_v11, %v20064_v21  ;;  %v20066_v27 = vmul.f32 %v30897_v19, %v19615_v63  ;;  %v20065_v46 = vmul.f32 %v30896_v50, %v19614_v6  ;;  %v19426_v1 = vadd.f32 %v28360_v62, %v18765_v34  ;;  %v18767_v36 = vpop.f32.mrb[110].mxu0 }
 0x659   : > { %v20129_v14 = vadd.f32 %v20128_v24, %v20002_v42  ;;  %v19553_v58 = vmax.f32 %v19425_v35, 0.0  ;;  %v19555_v38 = vmax.f32 %v19427_v3, 0.0  ;;  %v19428_v51 = vadd.f32 %v28360_v62, %v18808_v12  ;;  %v18769_v16 = vpop.f32.mrb[111].mxu0 }
 0x65a   : > { %v20193_v23 = vadd.f32 %v20192_v31, %v20065_v46  ;;  %v20067_v17 = vmul.f32 %v30898_v39, %v19616_v49  ;;  %v19554_v53 = vmax.f32 %v19426_v1, 0.0  ;;  %v19489_v48 = vadd.f32 %v28385_v10, %v18767_v36 }
 0x65b   : > { %v20130_v26 = vadd.f32 %v20129_v14, %v20003_v52  ;;  %v20004_v20 = vmul.f32 %v30899_v55, %v19553_v58  ;;  %v19556_v59 = vmax.f32 %v19428_v51, 0.0  ;;  %v19491_v9 = vadd.f32 %v28385_v10, %v18810_v29  ;;  %v18892_v8 = vpop.f32.mrb[112].mxu1  ;;  %v30904_v14 = vld [vmem:[#allocation129_spill] sm:$0xff] }
 0x65c   : > { %v20194_v32 = vadd.f32 %v20193_v23, %v20066_v27  ;;  %v20005_v43 = vmul.f32 %v30900_v54, %v19554_v53  ;;  %v19617_v41 = vmax.f32 %v19489_v48, 0.0  ;;  %v19490_v57 = vadd.f32 %v28385_v10, %v18769_v16  ;;  %v18894_v50 = vpop.f32.mrb[113].mxu1  ;;  %v30903_v27 = vld [vmem:[#allocation131_spill] sm:$0xff]  ;;  %v30905_v23 = vld [vmem:[#allocation128_spill] sm:$0xff] }
 0x65d   : > { %v20131_v2 = vadd.f32 %v20130_v26, %v20004_v20  ;;  %v20006_v47 = vmul.f32 %v30901_v30, %v19555_v38  ;;  %v19619_v5 = vmax.f32 %v19491_v9, 0.0  ;;  %v19492_v22 = vadd.f32 %v28385_v10, %v18812_v4  ;;  %v18896_v63 = vpop.f32.mrb[114].mxu1 }
 0x65e   : > { %v20195_v25 = vadd.f32 %v20194_v32, %v20067_v17  ;;  %v20068_v15 = vmul.f32 %v30899_v55, %v19617_v41  ;;  %v19618_v40 = vmax.f32 %v19490_v57, 0.0  ;;  %v18849_v7 = vpop.f32.mrb[112].mxu0  ;;  %v19431_v13 = vadd.f32 %v28360_v62, %v18892_v8  ;;  %v18898_v45 = vpop.f32.mrb[115].mxu1  ;;  %v30906_v41 = vld [vmem:[#allocation135_spill] sm:$0xff] }
 0x65f   : > { %v20132_v44 = vadd.f32 %v20131_v2, %v20005_v43  ;;  %v20007_v56 = vmul.f32 %v30902_v33, %v19556_v59  ;;  %v19620_v0 = vmax.f32 %v19492_v22, 0.0  ;;  %v19429_v19 = vadd.f32 %v28360_v62, %v18849_v7  ;;  %v18851_v42 = vpop.f32.mrb[113].mxu0 }
 0x660   : > { %v20196_v60 = vadd.f32 %v20195_v25, %v20068_v15  ;;  %v20070_v37 = vmul.f32 %v30901_v30, %v19619_v5  ;;  %v20069_v11 = vmul.f32 %v30900_v54, %v19618_v40  ;;  %v19430_v21 = vadd.f32 %v28360_v62, %v18851_v42  ;;  %v18853_v6 = vpop.f32.mrb[114].mxu0 }
 0x661   : > { %v20133_v3 = vadd.f32 %v20132_v44, %v20006_v47  ;;  %v19557_v12 = vmax.f32 %v19429_v19, 0.0  ;;  %v19559_v24 = vmax.f32 %v19431_v13, 0.0  ;;  %v19432_v39 = vadd.f32 %v28360_v62, %v18894_v50  ;;  %v18855_v52 = vpop.f32.mrb[115].mxu0 }
 0x662   : > { %v20197_v49 = vadd.f32 %v20196_v60, %v20069_v11  ;;  %v20071_v35 = vmul.f32 %v30902_v33, %v19620_v0  ;;  %v19558_v34 = vmax.f32 %v19430_v21, 0.0  ;;  %v19493_v29 = vadd.f32 %v28385_v10, %v18853_v6 }
 0x663   : > { %v20134_v31 = vadd.f32 %v20133_v3, %v20007_v56  ;;  %v20008_v46 = vmul.f32 %v30903_v27, %v19557_v12  ;;  %v19560_v1 = vmax.f32 %v19432_v39, 0.0  ;;  %v19495_v36 = vadd.f32 %v28385_v10, %v18896_v63  ;;  %v18978_v26 = vpop.f32.mrb[116].mxu1  ;;  %v30908_v3 = vld [vmem:[#allocation65_spill] sm:$0xff] }
 0x664   : > { %v20198_v4 = vadd.f32 %v20197_v49, %v20070_v37  ;;  %v20009_v58 = vmul.f32 %v30904_v14, %v19558_v34  ;;  %v19621_v38 = vmax.f32 %v19493_v29, 0.0  ;;  %v19494_v51 = vadd.f32 %v28385_v10, %v18855_v52  ;;  %v18980_v54 = vpop.f32.mrb[117].mxu1  ;;  %v30907_v37 = vld [vmem:[#allocation169_spill] sm:$0xff]  ;;  %v30909_v49 = vld [vmem:[#allocation62_spill] sm:$0xff] }
 0x665   : > { %v20135_v16 = vadd.f32 %v20134_v31, %v20008_v46  ;;  %v20010_v17 = vmul.f32 %v30905_v23, %v19559_v24  ;;  %v19623_v53 = vmax.f32 %v19495_v36, 0.0  ;;  %v19496_v48 = vadd.f32 %v28385_v10, %v18898_v45  ;;  %v18982_v5 = vpop.f32.mrb[118].mxu1 }
 0x666   : > { %v20199_v55 = vadd.f32 %v20198_v4, %v20071_v35  ;;  %v20072_v20 = vmul.f32 %v30903_v27, %v19621_v38  ;;  %v19622_v59 = vmax.f32 %v19494_v51, 0.0  ;;  %v18935_v9 = vpop.f32.mrb[116].mxu0  ;;  %v19435_v32 = vadd.f32 %v28360_v62, %v18978_v26  ;;  %v18984_v7 = vpop.f32.mrb[119].mxu1  ;;  %v30910_v38 = vld [vmem:[#allocation96_spill] sm:$0xff] }
 0x667   : > { %v20136_v43 = vadd.f32 %v20135_v16, %v20009_v58  ;;  %v20011_v57 = vmul.f32 %v30906_v41, %v19560_v1  ;;  %v19624_v2 = vmax.f32 %v19496_v48, 0.0  ;;  %v19433_v30 = vadd.f32 %v28360_v62, %v18935_v9  ;;  %v18937_v47 = vpop.f32.mrb[117].mxu0  ;;  %v30911_v48 = vld [vmem:[#allocation139_spill] sm:$0xff] }
 0x668   : > { %v20200_v22 = vadd.f32 %v20199_v55, %v20072_v20  ;;  %v20074_v8 = vmul.f32 %v30905_v23, %v19623_v53  ;;  %v20073_v25 = vmul.f32 %v30904_v14, %v19622_v59  ;;  %v19434_v15 = vadd.f32 %v28360_v62, %v18937_v47  ;;  %v18939_v40 = vpop.f32.mrb[118].mxu0 }
 0x669   : > { %v20137_v13 = vadd.f32 %v20136_v43, %v20010_v17  ;;  %v19561_v50 = vmax.f32 %v19433_v30, 0.0  ;;  %v19563_v44 = vmax.f32 %v19435_v32, 0.0  ;;  %v19436_v33 = vadd.f32 %v28360_v62, %v18980_v54  ;;  %v18941_v56 = vpop.f32.mrb[119].mxu0 }
 0x66a   : > { %v20201_v0 = vadd.f32 %v20200_v22, %v20073_v25  ;;  %v20075_v19 = vmul.f32 %v30906_v41, %v19624_v2  ;;  %v19562_v42 = vmax.f32 %v19434_v15, 0.0  ;;  %v19497_v63 = vadd.f32 %v28385_v10, %v18939_v40  ;;  %v30915_v40 = vld [vmem:[#allocation147_spill] sm:$0xff] }
 0x66b   : > { %v20138_v60 = vadd.f32 %v20137_v13, %v20011_v57  ;;  %v20012_v11 = vmul.f32 %v30907_v37, %v19561_v50  ;;  %v19564_v21 = vmax.f32 %v19436_v33, 0.0  ;;  %v19499_v6 = vadd.f32 %v28385_v10, %v18982_v5  ;;  %v19064_v31 = vpop.f32.mrb[120].mxu1  ;;  %v30916_v33 = vld [vmem:[#allocation149_spill] sm:$0xff] }
 0x66c   : > { %v20202_v45 = vadd.f32 %v20201_v0, %v20074_v8  ;;  %v20013_v12 = vmul.f32 %v30908_v3, %v19562_v42  ;;  %v19625_v24 = vmax.f32 %v19497_v63, 0.0  ;;  %v19498_v39 = vadd.f32 %v28385_v10, %v18941_v56  ;;  %v19066_v14 = vpop.f32.mrb[121].mxu1  ;;  %v30917_v63 = vld [vmem:[#allocation145_spill] sm:$0xff] }
 0x66d   : > { %v20139_v52 = vadd.f32 %v20138_v60, %v20012_v11  ;;  %v20014_v35 = vmul.f32 %v30909_v49, %v19563_v44  ;;  %v19627_v34 = vmax.f32 %v19499_v6, 0.0  ;;  %v19500_v29 = vadd.f32 %v28385_v10, %v18984_v7  ;;  %v19068_v53 = vpop.f32.mrb[122].mxu1 }
 0x66e   : > { %v20203_v27 = vadd.f32 %v20202_v45, %v20075_v19  ;;  %v20076_v46 = vmul.f32 %v30907_v37, %v19625_v24  ;;  %v19626_v1 = vmax.f32 %v19498_v39, 0.0  ;;  %v19021_v36 = vpop.f32.mrb[120].mxu0  ;;  %v19439_v4 = vadd.f32 %v28360_v62, %v19064_v31  ;;  %v19070_v43 = vpop.f32.mrb[123].mxu1 }
 0x66f   : > { %v20140_v58 = vadd.f32 %v20139_v52, %v20013_v12  ;;  %v20015_v51 = vmul.f32 %v30910_v38, %v19564_v21  ;;  %v19628_v16 = vmax.f32 %v19500_v29, 0.0  ;;  %v19437_v23 = vadd.f32 %v28360_v62, %v19021_v36  ;;  %v19023_v17 = vpop.f32.mrb[121].mxu0 }
 0x670   : > { %v30912_v26 = vshra.s32 %v30911_v48, 8  ;;  %v20204_v20 = vadd.f32 %v20203_v27, %v20076_v46  ;;  %v20078_v59 = vmul.f32 %v30909_v49, %v19627_v34  ;;  %v20077_v9 = vmul.f32 %v30908_v3, %v19626_v1  ;;  %v19025_v54 = vpop.f32.mrb[122].mxu0  ;;  %v30918_v49 = vld [vmem:[#allocation154_spill] sm:$0xff] }
 0x671   : > { %v19438_v32 = vadd.f32 %v28360_v62, %v19023_v17  ;;  %v20141_v41 = vadd.f32 %v20140_v58, %v20014_v35  ;;  %v19565_v57 = vmax.f32 %v19437_v23, 0.0  ;;  %v19567_v2 = vmax.f32 %v19439_v4, 0.0  ;;  %v19027_v47 = vpop.f32.mrb[123].mxu0  ;;  %v30919_v46 = vld [vmem:[#allocation54_spill] sm:$0xff] }
 0x672   : > { %vm28721_vm7 = vcmp.lt.s32.totalorder %v30912_v26, 11  ;;  %v19440_v30 = vadd.f32 %v28360_v62, %v19066_v14  ;;  %v20205_v5 = vadd.f32 %v20204_v20, %v20077_v9  ;;  %v20079_v22 = vmul.f32 %v30910_v38, %v19628_v16 }
 0x673   : > { %v19566_v8 = vmax.f32 %v19438_v32, 0.0  ;;  %v19501_v25 = vadd.f32 %v28385_v10, %v19025_v54  ;;  %v20142_v15 = vadd.f32 %v20141_v41, %v20015_v51  ;;  %v20016_v7 = vmul.f32 %v30915_v40, %v19565_v57  ;;  %v19150_v21 = vpop.f32.mrb[124].mxu1  ;;  %v30923_v54 = vld [vmem:[#allocation152_spill] sm:$0xff]  ;;  %v30925_v41 = vld [vmem:[#allocation103_spill] sm:$0xff] }
 0x674   : > { %v19568_v13 = vmax.f32 %v19440_v30, 0.0  ;;  %v19503_v50 = vadd.f32 %v28385_v10, %v19068_v53  ;;  %v20206_v44 = vadd.f32 %v20205_v5, %v20078_v59  ;;  %v19502_v19 = vadd.f32 %v28385_v10, %v19027_v47  ;;  %v19152_v39 = vpop.f32.mrb[125].mxu1  ;;  %v30926_v5 = vld [vmem:[#allocation109_spill] sm:$0xff] }
 0x675   : > { %v20017_v56 = vmul.f32 %v30916_v33, %v19566_v8  ;;  %v19629_v0 = vmax.f32 %v19501_v25, 0.0  ;;  %v20143_v42 = vadd.f32 %v20142_v15, %v20016_v7  ;;  %v20018_v60 = vmul.f32 %v30917_v63, %v19567_v2  ;;  %v19154_v27 = vpop.f32.mrb[126].mxu1 }
 0x676   : > { %v19631_v37 = vmax.f32 %v19503_v50, 0.0  ;;  %v19504_v11 = vadd.f32 %v28385_v10, %v19070_v43  ;;  %v20207_v6 = vadd.f32 %v20206_v44, %v20079_v22  ;;  %v19630_v3 = vmax.f32 %v19502_v19, 0.0  ;;  %v19107_v12 = vpop.f32.mrb[124].mxu0  ;;  %v19156_v16 = vpop.f32.mrb[127].mxu1 }
 0x677   : > { %v20080_v45 = vmul.f32 %v30915_v40, %v19629_v0  ;;  %v19443_v24 = vadd.f32 %v28360_v62, %v19150_v21  ;;  %v20144_v52 = vadd.f32 %v20143_v42, %v20017_v56  ;;  %v20019_v35 = vmul.f32 %v30918_v49, %v19568_v13  ;;  %v19109_v31 = vpop.f32.mrb[125].mxu0  ;;  %v30927_v42 = vld [vmem:[#allocation104_spill] sm:$0xff] }
 0x678   : > { %v19632_v34 = vmax.f32 %v19504_v11, 0.0  ;;  %v19441_v29 = vadd.f32 %v28360_v62, %v19107_v12  ;;  %v30920_v1 = vshra.s32 %v30919_v46, 8  ;;  %v20082_v14 = vmul.f32 %v30917_v63, %v19631_v37  ;;  %v19111_v51 = vpop.f32.mrb[126].mxu0 }
 0x679   : > { %v20208_v4 = vadd.f32 %v20207_v6, %v20080_v45  ;;  %v20081_v58 = vmul.f32 %v30916_v33, %v19630_v3  ;;  %v19442_v38 = vadd.f32 %v28360_v62, %v19109_v31  ;;  %v20145_v23 = vadd.f32 %v20144_v52, %v20018_v60  ;;  %v19113_v26 = vpop.f32.mrb[127].mxu0  ;;  %v30928_v45 = vld [vmem:[#allocation107_spill] sm:$0xff] }
 0x67a   : > { %vm28743_vm8 = vcmp.lt.s32.totalorder %v30920_v1, 11  ;;  %v19569_v17 = vmax.f32 %v19441_v29, 0.0  ;;  %v19571_v53 = vmax.f32 %v19443_v24, 0.0  ;;  %v19444_v48 = vadd.f32 %v28360_v62, %v19152_v39 }
 0x67b   : > { %v20209_v20 = vadd.f32 %v20208_v4, %v20081_v58  ;;  %v20083_v59 = vmul.f32 %v30918_v49, %v19632_v34  ;;  %v19570_v9 = vmax.f32 %v19442_v38, 0.0  ;;  %v19505_v32 = vadd.f32 %v28385_v10, %v19111_v51  ;;  %v19236_v13 = vpop.f32.mrb[128].mxu1 }
 0x67c   : > { %vm30924_vm4 = vnez %v30923_v54  ;;  %v20146_v43 = vadd.f32 %v20145_v23, %v20019_v35  ;;  %v20020_v57 = vmul.f32 %v30925_v41, %v19569_v17  ;;  %v19572_v2 = vmax.f32 %v19444_v48, 0.0  ;;  %v19238_v19 = vpop.f32.mrb[129].mxu1 }
 0x67d   : > { %vm19831_vm3 = vmand %vm28721_vm7, %vm30924_vm4  ;;  %v19507_v30 = vadd.f32 %v28385_v10, %v19154_v27  ;;  %v20210_v47 = vadd.f32 %v20209_v20, %v20082_v14  ;;  %v20021_v22 = vmul.f32 %v30926_v5, %v19570_v9  ;;  %v19633_v8 = vmax.f32 %v19505_v32, 0.0  ;;  %v19240_v6 = vpop.f32.mrb[130].mxu1  ;;  %v30929_v14 = vld [vmem:[#allocation102_spill] sm:$0xff] }
 0x67e   : > { %v19506_v25 = vadd.f32 %v28385_v10, %v19113_v26  ;;  %v20147_v15 = vadd.f32 %v20146_v43, %v20020_v57  ;;  %v19508_v7 = vadd.f32 %v28385_v10, %v19156_v16  ;;  %v20953_v55 = vsel %vm19831_vm3, 1.0, %v30612_v18  ;;  %v19193_v56 = vpop.f32.mrb[128].mxu0  ;;  %v19242_v49 = vpop.f32.mrb[131].mxu1 }
 0x67f   : > { %v19635_v40 = vmax.f32 %v19507_v30, 0.0  ;;  %v20211_v50 = vadd.f32 %v20210_v47, %v20083_v59  ;;  %v20084_v44 = vmul.f32 %v30925_v41, %v19633_v8  ;;  %v19447_v0 = vadd.f32 %v28360_v62, %v19236_v13  ;;  %v19195_v21 = vpop.f32.mrb[129].mxu0 }
 0x680   : > { %v19634_v33 = vmax.f32 %v19506_v25, 0.0  ;;  %v20022_v63 = vmul.f32 %v30927_v42, %v19571_v53  ;;  %v20148_v60 = vadd.f32 %v20147_v15, %v20021_v22  ;;  %v19636_v37 = vmax.f32 %v19508_v7, 0.0  ;;  %v19197_v52 = vpop.f32.mrb[130].mxu0 }
 0x681   : > { %v19445_v11 = vadd.f32 %v28360_v62, %v19193_v56  ;;  %v20023_v3 = vmul.f32 %v30928_v45, %v19572_v2  ;;  %v20212_v12 = vadd.f32 %v20211_v50, %v20084_v44  ;;  %v19446_v39 = vadd.f32 %v28360_v62, %v19195_v21  ;;  %v19199_v27 = vpop.f32.mrb[131].mxu0  ;;  %v19963_v50 = vld [vmem:[#allocation3 + $0x8] sm:$0xff] }
 0x682   : > { %v20085_v24 = vmul.f32 %v30926_v5, %v19634_v33  ;;  %v20149_v35 = vadd.f32 %v20148_v60, %v20022_v63  ;;  %v20086_v34 = vmul.f32 %v30927_v42, %v19635_v40  ;;  %v19448_v31 = vadd.f32 %v28360_v62, %v19238_v19  ;;  %v20234_v19 = vld [vmem:[%s28897_s5] sm:$0xff]  ;;  %v20235_v60 = vld [vmem:[%s28897_s5 + $0x8] sm:$0xff] }
 0x683   : > { %v19573_v29 = vmax.f32 %v19445_v11, 0.0  ;;  %v19575_v1 = vmax.f32 %v19447_v0, 0.0  ;;  %v19574_v4 = vmax.f32 %v19446_v39, 0.0  ;;  %vm30930_vm6 = vnez %v30929_v14  ;;  %v20258_v42 = vld [vmem:[%s28899_s7] sm:$0xff] }
 0x684   : > { %v20213_v46 = vadd.f32 %v20212_v12, %v20085_v24  ;;  %vm19833_vm0 = vmand %vm28743_vm8, %vm30930_vm6  ;;  %v19509_v58 = vadd.f32 %v28385_v10, %v19197_v52  ;;  %v20150_v38 = vadd.f32 %v20149_v35, %v20023_v3  ;;  %v20087_v51 = vmul.f32 %v30928_v45, %v19636_v37  ;;  %v20259_v37 = vld [vmem:[%s28899_s7 + $0x8] sm:$0xff]  ;;  %v20269_v14 = vld [vmem:[%s28900_s8] sm:$0x1] }
 0x685   : > { %v20024_v16 = vmul.f32 %v28534_v28, %v19573_v29  ;;  %v19511_v23 = vadd.f32 %v28385_v10, %v19240_v6  ;;  %v20025_v62 = vmul.f32 %v20953_v55, %v19574_v4  ;;  %v19510_v48 = vadd.f32 %v28385_v10, %v19199_v27  ;;  %v20255_v4 = vld [vmem:[%s28898_s6] sm:$0x1] }
 0x686   : > { %v20214_v17 = vadd.f32 %v20213_v46, %v20086_v34  ;;  %v19637_v53 = vmax.f32 %v19509_v58, 0.0  ;;  %v19576_v20 = vmax.f32 %v19448_v31, 0.0  ;;  %v20955_v59 = vsel %vm19833_vm0, 1.0, %v30612_v18 }
 0x687   : > { %v20151_v26 = vadd.f32 %v20150_v38, %v20024_v16  ;;  %v19512_v36 = vadd.f32 %v28385_v10, %v19242_v49  ;;  %v19639_v54 = vmax.f32 %v19511_v23, 0.0  ;;  %v19638_v43 = vmax.f32 %v19510_v48, 0.0 }
 0x688   : > { %v20215_v9 = vadd.f32 %v20214_v17, %v20087_v51  ;;  %v20088_v32 = vmul.f32 %v28534_v28, %v19637_v53  ;;  %v20026_v41 = vmul.f32 %v28539_v61, %v19575_v1  ;;  %v20027_v5 = vmul.f32 %v20955_v59, %v19576_v20  ;;  %v19962_v28 = vld [vmem:[#allocation3] sm:$0xff] }
 0x689   : > { %v20152_v57 = vadd.f32 %v20151_v26, %v20025_v62  ;;  %v20089_v30 = vmul.f32 %v20953_v55, %v19638_v43  ;;  %v19640_v47 = vmax.f32 %v19512_v36, 0.0  ;;  %v20090_v8 = vmul.f32 %v28539_v61, %v19639_v54 }
 0x68a   : > { %v20216_v2 = vadd.f32 %v20215_v9, %v20088_v32 }
 0x68b   : > { %v20153_v22 = vadd.f32 %v20152_v57, %v20026_v41  ;;  %v20091_v18 = vmul.f32 %v20955_v59, %v19640_v47 }
 0x68c   : > { %v20217_v25 = vadd.f32 %v20216_v2, %v20089_v30 }
 0x68d   : > { %v20154_v15 = vadd.f32 %v20153_v22, %v20027_v5 }
 0x68e   : > { %v20218_v40 = vadd.f32 %v20217_v25, %v20090_v8 }
 0x68f   : > { %20155 = vadd.xlane.f32.xlu0 %v20154_v15 }
 0x690   : > { %v20219_v10 = vadd.f32 %v20218_v40, %v20091_v18 }
 0x692   : > { %20220 = vadd.xlane.f32.xlu1 %v20219_v10 }
 0x71c   : > { %v20156_v7 = vpop.xlane.xlu0 %20155 }
 0x71d   : > { %v20222_v13 = vadd.f32 %v20156_v7, %v19962_v28 }
 0x71f   : > { %20225 = vst.msk [vmem:[#allocation3] sm:$0xff] %vm30931_vm1, %v20222_v13  ;;  %v20221_v44 = vpop.xlane.xlu1 %20220 }
 0x720   : > { %v20223_v55 = vadd.f32 %v20221_v44, %v19963_v50 }
 0x722   : > { %20226 = vst.msk [vmem:[#allocation3 + $0x8] sm:$0xff] %vm30932_vm12, %v20223_v55 }
 0x726   : > { %v20230_v33 = vld [vmem:[#allocation3] sm:$0xff] }
 0x727   : > { %v20232_v56 = vmul.f32 0.00045228403, %v20230_v33 }
 0x729   : > { %20238 = vperm.xlu0 %22050, %v20232_v56   ;;  %v20231_v61 = vld [vmem:[#allocation3 + $0x8] sm:$0xff] }
 0x72a   : > { %v20233_v0 = vmul.f32 0.00045228403, %v20231_v61 }
 0x72c   : > { %20243 = vperm.xlu1 %22051, %v20233_v0  }
 0x7a8   : > { %v20239_v63 = vpop.permute.xlu0 %20238 }
 0x7a9   : > { %v20246_v21 = vmul.f32 %v20239_v63, %v20234_v19  ;;  %v20260_v6 = vmul.f32 %v20258_v42, %v20239_v63 }
 0x7ab   : > { %v20244_v11 = vpop.permute.xlu1 %20243 }
 0x7ac   : > { %v20247_v45 = vmul.f32 %v20244_v11, %v20235_v60  ;;  %v20261_v3 = vmul.f32 %v20259_v37, %v20244_v11 }
 0x7ae   : > { %v20248_v12 = vadd.f32 %v20247_v45, %v20246_v21  ;;  %v20262_v24 = vadd.f32 %v20261_v3, %v20260_v6 }
 0x7b0   : > { %v20249_v39 = vrot.slane %v20248_v12, 4  ;;  %v20263_v52 = vrot.slane %v20262_v24, 4 }
 0x7b2   : > { %v20250_v49 = vadd.f32 %v20249_v39, %v20248_v12  ;;  %v20264_v35 = vadd.f32 %v20263_v52, %v20262_v24 }
 0x7b4   : > { %v20251_v34 = vrot.slane %v20250_v49, 2  ;;  %v20265_v29 = vrot.slane %v20264_v35, 2 }
 0x7b6   : > { %v20252_v31 = vadd.f32 %v20251_v34, %v20250_v49  ;;  %v20266_v27 = vadd.f32 %v20265_v29, %v20264_v35 }
 0x7b8   : > { %v20253_v46 = vrot.slane %v20252_v31, 1  ;;  %v20267_v1 = vrot.slane %v20266_v27, 1 }
 0x7ba   : > { %v20254_v58 = vadd.f32 %v20253_v46, %v20252_v31  ;;  %v20268_v38 = vadd.f32 %v20267_v1, %v20266_v27 }
 0x7bc   : > { %v20256_v51 = vadd.f32 %v20255_v4, %v20254_v58  ;;  %v20270_v16 = vadd.f32 %v20269_v14, %v20268_v38 }
 0x7be   : > { %20257 = vst [vmem:[%s377_s27] sm:$0x1] %v20256_v51  ;;  %20271 = vst [vmem:[%s383_s12] sm:$0x1] %v20270_v16 }
 0x7bf   : > { %22178 = shalt.err (!%p22175_p5)
}
 0x7c0   : > { %s22179_s22 = scalar_lea.hbm %s28815_s16, 16  ;;  %s22183_s28 = scalar_lea.hbm %s28901_s9, 32 }
 0x7c1   : > { %p22180_p6 = scmp.ne.s32.totalorder %s28815_s16, %s22179_s22  ;;  %p22184_p10 = scmp.lt.u32.totalorder %s28815_s16, %s28901_s9 }
 0x7c2   : > { %p22185_p11 = scmp.lt.u32.totalorder %s22183_s28, %s22179_s22  ;;  %p22187_p13 = scmp.lt.u32.totalorder %s22179_s22, %s28815_s16 }
 0x7c3   : > { %p22181_p7 = pnand %p22180_p6, %p22379_p4 }
 0x7c4   : > { %p22186_p12 = por %p22185_p11, %p22184_p10 }
 0x7c5   : > { %p22182_p9 = pneg %p22181_p7 }
 0x7c6   : > { %p22188_p0 = por %p22187_p13, %p22186_p12 }
 0x7c8   : > { %p22189_p1 = pnand %p22188_p0, %p22182_p9 }
 0x7ca   : > { %22192 = shalt.err (!%p22189_p1)
}
 0x7cb   : > { %21985 = dma.vmem_to_hbm [thread:$0]  (%p22379_p4), %s28817_s30, 16, %s28815_s16, %s20273_s11  }
 0x7cc   : > { %s20277_s3 = scalar_lea.sflag [#allocation7], %s28801_s20  ;;  %s22193_s0 = scalar_lea.vmem %s28824_s19, 16 }
 0x7cd   : > { %p22194_p2 = scmp.ne.s32.totalorder %s28824_s19, %s22193_s0  ;;  %s22283_s1 = smov [#allocation6]  }
 0x7ce   : > { %s22197_s22 = sshll.u32 %s22283_s1, 4  ;;  %s22198_s22 = int_to_ptr.vmem [resolvable:$false] %s22197_s22 }
 0x7cf   : > { %p22195_p3 = pnand %p22194_p2, %p22379_p4  ;;  %s22199_s27 = scalar_lea.vmem %s22198_s22, 32 }
 0x7d0   : > { %p22200_p6 = scmp.lt.s32.totalorder %s28824_s19, %s22198_s22  ;;  %p22201_p7 = scmp.lt.s32.totalorder %s22199_s27, %s22193_s0 }
 0x7d1   : > { %p22196_p5 = pneg %p22195_p3 }
 0x7d2   : > { %p22202_p9 = por %p22201_p7, %p22200_p6 }
 0x7d4   : > { %p22203_p10 = pnand %p22202_p9, %p22196_p5 }
 0x7d6   : > { %22206 = shalt.err (!%p22203_p10)
}
 0x7d7   : > { %s22207_s20 = scalar_lea.hbm %s28822_s29, 16  ;;  %s22211_s11 = scalar_lea.hbm %s28902_s10, 32 }
 0x7d8   : > { %p22208_p11 = scmp.ne.s32.totalorder %s28822_s29, %s22207_s20  ;;  %p22212_p0 = scmp.lt.u32.totalorder %s28822_s29, %s28902_s10 }
 0x7d9   : > { %p22213_p1 = scmp.lt.u32.totalorder %s22211_s11, %s22207_s20  ;;  %p22215_p3 = scmp.lt.u32.totalorder %s22207_s20, %s28822_s29 }
 0x7da   : > { %p22209_p12 = pnand %p22208_p11, %p22379_p4 }
 0x7db   : > { %p22214_p2 = por %p22213_p1, %p22212_p0 }
 0x7dc   : > { %p22210_p13 = pneg %p22209_p12 }
 0x7dd   : > { %p22216_p5 = por %p22215_p3, %p22214_p2 }
 0x7df   : > { %p22217_p6 = pnand %p22216_p5, %p22210_p13 }
 0x7e1   : > { %22220 = shalt.err (!%p22217_p6)
}
 0x7e2   : > { %21986 = dma.vmem_to_hbm [thread:$0]  (%p22379_p4), %s28824_s19, 16, %s28822_s29, %s20277_s3  }
 0x7e3 PF: > { %p21996_p7 = scmp.ge.s32.totalorder %s22275_s18, 2  ;;  %s20314_s24 = sand.u32 1, %s22255_s13  }
 0x7e4   : > { %s20315_s2 = scalar_lea.sflag [#allocation5], %s20314_s24 }
 0x7e5   : > { %p21990_p9 = pnand %p21996_p7, %p22386_p8 }
 0x7e7   : > { %22246 = dma.done.wait (!%p21990_p9), %s20315_s2, 16  }
 0x7e8   : > { %22248 = vsyncadd (!%p21990_p9), %s20315_s2, 4294967280  ;;  %s20323_s0 = scalar_lea.sflag [#allocation7], %s20314_s24 }
 0x7e9   : > { %22250 = dma.done.wait (!%p21990_p9), %s20323_s0, 16  }
 0x7ea   : > { %22252 = vsyncadd (!%p21990_p9), %s20323_s0, 4294967280  ;;  %s27_s18 = sadd.s32 1, %s22275_s18   ;;  %s30933_s13 = smov %s22259_s14 }
 0x7eb   : > { %p24_p10 = scmp.ge.s32.totalorder %s27_s18, 4   ;;  %s30934_s14 = smov %s22263_s15 }
 0x7ec   : > { %s30935_s15 = smov %s22392_s26  ;;  %s30936_s16 = smov %s22271_s17 }
 0x7ed   : > { %s30937_s17 = smov %s30939_s21  ;;  %26 = sbr.rel (!%p24_p10) target bundleno = 11 (0xb), region = 124 }
 0x7f4   :  { %20327 = vsyncpa [#allocation5], 1 }
 0x7f5   :  { %20329 = vsyncpa [#allocation5 + $0x1], 1 }
 0x7f6   :  { %20330 = vsyncpa [#allocation7], 1 }
 0x7f7   :  { %20332 = vsyncpa [#allocation7 + $0x1], 1 }

</bundles_post_ra>
